<compile_context>
chip_gen: v7x
topology: tpu7x:2x2x1
jax: 0.10.0
libtpu: 0.0.40
codegen_flags: <defaults>
</compile_context>

<pallas_src>
import jax
import jax.numpy as jnp
from jax import lax
from jax.experimental import pallas as pl
from jax.experimental.pallas import tpu as pltpu


def _round_up(x, m):
    return ((x + m - 1) // m) * m


def _lane(n):
    return max(_round_up(n, 128), 128)


def attention_kernel(pq_ref, u_ref, pm_ref, mem_ref, bias_ref, wloc_ref, v_ref,
                     ctx_ref, attw_ref, e_scr, m_scr, l_scr, acc_scr):
    # Block shapes:
    #   pq_ref   (BB, A)       query projection (constant over T tiles)
    #   u_ref    (BB, TT, J)   im2col unfold of attention_weights_cat, J = 2K
    #   pm_ref   (BB, TT, A)   processed_memory (natural layout, A on lanes)
    #   mem_ref  (BB, TT, Ep)  encoder memory
    #   bias_ref (BB, TT)      additive mask bias (0 or -1e30)
    #   wloc_ref (J, A)        folded location conv + dense weight
    #   v_ref    (1, A)        energy projection vector
    # Outputs (written once, at the last T tile):
    #   ctx_ref  (BB, Ep), attw_ref (BB, Tp)   lane/sublane dense
    # Scratch (persists across the T-tile axis):
    #   e_scr (BB, Tp)  raw energies;  m/l (BB,1) running max / denom;
    #   acc_scr (BB, Ep) unnormalized context.
    t = pl.program_id(1)
    nt = pl.num_programs(1)
    BB, TT, J = u_ref.shape
    A = wloc_ref.shape[1]

    @pl.when(t == 0)
    def _init():
        m_scr[...] = jnp.full_like(m_scr, -jnp.inf)
        l_scr[...] = jnp.zeros_like(l_scr)
        acc_scr[...] = jnp.zeros_like(acc_scr)

    # Location conv + dense as ONE stationary-weight MXU matmul:
    # (BB*TT, J) @ (J, A). The reshape merges the leading dim with the sublane
    # dim (TT is a multiple of 8) so it is layout-preserving.
    u2 = u_ref[...].reshape(BB * TT, J).astype(jnp.float32)
    loc = jnp.dot(u2, wloc_ref[...], preferred_element_type=jnp.float32)
    loc = loc.reshape(BB, TT, A)

    # tanh(W_q q + location + processed_memory); pq broadcasts along T
    # (cheap sublane broadcast, A stays on the lane axis).
    s = jnp.tanh(pq_ref[...][:, None, :] + loc +
                 pm_ref[...].astype(jnp.float32))                    # (BB,TT,A)

    # energies = v . s : VPU multiply + lane reduce over A (keeps the MXU free,
    # avoids an M=1 matmul), then the additive mask bias.
    e = jnp.sum(s * v_ref[...][None, :, :], axis=-1) + bias_ref[...]  # (BB,TT)

    # Stash raw energies (aligned dynamic lane-offset store) so the exact,
    # lane-dense softmax can be written once at the end.
    off = pl.multiple_of(t * TT, TT)
    e_scr[:, pl.ds(off, TT)] = e

    # Online (flash-style) softmax accumulation of the context over T tiles.
    m_prev = m_scr[...]
    m_new = jnp.maximum(m_prev, jnp.max(e, axis=-1, keepdims=True))   # (BB,1)
    alpha = jnp.exp(m_prev - m_new)
    p = jnp.exp(e - m_new)                                            # (BB,TT)
    l_scr[...] = alpha * l_scr[...] + jnp.sum(p, axis=-1, keepdims=True)
    ctx_part = jnp.einsum(
        "bxt,bte->bxe", p[:, None, :].astype(mem_ref.dtype), mem_ref[...],
        preferred_element_type=jnp.float32)[:, 0, :]                  # (BB,Ep)
    acc_scr[...] = alpha * acc_scr[...] + ctx_part
    m_scr[...] = m_new

    @pl.when(t == nt - 1)
    def _finalize():
        inv_l = 1.0 / l_scr[...]
        ctx_ref[...] = (acc_scr[...] * inv_l).astype(ctx_ref.dtype)
        attw_ref[...] = (jnp.exp(e_scr[...] - m_scr[...]) * inv_l
                         ).astype(attw_ref.dtype)


def _vmem_footprint(BB, TT, Tp, A, Ep, J):
    """Rough f32 VMEM estimate: double-buffered streams + outputs + scratch +
    in-kernel temporaries (loc, s, p), using physical lane-padded widths."""
    f = 4
    streams = 2 * f * BB * TT * (_lane(J) + _lane(A) + _lane(Ep) + 1)
    consts = 2 * f * (BB * _lane(A) + 16 * _lane(A))
    outs = 2 * f * BB * (_lane(Ep) + Tp)
    scratch = f * BB * (Tp + _lane(Ep) + 2 * 128)
    temps = f * BB * TT * (2 * _lane(A) + 4)
    return streams + consts + outs + scratch + temps


def attention_forward(params, query, memory, processed_memory,
                      attention_weights_cat, mask, *,
                      block_b=None, block_t=None, stream_dtype=jnp.float32):
    wq, wconv, wd, v = params["wq"], params["wconv"], params["wd"], params["v"]
    f32 = jnp.float32
    query = query.astype(f32)
    memory = memory.astype(f32)
    processed_memory = processed_memory.astype(f32)
    attention_weights_cat = attention_weights_cat.astype(f32)

    B, T, E = memory.shape
    R, A = wq.shape
    F_, C, K = wconv.shape
    conv_pad = (K - 1) // 2
    J = C * K

    Tp = _round_up(T, 128)
    Ep = _round_up(E, 128)

    # ---- generation-aware VMEM budget -------------------------------------
    try:
        vmem_cap = int(pltpu.get_tpu_info().vmem_capacity_bytes)
    except Exception:
        vmem_cap = 64 * 1024 * 1024                  # v7x-safe fallback
    vmem_limit = max(32 * 1024 * 1024,
                     min(int(vmem_cap * 0.75), 100 * 1024 * 1024))
    budget = vmem_limit - 6 * 1024 * 1024            # headroom for Mosaic

    # ---- tile selection -----------------------------------------------------
    Bcap = _round_up(B, 8)
    if block_b is None:
        BB = min(128, Bcap)
        if Bcap >= 16:
            # keep >= 2 batch grid steps so both v7x TensorCores get work
            BB = min(BB, max(8, (Bcap // 2) // 8 * 8))
    else:
        BB = block_b
    if block_t is None:
        TT = min(512, Tp)
        while Tp % TT:
            TT //= 2
        while TT > 128 and _vmem_footprint(BB, TT, Tp, A, Ep, J) > budget:
            TT //= 2
    else:
        TT = block_t
    if block_b is None:
        while BB > 8 and _vmem_footprint(BB, TT, Tp, A, Ep, J) > budget:
            BB = max(8, (BB // 2) // 8 * 8)
    Bp = _round_up(B, BB)

    # ---- hoisted / folded weight prep (tiny XLA ops) ------------------------
    # Query projection hoisted out of the kernel: (B, R) @ (R, A).
    pq = jnp.dot(query, wq, preferred_element_type=f32)               # (B, A)
    # Fold location conv (F,2,K) and location dense (F,A) into (2K, A):
    #   wloc[c*K+k, a] = sum_f wconv[f,c,k] * wd[f,a]
    wloc = jnp.einsum("fck,fa->cka", wconv, wd).reshape(J, A)
    v_row = v.reshape(1, A).astype(f32)

    # im2col unfold of the 'same'-padded attention weights, (B, T, 2K):
    #   u[b, t, c*K+k] = awc_pad[b, c, t+k]
    awc_pad = jnp.pad(attention_weights_cat,
                      ((0, 0), (0, 0), (conv_pad, conv_pad)))
    u = jnp.stack([awc_pad[:, :, k:k + T] for k in range(K)], axis=-1)
    u = jnp.transpose(u, (0, 2, 1, 3)).reshape(B, T, J)               # (B,T,2K)

    # Additive mask bias: 0 = keep, -1e30 = masked / T padding / batch padding.
    masked = jnp.asarray(mask).astype(f32) > 0.5                      # (B, T)
    masked = jnp.pad(masked, ((0, Bp - B), (0, Tp - T)), constant_values=True)
    bias = jnp.where(masked, -1e30, 0.0).astype(f32)                  # (Bp, Tp)

    # ---- zero-pad to tiled shapes (natural, lane-dense layouts) -------------
    pq_p = jnp.pad(pq, ((0, Bp - B), (0, 0)))                          # (Bp, A)
    u_p = jnp.pad(u, ((0, Bp - B), (0, Tp - T), (0, 0)))               # (Bp,Tp,J)
    pm_p = jnp.pad(processed_memory,
                   ((0, Bp - B), (0, Tp - T), (0, 0))).astype(stream_dtype)
    mem_p = jnp.pad(memory,
                    ((0, Bp - B), (0, Tp - T), (0, Ep - E))).astype(stream_dtype)

    grid = (Bp // BB, Tp // TT)
    grid_spec = pltpu.PrefetchScalarGridSpec(
        num_scalar_prefetch=0,
        grid=grid,
        in_specs=[
            pl.BlockSpec((BB, A), lambda b, t: (b, 0)),        # query proj
            pl.BlockSpec((BB, TT, J), lambda b, t: (b, t, 0)),  # unfolded awc
            pl.BlockSpec((BB, TT, A), lambda b, t: (b, t, 0)),  # processed_mem
            pl.BlockSpec((BB, TT, Ep), lambda b, t: (b, t, 0)),  # memory
            pl.BlockSpec((BB, TT), lambda b, t: (b, t)),        # mask bias
            pl.BlockSpec((J, A), lambda b, t: (0, 0)),          # folded weight
            pl.BlockSpec((1, A), lambda b, t: (0, 0)),          # v
        ],
        out_specs=[
            pl.BlockSpec((BB, Ep), lambda b, t: (b, 0)),        # context
            pl.BlockSpec((BB, Tp), lambda b, t: (b, 0)),        # attn weights
        ],
        scratch_shapes=[
            pltpu.VMEM((BB, Tp), f32),   # raw energies
            pltpu.VMEM((BB, 1), f32),    # running max
            pltpu.VMEM((BB, 1), f32),    # running denom
            pltpu.VMEM((BB, Ep), f32),   # unnormalized context
        ],
    )

    ctx, attw = pl.pallas_call(
        attention_kernel,
        out_shape=(jax.ShapeDtypeStruct((Bp, Ep), f32),
                   jax.ShapeDtypeStruct((Bp, Tp), f32)),
        grid_spec=grid_spec,
        compiler_params=pltpu.CompilerParams(
            dimension_semantics=("parallel", "arbitrary"),
            vmem_limit_bytes=vmem_limit),
    )(pq_p, u_p, pm_p, mem_p, bias, wloc, v_row)

    return ctx[:B, :E], attw[:B, :T]


def reference_forward(params, query, memory, processed_memory,
                      attention_weights_cat, mask):
    """Pure-JAX reference mirroring the PyTorch Attention module exactly."""
    wq, wconv, wd, v = params["wq"], params["wconv"], params["wd"], params["v"]
    K = wconv.shape[2]
    conv_pad = (K - 1) // 2
    pq = query @ wq                                               # (B, A)
    conv = lax.conv_general_dilated(
        attention_weights_cat, wconv, window_strides=(1,),
        padding=[(conv_pad, conv_pad)], dimension_numbers=("NCH", "OIH", "NCH"))
    loc = jnp.einsum("bft,fa->bta", conv, wd)                     # (B, T, A)
    energies = jnp.tanh(pq[:, None, :] + loc + processed_memory) @ v  # (B,T,1)
    energies = energies[..., 0]
    energies = jnp.where(mask > 0.5, -jnp.inf, energies)
    attw = jax.nn.softmax(energies, axis=1)
    ctx = jnp.einsum("bt,bte->be", attw, memory)
    return ctx, attw


def make_params(key, attention_rnn_dim, embedding_dim, attention_dim,
                attention_location_n_filters, attention_location_kernel_size):
    # Deterministic xavier-uniform-ish init (synthetic weights, no checkpoint).
    k1, k2, k3, k4 = jax.random.split(key, 4)

    def xavier(k, shape, fan_in, fan_out):
        lim = jnp.sqrt(6.0 / (fan_in + fan_out))
        return jax.random.uniform(k, shape, jnp.float32, -lim, lim)

    R, A = attention_rnn_dim, attention_dim
    F_, K = attention_location_n_filters, attention_location_kernel_size
    return {
        # stored already transposed for y = x @ W
        "wq": xavier(k1, (R, A), R, A),
        "wconv": xavier(k2, (F_, 2, K), 2 * K, F_ * K),
        "wd": xavier(k3, (F_, A), F_, A),
        "v": xavier(k4, (A, 1), A, 1),
    }


# TODO(synk): the surrounding autoregressive Decoder loop (LSTMCells, prenet
# dropout, gate/linear projection) is sequential per-step state and is left to
# XLA; only the Attention layer forward is implemented as a Pallas kernel.

if __name__ == "__main__":
    B, T = 2, 8
    attention_rnn_dim = 32
    embedding_dim = 32
    attention_dim = 16
    attention_location_n_filters = 4
    attention_location_kernel_size = 3

    key = jax.random.PRNGKey(0)
    kp, k1, k2, k3, k4 = jax.random.split(key, 5)
    params = make_params(kp, attention_rnn_dim, embedding_dim, attention_dim,
                         attention_location_n_filters,
                         attention_location_kernel_size)

    query = jax.random.normal(k1, (B, attention_rnn_dim), jnp.float32)
    memory = jax.random.normal(k2, (B, T, embedding_dim), jnp.float32)
    processed_memory = jax.random.normal(k3, (B, T, attention_dim), jnp.float32)
    attention_weights_cat = jax.random.uniform(k4, (B, 2, T), jnp.float32)
    lengths = jnp.array([T, T - 2], jnp.int32)
    mask = (jnp.arange(T)[None, :] >= lengths[:, None]).astype(jnp.float32)

    ctx, attw = jax.jit(attention_forward)(
        params, query, memory, processed_memory, attention_weights_cat, mask)
    jax.block_until_ready((ctx, attw))

    ctx_ref, attw_ref = reference_forward(
        params, query, memory, processed_memory, attention_weights_cat, mask)
    assert jnp.allclose(ctx, ctx_ref, atol=2e-5, rtol=2e-5), \
        float(jnp.max(jnp.abs(ctx - ctx_ref)))
    assert jnp.allclose(attw, attw_ref, atol=2e-5, rtol=2e-5), \
        float(jnp.max(jnp.abs(attw - attw_ref)))

    print("KERNEL_OK")
</pallas_src>

<mosaic_0001>
module attributes {stable_mosaic.version = 11 : i64} {
  func.func @attention_kernel(%arg0: i32, %arg1: i32, %arg2: memref<8x16xf32, #tpu.memory_space<vmem>>, %arg3: memref<8x128x6xf32, #tpu.memory_space<vmem>>, %arg4: memref<8x128x16xf32, #tpu.memory_space<vmem>>, %arg5: memref<8x128x128xf32, #tpu.memory_space<vmem>>, %arg6: memref<8x128xf32, #tpu.memory_space<vmem>>, %arg7: memref<6x16xf32, #tpu.memory_space<vmem>>, %arg8: memref<1x16xf32, #tpu.memory_space<vmem>>, %arg9: memref<8x128xf32, #tpu.memory_space<vmem>>, %arg10: memref<8x128xf32, #tpu.memory_space<vmem>>, %arg11: memref<8x128xf32, #tpu.memory_space<vmem>>, %arg12: memref<8x1xf32, #tpu.memory_space<vmem>>, %arg13: memref<8x1xf32, #tpu.memory_space<vmem>>, %arg14: memref<8x128xf32, #tpu.memory_space<vmem>>) attributes {dimension_semantics = [#tpu.dimension_semantics<parallel>, #tpu.dimension_semantics<arbitrary>], iteration_bounds = array<i64: 1, 1>, scalar_prefetch = 0 : i64, scratch_operands = 4 : i64, tpu.core_type = #tpu.core_type<tc>, window_params = [{transform_indices = @transform_0, window_bounds = array<i64: 8, 16>}, {transform_indices = @transform_1, window_bounds = array<i64: 8, 128, 6>}, {transform_indices = @transform_2, window_bounds = array<i64: 8, 128, 16>}, {transform_indices = @transform_3, window_bounds = array<i64: 8, 128, 128>}, {transform_indices = @transform_4, window_bounds = array<i64: 8, 128>}, {pipeline_mode = #tpu.pipeline_mode<synchronous>, transform_indices = @transform_5, window_bounds = array<i64: 6, 16>}, {pipeline_mode = #tpu.pipeline_mode<synchronous>, transform_indices = @transform_6, window_bounds = array<i64: 1, 16>}, {transform_indices = @transform_7, window_bounds = array<i64: 8, 128>}, {transform_indices = @transform_8, window_bounds = array<i64: 8, 128>}]} {
    %c0_i32 = arith.constant 0 : i32
    %0 = arith.cmpi eq, %arg1, %c0_i32 : i32
    %1 = arith.extui %0 : i1 to i32
    %c0_i32_0 = arith.constant 0 : i32
    %2 = arith.cmpi ne, %1, %c0_i32_0 : i32
    scf.if %2 {
      %cst_36 = arith.constant 0xFF800000 : f32
      %54 = vector.broadcast %cst_36 : f32 to vector<8x1xf32>
      %c0_37 = arith.constant 0 : index
      %c0_38 = arith.constant 0 : index
      %55 = vector.load %arg12[%c0_37, %c0_38] : memref<8x1xf32, #tpu.memory_space<vmem>>, vector<8x1xf32>
      tpu.vector_store %arg12[%c0_37, %c0_38], %54 {strides = array<i32>} : memref<8x1xf32, #tpu.memory_space<vmem>>, vector<8x1xf32>,
      %cst_39 = arith.constant 0.000000e+00 : f32
      %56 = vector.broadcast %cst_39 : f32 to vector<8x1xf32>
      %c0_40 = arith.constant 0 : index
      %c0_41 = arith.constant 0 : index
      %57 = vector.load %arg13[%c0_40, %c0_41] : memref<8x1xf32, #tpu.memory_space<vmem>>, vector<8x1xf32>
      tpu.vector_store %arg13[%c0_40, %c0_41], %56 {strides = array<i32>} : memref<8x1xf32, #tpu.memory_space<vmem>>, vector<8x1xf32>,
      %cst_42 = arith.constant 0.000000e+00 : f32
      %58 = vector.broadcast %cst_42 : f32 to vector<8x128xf32>
      %c0_43 = arith.constant 0 : index
      %c0_44 = arith.constant 0 : index
      %59 = vector.load %arg14[%c0_43, %c0_44] : memref<8x128xf32, #tpu.memory_space<vmem>>, vector<8x128xf32>
      tpu.vector_store %arg14[%c0_43, %c0_44], %58 {strides = array<i32>} : memref<8x128xf32, #tpu.memory_space<vmem>>, vector<8x128xf32>,
    } else {
    }
    %c0 = arith.constant 0 : index
    %c0_1 = arith.constant 0 : index
    %c0_2 = arith.constant 0 : index
    %3 = vector.load %arg3[%c0, %c0_1, %c0_2] : memref<8x128x6xf32, #tpu.memory_space<vmem>>, vector<8x128x6xf32>
    %4 = vector.shape_cast %3 : vector<8x128x6xf32> to vector<1024x6xf32>
    %c0_3 = arith.constant 0 : index
    %c0_4 = arith.constant 0 : index
    %5 = vector.load %arg7[%c0_3, %c0_4] : memref<6x16xf32, #tpu.memory_space<vmem>>, vector<6x16xf32>
    %cst = arith.constant dense<0.000000e+00> : vector<1024x16xf32>
    %6 = tpu.matmul %4, %5, %cst {dimension_numbers = #tpu.dot_dimension_numbers<[1], [0], [0], [1], [0, 0, 1, 1], [], []>} : vector<1024x6xf32>, vector<6x16xf32>, vector<1024x16xf32> -> vector<1024x16xf32>
    %7 = vector.shape_cast %6 : vector<1024x16xf32> to vector<8x128x16xf32>
    %c0_5 = arith.constant 0 : index
    %c0_6 = arith.constant 0 : index
    %8 = vector.load %arg2[%c0_5, %c0_6] : memref<8x16xf32, #tpu.memory_space<vmem>>, vector<8x16xf32>
    %9 = vector.shape_cast %8 : vector<8x16xf32> to vector<8x1x16xf32>
    %10 = vector.broadcast %9 : vector<8x1x16xf32> to vector<8x128x16xf32>
    %11 = arith.addf %10, %7 : vector<8x128x16xf32>
    %c0_7 = arith.constant 0 : index
    %c0_8 = arith.constant 0 : index
    %c0_9 = arith.constant 0 : index
    %12 = vector.load %arg4[%c0_7, %c0_8, %c0_9] : memref<8x128x16xf32, #tpu.memory_space<vmem>>, vector<8x128x16xf32>
    %13 = arith.addf %11, %12 : vector<8x128x16xf32>
    %14 = math.tanh %13 : vector<8x128x16xf32>
    %c0_10 = arith.constant 0 : index
    %c0_11 = arith.constant 0 : index
    %15 = vector.load %arg8[%c0_10, %c0_11] : memref<1x16xf32, #tpu.memory_space<vmem>>, vector<1x16xf32>
    %16 = vector.shape_cast %15 : vector<1x16xf32> to vector<1x1x16xf32>
    %17 = vector.broadcast %16 : vector<1x1x16xf32> to vector<8x128x16xf32>
    %18 = arith.mulf %14, %17 : vector<8x128x16xf32>
    %cst_12 = arith.constant dense<0.000000e+00> : vector<8x128xf32>
    %19 = vector.multi_reduction <add>, %18, %cst_12 [2] : vector<8x128x16xf32> to vector<8x128xf32>
    %c0_13 = arith.constant 0 : index
    %c0_14 = arith.constant 0 : index
    %20 = vector.load %arg6[%c0_13, %c0_14] : memref<8x128xf32, #tpu.memory_space<vmem>>, vector<8x128xf32>
    %21 = arith.addf %19, %20 : vector<8x128xf32>
    %c128_i32 = arith.constant 128 : i32
    %22 = arith.muli %arg1, %c128_i32 : i32
    %23 = tpu.assume_multiple %22, 128 : i32
    %c0_15 = arith.constant 0 : index
    %24 = arith.index_cast %23 : i32 to index
    %25 = vector.load %arg11[%c0_15, %24] : memref<8x128xf32, #tpu.memory_space<vmem>>, vector<8x128xf32>
    tpu.vector_store %arg11[%c0_15, %24], %21 {strides = array<i32>} : memref<8x128xf32, #tpu.memory_space<vmem>>, vector<8x128xf32>,
    %c0_16 = arith.constant 0 : index
    %c0_17 = arith.constant 0 : index
    %26 = vector.load %arg12[%c0_16, %c0_17] : memref<8x1xf32, #tpu.memory_space<vmem>>, vector<8x1xf32>
    %cst_18 = arith.constant dense<0xFF800000> : vector<8xf32>
    %27 = vector.multi_reduction <maximumf>, %21, %cst_18 [1] : vector<8x128xf32> to vector<8xf32>
    %28 = vector.shape_cast %27 : vector<8xf32> to vector<8x1xf32>
    %29 = arith.maximumf %26, %28 : vector<8x1xf32>
    %30 = arith.subf %26, %29 : vector<8x1xf32>
    %31 = math.exp %30 : vector<8x1xf32>
    %32 = vector.broadcast %29 : vector<8x1xf32> to vector<8x128xf32>
    %33 = arith.subf %21, %32 : vector<8x128xf32>
    %34 = math.exp %33 : vector<8x128xf32>
    %c0_19 = arith.constant 0 : index
    %c0_20 = arith.constant 0 : index
    %35 = vector.load %arg13[%c0_19, %c0_20] : memref<8x1xf32, #tpu.memory_space<vmem>>, vector<8x1xf32>
    %36 = arith.mulf %31, %35 : vector<8x1xf32>
    %cst_21 = arith.constant dense<0.000000e+00> : vector<8xf32>
    %37 = vector.multi_reduction <add>, %34, %cst_21 [1] : vector<8x128xf32> to vector<8xf32>
    %38 = vector.shape_cast %37 : vector<8xf32> to vector<8x1xf32>
    %39 = arith.addf %36, %38 : vector<8x1xf32>
    %c0_22 = arith.constant 0 : index
    %c0_23 = arith.constant 0 : index
    %40 = vector.load %arg13[%c0_22, %c0_23] : memref<8x1xf32, #tpu.memory_space<vmem>>, vector<8x1xf32>
    tpu.vector_store %arg13[%c0_22, %c0_23], %39 {strides = array<i32>} : memref<8x1xf32, #tpu.memory_space<vmem>>, vector<8x1xf32>,
    %41 = vector.shape_cast %34 : vector<8x128xf32> to vector<8x1x128xf32>
    %c0_24 = arith.constant 0 : index
    %c0_25 = arith.constant 0 : index
    %c0_26 = arith.constant 0 : index
    %42 = vector.load %arg5[%c0_24, %c0_25, %c0_26] : memref<8x128x128xf32, #tpu.memory_space<vmem>>, vector<8x128x128xf32>
    "tpu.trace_start"() <{level = 10 : i32, message = "bxt,bte->bxe"}> : () -> ()
    %cst_27 = arith.constant dense<0.000000e+00> : vector<8x1x128xf32>
    %43 = tpu.matmul %41, %42, %cst_27 {dimension_numbers = #tpu.dot_dimension_numbers<[2], [1], [1], [2], [0, 0, 0, 1, 1, 2], [0], [0]>} : vector<8x1x128xf32>, vector<8x128x128xf32>, vector<8x1x128xf32> -> vector<8x1x128xf32>
    "tpu.trace_stop"() : () -> ()
    %44 = vector.shape_cast %43 : vector<8x1x128xf32> to vector<8x128xf32>
    %c0_28 = arith.constant 0 : index
    %c0_29 = arith.constant 0 : index
    %45 = vector.load %arg14[%c0_28, %c0_29] : memref<8x128xf32, #tpu.memory_space<vmem>>, vector<8x128xf32>
    %46 = vector.broadcast %31 : vector<8x1xf32> to vector<8x128xf32>
    %47 = arith.mulf %46, %45 : vector<8x128xf32>
    %48 = arith.addf %47, %44 : vector<8x128xf32>
    %c0_30 = arith.constant 0 : index
    %c0_31 = arith.constant 0 : index
    %49 = vector.load %arg14[%c0_30, %c0_31] : memref<8x128xf32, #tpu.memory_space<vmem>>, vector<8x128xf32>
    tpu.vector_store %arg14[%c0_30, %c0_31], %48 {strides = array<i32>} : memref<8x128xf32, #tpu.memory_space<vmem>>, vector<8x128xf32>,
    %c0_32 = arith.constant 0 : index
    %c0_33 = arith.constant 0 : index
    %50 = vector.load %arg12[%c0_32, %c0_33] : memref<8x1xf32, #tpu.memory_space<vmem>>, vector<8x1xf32>
    tpu.vector_store %arg12[%c0_32, %c0_33], %29 {strides = array<i32>} : memref<8x1xf32, #tpu.memory_space<vmem>>, vector<8x1xf32>,
    %c0_i32_34 = arith.constant 0 : i32
    %51 = arith.cmpi eq, %arg1, %c0_i32_34 : i32
    %52 = arith.extui %51 : i1 to i32
    %c0_i32_35 = arith.constant 0 : i32
    %53 = arith.cmpi ne, %52, %c0_i32_35 : i32
    scf.if %53 {
      %c0_36 = arith.constant 0 : index
      %c0_37 = arith.constant 0 : index
      %54 = vector.load %arg13[%c0_36, %c0_37] : memref<8x1xf32, #tpu.memory_space<vmem>>, vector<8x1xf32>
      %cst_38 = arith.constant 1.000000e+00 : f32
      %55 = vector.broadcast %cst_38 : f32 to vector<8x1xf32>
      %56 = arith.divf %55, %54 : vector<8x1xf32>
      %c0_39 = arith.constant 0 : index
      %c0_40 = arith.constant 0 : index
      %57 = vector.load %arg14[%c0_39, %c0_40] : memref<8x128xf32, #tpu.memory_space<vmem>>, vector<8x128xf32>
      %58 = vector.broadcast %56 : vector<8x1xf32> to vector<8x128xf32>
      %59 = arith.mulf %57, %58 : vector<8x128xf32>
      %c0_41 = arith.constant 0 : index
      %c0_42 = arith.constant 0 : index
      %60 = vector.load %arg9[%c0_41, %c0_42] : memref<8x128xf32, #tpu.memory_space<vmem>>, vector<8x128xf32>
      tpu.vector_store %arg9[%c0_41, %c0_42], %59 {strides = array<i32>} : memref<8x128xf32, #tpu.memory_space<vmem>>, vector<8x128xf32>,
      %c0_43 = arith.constant 0 : index
      %c0_44 = arith.constant 0 : index
      %61 = vector.load %arg11[%c0_43, %c0_44] : memref<8x128xf32, #tpu.memory_space<vmem>>, vector<8x128xf32>
      %c0_45 = arith.constant 0 : index
      %c0_46 = arith.constant 0 : index
      %62 = vector.load %arg12[%c0_45, %c0_46] : memref<8x1xf32, #tpu.memory_space<vmem>>, vector<8x1xf32>
      %63 = vector.broadcast %62 : vector<8x1xf32> to vector<8x128xf32>
      %64 = arith.subf %61, %63 : vector<8x128xf32>
      %65 = math.exp %64 : vector<8x128xf32>
      %66 = vector.broadcast %56 : vector<8x1xf32> to vector<8x128xf32>
      %67 = arith.mulf %65, %66 : vector<8x128xf32>
      %c0_47 = arith.constant 0 : index
      %c0_48 = arith.constant 0 : index
      %68 = vector.load %arg10[%c0_47, %c0_48] : memref<8x128xf32, #tpu.memory_space<vmem>>, vector<8x128xf32>
      tpu.vector_store %arg10[%c0_47, %c0_48], %67 {strides = array<i32>} : memref<8x128xf32, #tpu.memory_space<vmem>>, vector<8x128xf32>,
    } else {
    }
    return
  }
  func.func @transform_0(%arg0: i32, %arg1: i32) -> (i32, i32) {
    %c0_i32 = arith.constant 0 : i32
    %c0_i32_0 = arith.constant 0 : i32
    return %arg0, %c0_i32 : i32, i32
  }
  func.func @transform_1(%arg0: i32, %arg1: i32) -> (i32, i32, i32) {
    %c0_i32 = arith.constant 0 : i32
    %c0_i32_0 = arith.constant 0 : i32
    return %arg0, %arg1, %c0_i32 : i32, i32, i32
  }
  func.func @transform_2(%arg0: i32, %arg1: i32) -> (i32, i32, i32) {
    %c0_i32 = arith.constant 0 : i32
    %c0_i32_0 = arith.constant 0 : i32
    return %arg0, %arg1, %c0_i32 : i32, i32, i32
  }
  func.func @transform_3(%arg0: i32, %arg1: i32) -> (i32, i32, i32) {
    %c0_i32 = arith.constant 0 : i32
    %c0_i32_0 = arith.constant 0 : i32
    return %arg0, %arg1, %c0_i32 : i32, i32, i32
  }
  func.func @transform_4(%arg0: i32, %arg1: i32) -> (i32, i32) {
    %c0_i32 = arith.constant 0 : i32
    return %arg0, %arg1 : i32, i32
  }
  func.func @transform_5(%arg0: i32, %arg1: i32) -> (i32, i32) {
    %c0_i32 = arith.constant 0 : i32
    %c0_i32_0 = arith.constant 0 : i32
    %c0_i32_1 = arith.constant 0 : i32
    return %c0_i32, %c0_i32_0 : i32, i32
  }
  func.func @transform_6(%arg0: i32, %arg1: i32) -> (i32, i32) {
    %c0_i32 = arith.constant 0 : i32
    %c0_i32_0 = arith.constant 0 : i32
    %c0_i32_1 = arith.constant 0 : i32
    return %c0_i32, %c0_i32_0 : i32, i32
  }
  func.func @transform_7(%arg0: i32, %arg1: i32) -> (i32, i32) {
    %c0_i32 = arith.constant 0 : i32
    %c0_i32_0 = arith.constant 0 : i32
    return %arg0, %c0_i32 : i32, i32
  }
  func.func @transform_8(%arg0: i32, %arg1: i32) -> (i32, i32) {
    %c0_i32 = arith.constant 0 : i32
    %c0_i32_0 = arith.constant 0 : i32
    return %arg0, %c0_i32 : i32, i32
  }
}

</mosaic_0001>

<bundles_post_ra>
// kernel: attention_forward.1
= control target key start
LH: loop header
LB: loop body
LE: loop exit
PB: predicated region body
PF: predicated region fallthrough
CT: control target
= control target key end

     0   :  { %v13307_v0 = vlaneseq  ;;  %vm550_vm0 = vcmask 1045504   ;;  %vm165_vm1 = vcmask 48128   ;;  %vm1997_vm2 = vcmask 130048   ;;  %s13292_s4 = inlined_call_operand.vmem [shape: f32[8,128], index: 4, kind: input, shape index: {}]   ;;  %s13293_s5 = inlined_call_operand.vmem [shape: f32[6,16], index: 5, kind: input, shape index: {}]   ;;  %s13294_s1 = inlined_call_operand.vmem [shape: f32[8,128,6], index: 1, kind: input, shape index: {}]   ;;  %s13295_s0 = inlined_call_operand.vmem [shape: f32[8,16], index: 0, kind: input, shape index: {}]   ;;  %s13296_s2 = inlined_call_operand.vmem [shape: f32[8,128,16], index: 2, kind: input, shape index: {}]   ;;  %s13297_s6 = inlined_call_operand.vmem [shape: f32[1,16], index: 6, kind: input, shape index: {}]   ;;  %s13298_s3 = inlined_call_operand.vmem [shape: f32[8,128,128], index: 3, kind: input, shape index: {}]   ;;  %s13299_s7 = inlined_call_operand.vmem [shape: f32[8,128], index: 7, kind: output, shape index: {0}]   ;;  %s13300_s8 = inlined_call_operand.vmem [shape: f32[8,128], index: 8, kind: output, shape index: {1}]  }
   0x1   :  { %v164_v1 = vld [vmem:[%s13293_s5] sm:$0x3f]  ;;  %v37_v4 = vld [vmem:[%s13294_s1 + $0x8] sm:$0xff]  ;;  %v38_v5 = vld [vmem:[%s13294_s1 + $0x10] sm:$0xff]  ;;  %vm13444_vm3 = vcmask 7168   ;;  %vm3700_vm4 = vcmask 130112  }
   0x2   :  { %v36_v2 = vld [vmem:[%s13294_s1] sm:$0xff]  ;;  %v8381_v3 = vshrl.u32 %v13307_v0, 7  ;;  %7125 = vmatprep.subr.msk.mxu0 %vm550_vm0, %v164_v1  ;;  %v39_v9 = vld [vmem:[%s13294_s1 + $0x18] sm:$0xff]  ;;  %v41_v11 = vld [vmem:[%s13294_s1 + $0x28] sm:$0xff]  ;;  %vm3707_vm5 = vcmask 195712   ;;  %vm3714_vm6 = vcmask 261312  }
   0x3   :  { %7127 = vmatprep.mubr.msk.f32.mxu0 %vm165_vm1, %v36_v2  ;;  %v8393_v6 = vld [vmem:[%s13292_s4] sm:$0xff]  ;;  %7126 = vmatpush3.msk.msra.mxu0 %vm550_vm0, %v164_v1  ;;  %v42_v12 = vld [vmem:[%s13294_s1 + $0x30] sm:$0xff]  ;;  %v43_v13 = vld [vmem:[%s13294_s1 + $0x38] sm:$0xff]  ;;  %vm3721_vm7 = vcmask 326912   ;;  %vm3728_vm8 = vcmask 392512   ;;  %vm13450_vm9 = vcmask 458112  }
   0x4   :  { %13459 = vst [vmem:[#allocation6_spill] sm:$0xff] %v8381_v3  ;;  %v8396_v7 = vsub.s32 0, %v8381_v3  ;;  %7128 = vmatmul.mubr.msk.f32.vlgmr.msra.gmra.mrb[0].mxu0 %vm165_vm1, %v37_v4  ;;  %v40_v10 = vld [vmem:[%s13294_s1 + $0x20] sm:$0xff]  ;;  %v45_v15 = vld [vmem:[%s13294_s1 + $0x48] sm:$0xff]  ;;  %v46_v16 = vld [vmem:[%s13294_s1 + $0x50] sm:$0xff]  ;;  %v13306_v21 = vsub.s32 1, %v8381_v3 }
   0x5   :  { %7130 = vmatprep.mubr.msk.f32.mxu0 %vm165_vm1, %v38_v5  ;;  %v44_v14 = vld [vmem:[%s13294_s1 + $0x40] sm:$0xff]  ;;  %v47_v17 = vld [vmem:[%s13294_s1 + $0x58] sm:$0xff]  ;;  %v49_v19 = vld [vmem:[%s13294_s1 + $0x68] sm:$0xff]  ;;  %v13305_v39 = vsub.s32 2, %v8381_v3  ;;  %v13304_v57 = vsub.s32 3, %v8381_v3  ;;  %vm3742_vm10 = vcmask 523712  }
   0x6   :  { %13460 = vst [vmem:[#allocation7_spill] sm:$0xff] %v8396_v7  ;;  %v2387_v8 = vrot.slane %v8393_v6, %v8396_v7  ;;  %v48_v18 = vld [vmem:[%s13294_s1 + $0x60] sm:$0xff]  ;;  %v50_v20 = vld [vmem:[%s13294_s1 + $0x70] sm:$0xff]  ;;  %v51_v22 = vld [vmem:[%s13294_s1 + $0x78] sm:$0xff]  ;;  %v2454_v24 = vrot.slane %v8393_v6, %v13306_v21  ;;  %vm3749_vm11 = vcmask 589312   ;;  %vm3756_vm12 = vcmask 654912  }
   0x7   :  { %v52_v23 = vld [vmem:[%s13294_s1 + $0x80] sm:$0xff]  ;;  %v53_v25 = vld [vmem:[%s13294_s1 + $0x88] sm:$0xff]  ;;  %v54_v26 = vld [vmem:[%s13294_s1 + $0x90] sm:$0xff]  ;;  %v2521_v42 = vrot.slane %v8393_v6, %v13305_v39  ;;  %v8596_v60 = vrot.slane %v8393_v6, %v13304_v57  ;;  %vm13454_vm13 = vcmask 720512   ;;  %vm13452_vm14 = vcmask 786112  }
   0x8   :  { %2393 = vbcast.lane.b32.xlu1 %v2387_v8, 264  ;;  %2389 = vbcast.lane.b32.xlu0 %v2387_v8, 256  ;;  %v55_v27 = vld [vmem:[%s13294_s1 + $0x98] sm:$0xff]  ;;  %v56_v28 = vld [vmem:[%s13294_s1 + $0xa0] sm:$0xff]  ;;  %v57_v29 = vld [vmem:[%s13294_s1 + $0xa8] sm:$0xff]  ;;  %vm13451_vm15 = vcmask 851712  }
   0x9   :  { %7131 = vmatmul.mubr.msk.f32.gmra.mrb[2].mxu0 %vm165_vm1, %v39_v9  ;;  %v58_v30 = vld [vmem:[%s13294_s1 + $0xb0] sm:$0xff]  ;;  %v59_v31 = vld [vmem:[%s13294_s1 + $0xb8] sm:$0xff]  ;;  %v60_v32 = vld [vmem:[%s13294_s1 + $0xc0] sm:$0xff]  ;;  %vm3784_vm0 = vcmask 917312  }
   0xa   :  { %7133 = vmatprep.mubr.msk.f32.mxu0 %vm165_vm1, %v40_v10  ;;  %v61_v33 = vld [vmem:[%s13294_s1 + $0xc8] sm:$0xff]  ;;  %v62_v34 = vld [vmem:[%s13294_s1 + $0xd0] sm:$0xff]  ;;  %v63_v35 = vld [vmem:[%s13294_s1 + $0xd8] sm:$0xff] }
   0xb   :  { %v64_v36 = vld [vmem:[%s13294_s1 + $0xe0] sm:$0xff]  ;;  %v65_v37 = vld [vmem:[%s13294_s1 + $0xe8] sm:$0xff]  ;;  %v66_v38 = vld [vmem:[%s13294_s1 + $0xf0] sm:$0xff] }
   0xc   :  { %2397 = vbcast.lane.b32.xlu1 %v2387_v8, 272  ;;  %2405 = vbcast.lane.b32.xlu0 %v2387_v8, 288  ;;  %v67_v40 = vld [vmem:[%s13294_s1 + $0xf8] sm:$0xff]  ;;  %v68_v41 = vld [vmem:[%s13294_s1 + $0x100] sm:$0xff]  ;;  %v69_v43 = vld [vmem:[%s13294_s1 + $0x108] sm:$0xff] }
   0xd   :  { %7134 = vmatmul.mubr.msk.f32.gmra.mrb[4].mxu0 %vm165_vm1, %v41_v11  ;;  %v70_v44 = vld [vmem:[%s13294_s1 + $0x110] sm:$0xff]  ;;  %v71_v45 = vld [vmem:[%s13294_s1 + $0x118] sm:$0xff]  ;;  %v72_v46 = vld [vmem:[%s13294_s1 + $0x120] sm:$0xff] }
   0xe   :  { %7136 = vmatprep.mubr.msk.f32.mxu0 %vm165_vm1, %v42_v12  ;;  %v73_v47 = vld [vmem:[%s13294_s1 + $0x128] sm:$0xff]  ;;  %v74_v48 = vld [vmem:[%s13294_s1 + $0x130] sm:$0xff]  ;;  %v75_v49 = vld [vmem:[%s13294_s1 + $0x138] sm:$0xff] }
   0xf   :  { %v76_v50 = vld [vmem:[%s13294_s1 + $0x140] sm:$0xff]  ;;  %v77_v51 = vld [vmem:[%s13294_s1 + $0x148] sm:$0xff]  ;;  %v78_v52 = vld [vmem:[%s13294_s1 + $0x150] sm:$0xff] }
  0x10   :  { %2401 = vbcast.lane.b32.xlu1 %v2387_v8, 280  ;;  %2413 = vbcast.lane.b32.xlu0 %v2387_v8, 304  ;;  %v79_v53 = vld [vmem:[%s13294_s1 + $0x158] sm:$0xff]  ;;  %v80_v54 = vld [vmem:[%s13294_s1 + $0x160] sm:$0xff]  ;;  %v81_v55 = vld [vmem:[%s13294_s1 + $0x168] sm:$0xff] }
  0x11   :  { %7137 = vmatmul.mubr.msk.f32.gmra.mrb[6].mxu0 %vm165_vm1, %v43_v13  ;;  %v82_v56 = vld [vmem:[%s13294_s1 + $0x170] sm:$0xff]  ;;  %v83_v58 = vld [vmem:[%s13294_s1 + $0x178] sm:$0xff]  ;;  %v84_v59 = vld [vmem:[%s13294_s1 + $0x180] sm:$0xff] }
  0x12   :  { %7139 = vmatprep.mubr.msk.f32.mxu0 %vm165_vm1, %v44_v14  ;;  %v85_v61 = vld [vmem:[%s13294_s1 + $0x188] sm:$0xff]  ;;  %v86_v62 = vld [vmem:[%s13294_s1 + $0x190] sm:$0xff]  ;;  %v87_v63 = vld [vmem:[%s13294_s1 + $0x198] sm:$0xff] }
  0x13   :  { %v88_v1 = vld [vmem:[%s13294_s1 + $0x1a0] sm:$0xff]  ;;  %v89_v2 = vld [vmem:[%s13294_s1 + $0x1a8] sm:$0xff]  ;;  %v90_v4 = vld [vmem:[%s13294_s1 + $0x1b0] sm:$0xff] }
  0x14   :  { %2409 = vbcast.lane.b32.xlu1 %v2387_v8, 296  ;;  %2421 = vbcast.lane.b32.xlu0 %v2387_v8, 320  ;;  %v91_v5 = vld [vmem:[%s13294_s1 + $0x1b8] sm:$0xff]  ;;  %v93_v9 = vld [vmem:[%s13294_s1 + $0x1c8] sm:$0xff]  ;;  %v94_v10 = vld [vmem:[%s13294_s1 + $0x1d0] sm:$0xff] }
  0x15   :  { %7140 = vmatmul.mubr.msk.f32.gmra.mrb[8].mxu0 %vm165_vm1, %v45_v15  ;;  %v95_v11 = vld [vmem:[%s13294_s1 + $0x1d8] sm:$0xff]  ;;  %v96_v12 = vld [vmem:[%s13294_s1 + $0x1e0] sm:$0xff]  ;;  %v97_v14 = vld [vmem:[%s13294_s1 + $0x1e8] sm:$0xff] }
  0x16   :  { %7142 = vmatprep.mubr.msk.f32.mxu0 %vm165_vm1, %v46_v16  ;;  %v98_v16 = vld [vmem:[%s13294_s1 + $0x1f0] sm:$0xff]  ;;  %v148_v57 = vld [vmem:[%s13294_s1 + $0x380] sm:$0xff] }
  0x18   :  { %2417 = vbcast.lane.b32.xlu1 %v2387_v8, 312  ;;  %2429 = vbcast.lane.b32.xlu0 %v2387_v8, 336 }
  0x19   :  { %7143 = vmatmul.mubr.msk.f32.gmra.mrb[10].mxu0 %vm165_vm1, %v47_v17  ;;  %v13303_v17 = vsub.s32 4, %v8381_v3 }
  0x1a   :  { %7145 = vmatprep.mubr.msk.f32.mxu0 %vm165_vm1, %v48_v18 }
  0x1c   :  { %2425 = vbcast.lane.b32.xlu1 %v2387_v8, 328  ;;  %2437 = vbcast.lane.b32.xlu0 %v2387_v8, 352 }
  0x1d   :  { %7146 = vmatmul.mubr.msk.f32.gmra.mrb[12].mxu0 %vm165_vm1, %v49_v19  ;;  %v99_v19 = vld [vmem:[%s13294_s1 + $0x1f8] sm:$0xff] }
  0x1e   :  { %7148 = vmatprep.mubr.msk.f32.mxu0 %vm165_vm1, %v50_v20 }
  0x20   :  { %2433 = vbcast.lane.b32.xlu1 %v2387_v8, 344  ;;  %2445 = vbcast.lane.b32.xlu0 %v2387_v8, 368 }
  0x21   :  { %7149 = vmatmul.mubr.msk.f32.gmra.mrb[14].mxu0 %vm165_vm1, %v51_v22  ;;  %v100_v22 = vld [vmem:[%s13294_s1 + $0x200] sm:$0xff] }
  0x22   :  { %7151 = vmatprep.mubr.msk.f32.mxu0 %vm165_vm1, %v52_v23  ;;  %v8688_v23 = vrot.slane %v8393_v6, %v13303_v17 }
  0x24   :  { %2441 = vbcast.lane.b32.xlu1 %v2387_v8, 360  ;;  %2456 = vbcast.lane.b32.xlu0 %v2454_v24, 256 }
  0x25   :  { %7152 = vmatmul.mubr.msk.f32.gmra.mrb[16].mxu0 %vm165_vm1, %v53_v25  ;;  %v101_v25 = vld [vmem:[%s13294_s1 + $0x208] sm:$0xff] }
  0x26   :  { %7154 = vmatprep.mubr.msk.f32.mxu0 %vm165_vm1, %v54_v26 }
  0x28   :  { %2449 = vbcast.lane.b32.xlu1 %v2387_v8, 376  ;;  %2464 = vbcast.lane.b32.xlu0 %v2454_v24, 272  ;;  %v92_v8 = vld [vmem:[%s13294_s1 + $0x1c0] sm:$0xff] }
  0x29   :  { %7155 = vmatmul.mubr.msk.f32.gmra.mrb[18].mxu0 %vm165_vm1, %v55_v27  ;;  %v102_v27 = vld [vmem:[%s13294_s1 + $0x210] sm:$0xff] }
  0x2a   :  { %7157 = vmatprep.mubr.msk.f32.mxu0 %vm165_vm1, %v56_v28 }
  0x2c   :  { %2460 = vbcast.lane.b32.xlu1 %v2454_v24, 264  ;;  %2472 = vbcast.lane.b32.xlu0 %v2454_v24, 288 }
  0x2d   :  { %7158 = vmatmul.mubr.msk.f32.gmra.mrb[20].mxu0 %vm165_vm1, %v57_v29  ;;  %v103_v29 = vld [vmem:[%s13294_s1 + $0x218] sm:$0xff] }
  0x2e   :  { %7160 = vmatprep.mubr.msk.f32.mxu0 %vm165_vm1, %v58_v30 }
  0x30   :  { %2468 = vbcast.lane.b32.xlu1 %v2454_v24, 280  ;;  %2480 = vbcast.lane.b32.xlu0 %v2454_v24, 304 }
  0x31   :  { %7161 = vmatmul.mubr.msk.f32.gmra.mrb[22].mxu0 %vm165_vm1, %v59_v31  ;;  %v104_v31 = vld [vmem:[%s13294_s1 + $0x220] sm:$0xff] }
  0x32   :  { %7163 = vmatprep.mubr.msk.f32.mxu0 %vm165_vm1, %v60_v32 }
  0x34   :  { %2476 = vbcast.lane.b32.xlu1 %v2454_v24, 296  ;;  %2488 = vbcast.lane.b32.xlu0 %v2454_v24, 320 }
  0x35   :  { %7164 = vmatmul.mubr.msk.f32.gmra.mrb[24].mxu0 %vm165_vm1, %v61_v33  ;;  %v105_v33 = vld [vmem:[%s13294_s1 + $0x228] sm:$0xff] }
  0x36   :  { %7166 = vmatprep.mubr.msk.f32.mxu0 %vm165_vm1, %v62_v34 }
  0x38   :  { %2484 = vbcast.lane.b32.xlu1 %v2454_v24, 312  ;;  %2496 = vbcast.lane.b32.xlu0 %v2454_v24, 336 }
  0x39   :  { %7167 = vmatmul.mubr.msk.f32.gmra.mrb[26].mxu0 %vm165_vm1, %v63_v35  ;;  %v106_v35 = vld [vmem:[%s13294_s1 + $0x230] sm:$0xff] }
  0x3a   :  { %7169 = vmatprep.mubr.msk.f32.mxu0 %vm165_vm1, %v64_v36 }
  0x3c   :  { %2492 = vbcast.lane.b32.xlu1 %v2454_v24, 328  ;;  %2504 = vbcast.lane.b32.xlu0 %v2454_v24, 352 }
  0x3d   :  { %7170 = vmatmul.mubr.msk.f32.gmra.mrb[28].mxu0 %vm165_vm1, %v65_v37  ;;  %v107_v37 = vld [vmem:[%s13294_s1 + $0x238] sm:$0xff] }
  0x3e   :  { %7172 = vmatprep.mubr.msk.f32.mxu0 %vm165_vm1, %v66_v38 }
  0x40   :  { %2500 = vbcast.lane.b32.xlu1 %v2454_v24, 344  ;;  %2512 = vbcast.lane.b32.xlu0 %v2454_v24, 368 }
  0x41   :  { %7173 = vmatmul.mubr.msk.f32.gmra.mrb[30].mxu0 %vm165_vm1, %v67_v40  ;;  %v108_v40 = vld [vmem:[%s13294_s1 + $0x240] sm:$0xff] }
  0x42   :  { %7175 = vmatprep.mubr.msk.f32.mxu0 %vm165_vm1, %v68_v41  ;;  %v109_v41 = vld [vmem:[%s13294_s1 + $0x248] sm:$0xff] }
  0x44   :  { %2508 = vbcast.lane.b32.xlu1 %v2454_v24, 360  ;;  %2523 = vbcast.lane.b32.xlu0 %v2521_v42, 256 }
  0x45   :  { %7176 = vmatmul.mubr.msk.f32.gmra.mrb[32].mxu0 %vm165_vm1, %v69_v43  ;;  %v110_v43 = vld [vmem:[%s13294_s1 + $0x250] sm:$0xff] }
  0x46   :  { %7178 = vmatprep.mubr.msk.f32.mxu0 %vm165_vm1, %v70_v44 }
  0x48   :  { %2516 = vbcast.lane.b32.xlu1 %v2454_v24, 376  ;;  %2531 = vbcast.lane.b32.xlu0 %v2521_v42, 272 }
  0x49   :  { %7179 = vmatmul.mubr.msk.f32.gmra.mrb[34].mxu0 %vm165_vm1, %v71_v45  ;;  %v111_v45 = vld [vmem:[%s13294_s1 + $0x258] sm:$0xff] }
  0x4a   :  { %7181 = vmatprep.mubr.msk.f32.mxu0 %vm165_vm1, %v72_v46 }
  0x4c   :  { %2527 = vbcast.lane.b32.xlu1 %v2521_v42, 264  ;;  %2539 = vbcast.lane.b32.xlu0 %v2521_v42, 288 }
  0x4d   :  { %7182 = vmatmul.mubr.msk.f32.gmra.mrb[36].mxu0 %vm165_vm1, %v73_v47  ;;  %v112_v47 = vld [vmem:[%s13294_s1 + $0x260] sm:$0xff] }
  0x4e   :  { %7184 = vmatprep.mubr.msk.f32.mxu0 %vm165_vm1, %v74_v48 }
  0x50   :  { %2535 = vbcast.lane.b32.xlu1 %v2521_v42, 280  ;;  %2547 = vbcast.lane.b32.xlu0 %v2521_v42, 304 }
  0x51   :  { %7185 = vmatmul.mubr.msk.f32.gmra.mrb[38].mxu0 %vm165_vm1, %v75_v49  ;;  %v113_v49 = vld [vmem:[%s13294_s1 + $0x268] sm:$0xff] }
  0x52   :  { %7187 = vmatprep.mubr.msk.f32.mxu0 %vm165_vm1, %v76_v50 }
  0x54   :  { %2543 = vbcast.lane.b32.xlu1 %v2521_v42, 296  ;;  %2555 = vbcast.lane.b32.xlu0 %v2521_v42, 320 }
  0x55   :  { %7188 = vmatmul.mubr.msk.f32.gmra.mrb[40].mxu0 %vm165_vm1, %v77_v51  ;;  %v114_v51 = vld [vmem:[%s13294_s1 + $0x270] sm:$0xff] }
  0x56   :  { %7190 = vmatprep.mubr.msk.f32.mxu0 %vm165_vm1, %v78_v52  ;;  %v13302_v52 = vsub.s32 5, %v8381_v3 }
  0x58   :  { %2551 = vbcast.lane.b32.xlu1 %v2521_v42, 312  ;;  %2563 = vbcast.lane.b32.xlu0 %v2521_v42, 336 }
  0x59   :  { %7191 = vmatmul.mubr.msk.f32.gmra.mrb[42].mxu0 %vm165_vm1, %v79_v53  ;;  %v115_v53 = vld [vmem:[%s13294_s1 + $0x278] sm:$0xff] }
  0x5a   :  { %7193 = vmatprep.mubr.msk.f32.mxu0 %vm165_vm1, %v80_v54 }
  0x5c   :  { %2559 = vbcast.lane.b32.xlu1 %v2521_v42, 328  ;;  %2571 = vbcast.lane.b32.xlu0 %v2521_v42, 352 }
  0x5d   :  { %7194 = vmatmul.mubr.msk.f32.gmra.mrb[44].mxu0 %vm165_vm1, %v81_v55  ;;  %v116_v55 = vld [vmem:[%s13294_s1 + $0x280] sm:$0xff] }
  0x5e   :  { %7196 = vmatprep.mubr.msk.f32.mxu0 %vm165_vm1, %v82_v56 }
  0x60   :  { %2567 = vbcast.lane.b32.xlu1 %v2521_v42, 344  ;;  %2579 = vbcast.lane.b32.xlu0 %v2521_v42, 368 }
  0x61   :  { %7197 = vmatmul.mubr.msk.f32.gmra.mrb[46].mxu0 %vm165_vm1, %v83_v58  ;;  %v8804_v58 = vrot.slane %v8393_v6, %v13302_v52 }
  0x62   :  { %7199 = vmatprep.mubr.msk.f32.mxu0 %vm165_vm1, %v84_v59  ;;  %v117_v59 = vld [vmem:[%s13294_s1 + $0x288] sm:$0xff] }
  0x64   :  { %2575 = vbcast.lane.b32.xlu1 %v2521_v42, 360  ;;  %2590 = vbcast.lane.b32.xlu0 %v8596_v60, 256 }
  0x65   :  { %7200 = vmatmul.mubr.msk.f32.gmra.mrb[48].mxu0 %vm165_vm1, %v85_v61  ;;  %v118_v61 = vld [vmem:[%s13294_s1 + $0x290] sm:$0xff] }
  0x66   :  { %7202 = vmatprep.mubr.msk.f32.mxu0 %vm165_vm1, %v86_v62 }
  0x68   :  { %2583 = vbcast.lane.b32.xlu1 %v2521_v42, 376  ;;  %2598 = vbcast.lane.b32.xlu0 %v8596_v60, 272 }
  0x69   :  { %7203 = vmatmul.mubr.msk.f32.gmra.mrb[50].mxu0 %vm165_vm1, %v87_v63  ;;  %v119_v63 = vld [vmem:[%s13294_s1 + $0x298] sm:$0xff] }
  0x6a   :  { %7205 = vmatprep.mubr.msk.f32.mxu0 %vm165_vm1, %v88_v1 }
  0x6c   :  { %2594 = vbcast.lane.b32.xlu1 %v8596_v60, 264  ;;  %2606 = vbcast.lane.b32.xlu0 %v8596_v60, 288 }
  0x6d   :  { %7206 = vmatmul.mubr.msk.f32.gmra.mrb[52].mxu0 %vm165_vm1, %v89_v2  ;;  %v120_v2 = vld [vmem:[%s13294_s1 + $0x2a0] sm:$0xff] }
  0x6e   :  { %7208 = vmatprep.mubr.msk.f32.mxu0 %vm165_vm1, %v90_v4  ;;  %v121_v4 = vld [vmem:[%s13294_s1 + $0x2a8] sm:$0xff] }
  0x70   :  { %2602 = vbcast.lane.b32.xlu1 %v8596_v60, 280  ;;  %2614 = vbcast.lane.b32.xlu0 %v8596_v60, 304 }
  0x71   :  { %7209 = vmatmul.mubr.msk.f32.gmra.mrb[54].mxu0 %vm165_vm1, %v91_v5 }
  0x72   :  { %7211 = vmatprep.mubr.msk.f32.mxu0 %vm165_vm1, %v92_v8  ;;  %v122_v8 = vld [vmem:[%s13294_s1 + $0x2b0] sm:$0xff] }
  0x74   :  { %2610 = vbcast.lane.b32.xlu1 %v8596_v60, 296  ;;  %2622 = vbcast.lane.b32.xlu0 %v8596_v60, 320 }
  0x75   :  { %7212 = vmatmul.mubr.msk.f32.gmra.mrb[56].mxu0 %vm165_vm1, %v93_v9 }
  0x76   :  { %7214 = vmatprep.mubr.msk.f32.mxu0 %vm165_vm1, %v94_v10  ;;  %v123_v10 = vld [vmem:[%s13294_s1 + $0x2b8] sm:$0xff] }
  0x78   :  { %2618 = vbcast.lane.b32.xlu1 %v8596_v60, 312  ;;  %2630 = vbcast.lane.b32.xlu0 %v8596_v60, 336 }
  0x79   :  { %7215 = vmatmul.mubr.msk.f32.gmra.mrb[58].mxu0 %vm165_vm1, %v95_v11 }
  0x7a   :  { %v8657_v13 = vpop.permute.xlu0 %2389  ;;  %7217 = vmatprep.mubr.msk.f32.mxu0 %vm165_vm1, %v96_v12  ;;  %v8663_v15 = vpop.permute.xlu1 %2393  ;;  %v124_v12 = vld [vmem:[%s13294_s1 + $0x2c0] sm:$0xff] }
  0x7c   :  { %2626 = vbcast.lane.b32.xlu1 %v8596_v60, 328  ;;  %2638 = vbcast.lane.b32.xlu0 %v8596_v60, 352 }
  0x7d   :  { %7218 = vmatmul.mubr.msk.f32.gmra.mrb[60].mxu0 %vm165_vm1, %v97_v14 }
  0x7e   :  { %v8672_v18 = vpop.permute.xlu0 %2405  ;;  %7220 = vmatprep.mubr.msk.f32.mxu0 %vm165_vm1, %v98_v16  ;;  %v8678_v20 = vpop.permute.xlu1 %2397  ;;  %v125_v16 = vld [vmem:[%s13294_s1 + $0x2c8] sm:$0xff] }
  0x80   :  { %2634 = vbcast.lane.b32.xlu1 %v8596_v60, 344  ;;  %2646 = vbcast.lane.b32.xlu0 %v8596_v60, 368 }
  0x81   :  { %7221 = vmatmul.mubr.msk.f32.gmra.mrb[62].mxu0 %vm165_vm1, %v99_v19 }
  0x82   :  { %v8691_v24 = vpop.permute.xlu0 %2413  ;;  %7223 = vmatprep.mubr.msk.f32.mxu0 %vm165_vm1, %v100_v22  ;;  %v8697_v26 = vpop.permute.xlu1 %2401  ;;  %v126_v22 = vld [vmem:[%s13294_s1 + $0x2d0] sm:$0xff] }
  0x83   :  { %13461 = vst [vmem:[#allocation8_spill] sm:$0xff] %v8697_v26 }
  0x84   :  { %2642 = vbcast.lane.b32.xlu1 %v8596_v60, 360  ;;  %2657 = vbcast.lane.b32.xlu0 %v8688_v23, 256 }
  0x85   :  { %7224 = vmatmul.mubr.msk.f32.gmra.mrb[64].mxu0 %vm165_vm1, %v101_v25 }
  0x86   :  { %v8705_v28 = vpop.permute.xlu0 %2421  ;;  %7226 = vmatprep.mubr.msk.f32.mxu0 %vm165_vm1, %v102_v27  ;;  %v8711_v30 = vpop.permute.xlu1 %2409  ;;  %v128_v27 = vld [vmem:[%s13294_s1 + $0x2e0] sm:$0xff] }
  0x87   :  { %13462 = vst [vmem:[#allocation9_spill] sm:$0xff] %v8711_v30 }
  0x88   :  { %2650 = vbcast.lane.b32.xlu1 %v8596_v60, 376  ;;  %2665 = vbcast.lane.b32.xlu0 %v8688_v23, 272 }
  0x89   :  { %7227 = vmatmul.mubr.msk.f32.gmra.mrb[66].mxu0 %vm165_vm1, %v103_v29 }
  0x8a   :  { %v8719_v32 = vpop.permute.xlu0 %2429  ;;  %7229 = vmatprep.mubr.msk.f32.mxu0 %vm165_vm1, %v104_v31  ;;  %v8725_v34 = vpop.permute.xlu1 %2417  ;;  %v129_v31 = vld [vmem:[%s13294_s1 + $0x2e8] sm:$0xff] }
  0x8b   :  { %13463 = vst [vmem:[#allocation10_spill] sm:$0xff] %v8725_v34 }
  0x8c   :  { %2661 = vbcast.lane.b32.xlu1 %v8688_v23, 264  ;;  %2673 = vbcast.lane.b32.xlu0 %v8688_v23, 288 }
  0x8d   :  { %7230 = vmatmul.mubr.msk.f32.gmra.mrb[68].mxu0 %vm165_vm1, %v105_v33 }
  0x8e   :  { %v8733_v36 = vpop.permute.xlu0 %2437  ;;  %7232 = vmatprep.mubr.msk.f32.mxu0 %vm165_vm1, %v106_v35  ;;  %v8739_v38 = vpop.permute.xlu1 %2425  ;;  %v130_v35 = vld [vmem:[%s13294_s1 + $0x2f0] sm:$0xff] }
  0x8f   :  { %13464 = vst [vmem:[#allocation11_spill] sm:$0xff] %v8739_v38 }
  0x90   :  { %2669 = vbcast.lane.b32.xlu1 %v8688_v23, 280  ;;  %2681 = vbcast.lane.b32.xlu0 %v8688_v23, 304 }
  0x91   :  { %7233 = vmatmul.mubr.msk.f32.gmra.mrb[70].mxu0 %vm165_vm1, %v107_v37  ;;  %v13301_v37 = vsub.s32 6, %v8381_v3 }
  0x92   :  { %7235 = vmatprep.mubr.msk.f32.mxu0 %vm165_vm1, %v108_v40  ;;  %v8751_v42 = vpop.permute.xlu1 %2433  ;;  %v8756_v44 = vpop.permute.xlu0 %2445 }
  0x93   :  { %13465 = vst [vmem:[#allocation12_spill] sm:$0xff] %v8751_v42 }
  0x94   :  { %2677 = vbcast.lane.b32.xlu1 %v8688_v23, 296  ;;  %2689 = vbcast.lane.b32.xlu0 %v8688_v23, 320 }
  0x95   :  { %7236 = vmatmul.mubr.msk.f32.gmra.mrb[72].mxu0 %vm165_vm1, %v109_v41  ;;  %v131_v41 = vld [vmem:[%s13294_s1 + $0x2f8] sm:$0xff] }
  0x96   :  { %7238 = vmatprep.mubr.msk.f32.mxu0 %vm165_vm1, %v110_v43  ;;  %v8765_v46 = vpop.permute.xlu1 %2441  ;;  %v8773_v48 = vpop.permute.xlu0 %2456 }
  0x97   :  { %13466 = vst [vmem:[#allocation13_spill] sm:$0xff] %v8765_v46 }
  0x98   :  { %2685 = vbcast.lane.b32.xlu1 %v8688_v23, 312  ;;  %2697 = vbcast.lane.b32.xlu0 %v8688_v23, 336 }
  0x99   :  { %7239 = vmatmul.mubr.msk.f32.gmra.mrb[74].mxu0 %vm165_vm1, %v111_v45  ;;  %v132_v45 = vld [vmem:[%s13294_s1 + $0x300] sm:$0xff] }
  0x9a   :  { %7241 = vmatprep.mubr.msk.f32.mxu0 %vm165_vm1, %v112_v47  ;;  %v8779_v50 = vpop.permute.xlu1 %2449  ;;  %v8797_v56 = vpop.permute.xlu0 %2464  ;;  %v8916_v47 = vrot.slane %v8393_v6, %v13301_v37  ;;  %v135_v6 = vld [vmem:[%s13294_s1 + $0x318] sm:$0xff] }
  0x9b   :  { %13467 = vst [vmem:[#allocation14_spill] sm:$0xff] %v8779_v50 }
  0x9c   :  { %2693 = vbcast.lane.b32.xlu1 %v8688_v23, 328  ;;  %2705 = vbcast.lane.b32.xlu0 %v8688_v23, 352 }
  0x9d   :  { %7242 = vmatmul.mubr.msk.f32.gmra.mrb[76].mxu0 %vm165_vm1, %v113_v49  ;;  %v133_v49 = vld [vmem:[%s13294_s1 + $0x308] sm:$0xff] }
  0x9e   :  { %7244 = vmatprep.mubr.msk.f32.mxu0 %vm165_vm1, %v114_v51  ;;  %v8792_v54 = vpop.permute.xlu1 %2460  ;;  %v8819_v62 = vpop.permute.xlu0 %2472 }
  0x9f   :  { %13468 = vst [vmem:[#allocation15_spill] sm:$0xff] %v8792_v54 }
  0xa0   :  { %2701 = vbcast.lane.b32.xlu1 %v8688_v23, 344  ;;  %2713 = vbcast.lane.b32.xlu0 %v8688_v23, 368 }
  0xa1   :  { %7245 = vmatmul.mubr.msk.f32.gmra.mrb[78].mxu0 %vm165_vm1, %v115_v53  ;;  %v134_v53 = vld [vmem:[%s13294_s1 + $0x310] sm:$0xff] }
  0xa2   :  { %7247 = vmatprep.mubr.msk.f32.mxu0 %vm165_vm1, %v116_v55  ;;  %v8811_v60 = vpop.permute.xlu1 %2468  ;;  %v8842_v9 = vpop.permute.xlu0 %2480  ;;  %v8323_v55 = vmov 1966171168  }
  0xa3   :  { %13469 = vst [vmem:[#allocation16_spill] sm:$0xff] %v8811_v60  ;;  %13472 = vst [vmem:[#allocation19_spill] sm:$0xff] %v8842_v9 }
  0xa4   :  { %2709 = vbcast.lane.b32.xlu1 %v8688_v23, 360  ;;  %2724 = vbcast.lane.b32.xlu0 %v8804_v58, 256 }
  0xa5   :  { %7248 = vmatmul.mubr.msk.f32.gmra.mrb[80].mxu0 %vm165_vm1, %v117_v59  ;;  %v1263_v59 = vunpack.c.l.s4 %v8323_v55 }
  0xa6   :  { %7250 = vmatprep.mubr.msk.f32.mxu0 %vm165_vm1, %v118_v61  ;;  %v8825_v1 = vpop.permute.xlu1 %2476  ;;  %v8859_v14 = vpop.permute.xlu0 %2488 }
  0xa7   :  { %13470 = vst [vmem:[#allocation17_spill] sm:$0xff] %v8825_v1  ;;  %13474 = vst [vmem:[#allocation21_spill] sm:$0xff] %v8859_v14 }
  0xa8   :  { %2717 = vbcast.lane.b32.xlu1 %v8688_v23, 376  ;;  %2732 = vbcast.lane.b32.xlu0 %v8804_v58, 272  ;;  %v127_v23 = vld [vmem:[%s13294_s1 + $0x2d8] sm:$0xff] }
  0xa9   :  { %7251 = vmatmul.mubr.msk.f32.gmra.mrb[82].mxu0 %vm165_vm1, %v119_v63 }
  0xaa   :  { %7253 = vmatprep.mubr.msk.f32.mxu0 %vm165_vm1, %v120_v2  ;;  %v8837_v5 = vpop.permute.xlu1 %2484  ;;  %v8882_v29 = vpop.permute.xlu0 %2496  ;;  %v1264_v2 = vunpack.c.0.s8 %v1263_v59  ;;  %v143_v59 = vld [vmem:[%s13294_s1 + $0x358] sm:$0xff] }
  0xab   :  { %13471 = vst [vmem:[#allocation18_spill] sm:$0xff] %v8837_v5  ;;  %13477 = vst [vmem:[#allocation24_spill] sm:$0xff] %v8882_v29 }
  0xac   :  { %2728 = vbcast.lane.b32.xlu1 %v8804_v58, 264  ;;  %2740 = vbcast.lane.b32.xlu0 %v8804_v58, 288 }
  0xad   :  { %7254 = vmatmul.mubr.msk.f32.gmra.mrb[84].mxu0 %vm165_vm1, %v121_v4  ;;  %v136_v4 = vld [vmem:[%s13294_s1 + $0x320] sm:$0xff] }
  0xae   :  { %7256 = vmatprep.mubr.msk.f32.mxu0 %vm165_vm1, %v122_v8  ;;  %v8851_v11 = vpop.permute.xlu1 %2492  ;;  %v8900_v40 = vpop.permute.xlu0 %2504 }
  0xaf   :  { %13473 = vst [vmem:[#allocation20_spill] sm:$0xff] %v8851_v11  ;;  %13479 = vst [vmem:[#allocation26_spill] sm:$0xff] %v8900_v40 }
  0xb0   :  { %2736 = vbcast.lane.b32.xlu1 %v8804_v58, 280  ;;  %2748 = vbcast.lane.b32.xlu0 %v8804_v58, 304 }
  0xb1   :  { %7257 = vmatmul.mubr.msk.f32.gmra.mrb[86].mxu0 %vm165_vm1, %v123_v10  ;;  %v137_v10 = vld [vmem:[%s13294_s1 + $0x328] sm:$0xff] }
  0xb2   :  { %7259 = vmatprep.mubr.msk.f32.mxu0 %vm165_vm1, %v124_v12  ;;  %v8865_v19 = vpop.permute.xlu1 %2500  ;;  %v8928_v61 = vpop.permute.xlu0 %2512 }
  0xb3   :  { %13475 = vst [vmem:[#allocation22_spill] sm:$0xff] %v8865_v19  ;;  %13482 = vst [vmem:[#allocation29_spill] sm:$0xff] %v8928_v61 }
  0xb4   :  { %2744 = vbcast.lane.b32.xlu1 %v8804_v58, 296  ;;  %2756 = vbcast.lane.b32.xlu0 %v8804_v58, 320 }
  0xb5   :  { %7260 = vmatmul.mubr.msk.f32.gmra.mrb[88].mxu0 %vm165_vm1, %v125_v16  ;;  %v8954_v16 = vsub.s32 %v1264_v2, %v8381_v3 }
  0xb6   :  { %7262 = vmatprep.mubr.msk.f32.mxu0 %vm165_vm1, %v126_v22  ;;  %v8877_v25 = vpop.permute.xlu1 %2508  ;;  %v8945_v8 = vpop.permute.xlu0 %2523  ;;  %v8964_v22 = vld.sshfl [vmem:[%s13295_s0] sm:$0xff pattern:$0x75316420] }
  0xb7   :  { %13476 = vst [vmem:[#allocation23_spill] sm:$0xff] %v8877_v25  ;;  %13484 = vst [vmem:[#allocation31_spill] sm:$0xff] %v8945_v8 }
  0xb8   :  { %2752 = vbcast.lane.b32.xlu1 %v8804_v58, 312  ;;  %2764 = vbcast.lane.b32.xlu0 %v8804_v58, 336 }
  0xb9   :  { %7263 = vmatmul.mubr.msk.f32.gmra.mrb[90].mxu0 %vm165_vm1, %v127_v23  ;;  %v139_v23 = vld [vmem:[%s13294_s1 + $0x338] sm:$0xff] }
  0xba   :  { %7265 = vmatprep.mubr.msk.f32.mxu0 %vm165_vm1, %v128_v27  ;;  %v8891_v33 = vpop.permute.xlu1 %2516 }
  0xbb   :  { %13478 = vst [vmem:[#allocation25_spill] sm:$0xff] %v8891_v33 }
  0xbc   :  { %2760 = vbcast.lane.b32.xlu1 %v8804_v58, 328  ;;  %2772 = vbcast.lane.b32.xlu0 %v8804_v58, 352 }
  0xbd   :  { %7266 = vmatmul.mubr.msk.f32.gmra.mrb[92].mxu0 %vm165_vm1, %v129_v31  ;;  %v140_v31 = vld [vmem:[%s13294_s1 + $0x340] sm:$0xff] }
  0xbe   :  { %7268 = vmatprep.mubr.msk.f32.mxu0 %vm165_vm1, %v130_v35  ;;  %v8906_v43 = vpop.permute.xlu1 %2527  ;;  %v8976_v35 = vpop.permute.xlu0 %2531 }
  0xbf   :  { %13480 = vst [vmem:[#allocation27_spill] sm:$0xff] %v8906_v43  ;;  %13487 = vst [vmem:[#allocation34_spill] sm:$0xff] %v8976_v35 }
  0xc0   :  { %2768 = vbcast.lane.b32.xlu1 %v8804_v58, 344  ;;  %2780 = vbcast.lane.b32.xlu0 %v8804_v58, 368 }
  0xc1   :  { %7269 = vmatmul.mubr.msk.f32.gmra.mrb[94].mxu0 %vm165_vm1, %v131_v41  ;;  %v141_v41 = vld [vmem:[%s13294_s1 + $0x348] sm:$0xff] }
  0xc2   :  { %7271 = vmatprep.mubr.msk.f32.mxu0 %vm165_vm1, %v132_v45  ;;  %v8923_v51 = vpop.permute.xlu1 %2535  ;;  %v8997_v55 = vpop.permute.xlu0 %2539 }
  0xc3   :  { %13481 = vst [vmem:[#allocation28_spill] sm:$0xff] %v8923_v51  ;;  %13489 = vst [vmem:[#allocation36_spill] sm:$0xff] %v8997_v55 }
  0xc4   :  { %2776 = vbcast.lane.b32.xlu1 %v8804_v58, 360  ;;  %2791 = vbcast.lane.b32.xlu0 %v8916_v47, 256 }
  0xc5   :  { %7272 = vmatmul.mubr.msk.f32.gmra.mrb[96].mxu0 %vm165_vm1, %v133_v49  ;;  %v8989_v49 = vrot.slane %v8964_v22, %v8954_v16 }
  0xc6   :  { %7274 = vmatprep.mubr.msk.f32.mxu0 %vm165_vm1, %v134_v53  ;;  %v8937_v63 = vpop.permute.xlu1 %2543  ;;  %v142_v53 = vld [vmem:[%s13294_s1 + $0x350] sm:$0xff]  ;;  %v9025_v37 = vpop.permute.xlu0 %2547 }
  0xc7   :  { %13483 = vst [vmem:[#allocation30_spill] sm:$0xff] %v8937_v63  ;;  %13492 = vst [vmem:[#allocation39_spill] sm:$0xff] %v9025_v37 }
  0xc8   :  { %2784 = vbcast.lane.b32.xlu1 %v8804_v58, 376  ;;  %2799 = vbcast.lane.b32.xlu0 %v8916_v47, 272  ;;  %v138_v58 = vld [vmem:[%s13294_s1 + $0x330] sm:$0xff] }
  0xc9   :  { %7275 = vmatmul.mubr.msk.f32.gmra.mrb[98].mxu0 %vm165_vm1, %v135_v6 }
  0xca   :  { %7277 = vmatprep.mubr.msk.f32.mxu0 %vm165_vm1, %v136_v4  ;;  %v8951_v12 = vpop.permute.xlu1 %2551  ;;  %v9007_v4 = vrot.slane %v8989_v49, %v8396_v7 }
  0xcb   :  { %13485 = vst [vmem:[#allocation32_spill] sm:$0xff] %v8951_v12 }
  0xcc   :  { %2795 = vbcast.lane.b32.xlu1 %v8916_v47, 264  ;;  %2807 = vbcast.lane.b32.xlu0 %v8916_v47, 288 }
  0xcd   :  { %7278 = vmatmul.mubr.msk.f32.gmra.mrb[100].mxu0 %vm165_vm1, %v137_v10  ;;  %v144_v10 = vld [vmem:[%s13294_s1 + $0x360] sm:$0xff] }
  0xce   :  { %7280 = vmatprep.mubr.msk.f32.mxu0 %vm165_vm1, %v138_v58  ;;  %v8971_v27 = vpop.permute.xlu1 %2559 }
  0xcf   :  { %13486 = vst [vmem:[#allocation33_spill] sm:$0xff] %v8971_v27  ;;  %v153_v27 = vld [vmem:[%s13294_s1 + $0x3a8] sm:$0xff] }
  0xd0   :  { %2803 = vbcast.lane.b32.xlu1 %v8916_v47, 280  ;;  %2815 = vbcast.lane.b32.xlu0 %v8916_v47, 304 }
  0xd1   :  { %7281 = vmatmul.mubr.msk.f32.gmra.mrb[102].mxu0 %vm165_vm1, %v139_v23  ;;  %v145_v23 = vld [vmem:[%s13294_s1 + $0x368] sm:$0xff] }
  0xd2   :  { %7283 = vmatprep.mubr.msk.f32.mxu0 %vm165_vm1, %v140_v31  ;;  %v8985_v45 = vpop.permute.xlu1 %2567 }
  0xd3   :  { %13488 = vst [vmem:[#allocation35_spill] sm:$0xff] %v8985_v45 }
  0xd4   :  { %2811 = vbcast.lane.b32.xlu1 %v8916_v47, 296  ;;  %2823 = vbcast.lane.b32.xlu0 %v8916_v47, 320 }
  0xd5   :  { %7284 = vmatmul.mubr.msk.f32.gmra.mrb[104].mxu0 %vm165_vm1, %v141_v41 }
  0xd6   :  { %7286 = vmatprep.mubr.msk.f32.mxu0 %vm165_vm1, %v142_v53  ;;  %v9003_v6 = vpop.permute.xlu1 %2575  ;;  %v146_v53 = vld [vmem:[%s13294_s1 + $0x370] sm:$0xff] }
  0xd7   :  { %13490 = vst [vmem:[#allocation37_spill] sm:$0xff] %v9003_v6  ;;  %v7129_v2 = vpop.f32.mrb[0].mxu0 }
  0xd8   :  { %2819 = vbcast.lane.b32.xlu1 %v8916_v47, 312  ;;  %2831 = vbcast.lane.b32.xlu0 %v8916_v47, 336  ;;  %v620_v58 = vpop.f32.mrb[1].mxu0  ;;  %v1351_v41 = vadd.f32 %v7129_v2, %v9007_v4  ;;  %v147_v2 = vld [vmem:[%s13294_s1 + $0x378] sm:$0xff] }
  0xd9   :  { %7287 = vmatmul.mubr.msk.f32.gmra.mrb[106].mxu0 %vm165_vm1, %v143_v59  ;;  %v1479_v59 = vld [vmem:[%s13296_s2 + $0x8] sm:$0xff]  ;;  %v1350_v0 = vadd.f32 %v9007_v4, %v620_v58  ;;  %v150_v58 = vld [vmem:[%s13294_s1 + $0x390] sm:$0xff] }
  0xda   :  { %7289 = vmatprep.mubr.msk.f32.mxu0 %vm165_vm1, %v144_v10  ;;  %v9019_v31 = vpop.permute.xlu1 %2583  ;;  %v1607_v17 = vadd.f32 %v1479_v59, %v1351_v41  ;;  %v1478_v41 = vld [vmem:[%s13296_s2] sm:$0xff]  ;;  %v149_v59 = vld [vmem:[%s13294_s1 + $0x388] sm:$0xff] }
  0xdb   :  { %13491 = vst [vmem:[#allocation38_spill] sm:$0xff] %v9019_v31 }
  0xdc   :  { %2827 = vbcast.lane.b32.xlu1 %v8916_v47, 328  ;;  %v7132_v10 = vpop.f32.mrb[2].mxu0  ;;  %7800 = vtanh.f32 %v1607_v17  ;;  %v152_v17 = vld [vmem:[%s13294_s1 + $0x3a0] sm:$0xff] }
  0xdd   :  { %v630_v52 = vpop.f32.mrb[3].mxu0  ;;  %7290 = vmatmul.mubr.msk.f32.gmra.mrb[108].mxu0 %vm165_vm1, %v145_v23 }
  0xde   :  { %7292 = vmatprep.mubr.msk.f32.mxu0 %vm165_vm1, %v146_v53  ;;  %v9039_v39 = vpop.permute.xlu1 %2594  ;;  %v9046_v53 = vpop.permute.xlu0 %2555  ;;  %v1352_v63 = vadd.f32 %v9007_v4, %v630_v52  ;;  %v155_v52 = vld [vmem:[%s13294_s1 + $0x3b8] sm:$0xff] }
  0xdf   :  { %13493 = vst [vmem:[#allocation40_spill] sm:$0xff] %v9039_v39  ;;  %13494 = vst [vmem:[#allocation41_spill] sm:$0xff] %v9046_v53  ;;  %v1606_v39 = vadd.f32 %v1478_v41, %v1350_v0  ;;  %v1353_v0 = vadd.f32 %v7132_v10, %v9007_v4 }
  0xe0   :  { %2835 = vbcast.lane.b32.xlu1 %v8916_v47, 344  ;;  %v7135_v21 = vpop.f32.mrb[4].mxu0 }
  0xe1   :  { %7293 = vmatmul.mubr.msk.f32.gmra.mrb[110].mxu0 %vm165_vm1, %v147_v2  ;;  %v9044_v23 = vpop.f32.mrb[5].mxu0  ;;  %7802 = vtanh.f32 %v1606_v39  ;;  %v154_v39 = vld [vmem:[%s13294_s1 + $0x3b0] sm:$0xff]  ;;  %v1355_v25 = vadd.f32 %v7135_v21, %v9007_v4  ;;  %v157_v21 = vld [vmem:[%s13294_s1 + $0x3c8] sm:$0xff] }
  0xe2   :  { %7295 = vmatprep.mubr.msk.f32.mxu0 %vm165_vm1, %v148_v57  ;;  %v9061_v6 = vpop.permute.xlu1 %2602  ;;  %v151_v57 = vld [vmem:[%s13294_s1 + $0x398] sm:$0xff]  ;;  %v9070_v45 = vpop.permute.xlu0 %2563 }
  0xe3   :  { %13495 = vst [vmem:[#allocation42_spill] sm:$0xff] %v9061_v6  ;;  %13496 = vst [vmem:[#allocation43_spill] sm:$0xff] %v9070_v45 }
  0xe4   :  { %v7138_v2 = vpop.f32.mrb[6].mxu0 }
  0xe5   :  { %7296 = vmatmul.mubr.msk.f32.gmra.mrb[112].mxu0 %vm165_vm1, %v149_v59  ;;  %v9059_v31 = vpop.f32.mrb[7].mxu0  ;;  %v1481_v59 = vld [vmem:[%s13296_s2 + $0x18] sm:$0xff] }
  0xe6   :  { %7298 = vmatprep.mubr.msk.f32.mxu0 %vm165_vm1, %v150_v58  ;;  %v9084_v12 = vpop.permute.xlu1 %2610  ;;  %v1609_v10 = vadd.f32 %v1481_v59, %v1353_v0  ;;  %v7801_v51 = vpop.eup %7800  ;;  %v156_v59 = vld [vmem:[%s13294_s1 + $0x3c0] sm:$0xff] }
  0xe7   :  { %13497 = vst [vmem:[#allocation44_spill] sm:$0xff] %v9084_v12  ;;  %v9099_v43 = vpop.permute.xlu0 %2571 }
  0xe8   :  { %v7141_v41 = vpop.f32.mrb[8].mxu0  ;;  %13498 = vst [vmem:[#allocation45_spill] sm:$0xff] %v9099_v43  ;;  %7804 = vtanh.f32 %v1609_v10 }
  0xe9   :  { %7299 = vmatmul.mubr.msk.f32.gmra.mrb[114].mxu0 %vm165_vm1, %v151_v57  ;;  %v660_v58 = vpop.f32.mrb[9].mxu0 }
  0xea   :  { %v9078_v6 = vadd.f32 %v9007_v4, %v660_v58  ;;  %7301 = vmatprep.mubr.msk.f32.mxu0 %vm165_vm1, %v152_v17  ;;  %v1480_v58 = vld [vmem:[%s13296_s2 + $0x10] sm:$0xff]  ;;  %v9096_v17 = vld [vmem:[%s13297_s6] ss:$0 sm:$0xff]  ;;  %v9117_v43 = vpop.permute.xlu1 %2618 }
  0xeb   :  { %v1608_v33 = vadd.f32 %v1480_v58, %v1352_v63  ;;  %13499 = vst [vmem:[#allocation46_spill] sm:$0xff] %v9117_v43  ;;  %v158_v63 = vld [vmem:[%s13294_s1 + $0x3d0] sm:$0xff]  ;;  %v9129_v10 = vpop.permute.xlu0 %2579 }
  0xec   :  { %v7144_v57 = vpop.f32.mrb[10].mxu0  ;;  %13500 = vst [vmem:[#allocation47_spill] sm:$0xff] %v9129_v10 }
  0xed   :  { %7302 = vmatmul.mubr.msk.f32.gmra.mrb[116].mxu0 %vm165_vm1, %v153_v27  ;;  %v670_v12 = vpop.f32.mrb[11].mxu0  ;;  %v1870_v27 = vmul.f32 %v7801_v51, %v9096_v17  ;;  %v7803_v51 = vpop.eup %7802  ;;  %7806 = vtanh.f32 %v1608_v33 }
  0xee   :  { %v9102_v0 = vadd.f32 %v9007_v4, %v670_v12  ;;  %7304 = vmatprep.mubr.msk.f32.mxu0 %vm165_vm1, %v154_v39  ;;  %v1483_v12 = vld [vmem:[%s13296_s2 + $0x28] sm:$0xff]  ;;  %v1869_v5 = vmul.f32 %v7803_v51, %v9096_v17  ;;  %v9145_v33 = vpop.permute.xlu1 %2626 }
  0xef   :  { %v2001_v58 = vsel %vm1997_vm2, %v1870_v27, 0.0  ;;  %13501 = vst [vmem:[#allocation48_spill] sm:$0xff] %v9145_v33 }
  0xf0   :  { %v7147_v19 = vpop.f32.mrb[12].mxu0  ;;  %v1998_v33 = vsel %vm1997_vm2, %v1869_v5, 0.0 }
  0xf1   :  { %7305 = vmatmul.mubr.msk.f32.gmra.mrb[118].mxu0 %vm165_vm1, %v155_v52  ;;  %v680_v39 = vpop.f32.mrb[13].mxu0  ;;  %v1611_v52 = vadd.f32 %v1483_v12, %v1355_v25  ;;  %v159_v25 = vld [vmem:[%s13294_s1 + $0x3d8] sm:$0xff]  ;;  %v1359_v12 = vadd.f32 %v7141_v41, %v9007_v4  ;;  %v161_v41 = vld [vmem:[%s13294_s1 + $0x3e8] sm:$0xff] }
  0xf2   :  { %v9120_v11 = vadd.f32 %v9007_v4, %v680_v39  ;;  %7307 = vmatprep.mubr.msk.f32.mxu0 %vm165_vm1, %v156_v59  ;;  %v1357_v39 = vadd.f32 %v7138_v2, %v9007_v4  ;;  %v1485_v59 = vld [vmem:[%s13296_s2 + $0x38] sm:$0xff]  ;;  %v160_v2 = vld [vmem:[%s13294_s1 + $0x3e0] sm:$0xff]  ;;  %v9174_v10 = vpop.permute.xlu1 %2634 }
  0xf3   :  { %7808 = vtanh.f32 %v1611_v52  ;;  %v162_v52 = vld [vmem:[%s13294_s1 + $0x3f0] sm:$0xff]  ;;  %13503 = vst [vmem:[#allocation50_spill] sm:$0xff] %v9174_v10 }
  0xf4   :  { %v7150_v43 = vpop.f32.mrb[14].mxu0  ;;  %v1613_v27 = vadd.f32 %v1485_v59, %v1357_v39  ;;  %v1361_v59 = vadd.f32 %v7144_v57, %v9007_v4 }
  0xf5   :  { %7308 = vmatmul.mubr.msk.f32.gmra.mrb[120].mxu0 %vm165_vm1, %v157_v21  ;;  %v690_v45 = vpop.f32.mrb[15].mxu0 }
  0xf6   :  { %v9139_v53 = vadd.f32 %v9007_v4, %v690_v45  ;;  %7310 = vmatprep.mubr.msk.f32.mxu0 %vm165_vm1, %v158_v63  ;;  %v1487_v45 = vld [vmem:[%s13296_s2 + $0x48] sm:$0xff]  ;;  %v7805_v63 = vpop.eup %7804  ;;  %7810 = vtanh.f32 %v1613_v27 }
  0xf7   :  { %2002 = vadd.xlane.f32.xlu0 %v2001_v58  ;;  %v9157_v58 = vpop.permute.xlu0 %2590  ;;  %v1615_v39 = vadd.f32 %v1487_v45, %v1359_v12  ;;  %v1872_v5 = vmul.f32 %v7805_v63, %v9096_v17  ;;  %v7807_v27 = vpop.eup %7806  ;;  %v1363_v45 = vadd.f32 %v7147_v19, %v9007_v4 }
  0xf8   :  { %v7153_v21 = vpop.f32.mrb[16].mxu0  ;;  %13502 = vst [vmem:[#allocation49_spill] sm:$0xff] %v9157_v58  ;;  %v1871_v1 = vmul.f32 %v7807_v27, %v9096_v17 }
  0xf9   :  { %7311 = vmatmul.mubr.msk.f32.gmra.mrb[122].mxu0 %vm165_vm1, %v159_v25  ;;  %v9155_v51 = vpop.f32.mrb[17].mxu0  ;;  %v1276_v25 = vcombine.high %v8964_v22, %v8964_v22  ;;  %v163_v22 = vld [vmem:[%s13294_s1 + $0x3f8] sm:$0xff]  ;;  %7812 = vtanh.f32 %v1615_v39 }
  0xfa   :  { %7313 = vmatprep.mubr.msk.f32.mxu0 %vm165_vm1, %v160_v2  ;;  %v1489_v2 = vld [vmem:[%s13296_s2 + $0x58] sm:$0xff]  ;;  %v2004_v27 = vsel %vm1997_vm2, %v1871_v1, 0.0 }
  0xfb   :  { %1999 = vadd.xlane.f32.xlu0 %v1998_v33  ;;  %v9183_v57 = vpop.permute.xlu0 %2598  ;;  %v1617_v12 = vadd.f32 %v1489_v2, %v1361_v59  ;;  %v9187_v63 = vrot.slane %v1276_v25, %v8954_v16  ;;  %v9197_v59 = vpop.permute.xlu1 %2642  ;;  %v1365_v25 = vadd.f32 %v7150_v43, %v9007_v4 }
  0xfc   :  { %v7156_v58 = vpop.f32.mrb[18].mxu0  ;;  %13504 = vst [vmem:[#allocation51_spill] sm:$0xff] %v9183_v57  ;;  %13505 = vst [vmem:[#allocation52_spill] sm:$0xff] %v9197_v59 }
  0xfd   :  { %7314 = vmatmul.mubr.msk.f32.gmra.mrb[124].mxu0 %vm165_vm1, %v161_v41  ;;  %v9177_v33 = vpop.f32.mrb[19].mxu0  ;;  %v2007_v41 = vsel %vm1997_vm2, %v1872_v5, 0.0  ;;  %v7809_v39 = vpop.eup %7808  ;;  %7814 = vtanh.f32 %v1617_v12  ;;  %v9202_v5 = vrot.slane %v9187_v63, %v8396_v7 }
  0xfe   :  { %7316 = vmatprep.mubr.msk.f32.mxu0 %vm165_vm1, %v162_v52  ;;  %v1491_v52 = vld [vmem:[%s13296_s2 + $0x68] sm:$0xff]  ;;  %v1874_v57 = vmul.f32 %v7809_v39, %v9096_v17 }
  0xff   :  { %v1619_v19 = vadd.f32 %v1491_v52, %v1363_v45  ;;  %v9211_v12 = vpop.permute.xlu0 %2606  ;;  %v1367_v45 = vadd.f32 %v7153_v21, %v9202_v5  ;;  %v1495_v39 = vld [vmem:[%s13296_s2 + $0x88] sm:$0xff]  ;;  %v9219_v55 = vpop.permute.xlu1 %2650  ;;  %v1369_v21 = vadd.f32 %v7156_v58, %v9202_v5 }
 0x100   :  { %v7159_v10 = vpop.f32.mrb[20].mxu0  ;;  %13506 = vst [vmem:[#allocation53_spill] sm:$0xff] %v9211_v12  ;;  %v2013_v59 = vsel %vm1997_vm2, %v1874_v57, 0.0  ;;  %13507 = vst [vmem:[#allocation54_spill] sm:$0xff] %v9219_v55 }
 0x101   :  { %7317 = vmatmul.mubr.msk.f32.gmra.mrb[126].mxu0 %vm165_vm1, %v163_v22  ;;  %v9195_v37 = vpop.f32.mrb[21].mxu0  ;;  %v1493_v22 = vld [vmem:[%s13296_s2 + $0x78] sm:$0xff]  ;;  %7816 = vtanh.f32 %v1619_v19  ;;  %v1623_v19 = vadd.f32 %v1495_v39, %v1367_v45  ;;  %vm3791_vm1 = vcmask 982912  }
 0x102   :  { %v1621_v43 = vadd.f32 %v1493_v22, %v1365_v25  ;;  %v1497_v22 = vld [vmem:[%s13296_s2 + $0x98] sm:$0xff] }
 0x103   :  { %v9223_v12 = vpop.permute.xlu0 %2614  ;;  %v9233_v50 = vpop.permute.xlu1 %2661 }
 0x104   :  { %2008 = vadd.xlane.f32.xlu1 %v2007_v41  ;;  %v7162_v2 = vpop.f32.mrb[22].mxu0  ;;  %v7811_v41 = vpop.eup %7810  ;;  %13508 = vst [vmem:[#allocation55_spill] sm:$0xff] %v9223_v12  ;;  %7818 = vtanh.f32 %v1621_v43  ;;  %13509 = vst [vmem:[#allocation56_spill] sm:$0xff] %v9233_v50  ;;  %v1371_v43 = vadd.f32 %v7159_v10, %v9202_v5  ;;  %v1482_v10 = vld [vmem:[%s13296_s2 + $0x20] sm:$0xff] }
 0x105   :  { %v9209_v60 = vpop.f32.mrb[23].mxu0  ;;  %v1876_v1 = vmul.f32 %v7811_v41, %v9096_v17  ;;  %v7813_v35 = vpop.eup %7812  ;;  %7820 = vtanh.f32 %v1623_v19  ;;  %v1354_v19 = vadd.f32 %v9007_v4, %v9044_v23 }
 0x107   :  { %v2019_v57 = vsel %vm1997_vm2, %v1876_v1, 0.0  ;;  %v7815_v55 = vpop.eup %7814  ;;  %v1499_v1 = vld [vmem:[%s13296_s2 + $0xa8] sm:$0xff]  ;;  %v9244_v50 = vpop.permute.xlu0 %2622 }
 0x108   :  { %2005 = vadd.xlane.f32.xlu1 %v2004_v27  ;;  %v7165_v52 = vpop.f32.mrb[24].mxu0  ;;  %v1878_v27 = vmul.f32 %v7813_v35, %v9096_v17  ;;  %v1880_v35 = vmul.f32 %v7815_v55, %v9096_v17  ;;  %13510 = vst [vmem:[#allocation57_spill] sm:$0xff] %v9244_v50  ;;  %v1373_v55 = vadd.f32 %v7162_v2, %v9202_v5  ;;  %v1501_v50 = vld [vmem:[%s13296_s2 + $0xb8] sm:$0xff]  ;;  %v9257_v8 = vpop.permute.xlu1 %2669 }
 0x109   :  { %v9221_v54 = vpop.f32.mrb[25].mxu0  ;;  %13511 = vst [vmem:[#allocation58_spill] sm:$0xff] %v9257_v8  ;;  %v1356_v2 = vadd.f32 %v9007_v4, %v9059_v31  ;;  %v1503_v4 = vld [vmem:[%s13296_s2 + $0xc8] sm:$0xff] }
 0x10a   :  { %v2025_v45 = vsel %vm1997_vm2, %v1878_v27, 0.0  ;;  %v2031_v27 = vsel %vm1997_vm2, %v1880_v35, 0.0  ;;  %v1375_v35 = vadd.f32 %v7165_v52, %v9202_v5 }
 0x10b   :  { %v7817_v12 = vpop.eup %7816 }
 0x10c   :  { %2014 = vadd.xlane.f32.xlu1 %v2013_v59  ;;  %v7168_v25 = vpop.f32.mrb[26].mxu0  ;;  %v1625_v59 = vadd.f32 %v1497_v22, %v1369_v21  ;;  %v1627_v21 = vadd.f32 %v1499_v1, %v1371_v43  ;;  %v1882_v22 = vmul.f32 %v7817_v12, %v9096_v17  ;;  %v9264_v43 = vpop.permute.xlu0 %2630  ;;  %v1484_v12 = vld [vmem:[%s13296_s2 + $0x30] sm:$0xff]  ;;  %v1631_v52 = vadd.f32 %v1503_v4, %v1375_v35 }
 0x10d   :  { %v9231_v41 = vpop.f32.mrb[27].mxu0  ;;  %13512 = vst [vmem:[#allocation59_spill] sm:$0xff] %v9264_v43  ;;  %v9277_v43 = vpop.permute.xlu1 %2677 }
 0x10e   :  { %7822 = vtanh.f32 %v1625_v59  ;;  %v7819_v46 = vpop.eup %7818  ;;  %v1610_v59 = vadd.f32 %v1482_v10, %v1354_v19  ;;  %v2037_v8 = vsel %vm1997_vm2, %v1882_v22, 0.0  ;;  %v1612_v10 = vadd.f32 %v1484_v12, %v1356_v2  ;;  %13513 = vst [vmem:[#allocation60_spill] sm:$0xff] %v9277_v43  ;;  %v1505_v22 = vld [vmem:[%s13296_s2 + $0xd8] sm:$0xff] }
 0x10f   :  { %7824 = vtanh.f32 %v1627_v21  ;;  %v7821_v19 = vpop.eup %7820 }
 0x110   :  { %2020 = vadd.xlane.f32.xlu1 %v2019_v57  ;;  %v7171_v58 = vpop.f32.mrb[28].mxu0  ;;  %7826 = vtanh.f32 %v1610_v59  ;;  %v9290_v12 = vpop.permute.xlu0 %2638 }
 0x111   :  { %2839 = vbcast.lane.b32.xlu0 %v8916_v47, 352  ;;  %v9242_v39 = vpop.f32.mrb[29].mxu0  ;;  %13514 = vst [vmem:[#allocation61_spill] sm:$0xff] %v9290_v12  ;;  %v1379_v35 = vadd.f32 %v7171_v58, %v9202_v5 }
 0x114   :  { %2026 = vadd.xlane.f32.xlu1 %v2025_v45  ;;  %v7174_v57 = vpop.f32.mrb[30].mxu0  ;;  %v1629_v45 = vadd.f32 %v1501_v50, %v1373_v55  ;;  %v1486_v50 = vld [vmem:[%s13296_s2 + $0x40] sm:$0xff] }
 0x115   :  { %v770_v23 = vpop.f32.mrb[31].mxu0 }
 0x116   :  { %v9260_v61 = vadd.f32 %v9202_v5, %v770_v23  ;;  %v1884_v23 = vmul.f32 %v7819_v46, %v9096_v17  ;;  %7828 = vtanh.f32 %v1629_v45  ;;  %v1377_v46 = vadd.f32 %v7168_v25, %v9202_v5  ;;  %v1488_v25 = vld [vmem:[%s13296_s2 + $0x50] sm:$0xff] }
 0x117   :  { %7830 = vtanh.f32 %v1612_v10  ;;  %v1616_v58 = vadd.f32 %v1488_v25, %v9102_v0  ;;  %v1509_v25 = vld [vmem:[%s13296_s2 + $0xf8] sm:$0xff] }
 0x118   :  { %2032 = vadd.xlane.f32.xlu1 %v2031_v27  ;;  %v7177_v1 = vpop.f32.mrb[32].mxu0  ;;  %v2043_v55 = vsel %vm1997_vm2, %v1884_v23, 0.0  ;;  %v1886_v27 = vmul.f32 %v7821_v19, %v9096_v17  ;;  %v7823_v2 = vpop.eup %7822  ;;  %7832 = vtanh.f32 %v1631_v52  ;;  %v1633_v45 = vadd.f32 %v1505_v22, %v1377_v46 }
 0x119   :  { %v9275_v31 = vpop.f32.mrb[33].mxu0  ;;  %v1306_v23 = vcombine.high %v8989_v49, %v8989_v49  ;;  %v1888_v10 = vmul.f32 %v7823_v2, %v9096_v17  ;;  %v7825_v52 = vpop.eup %7824  ;;  %v1490_v49 = vld [vmem:[%s13296_s2 + $0x60] sm:$0xff]  ;;  %v1381_v22 = vadd.f32 %v7174_v57, %v9202_v5 }
 0x11a   :  { %v2049_v19 = vsel %vm1997_vm2, %v1886_v27, 0.0  ;;  %v9311_v46 = vpop.permute.xlu0 %2646  ;;  %v7827_v43 = vpop.eup %7826  ;;  %v1890_v0 = vmul.f32 %v7825_v52, %v9096_v17  ;;  %v1618_v57 = vadd.f32 %v1490_v49, %v9120_v11  ;;  %v1511_v49 = vld [vmem:[%s13296_s2 + $0x108] sm:$0xff] }
 0x11b   :  { %13516 = vst [vmem:[#allocation63_spill] sm:$0xff] %v9311_v46  ;;  %v9318_v2 = vrot.slane %v1306_v23, %v8396_v7  ;;  %v1492_v23 = vld [vmem:[%s13296_s2 + $0x70] sm:$0xff] }
 0x11c   :  { %2038 = vadd.xlane.f32.xlu1 %v2037_v8  ;;  %v7180_v21 = vpop.f32.mrb[34].mxu0  ;;  %v1614_v8 = vadd.f32 %v1486_v50, %v9078_v6  ;;  %v1507_v6 = vld [vmem:[%s13296_s2 + $0xe8] sm:$0xff]  ;;  %v9306_v50 = vpop.permute.xlu1 %2685  ;;  %v2061_v12 = vsel %vm1997_vm2, %v1890_v0, 0.0 }
 0x11d   :  { %v9288_v59 = vpop.f32.mrb[35].mxu0  ;;  %13515 = vst [vmem:[#allocation62_spill] sm:$0xff] %v9306_v50  ;;  %v1635_v27 = vadd.f32 %v1507_v6, %v1379_v35 }
 0x11e   :  { %7834 = vtanh.f32 %v1614_v8  ;;  %v2055_v8 = vsel %vm1997_vm2, %v1888_v10, 0.0  ;;  %v1383_v10 = vadd.f32 %v7177_v1, %v9318_v2  ;;  %v1620_v1 = vadd.f32 %v1492_v23, %v9139_v53 }
 0x11f   :  { %7836 = vtanh.f32 %v1633_v45 }
 0x120   :  { %2044 = vadd.xlane.f32.xlu1 %v2043_v55  ;;  %v9299_v4 = vpop.f32.mrb[36].mxu0  ;;  %v7829_v45 = vpop.eup %7828  ;;  %7838 = vtanh.f32 %v1616_v58  ;;  %v1873_v58 = vmul.f32 %v7827_v43, %v9096_v17  ;;  %v1494_v43 = vld [vmem:[%s13296_s2 + $0x80] sm:$0xff]  ;;  %v1639_v0 = vadd.f32 %v1511_v49, %v1383_v10 }
 0x121   :  { %v9308_v55 = vpop.f32.mrb[37].mxu0  ;;  %v9330_v35 = vpop.permute.xlu1 %2693  ;;  %7840 = vtanh.f32 %v1635_v27  ;;  %v1892_v11 = vmul.f32 %v7829_v45, %v9096_v17 }
 0x122   :  { %13517 = vst [vmem:[#allocation64_spill] sm:$0xff] %v9330_v35  ;;  %v7831_v52 = vpop.eup %7830  ;;  %v9346_v27 = vpop.permute.xlu0 %2657  ;;  %7842 = vtanh.f32 %v1618_v57 }
 0x123   :  { %13518 = vst [vmem:[#allocation65_spill] sm:$0xff] %v9346_v27  ;;  %v2010_v27 = vsel %vm1997_vm2, %v1873_v58, 0.0  ;;  %v2067_v57 = vsel %vm1997_vm2, %v1892_v11, 0.0  ;;  %v1875_v53 = vmul.f32 %v7831_v52, %v9096_v17  ;;  %v1368_v58 = vadd.f32 %v9202_v5, %v9177_v33  ;;  %v1496_v52 = vld [vmem:[%s13296_s2 + $0x90] sm:$0xff] }
 0x124   :  { %2050 = vadd.xlane.f32.xlu1 %v2049_v19  ;;  %v9320_v50 = vpop.f32.mrb[38].mxu0  ;;  %v1637_v19 = vadd.f32 %v1509_v25, %v1381_v22  ;;  %v1366_v22 = vadd.f32 %v9202_v5, %v9155_v51  ;;  %v1385_v25 = vadd.f32 %v7180_v21, %v9318_v2 }
 0x125   :  { %v9327_v46 = vpop.f32.mrb[39].mxu0  ;;  %v9361_v23 = vpop.permute.xlu1 %2701 }
 0x126   :  { %7844 = vtanh.f32 %v1637_v19  ;;  %13519 = vst [vmem:[#allocation66_spill] sm:$0xff] %v9361_v23  ;;  %v1622_v10 = vadd.f32 %v1494_v43, %v1366_v22  ;;  %v9370_v49 = vpop.permute.xlu0 %2665  ;;  %v2016_v22 = vsel %vm1997_vm2, %v1875_v53, 0.0 }
 0x127   :  { %7846 = vtanh.f32 %v1620_v1  ;;  %13520 = vst [vmem:[#allocation67_spill] sm:$0xff] %v9370_v49 }
 0x128   :  { %2056 = vadd.xlane.f32.xlu1 %v2055_v8  ;;  %v9336_v6 = vpop.f32.mrb[40].mxu0  ;;  %v7833_v8 = vpop.eup %7832  ;;  %7848 = vtanh.f32 %v1639_v0 }
 0x129   :  { %v9344_v35 = vpop.f32.mrb[41].mxu0  ;;  %v7835_v42 = vpop.eup %7834  ;;  %v1894_v51 = vmul.f32 %v7833_v8, %v9096_v17  ;;  %v1387_v8 = vadd.f32 %v9299_v4, %v9318_v2  ;;  %7850 = vtanh.f32 %v1622_v10  ;;  %v1624_v4 = vadd.f32 %v1496_v52, %v1368_v58 }
 0x12a   :  { %v7837_v21 = vpop.eup %7836  ;;  %v1877_v43 = vmul.f32 %v7835_v42, %v9096_v17  ;;  %v1498_v42 = vld [vmem:[%s13296_s2 + $0xa0] sm:$0xff] }
 0x12b   :  { %v7839_v1 = vpop.eup %7838  ;;  %v2073_v33 = vsel %vm1997_vm2, %v1894_v51, 0.0  ;;  %v1896_v49 = vmul.f32 %v7837_v21, %v9096_v17  ;;  %v1389_v51 = vadd.f32 %v9320_v50, %v9318_v2 }
 0x12c   :  { %2062 = vadd.xlane.f32.xlu1 %v2061_v12  ;;  %v9355_v45 = vpop.f32.mrb[42].mxu0  ;;  %v1513_v12 = vld [vmem:[%s13296_s2 + $0x118] sm:$0xff]  ;;  %v2022_v58 = vsel %vm1997_vm2, %v1877_v43, 0.0  ;;  %v1879_v52 = vmul.f32 %v7839_v1, %v9096_v17  ;;  %v1500_v1 = vld [vmem:[%s13296_s2 + $0xb0] sm:$0xff] }
 0x12d   :  { %v9366_v19 = vpop.f32.mrb[43].mxu0  ;;  %v1641_v11 = vadd.f32 %v1513_v12, %v1385_v25  ;;  %v7841_v25 = vpop.eup %7840 }
 0x12e   :  { %v9390_v12 = vpop.permute.xlu1 %2709  ;;  %v7843_v10 = vpop.eup %7842 }
 0x12f   :  { %13521 = vst [vmem:[#allocation68_spill] sm:$0xff] %v9390_v12  ;;  %7852 = vtanh.f32 %v1641_v11  ;;  %v1898_v12 = vmul.f32 %v7841_v25, %v9096_v17  ;;  %v1391_v25 = vadd.f32 %v9336_v6, %v9318_v2 }
 0x130   :  { %2011 = vadd.xlane.f32.xlu0 %v2010_v27  ;;  %2068 = vadd.xlane.f32.xlu1 %v2067_v57  ;;  %v9377_v23 = vpop.f32.mrb[44].mxu0  ;;  %v1515_v27 = vld [vmem:[%s13296_s2 + $0x128] sm:$0xff]  ;;  %v1370_v57 = vadd.f32 %v9202_v5, %v9195_v37  ;;  %v2079_v37 = vsel %vm1997_vm2, %v1896_v49, 0.0  ;;  %7854 = vtanh.f32 %v1624_v4  ;;  %v1372_v49 = vadd.f32 %v9202_v5, %v9209_v60 }
 0x131   :  { %v9386_v0 = vpop.f32.mrb[45].mxu0  ;;  %v1643_v53 = vadd.f32 %v1515_v27, %v1387_v8  ;;  %v7845_v8 = vpop.eup %7844  ;;  %v2028_v4 = vsel %vm1997_vm2, %v1879_v52, 0.0  ;;  %v1881_v60 = vmul.f32 %v7843_v10, %v9096_v17 }
 0x132   :  { %v1626_v27 = vadd.f32 %v1498_v42, %v1370_v57  ;;  %v2085_v57 = vsel %vm1997_vm2, %v1898_v12, 0.0  ;;  %v9422_v42 = vpop.permute.xlu1 %2717  ;;  %v1900_v40 = vmul.f32 %v7845_v8, %v9096_v17  ;;  %v1502_v12 = vld [vmem:[%s13296_s2 + $0xc0] sm:$0xff] }
 0x133   :  { %7856 = vtanh.f32 %v1643_v53  ;;  %13523 = vst [vmem:[#allocation70_spill] sm:$0xff] %v9422_v42  ;;  %v1519_v53 = vld [vmem:[%s13296_s2 + $0x148] sm:$0xff] }
 0x134   :  { %2017 = vadd.xlane.f32.xlu0 %v2016_v22  ;;  %2074 = vadd.xlane.f32.xlu1 %v2073_v33  ;;  %v9397_v21 = vpop.f32.mrb[46].mxu0  ;;  %v1517_v22 = vld [vmem:[%s13296_s2 + $0x138] sm:$0xff]  ;;  %v9406_v33 = vpop.permute.xlu0 %2673  ;;  %7858 = vtanh.f32 %v1626_v27  ;;  %v1647_v10 = vadd.f32 %v1519_v53, %v1391_v25 }
 0x135   :  { %v850_v11 = vpop.f32.mrb[47].mxu0  ;;  %13522 = vst [vmem:[#allocation69_spill] sm:$0xff] %v9406_v33  ;;  %v1645_v43 = vadd.f32 %v1517_v22, %v1389_v51  ;;  %v1393_v22 = vadd.f32 %v9355_v45, %v9318_v2 }
 0x136   :  { %v9409_v50 = vadd.f32 %v9318_v2, %v850_v11  ;;  %v7847_v11 = vpop.eup %7846  ;;  %v9453_v53 = vpop.permute.xlu1 %2728 }
 0x137   :  { %v7849_v6 = vpop.eup %7848  ;;  %7860 = vtanh.f32 %v1645_v43  ;;  %13525 = vst [vmem:[#allocation72_spill] sm:$0xff] %v9453_v53 }
 0x138   :  { %2023 = vadd.xlane.f32.xlu0 %v2022_v58  ;;  %2080 = vadd.xlane.f32.xlu1 %v2079_v37  ;;  %v9418_v33 = vpop.f32.mrb[48].mxu0  ;;  %v1628_v58 = vadd.f32 %v1500_v1, %v1372_v49  ;;  %v1374_v37 = vadd.f32 %v9202_v5, %v9221_v54  ;;  %v9433_v52 = vpop.permute.xlu0 %2681  ;;  %v2034_v49 = vsel %vm1997_vm2, %v1881_v60, 0.0  ;;  %v2091_v54 = vsel %vm1997_vm2, %v1900_v40, 0.0  ;;  %v1504_v40 = vld [vmem:[%s13296_s2 + $0xd0] sm:$0xff] }
 0x139   :  { %v9429_v51 = vpop.f32.mrb[49].mxu0  ;;  %13524 = vst [vmem:[#allocation71_spill] sm:$0xff] %v9433_v52  ;;  %v7851_v27 = vpop.eup %7850  ;;  %v1883_v1 = vmul.f32 %v7847_v11, %v9096_v17  ;;  %v1902_v42 = vmul.f32 %v7849_v6, %v9096_v17  ;;  %v1395_v60 = vadd.f32 %v9377_v23, %v9318_v2  ;;  %v1308_v6 = vcombine.high %v9187_v63, %v9187_v63 }
 0x13a   :  { %v7853_v25 = vpop.eup %7852  ;;  %7862 = vtanh.f32 %v1628_v58  ;;  %v1630_v45 = vadd.f32 %v1502_v12, %v1374_v37 }
 0x13b   :  { %7864 = vtanh.f32 %v1647_v10  ;;  %v7855_v37 = vpop.eup %7854  ;;  %v2097_v12 = vsel %vm1997_vm2, %v1902_v42, 0.0  ;;  %v1904_v53 = vmul.f32 %v7853_v25, %v9096_v17  ;;  %v1523_v10 = vld [vmem:[%s13296_s2 + $0x168] sm:$0xff]  ;;  %v1506_v42 = vld [vmem:[%s13296_s2 + $0xe0] sm:$0xff]  ;;  %v9483_v25 = vrot.slane %v1308_v6, %v8396_v7 }
 0x13c   :  { %2029 = vadd.xlane.f32.xlu0 %v2028_v4  ;;  %2086 = vadd.xlane.f32.xlu1 %v2085_v57  ;;  %v9440_v8 = vpop.f32.mrb[50].mxu0  ;;  %v1521_v4 = vld [vmem:[%s13296_s2 + $0x158] sm:$0xff]  ;;  %v1376_v57 = vadd.f32 %v9202_v5, %v9231_v41  ;;  %v2040_v41 = vsel %vm1997_vm2, %v1883_v1, 0.0  ;;  %7866 = vtanh.f32 %v1630_v45  ;;  %v1378_v1 = vadd.f32 %v9202_v5, %v9242_v39 }
 0x13d   :  { %v9449_v43 = vpop.f32.mrb[51].mxu0  ;;  %v1649_v11 = vadd.f32 %v1521_v4, %v1393_v22  ;;  %v7857_v23 = vpop.eup %7856  ;;  %v1397_v4 = vadd.f32 %v9397_v21, %v9318_v2  ;;  %v2103_v5 = vsel %vm1997_vm2, %v1904_v53, 0.0  ;;  %v1525_v21 = vld [vmem:[%s13296_s2 + $0x178] sm:$0xff]  ;;  %v1508_v53 = vld [vmem:[%s13296_s2 + $0xf0] sm:$0xff] }
 0x13e   :  { %v1632_v63 = vadd.f32 %v1504_v40, %v1376_v57  ;;  %v7859_v45 = vpop.eup %7858  ;;  %v9487_v57 = vpop.permute.xlu1 %2736  ;;  %v1906_v40 = vmul.f32 %v7857_v23, %v9096_v17 }
 0x13f   :  { %7868 = vtanh.f32 %v1649_v11  ;;  %13527 = vst [vmem:[#allocation74_spill] sm:$0xff] %v9487_v57  ;;  %v1887_v11 = vmul.f32 %v7855_v37, %v9096_v17  ;;  %v1399_v37 = vadd.f32 %v9418_v33, %v9483_v25  ;;  %v1636_v33 = vadd.f32 %v1508_v53, %v9260_v61 }
 0x140   :  { %2035 = vadd.xlane.f32.xlu0 %v2034_v49  ;;  %2092 = vadd.xlane.f32.xlu1 %v2091_v54  ;;  %v9462_v58 = vpop.f32.mrb[52].mxu0  ;;  %v1885_v49 = vmul.f32 %v7851_v27, %v9096_v17  ;;  %v9473_v54 = vpop.permute.xlu0 %2689  ;;  %v1651_v27 = vadd.f32 %v1523_v10, %v1395_v60  ;;  %7870 = vtanh.f32 %v1632_v63  ;;  %v2109_v57 = vsel %vm1997_vm2, %v1906_v40, 0.0 }
 0x141   :  { %v9471_v22 = vpop.f32.mrb[53].mxu0  ;;  %13526 = vst [vmem:[#allocation73_spill] sm:$0xff] %v9473_v54  ;;  %v7861_v6 = vpop.eup %7860  ;;  %v2052_v63 = vsel %vm1997_vm2, %v1887_v11, 0.0  ;;  %v1510_v11 = vld [vmem:[%s13296_s2 + $0x100] sm:$0xff] }
 0x142   :  { %v2046_v39 = vsel %vm1997_vm2, %v1885_v49, 0.0  ;;  %7872 = vtanh.f32 %v1651_v27  ;;  %v1653_v49 = vadd.f32 %v1525_v21, %v1397_v4  ;;  %v9519_v40 = vpop.permute.xlu1 %2744  ;;  %v1401_v21 = vadd.f32 %v9440_v8, %v9483_v25 }
 0x143   :  { %13529 = vst [vmem:[#allocation76_spill] sm:$0xff] %v9519_v40 }
 0x144   :  { %2041 = vadd.xlane.f32.xlu0 %v2040_v41  ;;  %2098 = vadd.xlane.f32.xlu1 %v2097_v12  ;;  %v9485_v54 = vpop.f32.mrb[54].mxu0  ;;  %v1634_v41 = vadd.f32 %v1506_v42, %v1378_v1  ;;  %v9498_v12 = vpop.permute.xlu0 %2697  ;;  %v1908_v1 = vmul.f32 %v7861_v6, %v9096_v17  ;;  %v1889_v42 = vmul.f32 %v7859_v45, %v9096_v17 }
 0x145   :  { %v9496_v60 = vpop.f32.mrb[55].mxu0  ;;  %13528 = vst [vmem:[#allocation75_spill] sm:$0xff] %v9498_v12  ;;  %v7863_v23 = vpop.eup %7862 }
 0x146   :  { %v7865_v4 = vpop.eup %7864  ;;  %7874 = vtanh.f32 %v1634_v41  ;;  %v2115_v61 = vsel %vm1997_vm2, %v1908_v1, 0.0  ;;  %v1891_v40 = vmul.f32 %v7863_v23, %v9096_v17  ;;  %v1384_v1 = vadd.f32 %v9318_v2, %v9288_v59 }
 0x147   :  { %7876 = vtanh.f32 %v1653_v49  ;;  %v7867_v41 = vpop.eup %7866  ;;  %v1910_v53 = vmul.f32 %v7865_v4, %v9096_v17 }
 0x148   :  { %2104 = vadd.xlane.f32.xlu1 %v2103_v5  ;;  %2047 = vadd.xlane.f32.xlu0 %v2046_v39  ;;  %v9505_v10 = vpop.f32.mrb[56].mxu0  ;;  %v1527_v5 = vld [vmem:[%s13296_s2 + $0x188] sm:$0xff]  ;;  %v1382_v39 = vadd.f32 %v9318_v2, %v9275_v31  ;;  %v2058_v31 = vsel %vm1997_vm2, %v1889_v42, 0.0  ;;  %7878 = vtanh.f32 %v1636_v33  ;;  %v1512_v42 = vld [vmem:[%s13296_s2 + $0x110] sm:$0xff]  ;;  %v2064_v59 = vsel %vm1997_vm2, %v1891_v40, 0.0  ;;  %v1514_v40 = vld [vmem:[%s13296_s2 + $0x120] sm:$0xff] }
 0x149   :  { %v9514_v27 = vpop.f32.mrb[57].mxu0  ;;  %v1655_v45 = vadd.f32 %v1527_v5, %v1399_v37  ;;  %v7869_v37 = vpop.eup %7868  ;;  %v1403_v5 = vadd.f32 %v9462_v58, %v9483_v25  ;;  %v2121_v33 = vsel %vm1997_vm2, %v1910_v53, 0.0  ;;  %v1405_v53 = vadd.f32 %v9485_v54, %v9483_v25 }
 0x14a   :  { %v1638_v8 = vadd.f32 %v1510_v11, %v1382_v39  ;;  %v7871_v12 = vpop.eup %7870  ;;  %v1912_v39 = vmul.f32 %v7869_v37, %v9096_v17  ;;  %v1893_v11 = vmul.f32 %v7867_v41, %v9096_v17 }
 0x14b   :  { %7880 = vtanh.f32 %v1655_v45  ;;  %v1531_v45 = vld [vmem:[%s13296_s2 + $0x1a8] sm:$0xff] }
 0x14c   :  { %2110 = vadd.xlane.f32.xlu1 %v2109_v57  ;;  %2053 = vadd.xlane.f32.xlu0 %v2052_v63  ;;  %v9526_v6 = vpop.f32.mrb[58].mxu0  ;;  %v1529_v57 = vld [vmem:[%s13296_s2 + $0x198] sm:$0xff]  ;;  %v9537_v63 = vpop.permute.xlu0 %2705  ;;  %7882 = vtanh.f32 %v1638_v8  ;;  %v1659_v41 = vadd.f32 %v1531_v45, %v1403_v5 }
 0x14d   :  { %v9535_v49 = vpop.f32.mrb[59].mxu0  ;;  %13530 = vst [vmem:[#allocation77_spill] sm:$0xff] %v9537_v63  ;;  %v1657_v23 = vadd.f32 %v1529_v57, %v1401_v21  ;;  %v9548_v63 = vpop.permute.xlu1 %2752 }
 0x14e   :  { %13531 = vst [vmem:[#allocation78_spill] sm:$0xff] %v9548_v63  ;;  %v7873_v58 = vpop.eup %7872  ;;  %v1895_v63 = vmul.f32 %v7871_v12, %v9096_v17  ;;  %v1516_v12 = vld [vmem:[%s13296_s2 + $0x130] sm:$0xff] }
 0x14f   :  { %7884 = vtanh.f32 %v1657_v23 }
 0x150   :  { %2116 = vadd.xlane.f32.xlu1 %v2115_v61  ;;  %2059 = vadd.xlane.f32.xlu0 %v2058_v31  ;;  %v9546_v4 = vpop.f32.mrb[60].mxu0  ;;  %v1640_v61 = vadd.f32 %v1512_v42, %v1384_v1  ;;  %v1386_v31 = vadd.f32 %v9318_v2, %v9308_v55  ;;  %v9561_v57 = vpop.permute.xlu0 %2713  ;;  %v2127_v1 = vsel %vm1997_vm2, %v1912_v39, 0.0  ;;  %v2070_v55 = vsel %vm1997_vm2, %v1893_v11, 0.0 }
 0x151   :  { %v9557_v21 = vpop.f32.mrb[61].mxu0  ;;  %13532 = vst [vmem:[#allocation79_spill] sm:$0xff] %v9561_v57  ;;  %v7875_v8 = vpop.eup %7874  ;;  %v1914_v42 = vmul.f32 %v7873_v58, %v9096_v17  ;;  %v1388_v39 = vadd.f32 %v9318_v2, %v9327_v46  ;;  %v1407_v58 = vadd.f32 %v9505_v10, %v9483_v25  ;;  %v1535_v10 = vld [vmem:[%s13296_s2 + $0x1c8] sm:$0xff] }
 0x152   :  { %v7877_v5 = vpop.eup %7876  ;;  %7886 = vtanh.f32 %v1640_v61  ;;  %v1642_v54 = vadd.f32 %v1514_v40, %v1386_v31  ;;  %v9582_v45 = vpop.permute.xlu1 %2760  ;;  %v8318_v61 = vld [vmem:[%s13295_s0] sm:$0xff] }
 0x153   :  { %13533 = vst [vmem:[#allocation80_spill] sm:$0xff] %v9582_v45  ;;  %7888 = vtanh.f32 %v1659_v41  ;;  %v1261_v46 = vcombine.high %v8318_v61, %v8318_v61  ;;  %v7879_v31 = vpop.eup %7878  ;;  %v2133_v40 = vsel %vm1997_vm2, %v1914_v42, 0.0  ;;  %v2076_v45 = vsel %vm1997_vm2, %v1895_v63, 0.0  ;;  %v1518_v63 = vld [vmem:[%s13296_s2 + $0x140] sm:$0xff] }
 0x154   :  { %2122 = vadd.xlane.f32.xlu1 %v2121_v33  ;;  %2065 = vadd.xlane.f32.xlu0 %v2064_v59  ;;  %v9568_v37 = vpop.f32.mrb[62].mxu0  ;;  %v1533_v33 = vld [vmem:[%s13296_s2 + $0x1b8] sm:$0xff]  ;;  %v1897_v41 = vmul.f32 %v7875_v8, %v9096_v17  ;;  %7890 = vtanh.f32 %v1642_v54  ;;  %v1644_v61 = vadd.f32 %v1516_v12, %v1388_v39  ;;  %v1390_v42 = vadd.f32 %v9318_v2, %v9344_v35 }
 0x155   :  { %v930_v23 = vpop.f32.mrb[63].mxu0  ;;  %v1661_v11 = vadd.f32 %v1533_v33, %v1405_v53  ;;  %v9603_v33 = vpop.permute.xlu0 %2724  ;;  %v1663_v8 = vadd.f32 %v1535_v10, %v1407_v58  ;;  %v9613_v57 = vrot.slane %v1261_v46, %v8954_v16  ;;  %v1392_v10 = vadd.f32 %v9318_v2, %v9366_v19 }
 0x156   :  { %v9578_v59 = vadd.f32 %v9483_v25, %v930_v23  ;;  %13534 = vst [vmem:[#allocation81_spill] sm:$0xff] %v9603_v33  ;;  %v9617_v39 = vpop.permute.xlu1 %2768  ;;  %v2082_v12 = vsel %vm1997_vm2, %v1897_v41, 0.0  ;;  %v1646_v46 = vadd.f32 %v1518_v63, %v1390_v42  ;;  %v1411_v41 = vadd.f32 %v9546_v4, %v9483_v25 }
 0x157   :  { %7892 = vtanh.f32 %v1661_v11  ;;  %13535 = vst [vmem:[#allocation82_spill] sm:$0xff] %v9617_v39 }
 0x158   :  { %2128 = vadd.xlane.f32.xlu1 %v2127_v1  ;;  %2071 = vadd.xlane.f32.xlu0 %v2070_v55  ;;  %v9589_v23 = vpop.f32.mrb[64].mxu0  ;;  %v1916_v1 = vmul.f32 %v7877_v5, %v9096_v17  ;;  %v7881_v55 = vpop.eup %7880  ;;  %v1409_v5 = vadd.f32 %v9526_v6, %v9483_v25  ;;  %v1537_v6 = vld [vmem:[%s13296_s2 + $0x1d8] sm:$0xff]  ;;  %7894 = vtanh.f32 %v1644_v61 }
 0x159   :  { %v9601_v53 = vpop.f32.mrb[65].mxu0  ;;  %v7883_v54 = vpop.eup %7882  ;;  %7896 = vtanh.f32 %v1663_v8  ;;  %v1539_v8 = vld [vmem:[%s13296_s2 + $0x1e8] sm:$0xff] }
 0x15a   :  { %v2139_v35 = vsel %vm1997_vm2, %v1916_v1, 0.0  ;;  %v7885_v58 = vpop.eup %7884  ;;  %v9630_v39 = vpop.permute.xlu0 %2732  ;;  %v1665_v1 = vadd.f32 %v1537_v6, %v1409_v5  ;;  %7898 = vtanh.f32 %v1646_v46  ;;  %v1394_v6 = vadd.f32 %v9318_v2, %v9386_v0 }
 0x15b   :  { %13536 = vst [vmem:[#allocation83_spill] sm:$0xff] %v9630_v39  ;;  %v1901_v39 = vmul.f32 %v7883_v54, %v9096_v17  ;;  %v9654_v52 = vpop.permute.xlu1 %2776  ;;  %v1522_v54 = vld [vmem:[%s13296_s2 + $0x160] sm:$0xff] }
 0x15c   :  { %2134 = vadd.xlane.f32.xlu1 %v2133_v40  ;;  %2077 = vadd.xlane.f32.xlu0 %v2076_v45  ;;  %v9615_v33 = vpop.f32.mrb[66].mxu0  ;;  %v1899_v40 = vmul.f32 %v7879_v31, %v9096_v17  ;;  %v1918_v45 = vmul.f32 %v7881_v55, %v9096_v17  ;;  %v1520_v31 = vld [vmem:[%s13296_s2 + $0x150] sm:$0xff]  ;;  %v9639_v55 = vrot.slane %v9613_v57, %v8954_v16  ;;  %v7887_v19 = vpop.eup %7886  ;;  %7900 = vtanh.f32 %v1665_v1  ;;  %v1541_v1 = vld [vmem:[%s13296_s2 + $0x1f8] sm:$0xff] }
 0x15d   :  { %v9626_v11 = vpop.f32.mrb[67].mxu0  ;;  %v7889_v5 = vpop.eup %7888  ;;  %13537 = vst [vmem:[#allocation84_spill] sm:$0xff] %v9654_v52  ;;  %v2094_v0 = vsel %vm1997_vm2, %v1901_v39, 0.0  ;;  %v1524_v39 = vld [vmem:[%s13296_s2 + $0x170] sm:$0xff] }
 0x15e   :  { %v2088_v42 = vsel %vm1997_vm2, %v1899_v40, 0.0  ;;  %v2145_v63 = vsel %vm1997_vm2, %v1918_v45, 0.0  ;;  %v1667_v40 = vadd.f32 %v1539_v8, %v1411_v41  ;;  %v1413_v45 = vadd.f32 %v9568_v37, %v9483_v25  ;;  %v7891_v2 = vpop.eup %7890 }
 0x15f   :  { %v1650_v8 = vadd.f32 %v1522_v54, %v1394_v6  ;;  %v9685_v52 = vpop.permute.xlu1 %2784  ;;  %v9692_v6 = vld [vmem:[%s13297_s6] ss:$0 sm:$0xff] }
 0x160   :  { %2140 = vadd.xlane.f32.xlu1 %v2139_v35  ;;  %2083 = vadd.xlane.f32.xlu0 %v2082_v12  ;;  %v9641_v61 = vpop.f32.mrb[68].mxu0  ;;  %v1920_v35 = vmul.f32 %v7885_v58, %v9096_v17  ;;  %v1648_v12 = vadd.f32 %v1520_v31, %v1392_v10  ;;  %v9663_v58 = vrot.slane %v9639_v55, %v8396_v7 }
 0x161   :  { %v9650_v4 = vpop.f32.mrb[69].mxu0  ;;  %v1903_v31 = vmul.f32 %v7887_v19, %v9096_v17  ;;  %v7893_v41 = vpop.eup %7892  ;;  %v1669_v19 = vadd.f32 %v1541_v1, %v1413_v45  ;;  %13539 = vst [vmem:[#allocation86_spill] sm:$0xff] %v9685_v52  ;;  %v1905_v54 = vmul.f32 %v9692_v6, %v7891_v2  ;;  %v1526_v2 = vld [vmem:[%s13296_s2 + $0x180] sm:$0xff] }
 0x162   :  { %v2151_v10 = vsel %vm1997_vm2, %v1920_v35, 0.0  ;;  %7902 = vtanh.f32 %v1648_v12 }
 0x163   :  { %7904 = vtanh.f32 %v1667_v40  ;;  %v1924_v40 = vmul.f32 %v9692_v6, %v7893_v41  ;;  %v1417_v41 = vadd.f32 %v9615_v33, %v9663_v58 }
 0x164   :  { %2089 = vadd.xlane.f32.xlu0 %v2088_v42  ;;  %2146 = vadd.xlane.f32.xlu1 %v2145_v63  ;;  %v9665_v46 = vpop.f32.mrb[70].mxu0  ;;  %v1922_v42 = vmul.f32 %v7889_v5, %v9096_v17  ;;  %v9676_v63 = vpop.permute.xlu0 %2740  ;;  %v1415_v17 = vadd.f32 %v9589_v23, %v9663_v58  ;;  %v1543_v23 = vld [vmem:[%s13296_s2 + $0x208] sm:$0xff]  ;;  %7906 = vtanh.f32 %v1650_v8 }
 0x165   :  { %v9674_v37 = vpop.f32.mrb[71].mxu0  ;;  %13538 = vst [vmem:[#allocation85_spill] sm:$0xff] %v9676_v63  ;;  %v7895_v5 = vpop.eup %7894  ;;  %v2100_v63 = vsel %vm1997_vm2, %v1903_v31, 0.0  ;;  %v1398_v31 = vadd.f32 %v9483_v25, %v9429_v51  ;;  %7908 = vtanh.f32 %v1669_v19  ;;  %v2163_v51 = vsel %vm1997_vm2, %v1924_v40, 0.0 }
 0x166   :  { %v2157_v12 = vsel %vm1997_vm2, %v1922_v42, 0.0  ;;  %v1671_v1 = vadd.f32 %v1543_v23, %v1415_v17  ;;  %v9724_v23 = vpop.permute.xlu1 %2795  ;;  %v1419_v40 = vadd.f32 %v9641_v61, %v9663_v58 }
 0x167   :  { %v1654_v33 = vadd.f32 %v1526_v2, %v1398_v31  ;;  %13541 = vst [vmem:[#allocation88_spill] sm:$0xff] %v9724_v23 }
 0x168   :  { %2095 = vadd.xlane.f32.xlu0 %v2094_v0  ;;  %2152 = vadd.xlane.f32.xlu1 %v2151_v10  ;;  %v9683_v35 = vpop.f32.mrb[72].mxu0  ;;  %v7897_v0 = vpop.eup %7896  ;;  %v1652_v10 = vadd.f32 %v1524_v39, %v9409_v50  ;;  %v2106_v50 = vsel %vm1997_vm2, %v1905_v54, 0.0  ;;  %v1907_v39 = vmul.f32 %v9692_v6, %v7895_v5  ;;  %v1528_v5 = vld [vmem:[%s13296_s2 + $0x190] sm:$0xff] }
 0x169   :  { %v9699_v45 = vpop.f32.mrb[73].mxu0  ;;  %v9704_v42 = vpop.permute.xlu0 %2748 }
 0x16a   :  { %13540 = vst [vmem:[#allocation87_spill] sm:$0xff] %v9704_v42  ;;  %v7899_v8 = vpop.eup %7898  ;;  %v1926_v42 = vmul.f32 %v9692_v6, %v7897_v0  ;;  %7910 = vtanh.f32 %v1652_v10  ;;  %v2112_v31 = vsel %vm1997_vm2, %v1907_v39, 0.0  ;;  %v1402_v39 = vadd.f32 %v9483_v25, %v9471_v22 }
 0x16b   :  { %v7901_v17 = vpop.eup %7900  ;;  %7912 = vtanh.f32 %v1671_v1  ;;  %v1909_v2 = vmul.f32 %v9692_v6, %v7899_v8 }
 0x16c   :  { %2101 = vadd.xlane.f32.xlu0 %v2100_v63  ;;  %2158 = vadd.xlane.f32.xlu1 %v2157_v12  ;;  %v9711_v52 = vpop.f32.mrb[74].mxu0  ;;  %v1545_v63 = vld [vmem:[%s13296_s2 + $0x218] sm:$0xff]  ;;  %v1400_v12 = vadd.f32 %v9483_v25, %v9449_v43  ;;  %v7903_v10 = vpop.eup %7902  ;;  %v2169_v43 = vsel %vm1997_vm2, %v1926_v42, 0.0  ;;  %v1928_v23 = vmul.f32 %v9692_v6, %v7901_v17  ;;  %7914 = vtanh.f32 %v1654_v33  ;;  %v1530_v42 = vld [vmem:[%s13296_s2 + $0x1a0] sm:$0xff] }
 0x16d   :  { %v9720_v19 = vpop.f32.mrb[75].mxu0  ;;  %v1673_v54 = vadd.f32 %v1545_v63, %v1417_v41  ;;  %v7905_v41 = vpop.eup %7904  ;;  %v1421_v63 = vadd.f32 %v9665_v46, %v9663_v58  ;;  %v2118_v33 = vsel %vm1997_vm2, %v1909_v2, 0.0  ;;  %v1404_v2 = vadd.f32 %v9483_v25, %v9496_v60 }
 0x16e   :  { %v1656_v61 = vadd.f32 %v1528_v5, %v1400_v12  ;;  %v7907_v38 = vpop.eup %7906  ;;  %v2175_v22 = vsel %vm1997_vm2, %v1928_v23, 0.0  ;;  %v1911_v12 = vmul.f32 %v9692_v6, %v7903_v10  ;;  %v1930_v5 = vmul.f32 %v9692_v6, %v7905_v41  ;;  %v1532_v23 = vld [vmem:[%s13296_s2 + $0x1b0] sm:$0xff] }
 0x16f   :  { %7916 = vtanh.f32 %v1673_v54  ;;  %v1549_v54 = vld [vmem:[%s13296_s2 + $0x238] sm:$0xff]  ;;  %v1423_v41 = vadd.f32 %v9683_v35, %v9663_v58  ;;  %v1660_v35 = vadd.f32 %v1532_v23, %v1404_v2 }
 0x170   :  { %2107 = vadd.xlane.f32.xlu0 %v2106_v50  ;;  %2164 = vadd.xlane.f32.xlu1 %v2163_v51  ;;  %v9731_v0 = vpop.f32.mrb[76].mxu0  ;;  %v1547_v50 = vld [vmem:[%s13296_s2 + $0x228] sm:$0xff]  ;;  %v9742_v51 = vpop.permute.xlu0 %2756  ;;  %7918 = vtanh.f32 %v1656_v61  ;;  %v1677_v10 = vadd.f32 %v1549_v54, %v1421_v63  ;;  %v2181_v60 = vsel %vm1997_vm2, %v1930_v5, 0.0  ;;  %v1425_v5 = vadd.f32 %v9711_v52, %v9663_v58 }
 0x171   :  { %v9740_v1 = vpop.f32.mrb[77].mxu0  ;;  %13542 = vst [vmem:[#allocation89_spill] sm:$0xff] %v9742_v51  ;;  %v1675_v8 = vadd.f32 %v1547_v50, %v1419_v40  ;;  %v9753_v51 = vpop.permute.xlu1 %2803 }
 0x172   :  { %13543 = vst [vmem:[#allocation90_spill] sm:$0xff] %v9753_v51 }
 0x173   :  { %7920 = vtanh.f32 %v1675_v8 }
 0x174   :  { %2113 = vadd.xlane.f32.xlu0 %v2112_v31  ;;  %2170 = vadd.xlane.f32.xlu1 %v2169_v43  ;;  %v9751_v17 = vpop.f32.mrb[78].mxu0  ;;  %v7909_v31 = vpop.eup %7908  ;;  %v1658_v43 = vadd.f32 %v1530_v42, %v1402_v39  ;;  %v2124_v39 = vsel %vm1997_vm2, %v1911_v12, 0.0  ;;  %v1913_v42 = vmul.f32 %v9692_v6, %v7907_v38  ;;  %v1534_v38 = vld [vmem:[%s13296_s2 + $0x1c0] sm:$0xff] }
 0x175   :  { %v1010_v40 = vpop.f32.mrb[79].mxu0  ;;  %v9767_v50 = vpop.permute.xlu0 %2764 }
 0x176   :  { %v9763_v46 = vadd.f32 %v9663_v58, %v1010_v40  ;;  %13544 = vst [vmem:[#allocation91_spill] sm:$0xff] %v9767_v50  ;;  %v7911_v61 = vpop.eup %7910  ;;  %v1932_v50 = vmul.f32 %v9692_v6, %v7909_v31  ;;  %7922 = vtanh.f32 %v1658_v43  ;;  %v9787_v54 = vpop.permute.xlu1 %2811  ;;  %v1277_v31 = vcombine.high %v9613_v57, %v9613_v57 }
 0x177   :  { %v7913_v63 = vpop.eup %7912  ;;  %13545 = vst [vmem:[#allocation92_spill] sm:$0xff] %v9787_v54  ;;  %7924 = vtanh.f32 %v1677_v10  ;;  %v1915_v51 = vmul.f32 %v9692_v6, %v7911_v61  ;;  %v1553_v10 = vld [vmem:[%s13296_s2 + $0x258] sm:$0xff] }
 0x178   :  { %2119 = vadd.xlane.f32.xlu0 %v2118_v33  ;;  %2176 = vadd.xlane.f32.xlu1 %v2175_v22  ;;  %v9774_v40 = vpop.f32.mrb[80].mxu0  ;;  %v1551_v33 = vld [vmem:[%s13296_s2 + $0x248] sm:$0xff]  ;;  %v1406_v22 = vadd.f32 %v9483_v25, %v9514_v27  ;;  %v7915_v2 = vpop.eup %7914  ;;  %v2130_v27 = vsel %vm1997_vm2, %v1913_v42, 0.0  ;;  %v2187_v23 = vsel %vm1997_vm2, %v1932_v50, 0.0  ;;  %7926 = vtanh.f32 %v1660_v35  ;;  %v1536_v50 = vld [vmem:[%s13296_s2 + $0x1d0] sm:$0xff] }
 0x179   :  { %v9783_v8 = vpop.f32.mrb[81].mxu0  ;;  %v1679_v12 = vadd.f32 %v1551_v33, %v1423_v41  ;;  %v7917_v52 = vpop.eup %7916  ;;  %v1408_v42 = vadd.f32 %v9483_v25, %v9535_v49  ;;  %v1681_v61 = vadd.f32 %v1553_v10, %v1425_v5  ;;  %v1427_v33 = vadd.f32 %v9731_v0, %v9663_v58  ;;  %v1555_v0 = vld [vmem:[%s13296_s2 + $0x268] sm:$0xff] }
 0x17a   :  { %v1662_v57 = vadd.f32 %v1534_v38, %v1406_v22  ;;  %v7919_v35 = vpop.eup %7918  ;;  %v9821_v22 = vpop.permute.xlu1 %2819  ;;  %v2136_v49 = vsel %vm1997_vm2, %v1915_v51, 0.0  ;;  %v1538_v51 = vld [vmem:[%s13296_s2 + $0x1e0] sm:$0xff] }
 0x17b   :  { %7928 = vtanh.f32 %v1679_v12  ;;  %13547 = vst [vmem:[#allocation94_spill] sm:$0xff] %v9821_v22  ;;  %v1936_v12 = vmul.f32 %v9692_v6, %v7917_v52 }
 0x17c   :  { %2125 = vadd.xlane.f32.xlu0 %v2124_v39  ;;  %2182 = vadd.xlane.f32.xlu1 %v2181_v60  ;;  %v9796_v43 = vpop.f32.mrb[82].mxu0  ;;  %v1934_v39 = vmul.f32 %v9692_v6, %v7913_v63  ;;  %v9807_v60 = vpop.permute.xlu0 %2772  ;;  %v9817_v63 = vrot.slane %v1277_v31, %v8954_v16  ;;  %7930 = vtanh.f32 %v1662_v57  ;;  %v1664_v31 = vadd.f32 %v1536_v50, %v1408_v42 }
 0x17d   :  { %v9805_v41 = vpop.f32.mrb[83].mxu0  ;;  %13546 = vst [vmem:[#allocation93_spill] sm:$0xff] %v9807_v60  ;;  %v7921_v16 = vpop.eup %7920  ;;  %7932 = vtanh.f32 %v1681_v61  ;;  %v2199_v42 = vsel %vm1997_vm2, %v1936_v12, 0.0  ;;  %v1919_v50 = vmul.f32 %v9692_v6, %v7919_v35  ;;  %v1557_v61 = vld [vmem:[%s13296_s2 + $0x278] sm:$0xff] }
 0x17e   :  { %v2193_v38 = vsel %vm1997_vm2, %v1934_v39, 0.0  ;;  %v1429_v39 = vadd.f32 %v9751_v17, %v9663_v58  ;;  %v9843_v52 = vrot.slane %v9817_v63, %v8396_v7  ;;  %7934 = vtanh.f32 %v1664_v31 }
 0x17f   :  { %v2148_v22 = vsel %vm1997_vm2, %v1919_v50, 0.0  ;;  %v1414_v50 = vadd.f32 %v9663_v58, %v9601_v53 }
 0x180   :  { %2131 = vadd.xlane.f32.xlu0 %v2130_v27  ;;  %2188 = vadd.xlane.f32.xlu1 %v2187_v23  ;;  %v9819_v60 = vpop.f32.mrb[84].mxu0  ;;  %v1917_v27 = vmul.f32 %v9692_v6, %v7915_v2  ;;  %v1410_v23 = vadd.f32 %v9483_v25, %v9557_v21  ;;  %v9834_v10 = vpop.permute.xlu0 %2780  ;;  %v1683_v2 = vadd.f32 %v1555_v0, %v1427_v33 }
 0x181   :  { %v9830_v5 = vpop.f32.mrb[85].mxu0  ;;  %13548 = vst [vmem:[#allocation95_spill] sm:$0xff] %v9834_v10  ;;  %v7923_v25 = vpop.eup %7922  ;;  %v1685_v35 = vadd.f32 %v1557_v61, %v1429_v39  ;;  %v1431_v12 = vadd.f32 %v9774_v40, %v9843_v52  ;;  %v1433_v61 = vadd.f32 %v9796_v43, %v9843_v52 }
 0x182   :  { %v2142_v21 = vsel %vm1997_vm2, %v1917_v27, 0.0  ;;  %v7925_v33 = vpop.eup %7924  ;;  %v9856_v0 = vpop.permute.xlu1 %2827  ;;  %v1540_v27 = vld [vmem:[%s13296_s2 + $0x1f0] sm:$0xff]  ;;  %7936 = vtanh.f32 %v1683_v2 }
 0x183   :  { %13549 = vst [vmem:[#allocation96_spill] sm:$0xff] %v9856_v0  ;;  %v7927_v10 = vpop.eup %7926  ;;  %v1668_v40 = vadd.f32 %v1540_v27, %v9578_v59 }
 0x184   :  { %2137 = vadd.xlane.f32.xlu0 %v2136_v49  ;;  %2194 = vadd.xlane.f32.xlu1 %v2193_v38  ;;  %v9845_v57 = vpop.f32.mrb[86].mxu0  ;;  %v1938_v49 = vmul.f32 %v9692_v6, %v7921_v16  ;;  %v1666_v38 = vadd.f32 %v1538_v51, %v1410_v23  ;;  %v1921_v23 = vmul.f32 %v9692_v6, %v7923_v25  ;;  %v1542_v25 = vld [vmem:[%s13296_s2 + $0x200] sm:$0xff] }
 0x185   :  { %v9854_v17 = vpop.f32.mrb[87].mxu0  ;;  %v1940_v51 = vmul.f32 %v9692_v6, %v7925_v33  ;;  %v7929_v39 = vpop.eup %7928  ;;  %v1923_v27 = vmul.f32 %v9692_v6, %v7927_v10  ;;  %v1544_v10 = vld [vmem:[%s13296_s2 + $0x210] sm:$0xff] }
 0x186   :  { %v2205_v31 = vsel %vm1997_vm2, %v1938_v49, 0.0  ;;  %7938 = vtanh.f32 %v1666_v38  ;;  %v7931_v0 = vpop.eup %7930  ;;  %v9886_v38 = vpop.permute.xlu1 %2835  ;;  %v2154_v59 = vsel %vm1997_vm2, %v1921_v23, 0.0  ;;  %v1942_v54 = vmul.f32 %v9692_v6, %v7929_v39 }
 0x187   :  { %7940 = vtanh.f32 %v1685_v35  ;;  %13551 = vst [vmem:[#allocation98_spill] sm:$0xff] %v9886_v38  ;;  %v2211_v53 = vsel %vm1997_vm2, %v1940_v51, 0.0  ;;  %v7933_v43 = vpop.eup %7932  ;;  %v1435_v51 = vadd.f32 %v9819_v60, %v9843_v52  ;;  %v1925_v38 = vmul.f32 %v9692_v6, %v7931_v0 }
 0x188   :  { %2143 = vadd.xlane.f32.xlu0 %v2142_v21  ;;  %2200 = vadd.xlane.f32.xlu1 %v2199_v42  ;;  %v9863_v16 = vpop.f32.mrb[88].mxu0  ;;  %v1559_v21 = vld [vmem:[%s13296_s2 + $0x288] sm:$0xff]  ;;  %v9874_v42 = vpop.permute.xlu0 %2791  ;;  %7942 = vtanh.f32 %v1668_v40 }
 0x189   :  { %v9872_v2 = vpop.f32.mrb[89].mxu0  ;;  %13550 = vst [vmem:[#allocation97_spill] sm:$0xff] %v9874_v42  ;;  %v1687_v49 = vadd.f32 %v1559_v21, %v1431_v12  ;;  %v1670_v12 = vadd.f32 %v1542_v25, %v1414_v50  ;;  %v7935_v40 = vpop.eup %7934  ;;  %v2217_v25 = vsel %vm1997_vm2, %v1942_v54, 0.0  ;;  %v1546_v54 = vld [vmem:[%s13296_s2 + $0x220] sm:$0xff] }
 0x18b   :  { %7944 = vtanh.f32 %v1687_v49  ;;  %v1563_v49 = vld [vmem:[%s13296_s2 + $0x2a8] sm:$0xff] }
 0x18c   :  { %2149 = vadd.xlane.f32.xlu0 %v2148_v22  ;;  %2206 = vadd.xlane.f32.xlu1 %v2205_v31  ;;  %v9884_v33 = vpop.f32.mrb[90].mxu0  ;;  %v1561_v22 = vld [vmem:[%s13296_s2 + $0x298] sm:$0xff]  ;;  %v1416_v31 = vadd.f32 %v9663_v58, %v9626_v11  ;;  %v9899_v21 = vpop.permute.xlu0 %2799  ;;  %v2160_v11 = vsel %vm1997_vm2, %v1923_v27, 0.0  ;;  %7946 = vtanh.f32 %v1670_v12  ;;  %v1691_v0 = vadd.f32 %v1563_v49, %v1435_v51 }
 0x18d   :  { %v9895_v35 = vpop.f32.mrb[91].mxu0  ;;  %13552 = vst [vmem:[#allocation99_spill] sm:$0xff] %v9899_v21  ;;  %v1689_v23 = vadd.f32 %v1561_v22, %v1433_v61  ;;  %v1944_v21 = vmul.f32 %v9692_v6, %v7933_v43  ;;  %v7937_v60 = vpop.eup %7936  ;;  %v1437_v27 = vadd.f32 %v9845_v57, %v9843_v52  ;;  %v2166_v12 = vsel %vm1997_vm2, %v1925_v38, 0.0 }
 0x18e   :  { %v1420_v38 = vadd.f32 %v9663_v58, %v9674_v37 }
 0x18f   :  { %7948 = vtanh.f32 %v1689_v23  ;;  %v1565_v23 = vld [vmem:[%s13296_s2 + $0x2b8] sm:$0xff] }
 0x190   :  { %2155 = vadd.xlane.f32.xlu0 %v2154_v59  ;;  %2212 = vadd.xlane.f32.xlu1 %v2211_v53  ;;  %v9906_v39 = vpop.f32.mrb[92].mxu0  ;;  %v1672_v59 = vadd.f32 %v1544_v10, %v1416_v31  ;;  %v1418_v53 = vadd.f32 %v9663_v58, %v9650_v4  ;;  %v7939_v43 = vpop.eup %7938  ;;  %v2223_v4 = vsel %vm1997_vm2, %v1944_v21, 0.0  ;;  %v1927_v31 = vmul.f32 %v9692_v6, %v7935_v40  ;;  %v1548_v21 = vld [vmem:[%s13296_s2 + $0x230] sm:$0xff] }
 0x191   :  { %v9908_v50 = vpop.xlane.xlu1 %2008  ;;  %v9917_v61 = vpop.f32.mrb[93].mxu0  ;;  %v1946_v10 = vmul.f32 %v9692_v6, %v7937_v60  ;;  %v1693_v40 = vadd.f32 %v1565_v23, %v1437_v27  ;;  %v1439_v60 = vadd.f32 %v9863_v16, %v9843_v52 }
 0x192   :  { %13553 = vst [vmem:[#allocation100_spill] sm:$0xff] %v9908_v50  ;;  %v9937_v57 = vpop.permute.xlu0 %2807  ;;  %7950 = vtanh.f32 %v1672_v59  ;;  %v1674_v49 = vadd.f32 %v1546_v54, %v1418_v53  ;;  %v2172_v59 = vsel %vm1997_vm2, %v1927_v31, 0.0  ;;  %v1929_v53 = vmul.f32 %v9692_v6, %v7939_v43  ;;  %v1550_v43 = vld [vmem:[%s13296_s2 + $0x240] sm:$0xff] }
 0x193   :  { %13554 = vst [vmem:[#allocation101_spill] sm:$0xff] %v9937_v57  ;;  %7952 = vtanh.f32 %v1691_v0  ;;  %v2229_v37 = vsel %vm1997_vm2, %v1946_v10, 0.0  ;;  %v1567_v0 = vld [vmem:[%s13296_s2 + $0x2c8] sm:$0xff]  ;;  %v1441_v10 = vadd.f32 %v9884_v33, %v9843_v52 }
 0x194   :  { %2161 = vadd.xlane.f32.xlu0 %v2160_v11  ;;  %2218 = vadd.xlane.f32.xlu1 %v2217_v25  ;;  %v9926_v22 = vpop.f32.mrb[94].mxu0  ;;  %v7941_v11 = vpop.eup %7940  ;;  %7954 = vtanh.f32 %v1674_v49  ;;  %v1695_v31 = vadd.f32 %v1567_v0, %v1439_v60  ;;  %v1307_v0 = vcombine.high %v9639_v55, %v9639_v55 }
 0x195   :  { %v9928_v42 = vpop.xlane.xlu1 %2005  ;;  %v1090_v51 = vpop.f32.mrb[95].mxu0  ;;  %v1948_v54 = vmul.f32 %v9692_v6, %v7941_v11  ;;  %7956 = vtanh.f32 %v1693_v40  ;;  %v1569_v40 = vld [vmem:[%s13296_s2 + $0x2d8] sm:$0xff] }
 0x196   :  { %v9940_v25 = vadd.f32 %v9843_v52, %v1090_v51  ;;  %v7943_v51 = vpop.eup %7942  ;;  %v9964_v23 = vpop.permute.xlu0 %2815 }
 0x197   :  { %v7945_v16 = vpop.eup %7944  ;;  %13556 = vst [vmem:[#allocation103_spill] sm:$0xff] %v9964_v23  ;;  %v1931_v23 = vmul.f32 %v9692_v6, %v7943_v51  ;;  %v1697_v51 = vadd.f32 %v1569_v40, %v1441_v10 }
 0x198   :  { %2167 = vadd.xlane.f32.xlu0 %v2166_v12  ;;  %2224 = vadd.xlane.f32.xlu1 %v2223_v4  ;;  %v9949_v57 = vpop.f32.mrb[96].mxu0  ;;  %v1676_v12 = vadd.f32 %v1548_v21, %v1420_v38  ;;  %v1422_v4 = vadd.f32 %v9663_v58, %v9699_v45  ;;  %v7947_v49 = vpop.eup %7946  ;;  %v2178_v45 = vsel %vm1997_vm2, %v1929_v53, 0.0  ;;  %v2235_v21 = vsel %vm1997_vm2, %v1948_v54, 0.0  ;;  %v1552_v53 = vld [vmem:[%s13296_s2 + $0x250] sm:$0xff] }
 0x199   :  { %v9951_v29 = vpop.xlane.xlu1 %2014  ;;  %v9960_v27 = vpop.f32.mrb[97].mxu0  ;;  %v1950_v34 = vmul.f32 %v9692_v6, %v7945_v16  ;;  %v1443_v54 = vadd.f32 %v9906_v39, %v9843_v52  ;;  %v1571_v39 = vld [vmem:[%s13296_s2 + $0x2e8] sm:$0xff] }
 0x19a   :  { %13555 = vst [vmem:[#allocation102_spill] sm:$0xff] %v9951_v29  ;;  %v7949_v33 = vpop.eup %7948  ;;  %7958 = vtanh.f32 %v1676_v12 }
 0x19b   :  { %7960 = vtanh.f32 %v1695_v31  ;;  %v1952_v31 = vmul.f32 %v9692_v6, %v7949_v33  ;;  %v1445_v33 = vadd.f32 %v9926_v22, %v9843_v52  ;;  %v1573_v22 = vld [vmem:[%s13296_s2 + $0x2f8] sm:$0xff] }
 0x19c   :  { %2173 = vadd.xlane.f32.xlu0 %v2172_v59  ;;  %2230 = vadd.xlane.f32.xlu1 %v2229_v37  ;;  %v9971_v11 = vpop.f32.mrb[98].mxu0  ;;  %v1678_v59 = vadd.f32 %v1550_v43, %v1422_v4  ;;  %v1424_v37 = vadd.f32 %v9663_v58, %v9720_v19  ;;  %v7951_v12 = vpop.eup %7950  ;;  %v2184_v19 = vsel %vm1997_vm2, %v1931_v23, 0.0  ;;  %v2241_v43 = vsel %vm1997_vm2, %v1950_v34, 0.0  ;;  %v1554_v34 = vld [vmem:[%s13296_s2 + $0x260] sm:$0xff] }
 0x19d   :  { %v9973_v38 = vpop.xlane.xlu1 %2020  ;;  %v9982_v60 = vpop.f32.mrb[99].mxu0  ;;  %v1426_v23 = vadd.f32 %v9663_v58, %v9740_v1  ;;  %v2247_v1 = vsel %vm1997_vm2, %v1952_v31, 0.0 }
 0x19e   :  { %13557 = vst [vmem:[#allocation104_spill] sm:$0xff] %v9973_v38  ;;  %v7953_v55 = vpop.eup %7952  ;;  %7962 = vtanh.f32 %v1678_v59  ;;  %v1680_v40 = vadd.f32 %v1552_v53, %v1424_v37  ;;  %v1935_v53 = vmul.f32 %v9692_v6, %v7951_v12  ;;  %v1701_v12 = vadd.f32 %v1573_v22, %v1445_v33 }
 0x19f   :  { %7964 = vtanh.f32 %v1697_v51  ;;  %v7955_v59 = vpop.eup %7954  ;;  %v1954_v51 = vmul.f32 %v9692_v6, %v7953_v55 }
 0x1a0   :  { %2179 = vadd.xlane.f32.xlu0 %v2178_v45  ;;  %2236 = vadd.xlane.f32.xlu1 %v2235_v21  ;;  %v9993_v16 = vpop.f32.mrb[100].mxu0  ;;  %v1933_v45 = vmul.f32 %v9692_v6, %v7947_v49  ;;  %v10006_v21 = vpop.permute.xlu0 %2823  ;;  %v1699_v49 = vadd.f32 %v1571_v39, %v1443_v54  ;;  %7966 = vtanh.f32 %v1680_v40  ;;  %v2196_v40 = vsel %vm1997_vm2, %v1935_v53, 0.0 }
 0x1a1   :  { %v9995_v4 = vpop.xlane.xlu1 %2026  ;;  %v10004_v10 = vpop.f32.mrb[101].mxu0  ;;  %13559 = vst [vmem:[#allocation106_spill] sm:$0xff] %v10006_v21 }
 0x1a2   :  { %13558 = vst [vmem:[#allocation105_spill] sm:$0xff] %v9995_v4  ;;  %v10016_v4 = vrot.slane %v1307_v0, %v8396_v7  ;;  %v2190_v58 = vsel %vm1997_vm2, %v1933_v45, 0.0  ;;  %v7957_v0 = vpop.eup %7956  ;;  %v1556_v45 = vld [vmem:[%s13296_s2 + $0x270] sm:$0xff]  ;;  %7968 = vtanh.f32 %v1699_v49  ;;  %v1575_v49 = vld [vmem:[%s13296_s2 + $0x308] sm:$0xff] }
 0x1a4   :  { %2185 = vadd.xlane.f32.xlu0 %v2184_v19  ;;  %2242 = vadd.xlane.f32.xlu1 %v2241_v43  ;;  %v10018_v21 = vpop.f32.mrb[102].mxu0  ;;  %v1682_v19 = vadd.f32 %v1554_v34, %v1426_v23  ;;  %v10031_v43 = vpop.permute.xlu0 %2831  ;;  %v1447_v31 = vadd.f32 %v9949_v57, %v10016_v4  ;;  %v2253_v23 = vsel %vm1997_vm2, %v1954_v51, 0.0  ;;  %v1937_v34 = vmul.f32 %v9692_v6, %v7955_v59  ;;  %v1558_v59 = vld [vmem:[%s13296_s2 + $0x280] sm:$0xff] }
 0x1a5   :  { %v10020_v37 = vpop.xlane.xlu1 %2032  ;;  %v10029_v54 = vpop.f32.mrb[103].mxu0  ;;  %13561 = vst [vmem:[#allocation108_spill] sm:$0xff] %v10031_v43  ;;  %v1956_v43 = vmul.f32 %v9692_v6, %v7957_v0  ;;  %v1449_v22 = vadd.f32 %v9971_v11, %v10016_v4 }
 0x1a6   :  { %13560 = vst [vmem:[#allocation107_spill] sm:$0xff] %v10020_v37  ;;  %v7959_v55 = vpop.eup %7958  ;;  %7970 = vtanh.f32 %v1682_v19  ;;  %v1703_v51 = vadd.f32 %v1575_v49, %v1447_v31 }
 0x1a7   :  { %v7961_v57 = vpop.eup %7960  ;;  %7972 = vtanh.f32 %v1701_v12  ;;  %v1577_v12 = vld [vmem:[%s13296_s2 + $0x318] sm:$0xff] }
 0x1a8   :  { %2191 = vadd.xlane.f32.xlu0 %v2190_v58  ;;  %2248 = vadd.xlane.f32.xlu1 %v2247_v1  ;;  %v10038_v39 = vpop.f32.mrb[104].mxu0  ;;  %v1684_v58 = vadd.f32 %v1556_v45, %v9763_v46  ;;  %v1430_v1 = vadd.f32 %v9843_v52, %v9783_v8  ;;  %v10054_v53 = vpop.xlane.xlu0 %2002  ;;  %v2202_v8 = vsel %vm1997_vm2, %v1937_v34, 0.0  ;;  %v2259_v45 = vsel %vm1997_vm2, %v1956_v43, 0.0  ;;  %v1560_v43 = vld [vmem:[%s13296_s2 + $0x290] sm:$0xff] }
 0x1a9   :  { %v10040_v37 = vpop.xlane.xlu1 %2038  ;;  %v10049_v33 = vpop.f32.mrb[105].mxu0  ;;  %v1958_v38 = vmul.f32 %v9692_v6, %v7961_v57  ;;  %v1451_v34 = vadd.f32 %v9993_v16, %v10016_v4 }
 0x1aa   :  { %13562 = vst [vmem:[#allocation109_spill] sm:$0xff] %v10040_v37  ;;  %v7963_v19 = vpop.eup %7962  ;;  %v1939_v37 = vmul.f32 %v9692_v6, %v7959_v55  ;;  %7974 = vtanh.f32 %v1684_v58  ;;  %v1705_v55 = vadd.f32 %v1577_v12, %v1449_v22  ;;  %v1453_v12 = vadd.f32 %v10018_v21, %v10016_v4 }
 0x1ab   :  { %v7965_v11 = vpop.eup %7964  ;;  %7976 = vtanh.f32 %v1703_v51  ;;  %v1579_v51 = vld [vmem:[%s13296_s2 + $0x328] sm:$0xff] }
 0x1ac   :  { %2197 = vadd.xlane.f32.xlu0 %v2196_v40  ;;  %2254 = vadd.xlane.f32.xlu1 %v2253_v23  ;;  %v10061_v0 = vpop.f32.mrb[106].mxu0  ;;  %v1686_v40 = vadd.f32 %v1558_v59, %v1430_v1  ;;  %v1432_v23 = vadd.f32 %v9843_v52, %v9805_v41  ;;  %v7967_v57 = vpop.eup %7966  ;;  %v2208_v58 = vsel %vm1997_vm2, %v1939_v37, 0.0  ;;  %v2265_v41 = vsel %vm1997_vm2, %v1958_v38, 0.0  ;;  %v1562_v38 = vld [vmem:[%s13296_s2 + $0x2a0] sm:$0xff] }
 0x1ad   :  { %v10063_v46 = vpop.xlane.xlu1 %2044  ;;  %v10072_v31 = vpop.f32.mrb[107].mxu0  ;;  %v1941_v1 = vmul.f32 %v9692_v6, %v7963_v19  ;;  %v1960_v59 = vmul.f32 %v9692_v6, %v7965_v11  ;;  %v1434_v37 = vadd.f32 %v9843_v52, %v9830_v5  ;;  %v1707_v19 = vadd.f32 %v1579_v51, %v1451_v34 }
 0x1ae   :  { %13563 = vst [vmem:[#allocation110_spill] sm:$0xff] %v10063_v46  ;;  %v7969_v16 = vpop.eup %7968  ;;  %7978 = vtanh.f32 %v1686_v40 }
 0x1af   :  { %7980 = vtanh.f32 %v1705_v55  ;;  %v2214_v40 = vsel %vm1997_vm2, %v1941_v1, 0.0  ;;  %v2271_v5 = vsel %vm1997_vm2, %v1960_v59, 0.0  ;;  %v1581_v55 = vld [vmem:[%s13296_s2 + $0x338] sm:$0xff]  ;;  %v1436_v1 = vadd.f32 %v9843_v52, %v9854_v17 }
 0x1b0   :  { %2203 = vadd.xlane.f32.xlu0 %v2202_v8  ;;  %2260 = vadd.xlane.f32.xlu1 %v2259_v45  ;;  %v10081_v49 = vpop.f32.mrb[108].mxu0  ;;  %v10094_v8 = vpop.xlane.xlu0 %1999  ;;  %v1688_v45 = vadd.f32 %v1560_v43, %v1432_v23  ;;  %v1943_v23 = vmul.f32 %v9692_v6, %v7967_v57  ;;  %v1962_v43 = vmul.f32 %v9692_v6, %v7969_v16  ;;  %v1564_v57 = vld [vmem:[%s13296_s2 + $0x2b0] sm:$0xff] }
 0x1b1   :  { %v10083_v46 = vpop.xlane.xlu1 %2050  ;;  %v10092_v22 = vpop.f32.mrb[109].mxu0  ;;  %v1709_v59 = vadd.f32 %v1581_v55, %v1453_v12  ;;  %v1455_v16 = vadd.f32 %v10038_v39, %v10016_v4  ;;  %v8324_v39 = vmov 0   ;;  %v1457_v55 = vadd.f32 %v10061_v0, %v10016_v4 }
 0x1b2   :  { %13564 = vst [vmem:[#allocation111_spill] sm:$0xff] %v10083_v46  ;;  %v7971_v46 = vpop.eup %7970  ;;  %7982 = vtanh.f32 %v1688_v45  ;;  %v2220_v17 = vsel %vm1997_vm2, %v1943_v23, 0.0  ;;  %7798 = vset.pattern.permute.xlu1 %v8324_v39  ;;  %7797 = vset.pattern.permute.xlu0 %v8324_v39  ;;  %v1438_v23 = vadd.f32 %v9843_v52, %v9872_v2 }
 0x1b3   :  { %7984 = vtanh.f32 %v1707_v19  ;;  %v1583_v19 = vld [vmem:[%s13296_s2 + $0x348] sm:$0xff] }
 0x1b4   :  { %2209 = vadd.xlane.f32.xlu0 %v2208_v58  ;;  %2266 = vadd.xlane.f32.xlu1 %v2265_v41  ;;  %v10103_v11 = vpop.f32.mrb[110].mxu0  ;;  %v7973_v58 = vpop.eup %7972  ;;  %v1690_v41 = vadd.f32 %v1562_v38, %v1434_v37  ;;  %v2277_v38 = vsel %vm1997_vm2, %v1962_v43, 0.0  ;;  %v1711_v43 = vadd.f32 %v1583_v19, %v1455_v16  ;;  %v1440_v19 = vadd.f32 %v9843_v52, %v9895_v35 }
 0x1b5   :  { %v10105_v14 = vpop.xlane.xlu1 %2056  ;;  %v1170_v34 = vpop.f32.mrb[111].mxu0 }
 0x1b6   :  { %13565 = vst [vmem:[#allocation112_spill] sm:$0xff] %v10105_v14  ;;  %v10115_v21 = vadd.f32 %v10016_v4, %v1170_v34  ;;  %v10119_v51 = vpop.permute.xlu0 %2839  ;;  %v7975_v45 = vpop.eup %7974  ;;  %v1964_v14 = vmul.f32 %v9692_v6, %v7973_v58  ;;  %7986 = vtanh.f32 %v1690_v41 }
 0x1b7   :  { %13566 = vst [vmem:[#allocation113_spill] sm:$0xff] %v10119_v51  ;;  %v1945_v51 = vmul.f32 %v9692_v6, %v7971_v46  ;;  %v1566_v46 = vld [vmem:[%s13296_s2 + $0x2c0] sm:$0xff]  ;;  %7988 = vtanh.f32 %v1709_v59  ;;  %v1585_v59 = vld [vmem:[%s13296_s2 + $0x358] sm:$0xff] }
 0x1b8   :  { %2215 = vadd.xlane.f32.xlu0 %v2214_v40  ;;  %2272 = vadd.xlane.f32.xlu1 %v2271_v5  ;;  %v10126_v34 = vpop.f32.mrb[112].mxu0  ;;  %v7977_v40 = vpop.eup %7976  ;;  %v1692_v5 = vadd.f32 %v1564_v57, %v1436_v1  ;;  %v2283_v1 = vsel %vm1997_vm2, %v1964_v14, 0.0  ;;  %v1947_v57 = vmul.f32 %v9692_v6, %v7975_v45  ;;  %v1568_v14 = vld [vmem:[%s13296_s2 + $0x2d0] sm:$0xff]  ;;  %v1459_v45 = vadd.f32 %v10081_v49, %v10016_v4  ;;  %v1587_v49 = vld [vmem:[%s13296_s2 + $0x368] sm:$0xff] }
 0x1b9   :  { %v10128_v37 = vpop.xlane.xlu1 %2062  ;;  %v10137_v12 = vpop.f32.mrb[113].mxu0  ;;  %v2226_v2 = vsel %vm1997_vm2, %v1945_v51, 0.0  ;;  %v1713_v51 = vadd.f32 %v1585_v59, %v1457_v55  ;;  %v1696_v59 = vadd.f32 %v1568_v14, %v1440_v19 }
 0x1ba   :  { %13567 = vst [vmem:[#allocation114_spill] sm:$0xff] %v10128_v37  ;;  %v7979_v39 = vpop.eup %7978  ;;  %7990 = vtanh.f32 %v1692_v5 }
 0x1bb   :  { %v7981_v0 = vpop.eup %7980  ;;  %7992 = vtanh.f32 %v1711_v43  ;;  %v1949_v55 = vmul.f32 %v9692_v6, %v7979_v39  ;;  %v1715_v39 = vadd.f32 %v1587_v49, %v1459_v45  ;;  %v1572_v49 = vld [vmem:[%s13296_s2 + $0x2f0] sm:$0xff] }
 0x1bc   :  { %2221 = vadd.xlane.f32.xlu0 %v2220_v17  ;;  %2278 = vadd.xlane.f32.xlu1 %v2277_v38  ;;  %v10146_v58 = vpop.f32.mrb[114].mxu0  ;;  %v1966_v17 = vmul.f32 %v9692_v6, %v7977_v40  ;;  %v1694_v38 = vadd.f32 %v1566_v46, %v1438_v23  ;;  %v1309_v40 = vcombine.high %v9817_v63, %v9817_v63  ;;  %v7983_v5 = vpop.eup %7982  ;;  %v2232_v46 = vsel %vm1997_vm2, %v1947_v57, 0.0  ;;  %v1570_v57 = vld [vmem:[%s13296_s2 + $0x2e0] sm:$0xff] }
 0x1bd   :  { %v10148_v37 = vpop.xlane.xlu0 %2011  ;;  %v10150_v41 = vpop.xlane.xlu1 %2068  ;;  %v1968_v43 = vmul.f32 %v9692_v6, %v7981_v0  ;;  %v2238_v14 = vsel %vm1997_vm2, %v1949_v55, 0.0  ;;  %v1951_v45 = vmul.f32 %v9692_v6, %v7983_v5 }
 0x1be   :  { %13568 = vst [vmem:[#allocation115_spill] sm:$0xff] %v10150_v41  ;;  %v10159_v16 = vpop.f32.mrb[115].mxu0  ;;  %v7985_v63 = vpop.eup %7984  ;;  %7994 = vtanh.f32 %v1694_v38  ;;  %v10193_v0 = vrot.slane %v1309_v40, %v8396_v7 }
 0x1bf   :  { %7996 = vtanh.f32 %v1713_v51  ;;  %v1970_v51 = vmul.f32 %v9692_v6, %v7985_v63 }
 0x1c0   :  { %2227 = vadd.xlane.f32.xlu0 %v2226_v2  ;;  %2284 = vadd.xlane.f32.xlu1 %v2283_v1  ;;  %v10170_v41 = vpop.f32.mrb[116].mxu0  ;;  %v2289_v2 = vsel %vm1997_vm2, %v1966_v17, 0.0  ;;  %v1461_v17 = vadd.f32 %v10103_v11, %v10016_v4  ;;  %v7987_v38 = vpop.eup %7986  ;;  %v1589_v11 = vld [vmem:[%s13296_s2 + $0x378] sm:$0xff]  ;;  %7998 = vtanh.f32 %v1696_v59  ;;  %v1463_v5 = vadd.f32 %v10126_v34, %v10193_v0 }
 0x1c1   :  { %v10172_v23 = vpop.xlane.xlu0 %2017  ;;  %v10174_v35 = vpop.xlane.xlu1 %2074  ;;  %8000 = vtanh.f32 %v1715_v39  ;;  %v2244_v59 = vsel %vm1997_vm2, %v1951_v45, 0.0  ;;  %v1591_v39 = vld [vmem:[%s13296_s2 + $0x388] sm:$0xff]  ;;  %v1465_v45 = vadd.f32 %v10146_v58, %v10193_v0 }
 0x1c2   :  { %13569 = vst [vmem:[#allocation116_spill] sm:$0xff] %v10174_v35  ;;  %v10183_v1 = vpop.f32.mrb[117].mxu0  ;;  %v1442_v35 = vadd.f32 %v9843_v52, %v9917_v61  ;;  %v2295_v61 = vsel %vm1997_vm2, %v1968_v43, 0.0  ;;  %v7989_v40 = vpop.eup %7988  ;;  %v1717_v43 = vadd.f32 %v1589_v11, %v1461_v17  ;;  %v1446_v11 = vadd.f32 %v10016_v4, %v9960_v27 }
 0x1c4   :  { %2233 = vadd.xlane.f32.xlu0 %v2232_v46  ;;  %2290 = vadd.xlane.f32.xlu1 %v2289_v2  ;;  %v10195_v30 = vpop.f32.mrb[118].mxu0  ;;  %v1698_v2 = vadd.f32 %v1570_v57, %v1442_v35  ;;  %v7991_v63 = vpop.eup %7990  ;;  %v2301_v35 = vsel %vm1997_vm2, %v1970_v51, 0.0  ;;  %v1972_v57 = vmul.f32 %v9692_v6, %v7989_v40  ;;  %v1574_v51 = vld [vmem:[%s13296_s2 + $0x300] sm:$0xff] }
 0x1c5   :  { %v10197_v19 = vpop.xlane.xlu0 %2023  ;;  %v10199_v52 = vpop.xlane.xlu1 %2080 }
 0x1c6   :  { %13570 = vst [vmem:[#allocation117_spill] sm:$0xff] %v10199_v52  ;;  %v10208_v46 = vpop.f32.mrb[119].mxu0  ;;  %v7993_v34 = vpop.eup %7992  ;;  %8002 = vtanh.f32 %v1698_v2  ;;  %v2307_v27 = vsel %vm1997_vm2, %v1972_v57, 0.0  ;;  %v1576_v57 = vld [vmem:[%s13296_s2 + $0x310] sm:$0xff] }
 0x1c7   :  { %8004 = vtanh.f32 %v1717_v43  ;;  %v1974_v29 = vmul.f32 %v9692_v6, %v7993_v34  ;;  %v1593_v43 = vld [vmem:[%s13296_s2 + $0x398] sm:$0xff] }
 0x1c8   :  { %2296 = vadd.xlane.f32.xlu1 %v2295_v61  ;;  %2239 = vadd.xlane.f32.xlu0 %v2238_v14  ;;  %v10215_v55 = vpop.f32.mrb[120].mxu0  ;;  %v1953_v61 = vmul.f32 %v9692_v6, %v7987_v38  ;;  %v1700_v14 = vadd.f32 %v1572_v49, %v9940_v25  ;;  %v1719_v38 = vadd.f32 %v1591_v39, %v1463_v5 }
 0x1c9   :  { %v10217_v7 = vpop.xlane.xlu0 %2029  ;;  %v10219_v52 = vpop.xlane.xlu1 %2086  ;;  %v1448_v39 = vadd.f32 %v10016_v4, %v9982_v60  ;;  %v2313_v60 = vsel %vm1997_vm2, %v1974_v29, 0.0 }
 0x1ca   :  { %13571 = vst [vmem:[#allocation118_spill] sm:$0xff] %v10219_v52  ;;  %v10228_v17 = vpop.f32.mrb[121].mxu0  ;;  %v7995_v52 = vpop.eup %7994  ;;  %v2250_v49 = vsel %vm1997_vm2, %v1953_v61, 0.0  ;;  %8006 = vtanh.f32 %v1700_v14 }
 0x1cb   :  { %v7997_v58 = vpop.eup %7996  ;;  %8008 = vtanh.f32 %v1719_v38  ;;  %v1704_v29 = vadd.f32 %v1576_v57, %v1448_v39 }
 0x1cc   :  { %2302 = vadd.xlane.f32.xlu1 %v2301_v35  ;;  %2245 = vadd.xlane.f32.xlu0 %v2244_v59  ;;  %v10238_v40 = vpop.f32.mrb[122].mxu0  ;;  %v1955_v35 = vmul.f32 %v9692_v6, %v7991_v63  ;;  %v1702_v59 = vadd.f32 %v1574_v51, %v1446_v11  ;;  %v1721_v6 = vadd.f32 %v1593_v43, %v1465_v45  ;;  %v7999_v34 = vpop.eup %7998  ;;  %v10271_v51 = vld [vmem:[%s13297_s6] ss:$0 sm:$0xff]  ;;  %v1595_v45 = vld [vmem:[%s13296_s2 + $0x3a8] sm:$0xff] }
 0x1cd   :  { %v10240_v2 = vpop.xlane.xlu0 %2035  ;;  %v10242_v25 = vpop.xlane.xlu1 %2092  ;;  %v1467_v63 = vadd.f32 %v10170_v41, %v10193_v0  ;;  %v1976_v38 = vmul.f32 %v10271_v51, %v7997_v58  ;;  %v1957_v41 = vmul.f32 %v10271_v51, %v7995_v52  ;;  %v1578_v43 = vld [vmem:[%s13296_s2 + $0x320] sm:$0xff]  ;;  %v1469_v58 = vadd.f32 %v10195_v30, %v10193_v0 }
 0x1ce   :  { %13572 = vst [vmem:[#allocation119_spill] sm:$0xff] %v10242_v25  ;;  %v10251_v5 = vpop.f32.mrb[123].mxu0  ;;  %v2256_v11 = vsel %vm1997_vm2, %v1955_v35, 0.0  ;;  %8010 = vtanh.f32 %v1702_v59  ;;  %v1450_v35 = vadd.f32 %v10016_v4, %v10004_v10 }
 0x1cf   :  { %8012 = vtanh.f32 %v1721_v6  ;;  %v1723_v52 = vadd.f32 %v1595_v45, %v1467_v63  ;;  %v2319_v10 = vsel %vm1997_vm2, %v1976_v38, 0.0  ;;  %v2262_v39 = vsel %vm1997_vm2, %v1957_v41, 0.0  ;;  %v1597_v6 = vld [vmem:[%s13296_s2 + $0x3b8] sm:$0xff]  ;;  %v1580_v38 = vld [vmem:[%s13296_s2 + $0x330] sm:$0xff] }
 0x1d0   :  { %2308 = vadd.xlane.f32.xlu1 %v2307_v27  ;;  %2251 = vadd.xlane.f32.xlu0 %v2250_v49  ;;  %v10260_v61 = vpop.f32.mrb[124].mxu0  ;;  %v8001_v27 = vpop.eup %8000  ;;  %8014 = vtanh.f32 %v1704_v29  ;;  %v1452_v45 = vadd.f32 %v10016_v4, %v10029_v54  ;;  %v1471_v41 = vadd.f32 %v10215_v55, %v10193_v0 }
 0x1d1   :  { %v10262_v25 = vpop.xlane.xlu0 %2041  ;;  %v10264_v14 = vpop.xlane.xlu1 %2098  ;;  %v1978_v57 = vmul.f32 %v10271_v51, %v8001_v27  ;;  %8016 = vtanh.f32 %v1723_v52  ;;  %v1599_v52 = vld [vmem:[%s13296_s2 + $0x3c8] sm:$0xff] }
 0x1d2   :  { %13573 = vst [vmem:[#allocation120_spill] sm:$0xff] %v10264_v14  ;;  %v10278_v49 = vpop.f32.mrb[125].mxu0  ;;  %v8003_v9 = vpop.eup %8002  ;;  %v1708_v55 = vadd.f32 %v1580_v38, %v1452_v45 }
 0x1d3   :  { %v8005_v30 = vpop.eup %8004  ;;  %v2325_v54 = vsel %vm1997_vm2, %v1978_v57, 0.0  ;;  %v1961_v50 = vmul.f32 %v10271_v51, %v8003_v9  ;;  %v1727_v57 = vadd.f32 %v1599_v52, %v1471_v41  ;;  %v1473_v9 = vadd.f32 %v10238_v40, %v10193_v0 }
 0x1d4   :  { %2314 = vadd.xlane.f32.xlu1 %v2313_v60  ;;  %2257 = vadd.xlane.f32.xlu0 %v2256_v11  ;;  %v10287_v14 = vpop.f32.mrb[126].mxu0  ;;  %v1959_v60 = vmul.f32 %v10271_v51, %v7999_v34  ;;  %v1706_v11 = vadd.f32 %v1578_v43, %v1450_v35  ;;  %v1725_v34 = vadd.f32 %v1597_v6, %v1469_v58  ;;  %v8007_v27 = vpop.eup %8006 }
 0x1d5   :  { %v10289_v26 = vpop.xlane.xlu1 %2104  ;;  %v10291_v59 = vpop.xlane.xlu0 %2047  ;;  %v1963_v45 = vmul.f32 %v10271_v51, %v8007_v27  ;;  %v1475_v27 = vadd.f32 %v10260_v61, %v10193_v0 }
 0x1d6   :  { %13574 = vst [vmem:[#allocation121_spill] sm:$0xff] %v10289_v26  ;;  %v1250_v63 = vpop.f32.mrb[127].mxu0  ;;  %v2268_v43 = vsel %vm1997_vm2, %v1959_v60, 0.0  ;;  %v8009_v58 = vpop.eup %8008  ;;  %8018 = vtanh.f32 %v1706_v11 }
 0x1d7   :  { %v10303_v26 = vadd.f32 %v10193_v0, %v1250_v63  ;;  %v1980_v63 = vmul.f32 %v10271_v51, %v8005_v30  ;;  %8020 = vtanh.f32 %v1725_v34  ;;  %v1982_v38 = vmul.f32 %v10271_v51, %v8009_v58  ;;  %v1601_v34 = vld [vmem:[%s13296_s2 + $0x3d8] sm:$0xff] }
 0x1d8   :  { %2320 = vadd.xlane.f32.xlu1 %v2319_v10  ;;  %2263 = vadd.xlane.f32.xlu0 %v2262_v39  ;;  %v1454_v10 = vadd.f32 %v10016_v4, %v10049_v33  ;;  %v1582_v39 = vld [vmem:[%s13296_s2 + $0x340] sm:$0xff]  ;;  %v8011_v60 = vpop.eup %8010  ;;  %v2274_v33 = vsel %vm1997_vm2, %v1961_v50, 0.0  ;;  %8022 = vtanh.f32 %v1708_v55  ;;  %v1729_v50 = vadd.f32 %v1601_v34, %v1473_v9 }
 0x1d9   :  { %v10310_v29 = vpop.xlane.xlu1 %2110  ;;  %v10312_v35 = vpop.xlane.xlu0 %2053  ;;  %v2331_v11 = vsel %vm1997_vm2, %v1980_v63, 0.0  ;;  %8024 = vtanh.f32 %v1727_v57  ;;  %v2280_v55 = vsel %vm1997_vm2, %v1963_v45, 0.0  ;;  %v1603_v57 = vld [vmem:[%s13296_s2 + $0x3e8] sm:$0xff]  ;;  %v1477_v45 = vadd.f32 %v10287_v14, %v10193_v0 }
 0x1da   :  { %v8013_v41 = vpop.eup %8012  ;;  %v1710_v40 = vadd.f32 %v1582_v39, %v1454_v10  ;;  %v1965_v10 = vmul.f32 %v10271_v51, %v8011_v60  ;;  %v1731_v60 = vadd.f32 %v1603_v57, %v1475_v27 }
 0x1db   :  { %v8015_v63 = vpop.eup %8014  ;;  %v1984_v39 = vmul.f32 %v10271_v51, %v8013_v41 }
 0x1dc   :  { %2326 = vadd.xlane.f32.xlu1 %v2325_v54  ;;  %2269 = vadd.xlane.f32.xlu0 %v2268_v43  ;;  %v1456_v54 = vadd.f32 %v10016_v4, %v10072_v31  ;;  %v1584_v43 = vld [vmem:[%s13296_s2 + $0x350] sm:$0xff]  ;;  %v2337_v31 = vsel %vm1997_vm2, %v1982_v38, 0.0  ;;  %v8017_v9 = vpop.eup %8016  ;;  %8026 = vtanh.f32 %v1710_v40  ;;  %v2286_v40 = vsel %vm1997_vm2, %v1965_v10, 0.0 }
 0x1dd   :  { %v10328_v6 = vpop.xlane.xlu1 %2116  ;;  %v10330_v30 = vpop.xlane.xlu0 %2059  ;;  %8028 = vtanh.f32 %v1729_v50 }
 0x1de   :  { %v1712_v61 = vadd.f32 %v1584_v43, %v1456_v54  ;;  %v1986_v54 = vmul.f32 %v10271_v51, %v8017_v9  ;;  %v1605_v43 = vld [vmem:[%s13296_s2 + $0x3f8] sm:$0xff] }
 0x1df   :  { %v1733_v27 = vadd.f32 %v1605_v43, %v1477_v45 }
 0x1e0   :  { %2332 = vadd.xlane.f32.xlu1 %v2331_v11  ;;  %2275 = vadd.xlane.f32.xlu0 %v2274_v33  ;;  %v1458_v11 = vadd.f32 %v10016_v4, %v10092_v22  ;;  %v1586_v33 = vld [vmem:[%s13296_s2 + $0x360] sm:$0xff]  ;;  %v8019_v38 = vpop.eup %8018  ;;  %v2343_v4 = vsel %vm1997_vm2, %v1984_v39, 0.0  ;;  %v1967_v22 = vmul.f32 %v10271_v51, %v8015_v63  ;;  %8030 = vtanh.f32 %v1712_v61 }
 0x1e1   :  { %v10346_v52 = vpop.xlane.xlu1 %2122  ;;  %v10348_v58 = vpop.xlane.xlu0 %2065  ;;  %8032 = vtanh.f32 %v1731_v60  ;;  %v2349_v57 = vsel %vm1997_vm2, %v1986_v54, 0.0  ;;  %v1969_v9 = vmul.f32 %v10271_v51, %v8019_v38  ;;  %v1462_v60 = vadd.f32 %v10193_v0, %v10137_v12 }
 0x1e2   :  { %v8021_v50 = vpop.eup %8020  ;;  %v1714_v14 = vadd.f32 %v1586_v33, %v1458_v11  ;;  %v2292_v39 = vsel %vm1997_vm2, %v1967_v22, 0.0 }
 0x1e3   :  { %v1988_v61 = vmul.f32 %v10271_v51, %v8021_v50  ;;  %v2298_v22 = vsel %vm1997_vm2, %v1969_v9, 0.0 }
 0x1e4   :  { %2281 = vadd.xlane.f32.xlu0 %v2280_v55  ;;  %2338 = vadd.xlane.f32.xlu1 %v2337_v31  ;;  %v8023_v55 = vpop.eup %8022  ;;  %v1588_v31 = vld [vmem:[%s13296_s2 + $0x370] sm:$0xff]  ;;  %8034 = vtanh.f32 %v1714_v14  ;;  %v1464_v14 = vadd.f32 %v10193_v0, %v10159_v16 }
 0x1e5   :  { %v10364_v34 = vpop.xlane.xlu1 %2128  ;;  %v10366_v41 = vpop.xlane.xlu0 %2071  ;;  %v1716_v33 = vadd.f32 %v1588_v31, %v10115_v21  ;;  %8036 = vtanh.f32 %v1733_v27  ;;  %v2355_v54 = vsel %vm1997_vm2, %v1988_v61, 0.0  ;;  %v1971_v21 = vmul.f32 %v10271_v51, %v8023_v55  ;;  %v1592_v31 = vld [vmem:[%s13296_s2 + $0x390] sm:$0xff] }
 0x1e6   :  { %v8025_v11 = vpop.eup %8024 }
 0x1e7   :  { %v8027_v45 = vpop.eup %8026  ;;  %v1990_v12 = vmul.f32 %v10271_v51, %v8025_v11  ;;  %8038 = vtanh.f32 %v1716_v33  ;;  %v2304_v55 = vsel %vm1997_vm2, %v1971_v21, 0.0  ;;  %v1720_v33 = vadd.f32 %v1592_v31, %v1464_v14 }
 0x1e8   :  { %2287 = vadd.xlane.f32.xlu0 %v2286_v40  ;;  %2344 = vadd.xlane.f32.xlu1 %v2343_v4  ;;  %v1590_v40 = vld [vmem:[%s13296_s2 + $0x380] sm:$0xff]  ;;  %v8029_v43 = vpop.eup %8028  ;;  %v1973_v61 = vmul.f32 %v10271_v51, %v8027_v45  ;;  %v1468_v31 = vadd.f32 %v10193_v0, %v10208_v46 }
 0x1e9   :  { %v10378_v10 = vpop.xlane.xlu1 %2134  ;;  %v10380_v63 = vpop.xlane.xlu0 %2077  ;;  %v1718_v50 = vadd.f32 %v1590_v40, %v1462_v60  ;;  %v2361_v9 = vsel %vm1997_vm2, %v1990_v12, 0.0  ;;  %v1992_v11 = vmul.f32 %v10271_v51, %v8029_v43  ;;  %v1466_v60 = vadd.f32 %v10193_v0, %v10183_v1 }
 0x1ea   :  { %v8031_v27 = vpop.eup %8030  ;;  %v2310_v45 = vsel %vm1997_vm2, %v1973_v61, 0.0 }
 0x1eb   :  { %v8033_v16 = vpop.eup %8032  ;;  %8040 = vtanh.f32 %v1718_v50  ;;  %v2367_v12 = vsel %vm1997_vm2, %v1992_v11, 0.0  ;;  %v1975_v43 = vmul.f32 %v10271_v51, %v8031_v27 }
 0x1ec   :  { %2293 = vadd.xlane.f32.xlu0 %v2292_v39  ;;  %2350 = vadd.xlane.f32.xlu1 %v2349_v57  ;;  %v1994_v50 = vmul.f32 %v10271_v51, %v8033_v16  ;;  %8042 = vtanh.f32 %v1720_v33 }
 0x1ed   :  { %v10392_v4 = vpop.xlane.xlu1 %2140  ;;  %v10394_v38 = vpop.xlane.xlu0 %2083  ;;  %v2316_v27 = vsel %vm1997_vm2, %v1975_v43, 0.0 }
 0x1ee   :  { %v8035_v40 = vpop.eup %8034  ;;  %v2373_v11 = vsel %vm1997_vm2, %v1994_v50, 0.0 }
 0x1ef   :  { %v8037_v1 = vpop.eup %8036  ;;  %v1977_v16 = vmul.f32 %v10271_v51, %v8035_v40 }
 0x1f0   :  { %2299 = vadd.xlane.f32.xlu0 %v2298_v22  ;;  %2356 = vadd.xlane.f32.xlu1 %v2355_v54  ;;  %v1594_v22 = vld [vmem:[%s13296_s2 + $0x3a0] sm:$0xff]  ;;  %v1996_v33 = vmul.f32 %v10271_v51, %v8037_v1 }
 0x1f1   :  { %v10405_v39 = vpop.xlane.xlu0 %2089  ;;  %v10407_v57 = vpop.xlane.xlu1 %2146  ;;  %v1722_v14 = vadd.f32 %v1594_v22, %v1466_v60  ;;  %v1470_v22 = vadd.f32 %v10193_v0, %v10228_v17  ;;  %v2322_v40 = vsel %vm1997_vm2, %v1977_v16, 0.0  ;;  %v1472_v17 = vadd.f32 %v10193_v0, %v10251_v5 }
 0x1f2   :  { %v8039_v60 = vpop.eup %8038  ;;  %v2379_v50 = vsel %vm1997_vm2, %v1996_v33, 0.0  ;;  %v1474_v5 = vadd.f32 %v10193_v0, %v10278_v49 }
 0x1f3   :  { %8044 = vtanh.f32 %v1722_v14  ;;  %v1979_v1 = vmul.f32 %v10271_v51, %v8039_v60 }
 0x1f4   :  { %2305 = vadd.xlane.f32.xlu0 %v2304_v55  ;;  %2362 = vadd.xlane.f32.xlu1 %v2361_v9  ;;  %v1596_v55 = vld [vmem:[%s13296_s2 + $0x3b0] sm:$0xff] }
 0x1f5   :  { %v10418_v54 = vpop.xlane.xlu0 %2095  ;;  %v10420_v21 = vpop.xlane.xlu1 %2152  ;;  %v1724_v46 = vadd.f32 %v1596_v55, %v1468_v31  ;;  %v1600_v55 = vld [vmem:[%s13296_s2 + $0x3d0] sm:$0xff]  ;;  %v2328_v16 = vsel %vm1997_vm2, %v1979_v1, 0.0 }
 0x1f6   :  { %v8041_v14 = vpop.eup %8040 }
 0x1f7   :  { %8046 = vtanh.f32 %v1724_v46  ;;  %v1981_v33 = vmul.f32 %v10271_v51, %v8041_v14  ;;  %v8043_v60 = vpop.eup %8042  ;;  %v1728_v46 = vadd.f32 %v1600_v55, %v1472_v17  ;;  %v1604_v55 = vld [vmem:[%s13296_s2 + $0x3f0] sm:$0xff] }
 0x1f8   :  { %2311 = vadd.xlane.f32.xlu0 %v2310_v45  ;;  %2368 = vadd.xlane.f32.xlu1 %v2367_v12  ;;  %v1598_v45 = vld [vmem:[%s13296_s2 + $0x3c0] sm:$0xff]  ;;  %v1983_v1 = vmul.f32 %v10271_v51, %v8043_v60 }
 0x1f9   :  { %v10431_v9 = vpop.xlane.xlu0 %2101  ;;  %v10433_v61 = vpop.xlane.xlu1 %2158  ;;  %v1726_v31 = vadd.f32 %v1598_v45, %v1470_v22  ;;  %v1602_v22 = vld [vmem:[%s13296_s2 + $0x3e0] sm:$0xff] }
 0x1fa   :  { %v2340_v49 = vsel %vm1997_vm2, %v1983_v1, 0.0 }
 0x1fb   :  { %8048 = vtanh.f32 %v1726_v31  ;;  %v1730_v31 = vadd.f32 %v1602_v22, %v1474_v5 }
 0x1fc   :  { %2317 = vadd.xlane.f32.xlu0 %v2316_v27  ;;  %2374 = vadd.xlane.f32.xlu1 %v2373_v11  ;;  %8050 = vtanh.f32 %v1728_v46 }
 0x1fd   :  { %v10444_v12 = vpop.xlane.xlu0 %2107  ;;  %v10446_v43 = vpop.xlane.xlu1 %2164  ;;  %8052 = vtanh.f32 %v1730_v31  ;;  %v13309_v31 = vsub.s32 7, %v8381_v3 }
 0x1fe   :  { %v8045_v14 = vpop.eup %8044 }
 0x200   :  { %2323 = vadd.xlane.f32.xlu0 %v2322_v40  ;;  %2380 = vadd.xlane.f32.xlu1 %v2379_v50  ;;  %v2334_v50 = vsel %vm1997_vm2, %v1981_v33, 0.0  ;;  %v1732_v33 = vadd.f32 %v1604_v55, %v10303_v26 }
 0x201   :  { %v10456_v27 = vpop.xlane.xlu0 %2113  ;;  %v10458_v11 = vpop.xlane.xlu1 %2170 }
 0x202   :  { %13575 = vst [vmem:[#allocation122_spill] sm:$0xff] %v10458_v11  ;;  %8054 = vtanh.f32 %v1732_v33  ;;  %v8321_v33 = vld [vmem:[%s13292_s4] sm:$0xff] }
 0x204   :  { %2329 = vadd.xlane.f32.xlu0 %v2328_v16  ;;  %v1985_v16 = vmul.f32 %v10271_v51, %v8045_v14 }
 0x205   :  { %v10467_v45 = vpop.xlane.xlu0 %2119  ;;  %v10469_v40 = vpop.xlane.xlu1 %2176 }
 0x206   :  { %13576 = vst [vmem:[#allocation123_spill] sm:$0xff] %v10469_v40  ;;  %v8047_v40 = vpop.eup %8046  ;;  %v2346_v5 = vsel %vm1997_vm2, %v1985_v16, 0.0 }
 0x207   :  { %v1987_v22 = vmul.f32 %v10271_v51, %v8047_v40 }
 0x208   :  { %2335 = vadd.xlane.f32.xlu0 %v2334_v50  ;;  %v8049_v50 = vpop.eup %8048 }
 0x209   :  { %v10473_v17 = vpop.xlane.xlu0 %2125  ;;  %v10475_v0 = vpop.xlane.xlu1 %2182  ;;  %v2352_v14 = vsel %vm1997_vm2, %v1987_v22, 0.0  ;;  %v1989_v26 = vmul.f32 %v10271_v51, %v8049_v50 }
 0x20a   :  { %13577 = vst [vmem:[#allocation124_spill] sm:$0xff] %v10475_v0 }
 0x20b   :  { %v2358_v16 = vsel %vm1997_vm2, %v1989_v26, 0.0 }
 0x20c   :  { %2341 = vadd.xlane.f32.xlu0 %v2340_v49  ;;  %v8051_v49 = vpop.eup %8050 }
 0x20d   :  { %v10483_v60 = vpop.xlane.xlu0 %2131  ;;  %v10485_v46 = vpop.xlane.xlu1 %2188  ;;  %v1991_v22 = vmul.f32 %v10271_v51, %v8051_v49 }
 0x20e   :  { %13578 = vst [vmem:[#allocation125_spill] sm:$0xff] %v10485_v46  ;;  %v8053_v50 = vpop.eup %8052 }
 0x20f   :  { %v2364_v26 = vsel %vm1997_vm2, %v1991_v22, 0.0  ;;  %v8055_v46 = vpop.eup %8054 }
 0x210   :  { %2347 = vadd.xlane.f32.xlu0 %v2346_v5  ;;  %v10508_v5 = vrot.slane %v8321_v33, %v13309_v31 }
 0x211   :  { %v10489_v1 = vpop.xlane.xlu0 %2137  ;;  %v10491_v0 = vpop.xlane.xlu1 %2194  ;;  %2843 = vbcast.lane.b32.xlu1 %v8916_v47, 360 }
 0x212   :  { %13579 = vst [vmem:[#allocation126_spill] sm:$0xff] %v10491_v0 }
 0x214   :  { %2353 = vadd.xlane.f32.xlu0 %v2352_v14 }
 0x215   :  { %v10497_v55 = vpop.xlane.xlu0 %2143  ;;  %v10499_v40 = vpop.xlane.xlu1 %2200  ;;  %2851 = vbcast.lane.b32.xlu1 %v8916_v47, 376 }
 0x216   :  { %13580 = vst [vmem:[#allocation127_spill] sm:$0xff] %v10499_v40  ;;  %v1993_v40 = vmul.f32 %v10271_v51, %v8053_v50 }
 0x218   :  { %2359 = vadd.xlane.f32.xlu0 %v2358_v16  ;;  %v2370_v49 = vsel %vm1997_vm2, %v1993_v40, 0.0  ;;  %v1995_v16 = vmul.f32 %v10271_v51, %v8055_v46 }
 0x219   :  { %v10511_v14 = vpop.xlane.xlu0 %2149  ;;  %v10513_v0 = vpop.xlane.xlu1 %2206  ;;  %2862 = vbcast.lane.b32.xlu1 %v10508_v5, 264 }
 0x21a   :  { %13581 = vst [vmem:[#allocation128_spill] sm:$0xff] %v10513_v0  ;;  %v2376_v22 = vsel %vm1997_vm2, %v1995_v16, 0.0  ;;  %vm3798_vm2 = vcmask 1048512  }
 0x21c   :  { %2365 = vadd.xlane.f32.xlu0 %v2364_v26 }
 0x21d   :  { %v10518_v11 = vpop.xlane.xlu0 %2155  ;;  %v10520_v33 = vpop.xlane.xlu1 %2212  ;;  %2870 = vbcast.lane.b32.xlu1 %v10508_v5, 280 }
 0x21e   :  { %13582 = vst [vmem:[#allocation129_spill] sm:$0xff] %v10520_v33 }
 0x220   :  { %2371 = vadd.xlane.f32.xlu0 %v2370_v49 }
 0x221   :  { %v10525_v31 = vpop.xlane.xlu0 %2161  ;;  %v10527_v3 = vpop.xlane.xlu1 %2218  ;;  %2878 = vbcast.lane.b32.xlu1 %v10508_v5, 296 }
 0x222   :  { %13583 = vst [vmem:[#allocation130_spill] sm:$0xff] %v10527_v3 }
 0x224   :  { %2377 = vadd.xlane.f32.xlu0 %v2376_v22 }
 0x225   :  { %v10531_v50 = vpop.xlane.xlu0 %2167  ;;  %v10533_v26 = vpop.xlane.xlu1 %2224  ;;  %2886 = vbcast.lane.b32.xlu1 %v10508_v5, 312 }
 0x226   :  { %13584 = vst [vmem:[#allocation131_spill] sm:$0xff] %v10533_v26 }
 0x229   :  { %v10536_v33 = vpop.xlane.xlu0 %2173  ;;  %v10538_v40 = vpop.xlane.xlu1 %2230  ;;  %2894 = vbcast.lane.b32.xlu1 %v10508_v5, 328 }
 0x22a   :  { %13585 = vst [vmem:[#allocation132_spill] sm:$0xff] %v10538_v40  ;;  %v10558_v40 = vadd.f32 %v8663_v15, %v10054_v53  ;;  %v10578_v15 = vadd.f32 %v8672_v18, %v10148_v37  ;;  %v10598_v18 = vadd.f32 %v8705_v28, %v10197_v19  ;;  %v10618_v28 = vadd.f32 %v8733_v36, %v10240_v2 }
 0x22b   :  { %v10638_v36 = vadd.f32 %v8773_v48, %v10291_v59  ;;  %v10662_v59 = vadd.f32 %v8819_v62, %v10330_v30 }
 0x22c   :  { %13589 = vst [vmem:[#allocation136_spill] sm:$0xff] %v10558_v40  ;;  %13591 = vst [vmem:[#allocation138_spill] sm:$0xff] %v10578_v15 }
 0x22d   :  { %v10541_v51 = vpop.xlane.xlu0 %2179  ;;  %v10543_v46 = vpop.xlane.xlu1 %2236  ;;  %2902 = vbcast.lane.b32.xlu1 %v10508_v5, 344  ;;  %13593 = vst [vmem:[#allocation140_spill] sm:$0xff] %v10598_v18  ;;  %13597 = vst [vmem:[#allocation144_spill] sm:$0xff] %v10618_v28 }
 0x22e   :  { %13586 = vst [vmem:[#allocation133_spill] sm:$0xff] %v10543_v46  ;;  %13599 = vst [vmem:[#allocation146_spill] sm:$0xff] %v10638_v36 }
 0x22f   :  { %13602 = vst [vmem:[#allocation149_spill] sm:$0xff] %v10662_v59 }
 0x231   :  { %v10546_v49 = vpop.xlane.xlu0 %2185  ;;  %v10548_v16 = vpop.xlane.xlu1 %2242  ;;  %2910 = vbcast.lane.b32.xlu1 %v10508_v5, 360 }
 0x232   :  { %13587 = vst [vmem:[#allocation134_spill] sm:$0xff] %v10548_v16  ;;  %v10568_v16 = vadd.f32 %v8678_v20, %v9928_v42  ;;  %v10588_v20 = vadd.f32 %v8691_v24, %v10172_v23  ;;  %v10608_v24 = vadd.f32 %v8719_v32, %v10217_v7  ;;  %v10628_v7 = vadd.f32 %v8756_v44, %v10262_v25 }
 0x233   :  { %v10648_v44 = vadd.f32 %v8797_v56, %v10312_v35  ;;  %v10652_v25 = vadd.f32 %v8657_v13, %v10094_v8  ;;  %v13606_v8 = vld [vmem:[#allocation19_spill] sm:$0xff] }
 0x234   :  { %13590 = vst [vmem:[#allocation137_spill] sm:$0xff] %v10568_v16  ;;  %13592 = vst [vmem:[#allocation139_spill] sm:$0xff] %v10588_v20 }
 0x235   :  { %v10551_v22 = vpop.xlane.xlu0 %2191  ;;  %v10553_v26 = vpop.xlane.xlu1 %2248  ;;  %2918 = vbcast.lane.b32.xlu1 %v10508_v5, 376  ;;  %13595 = vst [vmem:[#allocation142_spill] sm:$0xff] %v10608_v24  ;;  %13598 = vst [vmem:[#allocation145_spill] sm:$0xff] %v10628_v7 }
 0x236   :  { %13588 = vst [vmem:[#allocation135_spill] sm:$0xff] %v10553_v26  ;;  %13600 = vst [vmem:[#allocation147_spill] sm:$0xff] %v10648_v44 }
 0x237   :  { %13601 = vst [vmem:[#allocation148_spill] sm:$0xff] %v10652_v25 }
 0x239   :  { %v10560_v3 = vpop.xlane.xlu0 %2197  ;;  %v10562_v46 = vpop.xlane.xlu1 %2254  ;;  %3309 = vperm.xlu1 %7798, %v10558_v40  }
 0x23a   :  { %2847 = vbcast.lane.b32.xlu0 %v8916_v47, 368 }
 0x23d   :  { %v10570_v0 = vpop.xlane.xlu0 %2203  ;;  %v10572_v26 = vpop.xlane.xlu1 %2260  ;;  %3312 = vperm.xlu1 %7798, %v10568_v16  }
 0x23e   :  { %2858 = vbcast.lane.b32.xlu0 %v10508_v5, 256 }
 0x241   :  { %v10580_v53 = vpop.xlane.xlu0 %2209  ;;  %v10582_v40 = vpop.xlane.xlu1 %2266  ;;  %3318 = vperm.xlu1 %7798, %v10578_v15  }
 0x242   :  { %2866 = vbcast.lane.b32.xlu0 %v10508_v5, 272 }
 0x245   :  { %v10590_v47 = vpop.xlane.xlu0 %2215  ;;  %v10592_v42 = vpop.xlane.xlu1 %2272  ;;  %3324 = vperm.xlu1 %7798, %v10588_v20  }
 0x246   :  { %2874 = vbcast.lane.b32.xlu0 %v10508_v5, 288 }
 0x249   :  { %v10600_v37 = vpop.xlane.xlu0 %2221  ;;  %v10602_v15 = vpop.xlane.xlu1 %2278  ;;  %3330 = vperm.xlu1 %7798, %v10598_v18   ;;  %v13609_v18 = vld [vmem:[#allocation9_spill] sm:$0xff] }
 0x24a   :  { %13594 = vst [vmem:[#allocation141_spill] sm:$0xff] %v10602_v15  ;;  %2882 = vbcast.lane.b32.xlu0 %v10508_v5, 304 }
 0x24d   :  { %v10610_v23 = vpop.xlane.xlu0 %2227  ;;  %v10612_v20 = vpop.xlane.xlu1 %2284  ;;  %3336 = vperm.xlu1 %7798, %v10608_v24  }
 0x24e   :  { %13596 = vst [vmem:[#allocation143_spill] sm:$0xff] %v10612_v20  ;;  %2890 = vbcast.lane.b32.xlu0 %v10508_v5, 320  ;;  %v13615_v20 = vld [vmem:[#allocation10_spill] sm:$0xff] }
 0x251   :  { %v10620_v19 = vpop.xlane.xlu0 %2233  ;;  %v10622_v16 = vpop.xlane.xlu1 %2290  ;;  %3342 = vperm.xlu1 %7798, %v10618_v28  }
 0x252   :  { %2898 = vbcast.lane.b32.xlu0 %v10508_v5, 336 }
 0x255   :  { %v10630_v32 = vpop.xlane.xlu1 %2296  ;;  %v10632_v24 = vpop.xlane.xlu0 %2239  ;;  %3348 = vperm.xlu1 %7798, %v10628_v7  }
 0x256   :  { %2906 = vbcast.lane.b32.xlu0 %v10508_v5, 352 }
 0x259   :  { %v10640_v2 = vpop.xlane.xlu1 %2302  ;;  %v10642_v28 = vpop.xlane.xlu0 %2245  ;;  %3354 = vperm.xlu1 %7798, %v10638_v36   ;;  %v13604_v36 = vld [vmem:[#allocation8_spill] sm:$0xff] }
 0x25a   :  { %2914 = vbcast.lane.b32.xlu0 %v10508_v5, 368  ;;  %v13603_v5 = vld [vmem:[#allocation100_spill] sm:$0xff] }
 0x25b   :  { %v10666_v56 = vadd.f32 %v13604_v36, %v13603_v5  ;;  %v13612_v5 = vld [vmem:[#allocation21_spill] sm:$0xff] }
 0x25d   :  { %v10654_v7 = vpop.xlane.xlu1 %2308  ;;  %v10656_v48 = vpop.xlane.xlu0 %2251  ;;  %3360 = vperm.xlu1 %7798, %v10648_v44   ;;  %13605 = vst [vmem:[#allocation100_spill] sm:$0xff] %v10666_v56  ;;  %v10676_v44 = vadd.f32 %v13606_v8, %v10348_v58 }
 0x25e   :  { %3306 = vperm.xlu0 %7797, %v10652_v25   ;;  %v13608_v25 = vld [vmem:[#allocation102_spill] sm:$0xff] }
 0x25f   :  { %13607 = vst [vmem:[#allocation8_spill] sm:$0xff] %v10676_v44  ;;  %v10680_v62 = vadd.f32 %v13609_v18, %v13608_v25  ;;  %v13619_v25 = vld [vmem:[#allocation24_spill] sm:$0xff] }
 0x261   :  { %v10668_v35 = vpop.xlane.xlu1 %2314  ;;  %v10670_v13 = vpop.xlane.xlu0 %2257  ;;  %3366 = vperm.xlu1 %7798, %v10662_v59   ;;  %13610 = vst [vmem:[#allocation19_spill] sm:$0xff] %v10680_v62  ;;  %v10690_v59 = vadd.f32 %v13612_v5, %v10366_v41 }
 0x262   :  { %3315 = vperm.xlu0 %7797, %v10666_v56   ;;  %v13614_v56 = vld [vmem:[#allocation104_spill] sm:$0xff] }
 0x263   :  { %13613 = vst [vmem:[#allocation9_spill] sm:$0xff] %v10690_v59  ;;  %v10694_v58 = vadd.f32 %v13615_v20, %v13614_v56  ;;  %v13626_v56 = vld [vmem:[#allocation26_spill] sm:$0xff] }
 0x265   :  { %v10682_v30 = vpop.xlane.xlu1 %2320  ;;  %v10684_v36 = vpop.xlane.xlu0 %2263  ;;  %3372 = vperm.xlu1 %7798, %v10676_v44   ;;  %13616 = vst [vmem:[#allocation21_spill] sm:$0xff] %v10694_v58  ;;  %v10704_v44 = vadd.f32 %v13619_v25, %v10380_v63 }
 0x266   :  { %13611 = vst [vmem:[#allocation102_spill] sm:$0xff] %v10684_v36  ;;  %3321 = vperm.xlu0 %7797, %v10680_v62   ;;  %v13621_v62 = vld [vmem:[#allocation105_spill] sm:$0xff]  ;;  %v13622_v36 = vld [vmem:[#allocation11_spill] sm:$0xff] }
 0x267   :  { %13620 = vst [vmem:[#allocation24_spill] sm:$0xff] %v10704_v44  ;;  %v10708_v41 = vadd.f32 %v13622_v36, %v13621_v62  ;;  %v13632_v36 = vld [vmem:[#allocation29_spill] sm:$0xff] }
 0x269   :  { %v10696_v8 = vpop.xlane.xlu1 %2326  ;;  %v10698_v18 = vpop.xlane.xlu0 %2269  ;;  %3378 = vperm.xlu1 %7798, %v10690_v59   ;;  %13623 = vst [vmem:[#allocation105_spill] sm:$0xff] %v10708_v41  ;;  %v10718_v59 = vadd.f32 %v13626_v56, %v10394_v38 }
 0x26a   :  { %13617 = vst [vmem:[#allocation104_spill] sm:$0xff] %v10696_v8  ;;  %13618 = vst [vmem:[#allocation10_spill] sm:$0xff] %v10698_v18  ;;  %3327 = vperm.xlu0 %7797, %v10694_v58   ;;  %v13628_v58 = vld [vmem:[#allocation107_spill] sm:$0xff]  ;;  %v13629_v18 = vld [vmem:[#allocation12_spill] sm:$0xff] }
 0x26b   :  { %13627 = vst [vmem:[#allocation26_spill] sm:$0xff] %v10718_v59  ;;  %v10722_v63 = vadd.f32 %v13629_v18, %v13628_v58  ;;  %v13637_v18 = vld [vmem:[#allocation31_spill] sm:$0xff]  ;;  %v13650_v8 = vld [vmem:[#allocation16_spill] sm:$0xff] }
 0x26d   :  { %v10710_v5 = vpop.xlane.xlu1 %2332  ;;  %v10712_v20 = vpop.xlane.xlu0 %2275  ;;  %3384 = vperm.xlu1 %7798, %v10704_v44   ;;  %13630 = vst [vmem:[#allocation107_spill] sm:$0xff] %v10722_v63  ;;  %v10732_v44 = vadd.f32 %v13632_v36, %v10405_v39 }
 0x26e   :  { %13624 = vst [vmem:[#allocation11_spill] sm:$0xff] %v10710_v5  ;;  %13625 = vst [vmem:[#allocation150_spill] sm:$0xff] %v10712_v20  ;;  %3333 = vperm.xlu0 %7797, %v10708_v41   ;;  %v13634_v41 = vld [vmem:[#allocation109_spill] sm:$0xff]  ;;  %v13645_v20 = vld [vmem:[#allocation15_spill] sm:$0xff] }
 0x26f   :  { %13633 = vst [vmem:[#allocation29_spill] sm:$0xff] %v10732_v44  ;;  %v13635_v5 = vld [vmem:[#allocation13_spill] sm:$0xff] }
 0x270   :  { %v10736_v38 = vadd.f32 %v13635_v5, %v13634_v41  ;;  %v13642_v5 = vld [vmem:[#allocation34_spill] sm:$0xff] }
 0x271   :  { %v10724_v25 = vpop.xlane.xlu0 %2281  ;;  %3390 = vperm.xlu1 %7798, %v10718_v59   ;;  %v10727_v62 = vpop.xlane.xlu1 %2338  ;;  %v10746_v59 = vadd.f32 %v13637_v18, %v10418_v54 }
 0x272   :  { %13631 = vst [vmem:[#allocation12_spill] sm:$0xff] %v10724_v25  ;;  %3339 = vperm.xlu0 %7797, %v10722_v63   ;;  %13636 = vst [vmem:[#allocation109_spill] sm:$0xff] %v10736_v38  ;;  %v13639_v63 = vld [vmem:[#allocation110_spill] sm:$0xff] }
 0x273   :  { %13638 = vst [vmem:[#allocation13_spill] sm:$0xff] %v10746_v59  ;;  %v13640_v25 = vld [vmem:[#allocation14_spill] sm:$0xff] }
 0x274   :  { %v10750_v39 = vadd.f32 %v13640_v25, %v13639_v63  ;;  %v13647_v25 = vld [vmem:[#allocation36_spill] sm:$0xff] }
 0x275   :  { %v10738_v56 = vpop.xlane.xlu0 %2287  ;;  %3396 = vperm.xlu1 %7798, %v10732_v44   ;;  %v10741_v58 = vpop.xlane.xlu1 %2344  ;;  %v10760_v44 = vadd.f32 %v13642_v5, %v10431_v9 }
 0x276   :  { %3345 = vperm.xlu0 %7797, %v10736_v38   ;;  %13641 = vst [vmem:[#allocation31_spill] sm:$0xff] %v10750_v39  ;;  %v13644_v38 = vld [vmem:[#allocation111_spill] sm:$0xff] }
 0x277   :  { %13643 = vst [vmem:[#allocation110_spill] sm:$0xff] %v10760_v44  ;;  %v10764_v54 = vadd.f32 %v13645_v20, %v13644_v38  ;;  %v13653_v38 = vld [vmem:[#allocation39_spill] sm:$0xff] }
 0x278   :  { %v10786_v5 = vadd.f32 %v13653_v38, %v10456_v27 }
 0x279   :  { %v10752_v36 = vpop.xlane.xlu0 %2293  ;;  %3402 = vperm.xlu1 %7798, %v10746_v59   ;;  %v10755_v41 = vpop.xlane.xlu1 %2350  ;;  %13646 = vst [vmem:[#allocation14_spill] sm:$0xff] %v10764_v54  ;;  %v10772_v59 = vadd.f32 %v13647_v25, %v10444_v12 }
 0x27a   :  { %3351 = vperm.xlu0 %7797, %v10750_v39   ;;  %v13649_v39 = vld [vmem:[#allocation112_spill] sm:$0xff]  ;;  %13654 = vst [vmem:[#allocation36_spill] sm:$0xff] %v10786_v5 }
 0x27b   :  { %13648 = vst [vmem:[#allocation34_spill] sm:$0xff] %v10772_v59  ;;  %v10776_v15 = vadd.f32 %v13650_v8, %v13649_v39  ;;  %v13659_v39 = vld [vmem:[#allocation41_spill] sm:$0xff] }
 0x27d   :  { %v10766_v18 = vpop.xlane.xlu0 %2299  ;;  %3408 = vperm.xlu1 %7798, %v10760_v44   ;;  %v2357_v63 = vpop.xlane.xlu1 %2356  ;;  %13651 = vst [vmem:[#allocation111_spill] sm:$0xff] %v10776_v15  ;;  %v13656_v44 = vld [vmem:[#allocation17_spill] sm:$0xff] }
 0x27e   :  { %3357 = vperm.xlu0 %7797, %v10764_v54   ;;  %v13655_v54 = vld [vmem:[#allocation114_spill] sm:$0xff] }
 0x27f   :  { %v10790_v12 = vadd.f32 %v13656_v44, %v13655_v54  ;;  %v13665_v54 = vld [vmem:[#allocation43_spill] sm:$0xff] }
 0x281   :  { %v10778_v9 = vpop.xlane.xlu0 %2305  ;;  %3414 = vperm.xlu1 %7798, %v10772_v59   ;;  %v10781_v20 = vpop.xlane.xlu1 %2362  ;;  %13657 = vst [vmem:[#allocation112_spill] sm:$0xff] %v10790_v12  ;;  %v10800_v59 = vadd.f32 %v13659_v39, %v10467_v45 }
 0x282   :  { %13652 = vst [vmem:[#allocation15_spill] sm:$0xff] %v10778_v9  ;;  %3363 = vperm.xlu0 %7797, %v10776_v15   ;;  %v13661_v15 = vld [vmem:[#allocation115_spill] sm:$0xff]  ;;  %v13662_v9 = vld [vmem:[#allocation18_spill] sm:$0xff] }
 0x283   :  { %13660 = vst [vmem:[#allocation39_spill] sm:$0xff] %v10800_v59  ;;  %v10804_v27 = vadd.f32 %v13662_v9, %v13661_v15  ;;  %v13672_v9 = vld [vmem:[#allocation45_spill] sm:$0xff] }
 0x285   :  { %v10792_v25 = vpop.xlane.xlu0 %2311  ;;  %3420 = vperm.xlu1 %7798, %v10786_v5   ;;  %v10795_v8 = vpop.xlane.xlu1 %2368  ;;  %13663 = vst [vmem:[#allocation114_spill] sm:$0xff] %v10804_v27  ;;  %v10814_v5 = vadd.f32 %v13665_v54, %v10473_v17 }
 0x286   :  { %13658 = vst [vmem:[#allocation16_spill] sm:$0xff] %v10792_v25  ;;  %3369 = vperm.xlu0 %7797, %v10790_v12   ;;  %v13667_v12 = vld [vmem:[#allocation116_spill] sm:$0xff] }
 0x287   :  { %13666 = vst [vmem:[#allocation41_spill] sm:$0xff] %v10814_v5  ;;  %v13668_v25 = vld [vmem:[#allocation20_spill] sm:$0xff] }
 0x288   :  { %v10818_v45 = vadd.f32 %v13668_v25, %v13667_v12  ;;  %v13678_v25 = vld [vmem:[#allocation47_spill] sm:$0xff] }
 0x289   :  { %v10806_v38 = vpop.xlane.xlu0 %2317  ;;  %3426 = vperm.xlu1 %7798, %v10800_v59   ;;  %v10809_v44 = vpop.xlane.xlu1 %2374  ;;  %v10828_v59 = vadd.f32 %v13672_v9, %v10483_v60  ;;  %v13684_v9 = vld [vmem:[#allocation49_spill] sm:$0xff] }
 0x28a   :  { %13664 = vst [vmem:[#allocation17_spill] sm:$0xff] %v10806_v38  ;;  %3375 = vperm.xlu0 %7797, %v10804_v27   ;;  %13669 = vst [vmem:[#allocation115_spill] sm:$0xff] %v10818_v45  ;;  %v13674_v27 = vld [vmem:[#allocation117_spill] sm:$0xff]  ;;  %v13675_v38 = vld [vmem:[#allocation22_spill] sm:$0xff] }
 0x28b   :  { %13673 = vst [vmem:[#allocation116_spill] sm:$0xff] %v10828_v59  ;;  %v10832_v17 = vadd.f32 %v13675_v38, %v13674_v27 }
 0x28d   :  { %v10820_v39 = vpop.xlane.xlu0 %2323  ;;  %3432 = vperm.xlu1 %7798, %v10814_v5   ;;  %v10823_v15 = vpop.xlane.xlu1 %2380  ;;  %13676 = vst [vmem:[#allocation20_spill] sm:$0xff] %v10832_v17  ;;  %v10842_v5 = vadd.f32 %v13678_v25, %v10489_v1  ;;  %v13689_v25 = vld [vmem:[#allocation51_spill] sm:$0xff] }
 0x28e   :  { %13670 = vst [vmem:[#allocation18_spill] sm:$0xff] %v10820_v39  ;;  %13671 = vst [vmem:[#allocation43_spill] sm:$0xff] %v10823_v15  ;;  %3381 = vperm.xlu0 %7797, %v10818_v45   ;;  %v13680_v45 = vld [vmem:[#allocation118_spill] sm:$0xff]  ;;  %v13681_v15 = vld [vmem:[#allocation23_spill] sm:$0xff] }
 0x28f   :  { %13679 = vst [vmem:[#allocation117_spill] sm:$0xff] %v10842_v5  ;;  %v10846_v60 = vadd.f32 %v13681_v15, %v13680_v45  ;;  %v13697_v39 = vld [vmem:[#allocation28_spill] sm:$0xff] }
 0x291   :  { %v10834_v54 = vpop.xlane.xlu0 %2329  ;;  %3438 = vperm.xlu1 %7798, %v10828_v59   ;;  %v10837_v12 = vpop.permute.xlu1 %2843  ;;  %13682 = vst [vmem:[#allocation22_spill] sm:$0xff] %v10846_v60  ;;  %v10856_v59 = vadd.f32 %v13684_v9, %v10497_v55  ;;  %v13694_v9 = vld [vmem:[#allocation53_spill] sm:$0xff] }
 0x292   :  { %13677 = vst [vmem:[#allocation45_spill] sm:$0xff] %v10834_v54  ;;  %3387 = vperm.xlu0 %7797, %v10832_v17   ;;  %v13686_v17 = vld [vmem:[#allocation119_spill] sm:$0xff]  ;;  %v13687_v54 = vld [vmem:[#allocation25_spill] sm:$0xff] }
 0x293   :  { %13685 = vst [vmem:[#allocation118_spill] sm:$0xff] %v10856_v59  ;;  %v10860_v1 = vadd.f32 %v13687_v54, %v13686_v17 }
 0x295   :  { %3444 = vperm.xlu1 %7798, %v10842_v5   ;;  %v10849_v27 = vpop.permute.xlu1 %2851  ;;  %v10851_v38 = vpop.xlane.xlu0 %2335  ;;  %13688 = vst [vmem:[#allocation23_spill] sm:$0xff] %v10860_v1  ;;  %v10870_v5 = vadd.f32 %v13689_v25, %v10511_v14  ;;  %v13699_v25 = vld [vmem:[#allocation55_spill] sm:$0xff] }
 0x296   :  { %13683 = vst [vmem:[#allocation47_spill] sm:$0xff] %v10849_v27  ;;  %3393 = vperm.xlu0 %7797, %v10846_v60   ;;  %v13691_v60 = vld [vmem:[#allocation120_spill] sm:$0xff]  ;;  %v13692_v27 = vld [vmem:[#allocation27_spill] sm:$0xff] }
 0x297   :  { %13690 = vst [vmem:[#allocation49_spill] sm:$0xff] %v10870_v5  ;;  %v10874_v55 = vadd.f32 %v13692_v27, %v13691_v60 }
 0x299   :  { %3450 = vperm.xlu1 %7798, %v10856_v59   ;;  %v10863_v45 = vpop.permute.xlu1 %2862  ;;  %v10865_v15 = vpop.xlane.xlu0 %2341  ;;  %13693 = vst [vmem:[#allocation119_spill] sm:$0xff] %v10874_v55  ;;  %v10884_v59 = vadd.f32 %v13694_v9, %v10518_v11 }
 0x29a   :  { %3399 = vperm.xlu0 %7797, %v10860_v1   ;;  %v13696_v1 = vld [vmem:[#allocation121_spill] sm:$0xff] }
 0x29b   :  { %13695 = vst [vmem:[#allocation25_spill] sm:$0xff] %v10884_v59  ;;  %v10888_v14 = vadd.f32 %v13697_v39, %v13696_v1 }
 0x29d   :  { %3456 = vperm.xlu1 %7798, %v10870_v5   ;;  %v10877_v17 = vpop.permute.xlu1 %2870  ;;  %v10879_v54 = vpop.xlane.xlu0 %2347  ;;  %13698 = vst [vmem:[#allocation51_spill] sm:$0xff] %v10888_v14  ;;  %v10898_v5 = vadd.f32 %v13699_v25, %v10525_v31  ;;  %v13706_v31 = vld [vmem:[#allocation32_spill] sm:$0xff] }
 0x29e   :  { %3405 = vperm.xlu0 %7797, %v10874_v55   ;;  %v13701_v55 = vld [vmem:[#allocation30_spill] sm:$0xff]  ;;  %v10916_v25 = vadd.f32 %v13706_v31, %v10328_v6  ;;  %v13712_v31 = vld [vmem:[#allocation61_spill] sm:$0xff] }
 0x29f   :  { %13700 = vst [vmem:[#allocation120_spill] sm:$0xff] %v10898_v5  ;;  %v10902_v11 = vadd.f32 %v13701_v55, %v10310_v29 }
 0x2a0   :  { %13707 = vst [vmem:[#allocation28_spill] sm:$0xff] %v10916_v25 }
 0x2a1   :  { %3462 = vperm.xlu1 %7798, %v10884_v59   ;;  %v10891_v60 = vpop.permute.xlu1 %2878  ;;  %v10893_v27 = vpop.xlane.xlu0 %2353  ;;  %13702 = vst [vmem:[#allocation27_spill] sm:$0xff] %v10902_v11  ;;  %v13704_v59 = vld [vmem:[#allocation57_spill] sm:$0xff] }
 0x2a2   :  { %3411 = vperm.xlu0 %7797, %v10888_v14   ;;  %v10912_v14 = vadd.f32 %v13704_v59, %v10531_v50 }
 0x2a4   :  { %13705 = vst [vmem:[#allocation121_spill] sm:$0xff] %v10912_v14 }
 0x2a5   :  { %3468 = vperm.xlu1 %7798, %v10898_v5   ;;  %v2887_v39 = vpop.permute.xlu1 %2886  ;;  %v10905_v1 = vpop.xlane.xlu0 %2359  ;;  %v13745_v5 = vld [vmem:[#allocation48_spill] sm:$0xff] }
 0x2a6   :  { %v10907_v9 = vadd.f32 %v2887_v39, %v2357_v63  ;;  %3417 = vperm.xlu0 %7797, %v10902_v11   ;;  %v13708_v63 = vld [vmem:[#allocation59_spill] sm:$0xff]  ;;  %v13710_v11 = vld [vmem:[#allocation33_spill] sm:$0xff] }
 0x2a7   :  { %v10926_v39 = vadd.f32 %v13708_v63, %v10536_v33  ;;  %v10930_v50 = vadd.f32 %v13710_v11, %v10346_v52  ;;  %v13716_v63 = vld [vmem:[#allocation63_spill] sm:$0xff] }
 0x2a8   :  { %13703 = vst [vmem:[#allocation53_spill] sm:$0xff] %v10907_v9 }
 0x2a9   :  { %3474 = vperm.xlu1 %7798, %v10912_v14   ;;  %v10919_v29 = vpop.permute.xlu1 %2894  ;;  %v10921_v55 = vpop.xlane.xlu0 %2365  ;;  %13709 = vst [vmem:[#allocation55_spill] sm:$0xff] %v10926_v39  ;;  %13711 = vst [vmem:[#allocation30_spill] sm:$0xff] %v10930_v50  ;;  %v10940_v14 = vadd.f32 %v13712_v31, %v10541_v51  ;;  %v13720_v31 = vld [vmem:[#allocation65_spill] sm:$0xff] }
 0x2aa   :  { %3423 = vperm.xlu0 %7797, %v10916_v25   ;;  %v13714_v25 = vld [vmem:[#allocation35_spill] sm:$0xff] }
 0x2ab   :  { %13713 = vst [vmem:[#allocation57_spill] sm:$0xff] %v10940_v14  ;;  %v10944_v33 = vadd.f32 %v13714_v25, %v10364_v34 }
 0x2ad   :  { %3480 = vperm.xlu1 %7798, %v10926_v39   ;;  %v10933_v6 = vpop.permute.xlu1 %2902  ;;  %v10935_v59 = vpop.xlane.xlu0 %2371  ;;  %13715 = vst [vmem:[#allocation32_spill] sm:$0xff] %v10944_v33  ;;  %v10954_v39 = vadd.f32 %v13716_v63, %v10546_v49  ;;  %v13724_v63 = vld [vmem:[#allocation67_spill] sm:$0xff] }
 0x2ae   :  { %3429 = vperm.xlu0 %7797, %v10930_v50   ;;  %v13718_v50 = vld [vmem:[#allocation37_spill] sm:$0xff] }
 0x2af   :  { %13717 = vst [vmem:[#allocation59_spill] sm:$0xff] %v10954_v39  ;;  %v10958_v51 = vadd.f32 %v13718_v50, %v10378_v10 }
 0x2b1   :  { %3486 = vperm.xlu1 %7798, %v10940_v14   ;;  %v10947_v52 = vpop.permute.xlu1 %2910  ;;  %v10949_v11 = vpop.xlane.xlu0 %2377  ;;  %13719 = vst [vmem:[#allocation33_spill] sm:$0xff] %v10958_v51  ;;  %v10968_v14 = vadd.f32 %v13720_v31, %v10551_v22  ;;  %v13728_v31 = vld [vmem:[#allocation69_spill] sm:$0xff] }
 0x2b2   :  { %3435 = vperm.xlu0 %7797, %v10944_v33   ;;  %v13722_v33 = vld [vmem:[#allocation38_spill] sm:$0xff] }
 0x2b3   :  { %13721 = vst [vmem:[#allocation61_spill] sm:$0xff] %v10968_v14  ;;  %v10972_v49 = vadd.f32 %v13722_v33, %v10392_v4 }
 0x2b5   :  { %3492 = vperm.xlu1 %7798, %v10954_v39   ;;  %v10961_v34 = vpop.permute.xlu1 %2918  ;;  %v10963_v25 = vpop.permute.xlu0 %2847  ;;  %13723 = vst [vmem:[#allocation35_spill] sm:$0xff] %v10972_v49  ;;  %v10982_v39 = vadd.f32 %v13724_v63, %v10560_v3  ;;  %v13732_v63 = vld [vmem:[#allocation71_spill] sm:$0xff] }
 0x2b6   :  { %3441 = vperm.xlu0 %7797, %v10958_v51   ;;  %v13726_v51 = vld [vmem:[#allocation40_spill] sm:$0xff] }
 0x2b7   :  { %13725 = vst [vmem:[#allocation63_spill] sm:$0xff] %v10982_v39  ;;  %v10986_v22 = vadd.f32 %v13726_v51, %v10407_v57 }
 0x2b9   :  { %3498 = vperm.xlu1 %7798, %v10968_v14   ;;  %v10975_v10 = vpop.permute.xlu1 %3309  ;;  %v10977_v50 = vpop.permute.xlu0 %2858  ;;  %13727 = vst [vmem:[#allocation37_spill] sm:$0xff] %v10986_v22  ;;  %v10996_v14 = vadd.f32 %v13728_v31, %v10570_v0  ;;  %v13737_v31 = vld [vmem:[#allocation73_spill] sm:$0xff] }
 0x2ba   :  { %3447 = vperm.xlu0 %7797, %v10972_v49   ;;  %v13730_v49 = vld [vmem:[#allocation42_spill] sm:$0xff] }
 0x2bb   :  { %13729 = vst [vmem:[#allocation65_spill] sm:$0xff] %v10996_v14  ;;  %v11000_v3 = vadd.f32 %v13730_v49, %v10420_v21 }
 0x2bd   :  { %3504 = vperm.xlu1 %7798, %v10982_v39   ;;  %v10989_v4 = vpop.permute.xlu1 %3312  ;;  %v10991_v33 = vpop.permute.xlu0 %2866  ;;  %13731 = vst [vmem:[#allocation38_spill] sm:$0xff] %v11000_v3  ;;  %v11010_v39 = vadd.f32 %v13732_v63, %v10580_v53  ;;  %v13742_v63 = vld [vmem:[#allocation75_spill] sm:$0xff] }
 0x2be   :  { %3453 = vperm.xlu0 %7797, %v10986_v22   ;;  %v13734_v22 = vld [vmem:[#allocation44_spill] sm:$0xff] }
 0x2bf   :  { %13733 = vst [vmem:[#allocation67_spill] sm:$0xff] %v11010_v39  ;;  %v11014_v0 = vadd.f32 %v13734_v22, %v10433_v61 }
 0x2c1   :  { %3510 = vperm.xlu1 %7798, %v10996_v14   ;;  %v11003_v57 = vpop.permute.xlu1 %3318  ;;  %v11005_v51 = vpop.permute.xlu0 %2874  ;;  %13735 = vst [vmem:[#allocation40_spill] sm:$0xff] %v11014_v0  ;;  %v11024_v14 = vadd.f32 %v13737_v31, %v10590_v47  ;;  %v13748_v31 = vld [vmem:[#allocation77_spill] sm:$0xff] }
 0x2c2   :  { %3459 = vperm.xlu0 %7797, %v11000_v3   ;;  %v13739_v3 = vld [vmem:[#allocation46_spill] sm:$0xff] }
 0x2c3   :  { %13738 = vst [vmem:[#allocation42_spill] sm:$0xff] %v11024_v14  ;;  %v11028_v53 = vadd.f32 %v13739_v3, %v10446_v43 }
 0x2c5   :  { %3516 = vperm.xlu1 %7798, %v11010_v39   ;;  %v11017_v21 = vpop.permute.xlu1 %3324  ;;  %v11019_v49 = vpop.permute.xlu0 %2882  ;;  %13740 = vst [vmem:[#allocation71_spill] sm:$0xff] %v11028_v53  ;;  %v11038_v39 = vadd.f32 %v13742_v63, %v10600_v37 }
 0x2c6   :  { %13736 = vst [vmem:[#allocation69_spill] sm:$0xff] %v11017_v21  ;;  %3465 = vperm.xlu0 %7797, %v11014_v0   ;;  %v13744_v0 = vld [vmem:[#allocation122_spill] sm:$0xff]  ;;  %v13779_v21 = vld [vmem:[#allocation60_spill] sm:$0xff] }
 0x2c7   :  { %13743 = vst [vmem:[#allocation73_spill] sm:$0xff] %v11038_v39  ;;  %v11042_v47 = vadd.f32 %v13745_v5, %v13744_v0  ;;  %v13754_v0 = vld [vmem:[#allocation79_spill] sm:$0xff] }
 0x2c8   :  { %v11064_v63 = vadd.f32 %v13754_v0, %v10620_v19 }
 0x2c9   :  { %3522 = vperm.xlu1 %7798, %v11024_v14   ;;  %v11031_v61 = vpop.permute.xlu1 %3330  ;;  %v11033_v22 = vpop.permute.xlu0 %2890  ;;  %13746 = vst [vmem:[#allocation46_spill] sm:$0xff] %v11042_v47  ;;  %v11052_v14 = vadd.f32 %v13748_v31, %v10610_v23 }
 0x2ca   :  { %13741 = vst [vmem:[#allocation44_spill] sm:$0xff] %v11031_v61  ;;  %3471 = vperm.xlu0 %7797, %v11028_v53   ;;  %v13750_v53 = vld [vmem:[#allocation123_spill] sm:$0xff]  ;;  %v13751_v61 = vld [vmem:[#allocation50_spill] sm:$0xff] }
 0x2cb   :  { %13749 = vst [vmem:[#allocation122_spill] sm:$0xff] %v11052_v14  ;;  %v11056_v37 = vadd.f32 %v13751_v61, %v13750_v53  ;;  %13755 = vst [vmem:[#allocation123_spill] sm:$0xff] %v11064_v63  ;;  %v13760_v61 = vld [vmem:[#allocation81_spill] sm:$0xff] }
 0x2cc   :  { %v11078_v31 = vadd.f32 %v13760_v61, %v10632_v24  ;;  %v13770_v61 = vld [vmem:[#allocation85_spill] sm:$0xff] }
 0x2cd   :  { %3528 = vperm.xlu1 %7798, %v11038_v39   ;;  %v11045_v43 = vpop.permute.xlu1 %3336  ;;  %v11047_v3 = vpop.permute.xlu0 %2898  ;;  %13752 = vst [vmem:[#allocation48_spill] sm:$0xff] %v11056_v37 }
 0x2ce   :  { %13747 = vst [vmem:[#allocation75_spill] sm:$0xff] %v11045_v43  ;;  %3477 = vperm.xlu0 %7797, %v11042_v47   ;;  %v13756_v47 = vld [vmem:[#allocation124_spill] sm:$0xff] }
 0x2cf   :  { %v13757_v43 = vld [vmem:[#allocation52_spill] sm:$0xff]  ;;  %13761 = vst [vmem:[#allocation124_spill] sm:$0xff] %v11078_v31 }
 0x2d0   :  { %v11070_v23 = vadd.f32 %v13757_v43, %v13756_v47  ;;  %v13765_v43 = vld [vmem:[#allocation83_spill] sm:$0xff] }
 0x2d1   :  { %3534 = vperm.xlu1 %7798, %v11052_v14   ;;  %v11059_v5 = vpop.permute.xlu1 %3342  ;;  %v11066_v39 = vpop.permute.xlu0 %2906  ;;  %v13763_v14 = vld [vmem:[#allocation54_spill] sm:$0xff] }
 0x2d2   :  { %13753 = vst [vmem:[#allocation77_spill] sm:$0xff] %v11059_v5  ;;  %3483 = vperm.xlu0 %7797, %v11056_v37   ;;  %13758 = vst [vmem:[#allocation50_spill] sm:$0xff] %v11070_v23  ;;  %v13762_v37 = vld [vmem:[#allocation125_spill] sm:$0xff]  ;;  %v13773_v5 = vld [vmem:[#allocation58_spill] sm:$0xff] }
 0x2d3   :  { %v11082_v19 = vadd.f32 %v13763_v14, %v13762_v37 }
 0x2d5   :  { %3540 = vperm.xlu1 %7798, %v11064_v63   ;;  %v11073_v53 = vpop.permute.xlu1 %3348  ;;  %13764 = vst [vmem:[#allocation52_spill] sm:$0xff] %v11082_v19  ;;  %v11084_v0 = vpop.permute.xlu0 %2914  ;;  %v11092_v63 = vadd.f32 %v13765_v43, %v10642_v28  ;;  %v13776_v43 = vld [vmem:[#allocation97_spill] sm:$0xff] }
 0x2d6   :  { %13759 = vst [vmem:[#allocation79_spill] sm:$0xff] %v11073_v53  ;;  %3489 = vperm.xlu0 %7797, %v11070_v23   ;;  %v13767_v23 = vld [vmem:[#allocation126_spill] sm:$0xff]  ;;  %v13768_v53 = vld [vmem:[#allocation56_spill] sm:$0xff] }
 0x2d7   :  { %13766 = vst [vmem:[#allocation81_spill] sm:$0xff] %v11092_v63  ;;  %v11096_v24 = vadd.f32 %v13768_v53, %v13767_v23 }
 0x2d9   :  { %3546 = vperm.xlu1 %7798, %v11078_v31   ;;  %v11087_v47 = vpop.permute.xlu1 %3354  ;;  %13769 = vst [vmem:[#allocation125_spill] sm:$0xff] %v11096_v24  ;;  %v11106_v31 = vadd.f32 %v13770_v61, %v10656_v48  ;;  %v13781_v61 = vld [vmem:[#allocation99_spill] sm:$0xff] }
 0x2da   :  { %3495 = vperm.xlu0 %7797, %v11082_v19   ;;  %v13772_v19 = vld [vmem:[#allocation127_spill] sm:$0xff] }
 0x2db   :  { %13771 = vst [vmem:[#allocation54_spill] sm:$0xff] %v11106_v31  ;;  %v11110_v28 = vadd.f32 %v13773_v5, %v13772_v19 }
 0x2dd   :  { %3552 = vperm.xlu1 %7798, %v11092_v63   ;;  %v11099_v14 = vpop.permute.xlu1 %3360  ;;  %v11101_v37 = vpop.permute.xlu0 %3306  ;;  %13774 = vst [vmem:[#allocation83_spill] sm:$0xff] %v11110_v28  ;;  %v11120_v63 = vadd.f32 %v13776_v43, %v10738_v56  ;;  %v11148_v43 = vadd.f32 %v10863_v45, %v10727_v62 }
 0x2de   :  { %3501 = vperm.xlu0 %7797, %v11096_v24   ;;  %v13778_v24 = vld [vmem:[#allocation128_spill] sm:$0xff] }
 0x2df   :  { %13777 = vst [vmem:[#allocation56_spill] sm:$0xff] %v11120_v63  ;;  %v11124_v48 = vadd.f32 %v13779_v21, %v13778_v24  ;;  %13786 = vst [vmem:[#allocation97_spill] sm:$0xff] %v11148_v43 }
 0x2e1   :  { %3558 = vperm.xlu1 %7798, %v11106_v31   ;;  %v11113_v23 = vpop.permute.xlu1 %3366  ;;  %v11115_v53 = vpop.permute.xlu0 %3315  ;;  %13780 = vst [vmem:[#allocation85_spill] sm:$0xff] %v11124_v48  ;;  %v11134_v31 = vadd.f32 %v13781_v61, %v10752_v36  ;;  %v11162_v61 = vadd.f32 %v10991_v33, %v10865_v15 }
 0x2e2   :  { %13775 = vst [vmem:[#allocation126_spill] sm:$0xff] %v11113_v23  ;;  %3507 = vperm.xlu0 %7797, %v11110_v28   ;;  %v13783_v28 = vld [vmem:[#allocation129_spill] sm:$0xff]  ;;  %v13784_v23 = vld [vmem:[#allocation62_spill] sm:$0xff] }
 0x2e3   :  { %13782 = vst [vmem:[#allocation127_spill] sm:$0xff] %v11134_v31  ;;  %v11138_v56 = vadd.f32 %v13784_v23, %v13783_v28  ;;  %13790 = vst [vmem:[#allocation60_spill] sm:$0xff] %v11162_v61 }
 0x2e5   :  { %3594 = vperm.xlu1 %7798, %v11120_v63   ;;  %v11127_v5 = vpop.permute.xlu1 %3372  ;;  %v11129_v19 = vpop.permute.xlu0 %3321  ;;  %13785 = vst [vmem:[#allocation58_spill] sm:$0xff] %v11138_v56  ;;  %v13787_v63 = vld [vmem:[#allocation130_spill] sm:$0xff] }
 0x2e6   :  { %3513 = vperm.xlu0 %7797, %v11124_v48   ;;  %v13788_v48 = vld [vmem:[#allocation64_spill] sm:$0xff] }
 0x2e7   :  { %v11152_v36 = vadd.f32 %v13788_v48, %v13787_v63  ;;  %v11176_v48 = vadd.f32 %v10877_v17, %v10741_v58 }
 0x2e9   :  { %3600 = vperm.xlu1 %7798, %v11134_v31   ;;  %v11141_v21 = vpop.permute.xlu1 %3378  ;;  %v11143_v24 = vpop.permute.xlu0 %3327  ;;  %13789 = vst [vmem:[#allocation128_spill] sm:$0xff] %v11152_v36  ;;  %v13791_v31 = vld [vmem:[#allocation131_spill] sm:$0xff]  ;;  %13795 = vst [vmem:[#allocation62_spill] sm:$0xff] %v11176_v48 }
 0x2ea   :  { %3519 = vperm.xlu0 %7797, %v11138_v56   ;;  %v13792_v56 = vld [vmem:[#allocation66_spill] sm:$0xff] }
 0x2eb   :  { %v11166_v62 = vadd.f32 %v13792_v56, %v13791_v31  ;;  %v13800_v56 = vld [vmem:[#allocation92_spill] sm:$0xff] }
 0x2ed   :  { %3645 = vperm.xlu1 %7798, %v11148_v43   ;;  %v11155_v28 = vpop.permute.xlu1 %3384  ;;  %v11157_v23 = vpop.permute.xlu0 %3333  ;;  %13793 = vst [vmem:[#allocation99_spill] sm:$0xff] %v11166_v62  ;;  %v13796_v43 = vld [vmem:[#allocation132_spill] sm:$0xff] }
 0x2ee   :  { %3525 = vperm.xlu0 %7797, %v11152_v36   ;;  %v13797_v36 = vld [vmem:[#allocation68_spill] sm:$0xff] }
 0x2ef   :  { %v11180_v15 = vadd.f32 %v13797_v36, %v13796_v43  ;;  %v13806_v36 = vld [vmem:[#allocation78_spill] sm:$0xff] }
 0x2f1   :  { %v11168_v45 = vpop.permute.xlu1 %3390  ;;  %3648 = vperm.xlu1 %7798, %v11162_v61   ;;  %v11171_v63 = vpop.permute.xlu0 %3339  ;;  %13798 = vst [vmem:[#allocation130_spill] sm:$0xff] %v11180_v15  ;;  %v11190_v61 = vadd.f32 %v13800_v56, %v10640_v2 }
 0x2f2   :  { %13794 = vst [vmem:[#allocation129_spill] sm:$0xff] %v11168_v45  ;;  %3531 = vperm.xlu0 %7797, %v11166_v62   ;;  %v13802_v62 = vld [vmem:[#allocation133_spill] sm:$0xff]  ;;  %v13803_v45 = vld [vmem:[#allocation70_spill] sm:$0xff] }
 0x2f3   :  { %13801 = vst [vmem:[#allocation131_spill] sm:$0xff] %v11190_v61  ;;  %v11194_v58 = vadd.f32 %v13803_v45, %v13802_v62  ;;  %v11218_v45 = vadd.f32 %v10891_v60, %v10755_v41 }
 0x2f5   :  { %v11182_v33 = vpop.permute.xlu1 %3396  ;;  %3651 = vperm.xlu1 %7798, %v11176_v48   ;;  %v11185_v31 = vpop.permute.xlu0 %3345  ;;  %13804 = vst [vmem:[#allocation66_spill] sm:$0xff] %v11194_v58  ;;  %v11204_v48 = vadd.f32 %v13806_v36, %v10572_v26  ;;  %13811 = vst [vmem:[#allocation133_spill] sm:$0xff] %v11218_v45 }
 0x2f6   :  { %13799 = vst [vmem:[#allocation64_spill] sm:$0xff] %v11182_v33  ;;  %3537 = vperm.xlu0 %7797, %v11180_v15   ;;  %v13808_v15 = vld [vmem:[#allocation134_spill] sm:$0xff]  ;;  %v13809_v33 = vld [vmem:[#allocation72_spill] sm:$0xff] }
 0x2f7   :  { %13807 = vst [vmem:[#allocation68_spill] sm:$0xff] %v11204_v48  ;;  %v11208_v2 = vadd.f32 %v13809_v33, %v13808_v15  ;;  %v13815_v33 = vld [vmem:[#allocation94_spill] sm:$0xff] }
 0x2f9   :  { %v11196_v17 = vpop.permute.xlu1 %3402  ;;  %3609 = vperm.xlu1 %7798, %v11190_v61   ;;  %v11199_v43 = vpop.permute.xlu0 %3351  ;;  %13810 = vst [vmem:[#allocation92_spill] sm:$0xff] %v11208_v2  ;;  %v13812_v61 = vld [vmem:[#allocation135_spill] sm:$0xff] }
 0x2fa   :  { %13805 = vst [vmem:[#allocation132_spill] sm:$0xff] %v11199_v43  ;;  %3543 = vperm.xlu0 %7797, %v11194_v58   ;;  %v13813_v58 = vld [vmem:[#allocation74_spill] sm:$0xff] }
 0x2fb   :  { %v11222_v26 = vadd.f32 %v13813_v58, %v13812_v61  ;;  %v13819_v58 = vld [vmem:[#allocation80_spill] sm:$0xff] }
 0x2fd   :  { %v11210_v56 = vpop.permute.xlu1 %3408  ;;  %3567 = vperm.xlu1 %7798, %v11204_v48   ;;  %v11213_v62 = vpop.permute.xlu0 %3357  ;;  %13814 = vst [vmem:[#allocation70_spill] sm:$0xff] %v11222_v26  ;;  %v11232_v48 = vadd.f32 %v13815_v33, %v10654_v7 }
 0x2fe   :  { %3549 = vperm.xlu0 %7797, %v11208_v2   ;;  %v13817_v2 = vld [vmem:[#allocation76_spill] sm:$0xff] }
 0x2ff   :  { %13816 = vst [vmem:[#allocation78_spill] sm:$0xff] %v11232_v48  ;;  %v11236_v41 = vadd.f32 %v13817_v2, %v10562_v46  ;;  %v11260_v2 = vadd.f32 %v10977_v50, %v10851_v38  ;;  %v13829_v50 = vld [vmem:[#allocation82_spill] sm:$0xff] }
 0x301   :  { %v11224_v36 = vpop.permute.xlu1 %3414  ;;  %3657 = vperm.xlu1 %7798, %v11218_v45   ;;  %v11227_v15 = vpop.permute.xlu0 %3363  ;;  %13818 = vst [vmem:[#allocation134_spill] sm:$0xff] %v11236_v41  ;;  %v11246_v45 = vadd.f32 %v13819_v58, %v10582_v40  ;;  %13823 = vst [vmem:[#allocation74_spill] sm:$0xff] %v11260_v2  ;;  %v13826_v58 = vld [vmem:[#allocation90_spill] sm:$0xff] }
 0x302   :  { %3555 = vperm.xlu0 %7797, %v11222_v26   ;;  %v13821_v26 = vld [vmem:[#allocation88_spill] sm:$0xff] }
 0x303   :  { %13820 = vst [vmem:[#allocation72_spill] sm:$0xff] %v11246_v45  ;;  %v11250_v7 = vadd.f32 %v13821_v26, %v10622_v16  ;;  %v13824_v16 = vld [vmem:[#allocation96_spill] sm:$0xff] }
 0x304   :  { %v11270_v26 = vadd.f32 %v13824_v16, %v10668_v35 }
 0x305   :  { %v11238_v60 = vpop.permute.xlu1 %3420  ;;  %3615 = vperm.xlu1 %7798, %v11232_v48   ;;  %v11241_v61 = vpop.permute.xlu0 %3369  ;;  %13822 = vst [vmem:[#allocation135_spill] sm:$0xff] %v11250_v7 }
 0x306   :  { %3561 = vperm.xlu0 %7797, %v11236_v41   ;;  %13825 = vst [vmem:[#allocation94_spill] sm:$0xff] %v11270_v26  ;;  %v13843_v41 = vld [vmem:[#allocation15_spill] sm:$0xff] }
 0x309   :  { %v11252_v33 = vpop.permute.xlu1 %3426  ;;  %3573 = vperm.xlu1 %7798, %v11246_v45   ;;  %v11255_v46 = vpop.permute.xlu0 %3375  ;;  %v11274_v45 = vadd.f32 %v13826_v58, %v10630_v32  ;;  %v11298_v58 = vadd.f32 %v10919_v29, %v10781_v20  ;;  %v11316_v20 = vadd.f32 %v11005_v51, %v10879_v54  ;;  %v11340_v51 = vadd.f32 %v10933_v6, %v10795_v8 }
 0x30a   :  { %3597 = vperm.xlu0 %7797, %v11250_v7   ;;  %v11358_v8 = vadd.f32 %v11019_v49, %v10893_v27  ;;  %v11382_v49 = vadd.f32 %v10947_v52, %v10809_v44  ;;  %v11400_v44 = vadd.f32 %v11033_v22, %v10905_v1  ;;  %v13875_v1 = vld [vmem:[#allocation150_spill] sm:$0xff]  ;;  %v13876_v22 = vld [vmem:[#allocation93_spill] sm:$0xff] }
 0x30b   :  { %13827 = vst [vmem:[#allocation76_spill] sm:$0xff] %v11274_v45  ;;  %13834 = vst [vmem:[#allocation82_spill] sm:$0xff] %v11298_v58 }
 0x30c   :  { %13846 = vst [vmem:[#allocation15_spill] sm:$0xff] %v11340_v51  ;;  %13868 = vst [vmem:[#allocation153_spill] sm:$0xff] %v11400_v44 }
 0x30d   :  { %v11262_v48 = vpop.permute.xlu1 %3432  ;;  %3663 = vperm.xlu1 %7798, %v10907_v9   ;;  %v11265_v40 = vpop.permute.xlu0 %3381  ;;  %v11284_v9 = vadd.f32 %v13829_v50, %v10592_v42 }
 0x30e   :  { %3642 = vperm.xlu0 %7797, %v11260_v2   ;;  %v13831_v2 = vld [vmem:[#allocation101_spill] sm:$0xff] }
 0x30f   :  { %13830 = vst [vmem:[#allocation88_spill] sm:$0xff] %v11284_v9  ;;  %v11288_v35 = vadd.f32 %v13831_v2, %v10766_v18  ;;  %v13837_v2 = vld [vmem:[#allocation98_spill] sm:$0xff] }
 0x310   :  { %13839 = vst [vmem:[#allocation98_spill] sm:$0xff] %v11316_v20 }
 0x311   :  { %v11276_v7 = vpop.permute.xlu1 %3438  ;;  %3621 = vperm.xlu1 %7798, %v11270_v26   ;;  %v11279_v38 = vpop.permute.xlu0 %3387  ;;  %13832 = vst [vmem:[#allocation96_spill] sm:$0xff] %v11288_v35  ;;  %v13835_v26 = vld [vmem:[#allocation87_spill] sm:$0xff] }
 0x312   :  { %13828 = vst [vmem:[#allocation80_spill] sm:$0xff] %v11276_v7  ;;  %3603 = vperm.xlu0 %7797, %v11274_v45   ;;  %v11302_v42 = vadd.f32 %v13835_v26, %v10670_v13  ;;  %v11312_v45 = vadd.f32 %v13837_v2, %v10682_v30  ;;  %v13840_v26 = vld [vmem:[#allocation141_spill] sm:$0xff] }
 0x314   :  { %13836 = vst [vmem:[#allocation101_spill] sm:$0xff] %v11302_v42  ;;  %13838 = vst [vmem:[#allocation87_spill] sm:$0xff] %v11312_v45 }
 0x315   :  { %v11290_v16 = vpop.permute.xlu1 %3444  ;;  %3579 = vperm.xlu1 %7798, %v11284_v9   ;;  %v11293_v32 = vpop.permute.xlu0 %3393 }
 0x316   :  { %13833 = vst [vmem:[#allocation90_spill] sm:$0xff] %v11290_v16  ;;  %3606 = vperm.xlu0 %7797, %v11288_v35   ;;  %v13844_v35 = vld [vmem:[#allocation103_spill] sm:$0xff] }
 0x317   :  { %v11330_v30 = vadd.f32 %v13844_v35, %v13843_v41  ;;  %v13851_v35 = vld [vmem:[#allocation104_spill] sm:$0xff] }
 0x318   :  { %13853 = vst [vmem:[#allocation104_spill] sm:$0xff] %v11358_v8 }
 0x319   :  { %v11304_v50 = vpop.permute.xlu1 %3450  ;;  %3669 = vperm.xlu1 %7798, %v11298_v58   ;;  %v11307_v18 = vpop.permute.xlu0 %3399  ;;  %v13841_v58 = vld [vmem:[#allocation84_spill] sm:$0xff] }
 0x31a   :  { %3564 = vperm.xlu0 %7797, %v11302_v42   ;;  %v11326_v9 = vadd.f32 %v13841_v58, %v13840_v26  ;;  %13845 = vst [vmem:[#allocation84_spill] sm:$0xff] %v11330_v30  ;;  %v13859_v42 = vld [vmem:[#allocation106_spill] sm:$0xff] }
 0x31b   :  { %13862 = vst [vmem:[#allocation106_spill] sm:$0xff] %v11382_v49 }
 0x31c   :  { %13842 = vst [vmem:[#allocation141_spill] sm:$0xff] %v11326_v9 }
 0x31d   :  { %v11318_v29 = vpop.permute.xlu1 %3456  ;;  %3627 = vperm.xlu1 %7798, %v11312_v45   ;;  %v11321_v13 = vpop.permute.xlu0 %3405  ;;  %v13847_v45 = vld [vmem:[#allocation102_spill] sm:$0xff] }
 0x31e   :  { %3654 = vperm.xlu0 %7797, %v11316_v20   ;;  %v13848_v20 = vld [vmem:[#allocation89_spill] sm:$0xff] }
 0x31f   :  { %v11344_v58 = vadd.f32 %v13848_v20, %v13847_v45  ;;  %v13855_v20 = vld [vmem:[#allocation143_spill] sm:$0xff] }
 0x321   :  { %v11332_v2 = vpop.permute.xlu1 %3462  ;;  %3585 = vperm.xlu1 %7798, %v11326_v9   ;;  %v11335_v54 = vpop.permute.xlu0 %3411  ;;  %13849 = vst [vmem:[#allocation103_spill] sm:$0xff] %v11344_v58  ;;  %v11354_v9 = vadd.f32 %v10837_v12, %v13851_v35 }
 0x322   :  { %3612 = vperm.xlu0 %7797, %v11330_v30  }
 0x323   :  { %13852 = vst [vmem:[#allocation89_spill] sm:$0xff] %v11354_v9 }
 0x325   :  { %v11346_v26 = vpop.permute.xlu1 %3468  ;;  %3675 = vperm.xlu1 %7798, %v11340_v51   ;;  %v11349_v41 = vpop.permute.xlu0 %3417  ;;  %v13856_v51 = vld [vmem:[#allocation86_spill] sm:$0xff] }
 0x326   :  { %13850 = vst [vmem:[#allocation102_spill] sm:$0xff] %v11346_v26  ;;  %3570 = vperm.xlu0 %7797, %v11344_v58   ;;  %v11368_v30 = vadd.f32 %v13856_v51, %v13855_v20  ;;  %v13858_v58 = vld [vmem:[#allocation16_spill] sm:$0xff] }
 0x327   :  { %v11372_v12 = vadd.f32 %v13859_v42, %v13858_v58  ;;  %v11396_v58 = vadd.f32 %v11084_v0, %v10949_v11  ;;  %v11419_v0 = vadd.f32 %v13876_v22, %v13875_v1 }
 0x328   :  { %13857 = vst [vmem:[#allocation143_spill] sm:$0xff] %v11368_v30 }
 0x329   :  { %v11360_v6 = vpop.permute.xlu1 %3474  ;;  %3633 = vperm.xlu1 %7798, %v11354_v9   ;;  %v11363_v45 = vpop.permute.xlu0 %3423  ;;  %13860 = vst [vmem:[#allocation86_spill] sm:$0xff] %v11372_v12  ;;  %v13863_v9 = vld [vmem:[#allocation10_spill] sm:$0xff]  ;;  %13867 = vst [vmem:[#allocation152_spill] sm:$0xff] %v11396_v58 }
 0x32a   :  { %13854 = vst [vmem:[#allocation151_spill] sm:$0xff] %v11360_v6  ;;  %3660 = vperm.xlu0 %7797, %v11358_v8   ;;  %v13864_v8 = vld [vmem:[#allocation91_spill] sm:$0xff]  ;;  %13877 = vst [vmem:[#allocation150_spill] sm:$0xff] %v11419_v0 }
 0x32b   :  { %v11386_v51 = vadd.f32 %v13864_v8, %v13863_v9  ;;  %v13870_v8 = vld [vmem:[#allocation17_spill] sm:$0xff] }
 0x32d   :  { %v11374_v35 = vpop.permute.xlu1 %3480  ;;  %3591 = vperm.xlu1 %7798, %v11368_v30   ;;  %v11377_v27 = vpop.permute.xlu0 %3429  ;;  %13865 = vst [vmem:[#allocation10_spill] sm:$0xff] %v11386_v51 }
 0x32e   :  { %13861 = vst [vmem:[#allocation16_spill] sm:$0xff] %v11374_v35  ;;  %3618 = vperm.xlu0 %7797, %v11372_v12  }
 0x331   :  { %v11388_v20 = vpop.permute.xlu1 %3486  ;;  %3681 = vperm.xlu1 %7798, %v11382_v49   ;;  %v11391_v42 = vpop.permute.xlu0 %3435  ;;  %v13871_v49 = vld [vmem:[#allocation108_spill] sm:$0xff] }
 0x332   :  { %13866 = vst [vmem:[#allocation91_spill] sm:$0xff] %v11388_v20  ;;  %3576 = vperm.xlu0 %7797, %v11386_v51   ;;  %v11410_v30 = vadd.f32 %v13871_v49, %v13870_v8  ;;  %v11428_v49 = vadd.f32 %v11047_v3, %v10921_v55 }
 0x334   :  { %13872 = vst [vmem:[#allocation17_spill] sm:$0xff] %v11410_v30  ;;  %13879 = vst [vmem:[#allocation156_spill] sm:$0xff] %v11428_v49 }
 0x335   :  { %v11402_v52 = vpop.permute.xlu1 %3492  ;;  %3684 = vperm.xlu1 %7798, %v11396_v58   ;;  %v11405_v9 = vpop.permute.xlu0 %3441 }
 0x336   :  { %13869 = vst [vmem:[#allocation154_spill] sm:$0xff] %v11402_v52  ;;  %3666 = vperm.xlu0 %7797, %v11400_v44   ;;  %v13886_v52 = vld [vmem:[#allocation95_spill] sm:$0xff] }
 0x339   :  { %v11412_v12 = vpop.permute.xlu1 %3498  ;;  %v11414_v11 = vpop.permute.xlu0 %3447 }
 0x33a   :  { %13873 = vst [vmem:[#allocation108_spill] sm:$0xff] %v11412_v12  ;;  %13874 = vst [vmem:[#allocation155_spill] sm:$0xff] %v11414_v11  ;;  %3624 = vperm.xlu0 %7797, %v11410_v30   ;;  %v13881_v30 = vld [vmem:[#allocation18_spill] sm:$0xff]  ;;  %v13882_v12 = vld [vmem:[#allocation113_spill] sm:$0xff] }
 0x33b   :  { %v11437_v1 = vadd.f32 %v13882_v12, %v13881_v30  ;;  %v11455_v30 = vadd.f32 %v11066_v39, %v10935_v59 }
 0x33d   :  { %v11421_v51 = vpop.permute.xlu1 %3504  ;;  %v11423_v58 = vpop.permute.xlu0 %3453  ;;  %13883 = vst [vmem:[#allocation18_spill] sm:$0xff] %v11437_v1  ;;  %13889 = vst [vmem:[#allocation158_spill] sm:$0xff] %v11455_v30 }
 0x33e   :  { %13878 = vst [vmem:[#allocation93_spill] sm:$0xff] %v11421_v51  ;;  %3582 = vperm.xlu0 %7797, %v11419_v0   ;;  %v13885_v0 = vld [vmem:[#allocation12_spill] sm:$0xff] }
 0x33f   :  { %v11446_v55 = vadd.f32 %v13886_v52, %v13885_v0 }
 0x341   :  { %v11430_v8 = vpop.permute.xlu1 %3510  ;;  %v11432_v44 = vpop.permute.xlu0 %3459  ;;  %13887 = vst [vmem:[#allocation12_spill] sm:$0xff] %v11446_v55 }
 0x342   :  { %13880 = vst [vmem:[#allocation157_spill] sm:$0xff] %v11430_v8  ;;  %3672 = vperm.xlu0 %7797, %v11428_v49  }
 0x345   :  { %v11439_v22 = vpop.permute.xlu1 %3516  ;;  %v11441_v51 = vpop.permute.xlu0 %3465 }
 0x346   :  { %13884 = vst [vmem:[#allocation113_spill] sm:$0xff] %v11439_v22  ;;  %3630 = vperm.xlu0 %7797, %v11437_v1   ;;  %v13892_v1 = vld [vmem:[#allocation45_spill] sm:$0xff]  ;;  %v13897_v22 = vld [vmem:[#allocation47_spill] sm:$0xff] }
 0x347   :  { %v11464_v52 = vadd.f32 %v10963_v25, %v13892_v1 }
 0x349   :  { %v11448_v3 = vpop.permute.xlu1 %3522  ;;  %v11450_v8 = vpop.permute.xlu0 %3471  ;;  %13893 = vst [vmem:[#allocation45_spill] sm:$0xff] %v11464_v52 }
 0x34a   :  { %13888 = vst [vmem:[#allocation95_spill] sm:$0xff] %v11448_v3  ;;  %3588 = vperm.xlu0 %7797, %v11446_v55   ;;  %v13896_v55 = vld [vmem:[#allocation11_spill] sm:$0xff] }
 0x34b   :  { %v11473_v39 = vadd.f32 %v13897_v22, %v13896_v55  ;;  %v8325_v55 = vmov -inf  }
 0x34c   :  { %33 = vst.msk [vmem:[#allocation3] sm:$0xff] %vm13444_vm3, %v8325_v55  ;;  %vm13449_vm3 = vcmask 1041409  }
 0x34d   :  { %v11457_v12 = vpop.permute.xlu1 %3528  ;;  %v11459_v49 = vpop.permute.xlu0 %3477  ;;  %13898 = vst [vmem:[#allocation11_spill] sm:$0xff] %v11473_v39 }
 0x34e   :  { %13890 = vst [vmem:[#allocation159_spill] sm:$0xff] %v11457_v12  ;;  %13891 = vst [vmem:[#allocation160_spill] sm:$0xff] %v11459_v49  ;;  %3678 = vperm.xlu0 %7797, %v11455_v30   ;;  %v13901_v30 = vld [vmem:[#allocation43_spill] sm:$0xff] }
 0x34f   :  { %v11482_v25 = vadd.f32 %v10961_v34, %v13901_v30 }
 0x351   :  { %v11466_v0 = vpop.permute.xlu1 %3534  ;;  %v11468_v3 = vpop.permute.xlu0 %3483  ;;  %13902 = vst [vmem:[#allocation43_spill] sm:$0xff] %v11482_v25 }
 0x352   :  { %13894 = vst [vmem:[#allocation161_spill] sm:$0xff] %v11466_v0  ;;  %13895 = vst [vmem:[#allocation162_spill] sm:$0xff] %v11468_v3  ;;  %3636 = vperm.xlu0 %7797, %v11464_v52  }
 0x355   :  { %v11475_v59 = vpop.permute.xlu1 %3540  ;;  %v11477_v12 = vpop.permute.xlu0 %3489 }
 0x356   :  { %13899 = vst [vmem:[#allocation47_spill] sm:$0xff] %v11475_v59  ;;  %13900 = vst [vmem:[#allocation163_spill] sm:$0xff] %v11477_v12  ;;  %3639 = vperm.xlu0 %7797, %v11473_v39  }
 0x359   :  { %v11484_v1 = vpop.permute.xlu1 %3546  ;;  %v11486_v0 = vpop.permute.xlu0 %3495 }
 0x35a   :  { %13903 = vst [vmem:[#allocation164_spill] sm:$0xff] %v11484_v1  ;;  %13904 = vst [vmem:[#allocation165_spill] sm:$0xff] %v11486_v0  ;;  %3687 = vperm.xlu0 %7797, %v11482_v25  }
 0x35d   :  { %v11489_v52 = vpop.permute.xlu1 %3552  ;;  %v11491_v22 = vpop.permute.xlu0 %3501 }
 0x35e   :  { %13905 = vst [vmem:[#allocation166_spill] sm:$0xff] %v11489_v52  ;;  %13906 = vst [vmem:[#allocation167_spill] sm:$0xff] %v11491_v22 }
 0x361   :  { %v11494_v59 = vpop.permute.xlu1 %3558  ;;  %v11496_v39 = vpop.permute.xlu0 %3507 }
 0x362   :  { %13907 = vst [vmem:[#allocation168_spill] sm:$0xff] %v11494_v59  ;;  %13908 = vst [vmem:[#allocation169_spill] sm:$0xff] %v11496_v39 }
 0x365   :  { %v11498_v34 = vpop.permute.xlu1 %3594  ;;  %v11500_v30 = vpop.permute.xlu0 %3513 }
 0x366   :  { %13909 = vst [vmem:[#allocation170_spill] sm:$0xff] %v11498_v34  ;;  %13910 = vst [vmem:[#allocation171_spill] sm:$0xff] %v11500_v30 }
 0x369   :  { %v11502_v12 = vpop.permute.xlu1 %3600  ;;  %v11504_v0 = vpop.permute.xlu0 %3519 }
 0x36a   :  { %13911 = vst [vmem:[#allocation172_spill] sm:$0xff] %v11502_v12  ;;  %13912 = vst [vmem:[#allocation173_spill] sm:$0xff] %v11504_v0 }
 0x36d   :  { %v11506_v25 = vpop.permute.xlu1 %3645  ;;  %v11508_v52 = vpop.permute.xlu0 %3525 }
 0x36e   :  { %13913 = vst [vmem:[#allocation174_spill] sm:$0xff] %v11506_v25  ;;  %13914 = vst [vmem:[#allocation175_spill] sm:$0xff] %v11508_v52  ;;  %v13925_v52 = vlaneseq }
 0x371   :  { %v11510_v1 = vpop.permute.xlu1 %3648  ;;  %v11512_v3 = vpop.permute.xlu0 %3531 }
 0x372   :  { %13915 = vst [vmem:[#allocation176_spill] sm:$0xff] %v11510_v1  ;;  %13916 = vst [vmem:[#allocation177_spill] sm:$0xff] %v11512_v3  ;;  %v11531_v1 = vand.u32 127, %v13925_v52 }
 0x374   :  { %v3716_v52 = vadd.s32 4294967264, %v11531_v1  ;;  %v3772_v22 = vadd.s32 4294967200, %v11531_v1  ;;  %v3786_v35 = vadd.s32 4294967184, %v11531_v1  ;;  %v3723_v49 = vadd.s32 4294967256, %v11531_v1 }
 0x375   :  { %v11514_v55 = vpop.permute.xlu0 %3537  ;;  %v11516_v59 = vpop.permute.xlu1 %3651 }
 0x376   :  { %13917 = vst [vmem:[#allocation178_spill] sm:$0xff] %v11514_v55  ;;  %13918 = vst [vmem:[#allocation179_spill] sm:$0xff] %v11516_v59  ;;  %v3695_v59 = vadd.s32 4294967288, %v11531_v1 }
 0x379   :  { %v11518_v39 = vpop.permute.xlu0 %3543  ;;  %v11520_v34 = vpop.permute.xlu1 %3609 }
 0x37a   :  { %13919 = vst [vmem:[#allocation180_spill] sm:$0xff] %v11518_v39  ;;  %13920 = vst [vmem:[#allocation181_spill] sm:$0xff] %v11520_v34  ;;  %v3702_v34 = vadd.s32 4294967280, %v11531_v1 }
 0x37d   :  { %v11522_v30 = vpop.permute.xlu0 %3549  ;;  %v11526_v0 = vpop.permute.xlu1 %3567 }
 0x37e   :  { %13921 = vst [vmem:[#allocation182_spill] sm:$0xff] %v11522_v30  ;;  %13923 = vst [vmem:[#allocation184_spill] sm:$0xff] %v11526_v0  ;;  %v3709_v30 = vadd.s32 4294967272, %v11531_v1  ;;  %v13930_v0 = vld [vmem:[#allocation6_spill] sm:$0xff] }
 0x37f   :  { %v11545_v20 = vsub.s32 %v3695_v59, %v13930_v0  ;;  %v11560_v59 = vsub.s32 %v3702_v34, %v13930_v0  ;;  %v11569_v11 = vsub.s32 %v3716_v52, %v13930_v0  ;;  %v11585_v7 = vsub.s32 %v3772_v22, %v13930_v0 }
 0x380   :  { %v11565_v16 = vsub.s32 %v3709_v30, %v13930_v0 }
 0x381   :  { %v11524_v12 = vpop.permute.xlu0 %3555  ;;  %v11533_v3 = vpop.permute.xlu1 %3657  ;;  %13931 = vst [vmem:[#allocation6_spill] sm:$0xff] %v11545_v20  ;;  %v3699_v34 = vrot.slane %v10975_v10, %v11545_v20  ;;  %v3737_v10 = vadd.s32 4294967240, %v11531_v1 }
 0x382   :  { %13922 = vst [vmem:[#allocation183_spill] sm:$0xff] %v11524_v12  ;;  %13926 = vst [vmem:[#allocation186_spill] sm:$0xff] %v11533_v3  ;;  %v3744_v3 = vadd.s32 4294967232, %v11531_v1  ;;  %v3713_v22 = vrot.slane %v11115_v53, %v11565_v16  ;;  %v3886_v53 = vrot.slane %v11321_v13, %v11545_v20 }
 0x385   :  { %v11528_v25 = vpop.permute.xlu0 %3561  ;;  %v11542_v12 = vpop.permute.xlu1 %3615 }
 0x386   :  { %13924 = vst [vmem:[#allocation185_spill] sm:$0xff] %v11528_v25  ;;  %13929 = vst [vmem:[#allocation189_spill] sm:$0xff] %v11542_v12  ;;  %v3730_v25 = vadd.s32 4294967248, %v11531_v1 }
 0x388   :  { %v11572_v26 = vsub.s32 %v3730_v25, %v13930_v0  ;;  %v11590_v25 = vsub.s32 %v3786_v35, %v13930_v0  ;;  %v3706_v35 = vrot.slane %v10989_v4, %v11560_v59  ;;  %v11615_v4 = vsub.s32 %v3737_v10, %v13930_v0 }
 0x389   :  { %v11535_v55 = vpop.permute.xlu0 %3597  ;;  %v11587_v52 = vpop.permute.xlu1 %3573 }
 0x38a   :  { %13927 = vst [vmem:[#allocation187_spill] sm:$0xff] %v11535_v55  ;;  %v3758_v55 = vadd.s32 4294967216, %v11531_v1  ;;  %13934 = vst [vmem:[#allocation192_spill] sm:$0xff] %v11587_v52  ;;  %v3817_v52 = vrot.slane %v11227_v15, %v11565_v16 }
 0x38c   :  { %v11582_v30 = vsub.s32 %v3758_v55, %v13930_v0  ;;  %v11601_v55 = vsub.s32 %v3723_v49, %v13930_v0 }
 0x38d   :  { %v11538_v39 = vpop.permute.xlu0 %3642  ;;  %v11625_v13 = vpop.permute.xlu1 %3663 }
 0x38e   :  { %13928 = vst [vmem:[#allocation188_spill] sm:$0xff] %v11538_v39  ;;  %v11554_v39 = vsub.s32 %v11531_v1, %v13930_v0 }
 0x390   :  { %13932 = vst [vmem:[#allocation190_spill] sm:$0xff] %v11554_v39  ;;  %v3694_v6 = vrot.slane %v11101_v37, %v11554_v39  ;;  %v11579_v37 = vsub.s32 %v3744_v3, %v13930_v0 }
 0x391   :  { %v11557_v12 = vpop.permute.xlu0 %3603 }
 0x392   :  { %13933 = vst [vmem:[#allocation191_spill] sm:$0xff] %v11557_v12  ;;  %v3807_v12 = vrot.slane %v11213_v62, %v11545_v20  ;;  %v3803_v62 = vrot.slane %v11087_v47, %v11554_v39  ;;  %v3701_v3 = vsel %vm3700_vm4, %v3699_v34, %v3694_v6  ;;  %v3751_v6 = vadd.s32 4294967224, %v11531_v1 }
 0x393   :  { %v3708_v49 = vsel %vm3707_vm5, %v3706_v35, %v3701_v3  ;;  %v3882_v34 = vrot.slane %v11196_v17, %v11554_v39  ;;  %v3720_v3 = vrot.slane %v11003_v57, %v11569_v11  ;;  %v3827_v35 = vrot.slane %v11241_v61, %v11601_v55 }
 0x394   :  { %v3808_v47 = vsel %vm3700_vm4, %v3807_v12, %v3803_v62  ;;  %v3715_v15 = vsel %vm3714_vm6, %v3713_v22, %v3708_v49  ;;  %v13936_v22 = vld [vmem:[#allocation126_spill] sm:$0xff]  ;;  %v3765_v57 = vadd.s32 4294967208, %v11531_v1 }
 0x395   :  { %v11595_v43 = vpop.permute.xlu0 %3606  ;;  %v3822_v49 = vrot.slane %v13936_v22, %v11569_v11  ;;  %v3887_v17 = vsel %vm3700_vm4, %v3886_v53, %v3882_v34  ;;  %v3779_v53 = vadd.s32 4294967192, %v11531_v1  ;;  %v3837_v22 = vrot.slane %v11255_v46, %v11615_v4 }
 0x396   :  { %13935 = vst [vmem:[#allocation193_spill] sm:$0xff] %v11595_v43  ;;  %v3812_v43 = vrot.slane %v11099_v14, %v11560_v59  ;;  %v3727_v14 = vrot.slane %v11129_v19, %v11601_v55  ;;  %v11635_v19 = vsub.s32 %v3751_v6, %v13930_v0  ;;  %v3741_v6 = vrot.slane %v11143_v24, %v11615_v4 }
 0x397   :  { %v3901_v46 = vrot.slane %v11224_v36, %v11569_v11 }
 0x398   :  { %v3813_v62 = vsel %vm3707_vm5, %v3812_v43, %v3808_v47  ;;  %v3896_v43 = vrot.slane %v11335_v54, %v11565_v16  ;;  %v3722_v47 = vsel %vm3721_vm7, %v3720_v3, %v3715_v15  ;;  %v13937_v54 = vld [vmem:[#allocation69_spill] sm:$0xff]  ;;  %v3847_v36 = vrot.slane %v11265_v40, %v11635_v19 }
 0x399   :  { %v11617_v12 = vpop.permute.xlu0 %3564  ;;  %v3818_v10 = vsel %vm3714_vm6, %v3817_v52, %v3813_v62  ;;  %v3891_v52 = vrot.slane %v11210_v56, %v11560_v59  ;;  %v3729_v62 = vsel %vm3728_vm8, %v3727_v14, %v3722_v47  ;;  %v3734_v15 = vrot.slane %v13937_v54, %v11572_v26 }
 0x39a   :  { %v3823_v34 = vsel %vm3721_vm7, %v3822_v49, %v3818_v10  ;;  %v3832_v14 = vrot.slane %v11127_v5, %v11572_v26  ;;  %v3906_v47 = vrot.slane %v11349_v41, %v11601_v55  ;;  %v11662_v10 = vpop.permute.xlu1 %3621  ;;  %v11676_v41 = vsub.s32 %v3779_v53, %v13930_v0 }
 0x39b   :  { %v3828_v3 = vsel %vm3728_vm8, %v3827_v35, %v3823_v34  ;;  %v3892_v56 = vsel %vm3707_vm5, %v3891_v52, %v3887_v17  ;;  %v3736_v49 = vsel %vm13450_vm9, %v3734_v15, %v3729_v62  ;;  %v11666_v35 = vsub.s32 %v3765_v57, %v13930_v0  ;;  %v13938_v57 = vld [vmem:[#allocation44_spill] sm:$0xff] }
 0x39c   :  { %v3897_v24 = vsel %vm3714_vm6, %v3896_v43, %v3892_v56  ;;  %v3743_v5 = vsel %vm3742_vm10, %v3741_v6, %v3736_v49  ;;  %v3755_v43 = vrot.slane %v11157_v23, %v11635_v19  ;;  %v3833_v52 = vsel %vm13450_vm9, %v3832_v14, %v3828_v3  ;;  %v13939_v3 = vld [vmem:[#allocation75_spill] sm:$0xff] }
 0x39d   :  { %v11644_v61 = vpop.permute.xlu0 %3654  ;;  %v3748_v62 = vrot.slane %v13938_v57, %v11579_v37  ;;  %v3838_v34 = vsel %vm3742_vm10, %v3837_v22, %v3833_v52  ;;  %v3902_v6 = vsel %vm3721_vm7, %v3901_v46, %v3897_v24  ;;  %v3842_v23 = vrot.slane %v11141_v21, %v11579_v37  ;;  %v13940_v57 = vld [vmem:[#allocation77_spill] sm:$0xff] }
 0x39e   :  { %v3907_v54 = vsel %vm3728_vm8, %v3906_v47, %v3902_v6  ;;  %v3916_v53 = vrot.slane %v11363_v45, %v11615_v4  ;;  %v3965_v15 = vrot.slane %v11423_v58, %v11545_v20  ;;  %v3762_v56 = vrot.slane %v13939_v3, %v11582_v30  ;;  %v11706_v49 = vpop.permute.xlu1 %3579 }
 0x39f   :  { %v3750_v22 = vsel %vm3749_vm11, %v3748_v62, %v3743_v5  ;;  %v3793_v40 = vadd.s32 4294967176, %v11531_v1  ;;  %v3911_v14 = vrot.slane %v11238_v60, %v11572_v26  ;;  %v3769_v45 = vrot.slane %v11171_v63, %v11666_v35 }
 0x3a0   :  { %v3757_v21 = vsel %vm3756_vm12, %v3755_v43, %v3750_v22  ;;  %v3843_v47 = vsel %vm3749_vm11, %v3842_v23, %v3838_v34  ;;  %v3961_v58 = vrot.slane %v11304_v50, %v11554_v39  ;;  %v3852_v1 = vrot.slane %v11155_v28, %v11582_v30 }
 0x3a1   :  { %v11670_v17 = vpop.permute.xlu0 %3612  ;;  %v3848_v46 = vsel %vm3756_vm12, %v3847_v36, %v3843_v47  ;;  %v3857_v60 = vrot.slane %v11279_v38, %v11666_v35  ;;  %v3912_v5 = vsel %vm13450_vm9, %v3911_v14, %v3907_v54  ;;  %v3926_v63 = vrot.slane %v11377_v27, %v11635_v19  ;;  %v13941_v27 = vld [vmem:[#allocation129_spill] sm:$0xff] }
 0x3a2   :  { %v3917_v43 = vsel %vm3742_vm10, %v3916_v53, %v3912_v5  ;;  %v3966_v52 = vsel %vm3700_vm4, %v3965_v15, %v3961_v58  ;;  %v3975_v50 = vrot.slane %v11432_v44, %v11565_v16  ;;  %v3776_v28 = vrot.slane %v13940_v57, %v11585_v7  ;;  %v11746_v14 = vpop.permute.xlu1 %3669 }
 0x3a3   :  { %v3764_v62 = vsel %vm13454_vm13, %v3762_v56, %v3757_v21  ;;  %v3921_v38 = vrot.slane %v11252_v33, %v11579_v37  ;;  %v3970_v34 = vrot.slane %v11318_v29, %v11560_v59  ;;  %v3862_v6 = vrot.slane %v13941_v27, %v11585_v7 }
 0x3a4   :  { %v3771_v23 = vsel %vm13452_vm14, %v3769_v45, %v3764_v62  ;;  %v3783_v44 = vrot.slane %v11185_v31, %v11676_v41  ;;  %v3853_v54 = vsel %vm13454_vm13, %v3852_v1, %v3848_v46  ;;  %v3867_v33 = vrot.slane %v11293_v32, %v11676_v41  ;;  %v13945_v62 = vld [vmem:[#allocation80_spill] sm:$0xff] }
 0x3a5   :  { %v11698_v24 = vpop.permute.xlu0 %3570  ;;  %v3858_v53 = vsel %vm13452_vm14, %v3857_v60, %v3853_v54  ;;  %v3922_v15 = vsel %vm3749_vm11, %v3921_v38, %v3917_v43  ;;  %v3971_v29 = vsel %vm3707_vm5, %v3970_v34, %v3966_v52  ;;  %v3936_v56 = vrot.slane %v11391_v42, %v11666_v35  ;;  %v13942_v42 = vld [vmem:[#allocation64_spill] sm:$0xff]  ;;  %v13946_v34 = vld [vmem:[#allocation102_spill] sm:$0xff] }
 0x3a6   :  { %v3927_v3 = vsel %vm3756_vm12, %v3926_v63, %v3922_v15  ;;  %v3976_v22 = vsel %vm3714_vm6, %v3975_v50, %v3971_v29  ;;  %v3985_v31 = vrot.slane %v11441_v51, %v11601_v55  ;;  %v3778_v21 = vsel %vm13451_vm15, %v3776_v28, %v3771_v23  ;;  %v13943_v50 = vld [vmem:[#allocation79_spill] sm:$0xff]  ;;  %v13944_v28 = vld [vmem:[#allocation132_spill] sm:$0xff]  ;;  %v11784_v23 = vpop.permute.xlu1 %3627 }
 0x3a7   :  { %v11750_v32 = vsub.s32 %v3793_v40, %v13930_v0  ;;  %v3931_v45 = vrot.slane %v11262_v48, %v11582_v30  ;;  %v3980_v47 = vrot.slane %v11332_v2, %v11569_v11  ;;  %v3872_v1 = vrot.slane %v13942_v42, %v11590_v25  ;;  %v13947_v15 = vld [vmem:[#allocation155_spill] sm:$0xff] }
 0x3a8   :  { %v3785_v51 = vsel %vm3784_vm0, %v3783_v44, %v3778_v21  ;;  %v3863_v46 = vsel %vm13451_vm15, %v3862_v6, %v3858_v53  ;;  %v3946_v43 = vrot.slane %v11405_v9, %v11676_v41  ;;  %v3995_v52 = vrot.slane %v11450_v8, %v11615_v4  ;;  %v13949_v21 = vld [vmem:[#allocation90_spill] sm:$0xff] }
 0x3a9   :  { %v11727_v36 = vpop.permute.xlu0 %3660  ;;  %v3868_v60 = vsel %vm3784_vm0, %v3867_v33, %v3863_v46  ;;  %v3877_v40 = vrot.slane %v11307_v18, %v11750_v32  ;;  %v3932_v48 = vsel %vm13454_vm13, %v3931_v45, %v3927_v3  ;;  %v3981_v5 = vsel %vm3721_vm7, %v3980_v47, %v3976_v22  ;;  %v13950_v47 = vld [vmem:[#allocation151_spill] sm:$0xff]  ;;  %v13951_v46 = vld [vmem:[#allocation16_spill] sm:$0xff] }
 0x3aa   :  { %v3937_v2 = vsel %vm13452_vm14, %v3936_v56, %v3932_v48  ;;  %v3986_v63 = vsel %vm3728_vm8, %v3985_v31, %v3981_v5  ;;  %v3790_v57 = vrot.slane %v13943_v50, %v11590_v25  ;;  %v3797_v18 = vrot.slane %v13944_v28, %v11750_v32  ;;  %v13948_v56 = vld [vmem:[#allocation160_spill] sm:$0xff]  ;;  %v13953_v5 = vld [vmem:[#allocation91_spill] sm:$0xff] }
 0x3ab   :  { %v3941_v38 = vrot.slane %v13945_v62, %v11585_v7  ;;  %v3990_v27 = vrot.slane %v13946_v34, %v11572_v26  ;;  %v3873_v9 = vsel %vm3791_vm1, %v3872_v1, %v3868_v60  ;;  %v3956_v29 = vrot.slane %v13947_v15, %v11750_v32  ;;  %v13960_v15 = vld [vmem:[#allocation162_spill] sm:$0xff] }
 0x3ac   :  { %v3792_v8 = vsel %vm3791_vm1, %v3790_v57, %v3785_v51  ;;  %v3878_v44 = vsel %vm3798_vm2, %v3877_v40, %v3873_v9  ;;  %v4005_v22 = vrot.slane %v13948_v56, %v11635_v19  ;;  %v3951_v45 = vrot.slane %v13949_v21, %v11590_v25  ;;  %v13952_v40 = vld [vmem:[#allocation167_spill] sm:$0xff]  ;;  %v13955_v57 = vld [vmem:[#allocation108_spill] sm:$0xff]  ;;  %v13957_v9 = vld [vmem:[#allocation93_spill] sm:$0xff] }
 0x3ad   :  { %v11756_v58 = vpop.permute.xlu0 %3618  ;;  %v3942_v54 = vsel %vm13451_vm15, %v3941_v38, %v3937_v2  ;;  %v3991_v53 = vsel %vm13450_vm9, %v3990_v27, %v3986_v63  ;;  %v3799_v31 = vsel %vm3798_vm2, %v3797_v18, %v3792_v8  ;;  %v4000_v42 = vrot.slane %v13950_v47, %v11579_v37  ;;  %v13956_v38 = vld [vmem:[#allocation182_spill] sm:$0xff]  ;;  %v11824_v27 = vpop.permute.xlu1 %3585  ;;  %v13961_v56 = vld [vmem:[#allocation164_spill] sm:$0xff]  ;;  %v13962_v21 = vld [vmem:[#allocation169_spill] sm:$0xff] }
 0x3ae   :  { %v3947_v33 = vsel %vm3784_vm0, %v3946_v43, %v3942_v54  ;;  %v3996_v3 = vsel %vm3742_vm10, %v3995_v52, %v3991_v53  ;;  %v11804_v51 = vsel %vm13449_vm3, %v3878_v44, %v3799_v31  ;;  %v4010_v60 = vrot.slane %v13951_v46, %v11582_v30  ;;  %v13954_v43 = vld [vmem:[#allocation154_spill] sm:$0xff]  ;;  %v13958_v44 = vld [vmem:[#allocation157_spill] sm:$0xff]  ;;  %v13963_v47 = vld [vmem:[#allocation188_spill] sm:$0xff] }
 0x3af   :  { %v4044_v48 = vrot.slane %v13952_v40, %v11545_v20  ;;  %v4020_v2 = vrot.slane %v13953_v5, %v11585_v7  ;;  %v3952_v52 = vsel %vm3791_vm1, %v3951_v45, %v3947_v33  ;;  %v4001_v50 = vsel %vm3749_vm11, %v4000_v42, %v3996_v3  ;;  %v13959_v53 = vld [vmem:[#allocation113_spill] sm:$0xff]  ;;  %v13964_v46 = vld [vmem:[#allocation95_spill] sm:$0xff] }
 0x3b0   :  { %v4040_v28 = vrot.slane %v13955_v57, %v11554_v39  ;;  %v11819_v18 = vsel %vm3798_vm2, %v3956_v29, %v3952_v52  ;;  %v4006_v62 = vsel %vm3756_vm12, %v4005_v22, %v4001_v50  ;;  %v4123_v34 = vrot.slane %v13956_v38, %v11545_v20  ;;  %v13965_v5 = vld [vmem:[#allocation159_spill] sm:$0xff] }
 0x3b1   :  { %v11781_v6 = vpop.permute.xlu0 %3576  ;;  %v4049_v8 = vrot.slane %v13957_v9, %v11560_v59  ;;  %v4059_v54 = vrot.slane %v13958_v44, %v11569_v11  ;;  %v4069_v33 = vrot.slane %v13959_v53, %v11572_v26  ;;  %v4015_v29 = vrot.slane %v13960_v15, %v11666_v35  ;;  %v13966_v57 = vld [vmem:[#allocation187_spill] sm:$0xff]  ;;  %v13967_v9 = vld [vmem:[#allocation161_spill] sm:$0xff] }
 0x3b2   :  { %v4119_v22 = vrot.slane %v13961_v56, %v11554_v39  ;;  %v4045_v31 = vsel %vm3700_vm4, %v4044_v48, %v4040_v28  ;;  %v4054_v45 = vrot.slane %v13962_v21, %v11565_v16  ;;  %v4277_v42 = vrot.slane %v13963_v47, %v11554_v39  ;;  %v13968_v28 = vld [vmem:[#allocation174_spill] sm:$0xff]  ;;  %v13969_v15 = vld [vmem:[#allocation183_spill] sm:$0xff]  ;;  %v13972_v48 = vld [vmem:[#allocation168_spill] sm:$0xff] }
 0x3b3   :  { %v4011_v50 = vsel %vm13454_vm13, %v4010_v60, %v4006_v62  ;;  %v4202_v38 = vrot.slane %v13966_v57, %v11545_v20  ;;  %v4281_v44 = vrot.slane %v13968_v28, %v11545_v20  ;;  %v4133_v56 = vrot.slane %v13969_v15, %v11565_v16  ;;  %v13970_v47 = vld [vmem:[#allocation166_spill] sm:$0xff]  ;;  %v13975_v40 = vld [vmem:[#allocation191_spill] sm:$0xff] }
 0x3b4   :  { %v4124_v53 = vsel %vm3700_vm4, %v4123_v34, %v4119_v22  ;;  %v4016_v21 = vsel %vm13452_vm14, %v4015_v29, %v4011_v50  ;;  %v4128_v63 = vrot.slane %v13970_v47, %v11560_v59  ;;  %v4050_v60 = vsel %vm3707_vm5, %v4049_v8, %v4045_v31  ;;  %v13971_v62 = vld [vmem:[#allocation170_spill] sm:$0xff]  ;;  %v13973_v22 = vld [vmem:[#allocation171_spill] sm:$0xff]  ;;  %v11871_v50 = vpop.permute.xlu1 %3675  ;;  %v13974_v47 = vld [vmem:[#allocation176_spill] sm:$0xff] }
 0x3b5   :  { %v11801_v1 = vpop.permute.xlu0 %3666  ;;  %v4198_v57 = vrot.slane %v13971_v62, %v11554_v39  ;;  %v4138_v28 = vrot.slane %v13972_v48, %v11569_v11  ;;  %v4055_v34 = vsel %vm3714_vm6, %v4054_v45, %v4050_v60  ;;  %v4064_v15 = vrot.slane %v13973_v22, %v11601_v55  ;;  %v13976_v48 = vld [vmem:[#allocation172_spill] sm:$0xff]  ;;  %v13977_v22 = vld [vmem:[#allocation185_spill] sm:$0xff] }
 0x3b6   :  { %v4282_v29 = vsel %vm3700_vm4, %v4281_v44, %v4277_v42  ;;  %v4286_v8 = vrot.slane %v13974_v47, %v11560_v59  ;;  %v4129_v31 = vsel %vm3707_vm5, %v4128_v63, %v4124_v53  ;;  %v4212_v39 = vrot.slane %v13975_v40, %v11565_v16  ;;  %v13978_v44 = vld [vmem:[#allocation193_spill] sm:$0xff] }
 0x3b7   :  { %v4203_v62 = vsel %vm3700_vm4, %v4202_v38, %v4198_v57  ;;  %v4207_v45 = vrot.slane %v13976_v48, %v11560_v59  ;;  %v4134_v60 = vsel %vm3714_vm6, %v4133_v56, %v4129_v31  ;;  %v4143_v42 = vrot.slane %v13977_v22, %v11601_v55  ;;  %v13979_v31 = vld [vmem:[#allocation179_spill] sm:$0xff] }
 0x3b8   :  { %v4217_v20 = vrot.slane %v13978_v44, %v11569_v11  ;;  %v4060_v47 = vsel %vm3721_vm7, %v4059_v54, %v4055_v34  ;;  %v4287_v63 = vsel %vm3707_vm5, %v4286_v8, %v4282_v29  ;;  %v4148_v38 = vrot.slane %v11617_v12, %v11572_v26  ;;  %v13980_v54 = vld [vmem:[#allocation173_spill] sm:$0xff] }
 0x3b9   :  { %v11834_v3 = vpop.permute.xlu0 %3624  ;;  %v4296_v40 = vrot.slane %v11644_v61, %v11569_v11  ;;  %v4021_v56 = vsel %vm13451_vm15, %v4020_v2, %v4016_v21  ;;  %v4065_v57 = vsel %vm3728_vm8, %v4064_v15, %v4060_v47  ;;  %v4291_v48 = vrot.slane %v13979_v31, %v11565_v16  ;;  %v13981_v29 = vld [vmem:[#allocation181_spill] sm:$0xff] }
 0x3ba   :  { %v4208_v22 = vsel %vm3707_vm5, %v4207_v45, %v4203_v62  ;;  %v4074_v34 = vrot.slane %v13980_v54, %v11615_v4  ;;  %v4222_v12 = vrot.slane %v13981_v29, %v11601_v55  ;;  %v4139_v8 = vsel %vm3721_vm7, %v4138_v28, %v4134_v60  ;;  %v11910_v62 = vpop.permute.xlu1 %3633 }
 0x3bb   :  { %v4213_v61 = vsel %vm3714_vm6, %v4212_v39, %v4208_v22  ;;  %v4144_v44 = vsel %vm3728_vm8, %v4143_v42, %v4139_v8  ;;  %v4292_v21 = vsel %vm3714_vm6, %v4291_v48, %v4287_v63  ;;  %v4227_v15 = vrot.slane %v11670_v17, %v11572_v26  ;;  %v13983_v17 = vld [vmem:[#allocation184_spill] sm:$0xff] }
 0x3bc   :  { %v4218_v2 = vsel %vm3721_vm7, %v4217_v20, %v4213_v61  ;;  %v4149_v45 = vsel %vm13450_vm9, %v4148_v38, %v4144_v44  ;;  %v4297_v47 = vsel %vm3721_vm7, %v4296_v40, %v4292_v21  ;;  %v4158_v28 = vrot.slane %v11698_v24, %v11579_v37  ;;  %v13982_v20 = vld [vmem:[#allocation163_spill] sm:$0xff]  ;;  %v13984_v38 = vld [vmem:[#allocation186_spill] sm:$0xff] }
 0x3bd   :  { %v11863_v52 = vpop.permute.xlu0 %3582  ;;  %v4306_v39 = vrot.slane %v11727_v36, %v11572_v26  ;;  %v4025_v42 = vrot.slane %v13982_v20, %v11676_v41  ;;  %v4070_v63 = vsel %vm13450_vm9, %v4069_v33, %v4065_v57  ;;  %v4153_v31 = vrot.slane %v13983_v17, %v11615_v4  ;;  %v13985_v24 = vld [vmem:[#allocation175_spill] sm:$0xff]  ;;  %v13986_v36 = vld [vmem:[#allocation189_spill] sm:$0xff] }
 0x3be   :  { %v4301_v48 = vrot.slane %v13984_v38, %v11601_v55  ;;  %v4075_v40 = vsel %vm3742_vm10, %v4074_v34, %v4070_v63  ;;  %v4084_v22 = vrot.slane %v13985_v24, %v11635_v19  ;;  %v4232_v54 = vrot.slane %v13986_v36, %v11615_v4 }
 0x3bf   :  { %v4223_v29 = vsel %vm3728_vm8, %v4222_v12, %v4218_v2  ;;  %v4154_v33 = vsel %vm3742_vm10, %v4153_v31, %v4149_v45  ;;  %v4237_v61 = vrot.slane %v11756_v58, %v11579_v37  ;;  %v4168_v21 = vrot.slane %v11781_v6, %v11582_v30  ;;  %v13988_v58 = vld [vmem:[#allocation192_spill] sm:$0xff] }
 0x3c0   :  { %v4228_v8 = vsel %vm13450_vm9, %v4227_v15, %v4223_v29  ;;  %v4302_v57 = vsel %vm3728_vm8, %v4301_v48, %v4297_v47  ;;  %v4159_v44 = vsel %vm3749_vm11, %v4158_v28, %v4154_v33  ;;  %v4316_v20 = vrot.slane %v11801_v1, %v11579_v37  ;;  %v13989_v1 = vld [vmem:[#allocation177_spill] sm:$0xff] }
 0x3c1   :  { %v11892_v53 = vpop.permute.xlu0 %3672  ;;  %v4307_v34 = vsel %vm13450_vm9, %v4306_v39, %v4302_v57  ;;  %v4026_v2 = vsel %vm3784_vm0, %v4025_v42, %v4021_v56  ;;  %v13987_v15 = vrot.slane %v13964_v46, %v11579_v37  ;;  %v4163_v47 = vrot.slane %v13988_v58, %v11635_v19  ;;  %v11953_v39 = vpop.permute.xlu1 %3591  ;;  %v13993_v58 = vld [vmem:[#allocation47_spill] sm:$0xff] }
 0x3c2   :  { %v4311_v28 = vrot.slane %v11625_v13, %v11615_v4  ;;  %v4094_v63 = vrot.slane %v13989_v1, %v11666_v35  ;;  %v4242_v56 = vrot.slane %v11662_v10, %v11635_v19  ;;  %v4233_v46 = vsel %vm3742_vm10, %v4232_v54, %v4228_v8 }
 0x3c3   :  { %v4080_v45 = vsel %vm3749_vm11, %v13987_v15, %v4075_v40  ;;  %vm13453_vm3 = vcmask 1042434   ;;  %v4238_v42 = vsel %vm3749_vm11, %v4237_v61, %v4233_v46  ;;  %v4164_v17 = vsel %vm3756_vm12, %v4163_v47, %v4159_v44  ;;  %v13996_v46 = vld [vmem:[#allocation180_spill] sm:$0xff] }
 0x3c4   :  { %v4085_v6 = vsel %vm3756_vm12, %v4084_v22, %v4080_v45  ;;  %v4312_v31 = vsel %vm3742_vm10, %v4311_v28, %v4307_v34  ;;  %v4247_v13 = vrot.slane %v11834_v3, %v11582_v30  ;;  %v4169_v38 = vsel %vm13454_vm13, %v4168_v21, %v4164_v17  ;;  %v13990_v22 = vld [vmem:[#allocation165_spill] sm:$0xff] }
 0x3c5   :  { %v11918_v60 = vpop.permute.xlu0 %3630  ;;  %v4317_v48 = vsel %vm3749_vm11, %v4316_v20, %v4312_v31  ;;  %v4178_v40 = vrot.slane %v11863_v52, %v11585_v7  ;;  %v4326_v10 = vrot.slane %v11892_v53, %v11582_v30  ;;  %vm13455_vm9 = vcmask 1043459   ;;  %v13992_v53 = vld [vmem:[#allocation178_spill] sm:$0xff]  ;;  %v3682_v44 = vpop.permute.xlu1 %3681 }
 0x3c6   :  { %v4035_v36 = vrot.slane %v13990_v22, %v11750_v32  ;;  %v13991_v54 = vrot.slane %v13965_v5, %v11582_v30  ;;  %v4173_v29 = vrot.slane %v11706_v49, %v11666_v35  ;;  %v4321_v8 = vrot.slane %v11746_v14, %v11635_v19 }
 0x3c7   :  { %v4104_v33 = vrot.slane %v13992_v53, %v11676_v41  ;;  %v4252_v57 = vrot.slane %v11784_v23, %v11666_v35  ;;  %v4243_v61 = vsel %vm3756_vm12, %v4242_v56, %v4238_v42  ;;  %v4257_v14 = vrot.slane %v11918_v60, %v11585_v7 }
 0x3c8   :  { %v4090_v3 = vsel %vm13454_vm13, %v13991_v54, %v4085_v6  ;;  %v4248_v5 = vsel %vm13454_vm13, %v4247_v13, %v4243_v61  ;;  %v4174_v34 = vsel %vm13452_vm14, %v4173_v29, %v4169_v38  ;;  %v4322_v49 = vsel %vm3756_vm12, %v4321_v8, %v4317_v48 }
 0x3c9   :  { %v3589_v12 = vpop.permute.xlu0 %3588  ;;  %v4095_v52 = vsel %vm13452_vm14, %v4094_v63, %v4090_v3  ;;  %v4179_v21 = vsel %vm13451_vm15, %v4178_v40, %v4174_v34  ;;  %v4327_v20 = vsel %vm13454_vm13, %v4326_v10, %v4322_v49  ;;  %v4109_v47 = vrot.slane %v13993_v58, %v11590_v25  ;;  %v3685_v22 = vpop.permute.xlu1 %3684  ;;  %v13999_v58 = vld [vmem:[#allocation7_spill] sm:$0xff] }
 0x3ca   :  { %v4188_v15 = vrot.slane %v3589_v12, %v11590_v25  ;;  %v13994_v28 = vrot.slane %v13967_v9, %v11585_v7  ;;  %v4183_v60 = vrot.slane %v11824_v27, %v11676_v41  ;;  %v4331_v1 = vrot.slane %v11871_v50, %v11666_v35 }
 0x3cb   :  { %v13995_v12 = vrot.slane %v13954_v43, %v11590_v25  ;;  %v4114_v42 = vrot.slane %v13996_v46, %v11750_v32  ;;  %v4253_v9 = vsel %vm13452_vm14, %v4252_v57, %v4248_v5  ;;  %v4262_v43 = vrot.slane %v11910_v62, %v11676_v41 }
 0x3cc   :  { %v4100_v6 = vsel %vm13451_vm15, %v13994_v28, %v4095_v52  ;;  %v4258_v17 = vsel %vm13451_vm15, %v4257_v14, %v4253_v9  ;;  %v4184_v31 = vsel %vm3784_vm0, %v4183_v60, %v4179_v21  ;;  %v4332_v27 = vsel %vm13452_vm14, %v4331_v1, %v4327_v20  ;;  %v12052_v21 = vld [vmem:[#allocation3] sm:$0xff] }
 0x3cd   :  { %v3679_v24 = vpop.permute.xlu0 %3678  ;;  %v4031_v63 = vsel %vm3791_vm1, %v13995_v12, %v4026_v2  ;;  %v4105_v56 = vsel %vm3784_vm0, %v4104_v33, %v4100_v6  ;;  %v4189_v2 = vsel %vm3791_vm1, %v4188_v15, %v4184_v31  ;;  %v4193_v10 = vrot.slane %v11953_v39, %v11750_v32  ;;  %v14001_v60 = vld [vmem:[#allocation140_spill] sm:$0xff] }
 0x3ce   :  { %v4336_v23 = vrot.slane %v3679_v24, %v11585_v7  ;;  %v4036_v13 = vsel %vm3798_vm2, %v4035_v36, %v4031_v63  ;;  %v4110_v40 = vsel %vm3791_vm1, %v4109_v47, %v4105_v56  ;;  %v4341_v24 = vrot.slane %v3682_v44, %v11676_v41  ;;  %v14002_v12 = vld [vmem:[#allocation148_spill] sm:$0xff]  ;;  %v14003_v56 = vld [vmem:[#allocation145_spill] sm:$0xff] }
 0x3cf   :  { %v4356_v36 = vsel %vm13453_vm3, %v11819_v18, %v11804_v51  ;;  %v4115_v62 = vsel %vm3798_vm2, %v4114_v42, %v4110_v40  ;;  %v4263_v3 = vsel %vm3784_vm0, %v4262_v43, %v4258_v17  ;;  %v4194_v8 = vsel %vm3798_vm2, %v4193_v10, %v4189_v2  ;;  %v14004_v42 = vld [vmem:[#allocation136_spill] sm:$0xff]  ;;  %v14006_v2 = vld [vmem:[#allocation137_spill] sm:$0xff]  ;;  %v14007_v40 = vld [vmem:[#allocation147_spill] sm:$0xff] }
 0x3d0   :  { %v4337_v38 = vsel %vm13451_vm15, %v4336_v23, %v4332_v27  ;;  %vm4359_vm15 = vcmask 1044484   ;;  %vm13458_vm14 = vcmask 1045509   ;;  %v4358_v52 = vsel %vm13455_vm9, %v4036_v13, %v4356_v36 }
 0x3d1   :  { %v3637_v45 = vpop.permute.xlu0 %3636  ;;  %v4342_v39 = vsel %vm3784_vm0, %v4341_v24, %v4337_v38  ;;  %v4346_v53 = vrot.slane %v3685_v22, %v11590_v25  ;;  %vm13456_vm3 = vcmask 1046534   ;;  %v4360_v18 = vsel %vm4359_vm15, %v4115_v62, %v4358_v52  ;;  %v14008_v22 = vld [vmem:[#allocation100_spill] sm:$0xff]  ;;  %v14009_v62 = vld [vmem:[#allocation149_spill] sm:$0xff] }
 0x3d2   :  { %v4267_v50 = vrot.slane %v3637_v45, %v11590_v25  ;;  %vm13457_vm13 = vcmask 1047559   ;;  %v4362_v44 = vsel %vm13458_vm14, %v4194_v8, %v4360_v18  ;;  %v8326_v14 = vmov 0.0   ;;  %v14010_v8 = vld [vmem:[#allocation138_spill] sm:$0xff] }
 0x3d3   :  { %v4347_v61 = vsel %vm3791_vm1, %v4346_v53, %v4342_v39  ;;  %vm13997_vm9 = vcmask 7168   ;;  %v14000_v28 = vsub.s32 1, %v13930_v0  ;;  %vm14111_vm14 = vcmask 851712  }
 0x3d4   :  { %v4268_v29 = vsel %vm3791_vm1, %v4267_v50, %v4263_v3  ;;  %34 = vst.msk [vmem:[#allocation4] sm:$0xff] %vm13997_vm9, %v8326_v14  ;;  %v14005_v50 = vld [vmem:[#allocation146_spill] sm:$0xff] }
 0x3d5   :  { %v3640_v48 = vpop.permute.xlu0 %3639 }
 0x3d6   :  { %v4272_v54 = vrot.slane %v3640_v48, %v11750_v32 }
 0x3d8   :  { %v4273_v57 = vsel %vm3798_vm2, %v4272_v54, %v4268_v29 }
 0x3d9   :  { %v3688_v33 = vpop.permute.xlu0 %3687  ;;  %v4364_v34 = vsel %vm13456_vm3, %v4273_v57, %v4362_v44  ;;  %vm13998_vm3 = vmmov %vm13997_vm9  ;;  %v14011_v57 = vld [vmem:[#allocation8_spill] sm:$0xff]  ;;  %vm14104_vm9 = vcmask 458112  }
 0x3da   :  { %v4351_v51 = vrot.slane %v3688_v33, %v11750_v32 }
 0x3dc   :  { %v4352_v5 = vsel %vm3798_vm2, %v4351_v51, %v4347_v61  ;;  %v14012_v61 = vld [vmem:[#allocation19_spill] sm:$0xff] }
 0x3dd   :  { %v12047_v49 = vsel %vm13457_vm13, %v4352_v5, %v4364_v34  ;;  %vm14109_vm13 = vcmask 786112  }
 0x3de   :  { %4373 = vmax.xlane.f32.xlu1 %v12047_v49 }
 0x46b   :  { %v4374_v20 = vpop.xlane.xlu1 %4373 }
 0x46c   :  { %v12055_v15 = vmax.f32 %v12052_v21, %v4374_v20 }
 0x46e   :  { %v4376_v23 = vsub.f32 %v12052_v21, %v12055_v15  ;;  %6694 = vst.msk [vmem:[#allocation3] sm:$0xff] %vm13998_vm3, %v12055_v15  ;;  %4381 = vperm.xlu0 %7797, %v12055_v15   ;;  %vm8328_vm3 = vmmov 0  }
 0x46f   :  { %7351 = vmatprep.mubr.msk.f32.mxu1 %vm8328_vm3, %v8326_v14 }
 0x4ed   :  { %v12062_v45 = vpop.permute.xlu0 %4381 }
 0x4ee   :  { %v12066_v47 = vrot.slane %v12062_v45, %v13999_v58  ;;  %v12071_v6 = vrot.slane %v12062_v45, %v14000_v28  ;;  %v14013_v58 = vld [vmem:[#allocation9_spill] sm:$0xff] }
 0x4f0   :  { %v4431_v1 = vsub.f32 %v14001_v60, %v12066_v47  ;;  %v4423_v63 = vsub.f32 %v14002_v12, %v12066_v47  ;;  %v4437_v46 = vsub.f32 %v14003_v56, %v12066_v47  ;;  %v4424_v9 = vsub.f32 %v14004_v42, %v12066_v47  ;;  %v14015_v42 = vld [vmem:[#allocation24_spill] sm:$0xff] }
 0x4f1   :  { %v4439_v13 = vsub.f32 %v14005_v50, %v12071_v6  ;;  %v4425_v38 = vsub.f32 %v14006_v2, %v12066_v47  ;;  %v4441_v10 = vsub.f32 %v14007_v40, %v12071_v6  ;;  %v4426_v54 = vsub.f32 %v14008_v22, %v12066_v47  ;;  %v14017_v2 = vld [vmem:[#allocation26_spill] sm:$0xff]  ;;  %v14018_v40 = vld [vmem:[#allocation105_spill] sm:$0xff] }
 0x4f2   :  { %v4567_v17 = vmul.f32 1.442695, %v4431_v1  ;;  %v4551_v31 = vmul.f32 1.442695, %v4423_v63  ;;  %v4579_v27 = vmul.f32 1.442695, %v4437_v46  ;;  %v4443_v3 = vsub.f32 %v14009_v62, %v12071_v6 }
 0x4f3   :  { %v4553_v43 = vmul.f32 1.442695, %v4424_v9  ;;  %v4583_v48 = vmul.f32 1.442695, %v4439_v13  ;;  %v4555_v24 = vmul.f32 1.442695, %v4425_v38  ;;  %v4427_v39 = vsub.f32 %v14010_v8, %v12066_v47 }
 0x4f4   :  { %8056 = vpow2.f32 %v4567_v17  ;;  %v4587_v36 = vmul.f32 1.442695, %v4441_v10  ;;  %v4557_v29 = vmul.f32 1.442695, %v4426_v54  ;;  %v4591_v33 = vmul.f32 1.442695, %v4443_v3 }
 0x4f5   :  { %8058 = vpow2.f32 %v4551_v31  ;;  %v4445_v51 = vsub.f32 %v14011_v57, %v12071_v6  ;;  %v4559_v18 = vmul.f32 1.442695, %v4427_v39  ;;  %v4428_v44 = vsub.f32 %v14012_v61, %v12066_v47  ;;  %v14014_v1 = vld [vmem:[#allocation139_spill] sm:$0xff]  ;;  %v14016_v31 = vld [vmem:[#allocation21_spill] sm:$0xff]  ;;  %v14021_v39 = vld [vmem:[#allocation142_spill] sm:$0xff] }
 0x4f6   :  { %8060 = vpow2.f32 %v4579_v27  ;;  %v4447_v28 = vsub.f32 %v14013_v58, %v12071_v6  ;;  %v4429_v12 = vsub.f32 %v14014_v1, %v12066_v47  ;;  %v4449_v9 = vsub.f32 %v14015_v42, %v12071_v6  ;;  %v14020_v3 = vld [vmem:[#allocation29_spill] sm:$0xff] }
 0x4f7   :  { %8062 = vpow2.f32 %v4553_v43  ;;  %v4595_v20 = vmul.f32 1.442695, %v4445_v51  ;;  %v4561_v60 = vmul.f32 1.442695, %v4428_v44  ;;  %v4430_v27 = vsub.f32 %v14016_v31, %v12066_v47  ;;  %v14022_v51 = vld [vmem:[#allocation13_spill] sm:$0xff]  ;;  %v14023_v44 = vld [vmem:[#allocation107_spill] sm:$0xff] }
 0x4f8   :  { %8064 = vpow2.f32 %v4583_v48  ;;  %v4599_v46 = vmul.f32 1.442695, %v4447_v28  ;;  %v4563_v17 = vmul.f32 1.442695, %v4429_v12  ;;  %v4603_v43 = vmul.f32 1.442695, %v4449_v9 }
 0x4f9   :  { %8066 = vpow2.f32 %v4555_v24  ;;  %v4451_v38 = vsub.f32 %v14017_v2, %v12071_v6  ;;  %v4565_v48 = vmul.f32 1.442695, %v4430_v27  ;;  %v4432_v10 = vsub.f32 %v14018_v40, %v12066_v47  ;;  %v14024_v28 = vld [vmem:[#allocation110_spill] sm:$0xff]  ;;  %v14025_v12 = vld [vmem:[#allocation144_spill] sm:$0xff]  ;;  %v14027_v27 = vld [vmem:[#allocation109_spill] sm:$0xff] }
 0x4fa   :  { %8068 = vpow2.f32 %v4587_v36  ;;  %v14019_v54 = vsub.s32 2, %v13930_v0  ;;  %v14026_v9 = vld [vmem:[#allocation34_spill] sm:$0xff]  ;;  %v5967_v2 = vld [vmem:[%s13298_s3 + $0x8] sm:$0xff]  ;;  %v14028_v40 = vld [vmem:[#allocation36_spill] sm:$0xff] }
 0x4fb   :  { %8070 = vpow2.f32 %v4557_v29  ;;  %v4607_v62 = vmul.f32 1.442695, %v4451_v38  ;;  %v4453_v29 = vsub.f32 %v14020_v3, %v12071_v6  ;;  %v4569_v8 = vmul.f32 1.442695, %v4432_v10 }
 0x4fc   :  { %8072 = vpow2.f32 %v4591_v33  ;;  %v12112_v36 = vrot.slane %v12062_v45, %v14019_v54  ;;  %v5968_v54 = vld [vmem:[%s13298_s3 + $0x10] sm:$0xff] }
 0x4fd   :  { %8074 = vpow2.f32 %v4559_v18  ;;  %v4611_v57 = vmul.f32 1.442695, %v4453_v29 }
 0x4fe   :  { %v8057_v52 = vpop.eup %8056  ;;  %8076 = vpow2.f32 %v4595_v20  ;;  %v4455_v18 = vsub.f32 %v14022_v51, %v12112_v36  ;;  %v4461_v10 = vsub.f32 %v14028_v40, %v12112_v36  ;;  %v5970_v51 = vld [vmem:[%s13298_s3 + $0x20] sm:$0xff] }
 0x4ff   :  { %v8059_v53 = vpop.eup %8058  ;;  %4962 = vperm.xlu1 %7798, %v8057_v52   ;;  %8078 = vpow2.f32 %v4561_v60  ;;  %v4433_v52 = vsub.f32 %v14021_v39, %v12066_v47  ;;  %v4457_v60 = vsub.f32 %v14024_v28, %v12112_v36  ;;  %v8327_v39 = vmov 0.0|0.0  }
 0x500   :  { %4938 = vperm.xlu0 %7797, %v8059_v53   ;;  %v8061_v5 = vpop.eup %8060  ;;  %8080 = vpow2.f32 %v4599_v46  ;;  %v4615_v58 = vmul.f32 1.442695, %v4455_v18  ;;  %7599 = vmatprep.subr.bf16.mxu1 %v8327_v39  ;;  %v5971_v18 = vld [vmem:[%s13298_s3 + $0x28] sm:$0xff] }
 0x501   :  { %v8063_v34 = vpop.eup %8062  ;;  %8082 = vpow2.f32 %v4563_v17  ;;  %v4571_v61 = vmul.f32 1.442695, %v4433_v52  ;;  %v4619_v42 = vmul.f32 1.442695, %v4457_v60  ;;  %v4459_v17 = vsub.f32 %v14026_v9, %v12112_v36  ;;  %v14032_v60 = vld [vmem:[#allocation41_spill] sm:$0xff] }
 0x502   :  { %v8065_v63 = vpop.eup %8064  ;;  %8084 = vpow2.f32 %v4603_v43  ;;  %v5966_v43 = vld [vmem:[%s13298_s3] sm:$0xff] }
 0x503   :  { %4980 = vperm.xlu1 %7798, %v8061_v5   ;;  %v8067_v56 = vpop.eup %8066  ;;  %8086 = vpow2.f32 %v4565_v48  ;;  %v4434_v5 = vsub.f32 %v14023_v44, %v12066_v47  ;;  %v4623_v48 = vmul.f32 1.442695, %v4459_v17  ;;  %v7600_v29 = vpack.c.bf16 %v5967_v2, %v5966_v43  ;;  %v14031_v44 = vld [vmem:[#allocation14_spill] sm:$0xff]  ;;  %v5974_v43 = vld [vmem:[%s13298_s3 + $0x40] sm:$0xff]  ;;  %v5975_v2 = vld [vmem:[%s13298_s3 + $0x48] sm:$0xff] }
 0x504   :  { %4941 = vperm.xlu0 %7797, %v8063_v34   ;;  %v8069_v50 = vpop.eup %8068  ;;  %8088 = vpow2.f32 %v4607_v62  ;;  %v5969_v62 = vld [vmem:[%s13298_s3 + $0x18] sm:$0xff] }
 0x505   :  { %v8071_v13 = vpop.eup %8070  ;;  %8090 = vpow2.f32 %v4569_v8  ;;  %v4573_v1 = vmul.f32 1.442695, %v4434_v5  ;;  %7601 = vmatpush3.bf16.msra.mxu1 %v7600_v29  ;;  %v4440_v5 = vsub.f32 %v14031_v44, %v12071_v6  ;;  %v14037_v29 = vld [vmem:[#allocation117_spill] sm:$0xff] }
 0x506   :  { %v8073_v24 = vpop.eup %8072  ;;  %8092 = vpow2.f32 %v4611_v57  ;;  %7602 = vmatprep.subr.bf16.mxu1 %v8327_v39 }
 0x507   :  { %4986 = vperm.xlu1 %7798, %v8065_v63   ;;  %v8075_v22 = vpop.eup %8074  ;;  %8094 = vpow2.f32 %v4571_v61  ;;  %v4435_v63 = vsub.f32 %v14025_v12, %v12066_v47  ;;  %v5972_v12 = vld [vmem:[%s13298_s3 + $0x30] sm:$0xff] }
 0x508   :  { %4944 = vperm.xlu0 %7797, %v8067_v56   ;;  %v8077_v53 = vpop.eup %8076  ;;  %8096 = vpow2.f32 %v4615_v58  ;;  %v7606_v58 = vpack.c.bf16 %v5971_v18, %v5970_v51 }
 0x509   :  { %v8079_v33 = vpop.eup %8078  ;;  %8098 = vpow2.f32 %v4573_v1  ;;  %v4575_v31 = vmul.f32 1.442695, %v4435_v63  ;;  %v4465_v1 = vsub.f32 %v14032_v60, %v12112_v36  ;;  %v5973_v63 = vld [vmem:[%s13298_s3 + $0x38] sm:$0xff] }
 0x50a   :  { %v8081_v34 = vpop.eup %8080  ;;  %8100 = vpow2.f32 %v4619_v42  ;;  %v14040_v60 = vld [vmem:[#allocation115_spill] sm:$0xff] }
 0x50b   :  { %4992 = vperm.xlu1 %7798, %v8069_v50   ;;  %v8083_v20 = vpop.eup %8082  ;;  %v4436_v50 = vsub.f32 %v14027_v27, %v12066_v47  ;;  %8102 = vpow2.f32 %v4575_v31  ;;  %v7609_v31 = vpack.c.bf16 %v5973_v63, %v5972_v12  ;;  %v4635_v27 = vmul.f32 1.442695, %v4465_v1 }
 0x50c   :  { %4947 = vperm.xlu0 %7797, %v8071_v13   ;;  %v8085_v56 = vpop.eup %8084  ;;  %8104 = vpow2.f32 %v4623_v48  ;;  %v14035_v48 = vld [vmem:[#allocation112_spill] sm:$0xff]  ;;  %v4448_v1 = vsub.f32 %v14040_v60, %v12071_v6 }
 0x50d   :  { %v8087_v46 = vpop.eup %8086  ;;  %v4577_v3 = vmul.f32 1.442695, %v4436_v50  ;;  %v14034_v50 = vld [vmem:[#allocation116_spill] sm:$0xff]  ;;  %v4444_v40 = vsub.f32 %v14035_v48, %v12071_v6 }
 0x50e   :  { %v8089_v13 = vpop.eup %8088 }
 0x50f   :  { %4998 = vperm.xlu1 %7798, %v8073_v24   ;;  %v8091_v38 = vpop.eup %8090  ;;  %v14029_v24 = vld [vmem:[#allocation31_spill] sm:$0xff]  ;;  %8106 = vpow2.f32 %v4577_v3 }
 0x510   :  { %4950 = vperm.xlu0 %7797, %v8075_v22   ;;  %v4438_v22 = vsub.f32 %v14029_v24, %v12066_v47  ;;  %v8093_v8 = vpop.eup %8092  ;;  %v4627_v47 = vmul.f32 1.442695, %v4461_v10 }
 0x511   :  { %v8095_v52 = vpop.eup %8094 }
 0x512   :  { %v4581_v61 = vmul.f32 1.442695, %v4438_v22  ;;  %8108 = vpow2.f32 %v4627_v47  ;;  %v7612_v22 = vpack.c.bf16 %v5975_v2, %v5974_v43  ;;  %v4593_v47 = vmul.f32 1.442695, %v4444_v40  ;;  %v14043_v40 = vld [vmem:[#allocation25_spill] sm:$0xff] }
 0x513   :  { %5004 = vperm.xlu1 %7798, %v8077_v53   ;;  %v7603_v53 = vpack.c.bf16 %v5969_v62, %v5968_v54  ;;  %v14036_v54 = vsub.s32 3, %v13930_v0 }
 0x514   :  { %4953 = vperm.xlu0 %7797, %v8079_v33   ;;  %v14030_v33 = vld [vmem:[#allocation39_spill] sm:$0xff]  ;;  %8110 = vpow2.f32 %v4581_v61 }
 0x515   :  { %v4463_v57 = vsub.f32 %v14030_v33, %v12112_v36  ;;  %7604 = vmatpush3.bf16.msra.mxu1 %v7603_v53  ;;  %v12183_v62 = vrot.slane %v12062_v45, %v14036_v54  ;;  %v5977_v53 = vld [vmem:[%s13298_s3 + $0x58] sm:$0xff]  ;;  %v14038_v33 = vld [vmem:[#allocation114_spill] sm:$0xff] }
 0x516   :  { %7605 = vmatprep.subr.bf16.mxu1 %v8327_v39 }
 0x517   :  { %5010 = vperm.xlu1 %7798, %v8081_v34   ;;  %v8097_v34 = vpop.eup %8096  ;;  %v4631_v28 = vmul.f32 1.442695, %v4463_v57  ;;  %v4446_v57 = vsub.f32 %v14038_v33, %v12071_v6  ;;  %v14046_v33 = vld [vmem:[#allocation23_spill] sm:$0xff] }
 0x518   :  { %4956 = vperm.xlu0 %7797, %v8083_v20   ;;  %v8099_v20 = vpop.eup %8098 }
 0x519   :  { %v8101_v9 = vpop.eup %8100  ;;  %7607 = vmatpush3.bf16.msra.mxu1 %v7606_v58  ;;  %8112 = vpow2.f32 %v4631_v28  ;;  %v5979_v58 = vld [vmem:[%s13298_s3 + $0x68] sm:$0xff]  ;;  %v4597_v28 = vmul.f32 1.442695, %v4446_v57  ;;  %v4454_v57 = vsub.f32 %v14046_v33, %v12071_v6 }
 0x51a   :  { %v8103_v17 = vpop.eup %8102  ;;  %7608 = vmatprep.subr.bf16.mxu1 %v8327_v39 }
 0x51b   :  { %5016 = vperm.xlu1 %7798, %v8085_v56   ;;  %v4585_v56 = vmul.f32 1.442695, %v4440_v5  ;;  %v8105_v10 = vpop.eup %8104  ;;  %v14039_v5 = vld [vmem:[#allocation118_spill] sm:$0xff] }
 0x51c   :  { %4959 = vperm.xlu0 %7797, %v8087_v46   ;;  %v14033_v46 = vld [vmem:[#allocation111_spill] sm:$0xff]  ;;  %v8107_v24 = vpop.eup %8106 }
 0x51d   :  { %v4442_v42 = vsub.f32 %v14033_v46, %v12071_v6  ;;  %8114 = vpow2.f32 %v4585_v56  ;;  %7610 = vmatpush3.bf16.msra.mxu1 %v7609_v31  ;;  %v8109_v51 = vpop.eup %8108  ;;  %v5981_v31 = vld [vmem:[%s13298_s3 + $0x78] sm:$0xff] }
 0x51e   :  { %8116 = vpow2.f32 %v4635_v27  ;;  %7611 = vmatprep.subr.bf16.mxu1 %v8327_v39  ;;  %v8111_v18 = vpop.eup %8110  ;;  %v4601_v27 = vmul.f32 1.442695, %v4448_v1  ;;  %v14049_v1 = vld [vmem:[#allocation55_spill] sm:$0xff] }
 0x51f   :  { %5022 = vperm.xlu1 %7798, %v8089_v13   ;;  %v4467_v13 = vsub.f32 %v14034_v50, %v12112_v36  ;;  %v14042_v50 = vld [vmem:[#allocation20_spill] sm:$0xff] }
 0x520   :  { %4965 = vperm.xlu0 %7797, %v8091_v38   ;;  %v4589_v38 = vmul.f32 1.442695, %v4442_v42  ;;  %v14041_v42 = vld [vmem:[#allocation49_spill] sm:$0xff] }
 0x521   :  { %v4639_v3 = vmul.f32 1.442695, %v4467_v13  ;;  %7613 = vmatpush3.bf16.msra.mxu1 %v7612_v22  ;;  %v4450_v13 = vsub.f32 %v14042_v50, %v12071_v6  ;;  %v14044_v22 = vld [vmem:[#allocation22_spill] sm:$0xff] }
 0x522   :  { %8118 = vpow2.f32 %v4589_v38  ;;  %7614 = vmatprep.subr.bf16.mxu1 %v8327_v39  ;;  %v4452_v54 = vsub.f32 %v14044_v22, %v12071_v6 }
 0x523   :  { %5028 = vperm.xlu1 %7798, %v8093_v8   ;;  %v4469_v8 = vsub.f32 %v14037_v29, %v12112_v36  ;;  %8120 = vpow2.f32 %v4639_v3  ;;  %v8113_v12 = vpop.eup %8112 }
 0x524   :  { %4968 = vperm.xlu0 %7797, %v8095_v52   ;;  %v5976_v52 = vld [vmem:[%s13298_s3 + $0x50] sm:$0xff]  ;;  %8122 = vpow2.f32 %v4593_v47  ;;  %v4609_v47 = vmul.f32 1.442695, %v4452_v54 }
 0x525   :  { %v7615_v61 = vpack.c.bf16 %v5977_v53, %v5976_v52  ;;  %v4643_v44 = vmul.f32 1.442695, %v4469_v8  ;;  %v14045_v52 = vld [vmem:[#allocation120_spill] sm:$0xff] }
 0x526   :  { %v4477_v53 = vsub.f32 %v14045_v52, %v12183_v62 }
 0x527   :  { %5034 = vperm.xlu1 %7798, %v8097_v34   ;;  %v4471_v34 = vsub.f32 %v14039_v5, %v12183_v62  ;;  %v8115_v63 = vpop.eup %8114  ;;  %7616 = vmatpush3.bf16.msra.mxu1 %v7615_v61  ;;  %8124 = vpow2.f32 %v4643_v44  ;;  %v14047_v44 = vld [vmem:[#allocation121_spill] sm:$0xff] }
 0x528   :  { %4971 = vperm.xlu0 %7797, %v8099_v20   ;;  %v5978_v20 = vld [vmem:[%s13298_s3 + $0x60] sm:$0xff]  ;;  %7617 = vmatprep.subr.bf16.mxu1 %v8327_v39  ;;  %8126 = vpow2.f32 %v4597_v28  ;;  %v8117_v43 = vpop.eup %8116  ;;  %v4659_v61 = vmul.f32 1.442695, %v4477_v53  ;;  %v4479_v5 = vsub.f32 %v14047_v44, %v12183_v62 }
 0x529   :  { %v7618_v56 = vpack.c.bf16 %v5979_v58, %v5978_v20  ;;  %v4647_v46 = vmul.f32 1.442695, %v4471_v34  ;;  %v4613_v34 = vmul.f32 1.442695, %v4454_v57  ;;  %v14048_v20 = vld [vmem:[#allocation119_spill] sm:$0xff] }
 0x52a   :  { %v4456_v58 = vsub.f32 %v14048_v20, %v12112_v36  ;;  %v4663_v6 = vmul.f32 1.442695, %v4479_v5 }
 0x52b   :  { %5040 = vperm.xlu1 %7798, %v8101_v9   ;;  %v4473_v9 = vsub.f32 %v14041_v42, %v12183_v62  ;;  %7619 = vmatpush3.bf16.msra.mxu1 %v7618_v56  ;;  %8128 = vpow2.f32 %v4647_v46  ;;  %v14050_v56 = vld [vmem:[#allocation51_spill] sm:$0xff] }
 0x52c   :  { %4974 = vperm.xlu0 %7797, %v8103_v17   ;;  %v5980_v17 = vld [vmem:[%s13298_s3 + $0x70] sm:$0xff]  ;;  %v8119_v2 = vpop.eup %8118  ;;  %7620 = vmatprep.subr.bf16.mxu1 %v8327_v39  ;;  %8130 = vpow2.f32 %v4601_v27  ;;  %v4458_v46 = vsub.f32 %v14050_v56, %v12112_v36 }
 0x52d   :  { %v7621_v38 = vpack.c.bf16 %v5981_v31, %v5980_v17  ;;  %v4651_v48 = vmul.f32 1.442695, %v4473_v9  ;;  %v8121_v3 = vpop.eup %8120  ;;  %v14051_v31 = vld [vmem:[#allocation57_spill] sm:$0xff] }
 0x52e   :  { %v8123_v29 = vpop.eup %8122  ;;  %v4483_v27 = vsub.f32 %v14051_v31, %v12183_v62  ;;  %v4621_v50 = vmul.f32 1.442695, %v4458_v46 }
 0x52f   :  { %5046 = vperm.xlu1 %7798, %v8105_v10   ;;  %v4475_v10 = vsub.f32 %v14043_v40, %v12183_v62  ;;  %7622 = vmatpush3.bf16.msra.mxu1 %v7621_v38  ;;  %8132 = vpow2.f32 %v4651_v48  ;;  %v14053_v48 = vsub.s32 4, %v13930_v0 }
 0x530   :  { %4977 = vperm.xlu0 %7797, %v8107_v24   ;;  %v4605_v24 = vmul.f32 1.442695, %v4450_v13  ;;  %7623 = vmatprep.subr.bf16.mxu1 %v8327_v39  ;;  %v14052_v13 = vld [vmem:[#allocation27_spill] sm:$0xff] }
 0x531   :  { %v4655_v8 = vmul.f32 1.442695, %v4475_v10  ;;  %v12245_v40 = vrot.slane %v12062_v45, %v14053_v48  ;;  %v4671_v10 = vmul.f32 1.442695, %v4483_v27 }
 0x532   :  { %8134 = vpow2.f32 %v4605_v24  ;;  %v14054_v24 = vld [vmem:[#allocation59_spill] sm:$0xff] }
 0x533   :  { %5052 = vperm.xlu1 %7798, %v8109_v51   ;;  %v8125_v51 = vpop.eup %8124  ;;  %8136 = vpow2.f32 %v4655_v8  ;;  %v4485_v22 = vsub.f32 %v14054_v24, %v12183_v62 }
 0x534   :  { %4983 = vperm.xlu0 %7797, %v8111_v18   ;;  %v8127_v18 = vpop.eup %8126  ;;  %8138 = vpow2.f32 %v4609_v47  ;;  %v14056_v47 = vld [vmem:[#allocation61_spill] sm:$0xff] }
 0x535   :  { %v8129_v28 = vpop.eup %8128  ;;  %8140 = vpow2.f32 %v4659_v61  ;;  %v4675_v53 = vmul.f32 1.442695, %v4485_v22  ;;  %v4487_v33 = vsub.f32 %v14056_v47, %v12245_v40  ;;  %v14064_v22 = vld [vmem:[#allocation42_spill] sm:$0xff]  ;;  %v14066_v47 = vld [vmem:[#allocation73_spill] sm:$0xff] }
 0x536   :  { %v8131_v60 = vpop.eup %8130  ;;  %8142 = vpow2.f32 %v4613_v34  ;;  %v14058_v34 = vld [vmem:[#allocation63_spill] sm:$0xff] }
 0x537   :  { %5058 = vperm.xlu1 %7798, %v8113_v12   ;;  %v4481_v12 = vsub.f32 %v14049_v1, %v12183_v62  ;;  %8144 = vpow2.f32 %v4663_v6  ;;  %v4679_v5 = vmul.f32 1.442695, %v4487_v33  ;;  %v4489_v20 = vsub.f32 %v14058_v34, %v12245_v40  ;;  %v14068_v34 = vld [vmem:[#allocation122_spill] sm:$0xff] }
 0x538   :  { %4989 = vperm.xlu0 %7797, %v8115_v63   ;;  %v4617_v63 = vmul.f32 1.442695, %v4456_v58  ;;  %v4497_v33 = vsub.f32 %v14066_v47, %v12245_v40 }
 0x539   :  { %v8133_v42 = vpop.eup %8132  ;;  %v4667_v17 = vmul.f32 1.442695, %v4481_v12  ;;  %v4683_v12 = vmul.f32 1.442695, %v4489_v20  ;;  %v4499_v20 = vsub.f32 %v14068_v34, %v12245_v40 }
 0x53a   :  { %8146 = vpow2.f32 %v4617_v63  ;;  %v14060_v63 = vld [vmem:[#allocation65_spill] sm:$0xff] }
 0x53b   :  { %5064 = vperm.xlu1 %7798, %v8117_v43   ;;  %v4460_v43 = vsub.f32 %v14052_v13, %v12112_v36  ;;  %8148 = vpow2.f32 %v4667_v17  ;;  %v4491_v56 = vsub.f32 %v14060_v63, %v12245_v40 }
 0x53c   :  { %4995 = vperm.xlu0 %7797, %v8119_v2   ;;  %v8135_v9 = vpop.eup %8134  ;;  %8150 = vpow2.f32 %v4621_v50  ;;  %v14062_v50 = vld [vmem:[#allocation67_spill] sm:$0xff] }
 0x53d   :  { %v8137_v2 = vpop.eup %8136  ;;  %v4625_v54 = vmul.f32 1.442695, %v4460_v43  ;;  %8152 = vpow2.f32 %v4671_v10  ;;  %v4687_v27 = vmul.f32 1.442695, %v4491_v56  ;;  %v4493_v13 = vsub.f32 %v14062_v50, %v12245_v40 }
 0x53e   :  { %v8139_v38 = vpop.eup %8138  ;;  %v4703_v56 = vmul.f32 1.442695, %v4499_v20 }
 0x53f   :  { %5070 = vperm.xlu1 %7798, %v8121_v3   ;;  %v14055_v3 = vld [vmem:[#allocation28_spill] sm:$0xff]  ;;  %v8141_v8 = vpop.eup %8140  ;;  %8154 = vpow2.f32 %v4625_v54  ;;  %v4691_v24 = vmul.f32 1.442695, %v4493_v13  ;;  %v4495_v54 = vsub.f32 %v14064_v22, %v12245_v40 }
 0x540   :  { %5001 = vperm.xlu0 %7797, %v8123_v29   ;;  %v4462_v29 = vsub.f32 %v14055_v3, %v12112_v36  ;;  %v8143_v52 = vpop.eup %8142  ;;  %8156 = vpow2.f32 %v4675_v53 }
 0x541   :  { %v8145_v61 = vpop.eup %8144 }
 0x542   :  { %v4629_v57 = vmul.f32 1.442695, %v4462_v29  ;;  %v14065_v29 = vld [vmem:[#allocation37_spill] sm:$0xff] }
 0x543   :  { %5076 = vperm.xlu1 %7798, %v8125_v51   ;;  %v14057_v51 = vld [vmem:[#allocation30_spill] sm:$0xff] }
 0x544   :  { %5007 = vperm.xlu0 %7797, %v8127_v18   ;;  %v4464_v18 = vsub.f32 %v14057_v51, %v12112_v36  ;;  %v8147_v44 = vpop.eup %8146  ;;  %8158 = vpow2.f32 %v4629_v57  ;;  %v14067_v51 = vld [vmem:[#allocation38_spill] sm:$0xff] }
 0x545   :  { %v8149_v6 = vpop.eup %8148  ;;  %8160 = vpow2.f32 %v4679_v5  ;;  %v4699_v5 = vmul.f32 1.442695, %v4497_v33 }
 0x546   :  { %v4633_v58 = vmul.f32 1.442695, %v4464_v18  ;;  %v8151_v1 = vpop.eup %8150  ;;  %v4474_v18 = vsub.f32 %v14067_v51, %v12183_v62 }
 0x547   :  { %5082 = vperm.xlu1 %7798, %v8129_v28   ;;  %v14059_v28 = vld [vmem:[#allocation32_spill] sm:$0xff]  ;;  %v8153_v17 = vpop.eup %8152 }
 0x548   :  { %5013 = vperm.xlu0 %7797, %v8131_v60   ;;  %v4466_v60 = vsub.f32 %v14059_v28, %v12112_v36  ;;  %8162 = vpow2.f32 %v4633_v58  ;;  %v4653_v58 = vmul.f32 1.442695, %v4474_v18  ;;  %v14069_v28 = vld [vmem:[#allocation40_spill] sm:$0xff] }
 0x549   :  { %v8155_v31 = vpop.eup %8154  ;;  %8164 = vpow2.f32 %v4683_v12  ;;  %v14070_v12 = vsub.s32 5, %v13930_v0 }
 0x54a   :  { %v4637_v46 = vmul.f32 1.442695, %v4466_v60  ;;  %v8157_v48 = vpop.eup %8156  ;;  %v4476_v60 = vsub.f32 %v14069_v28, %v12183_v62 }
 0x54b   :  { %5088 = vperm.xlu1 %7798, %v8133_v42   ;;  %v14061_v42 = vld [vmem:[#allocation33_spill] sm:$0xff]  ;;  %v12282_v63 = vrot.slane %v12062_v45, %v14070_v12  ;;  %v14080_v12 = vld [vmem:[#allocation52_spill] sm:$0xff] }
 0x54c   :  { %5019 = vperm.xlu0 %7797, %v8135_v9   ;;  %v4468_v9 = vsub.f32 %v14061_v42, %v12112_v36  ;;  %8166 = vpow2.f32 %v4637_v46  ;;  %v14071_v46 = vld [vmem:[#allocation123_spill] sm:$0xff] }
 0x54d   :  { %8168 = vpow2.f32 %v4687_v27  ;;  %v4501_v42 = vsub.f32 %v14071_v46, %v12245_v40 }
 0x54e   :  { %v4641_v43 = vmul.f32 1.442695, %v4468_v9  ;;  %v8159_v10 = vpop.eup %8158  ;;  %v4657_v9 = vmul.f32 1.442695, %v4476_v60  ;;  %v14079_v60 = vld [vmem:[#allocation101_spill] sm:$0xff] }
 0x54f   :  { %5094 = vperm.xlu1 %7798, %v8137_v2   ;;  %v14063_v2 = vld [vmem:[#allocation35_spill] sm:$0xff]  ;;  %v4707_v13 = vmul.f32 1.442695, %v4501_v42 }
 0x550   :  { %5025 = vperm.xlu0 %7797, %v8139_v38   ;;  %v4470_v38 = vsub.f32 %v14063_v2, %v12112_v36  ;;  %8170 = vpow2.f32 %v4641_v43  ;;  %v4695_v36 = vmul.f32 1.442695, %v4495_v54  ;;  %v14073_v43 = vld [vmem:[#allocation124_spill] sm:$0xff] }
 0x551   :  { %8172 = vpow2.f32 %v4691_v24  ;;  %v4503_v2 = vsub.f32 %v14073_v43, %v12282_v63  ;;  %v14082_v43 = vld [vmem:[#allocation125_spill] sm:$0xff] }
 0x552   :  { %v4645_v3 = vmul.f32 1.442695, %v4470_v38 }
 0x553   :  { %5100 = vperm.xlu1 %7798, %v8141_v8   ;;  %v4472_v8 = vsub.f32 %v14065_v29, %v12183_v62  ;;  %v4711_v54 = vmul.f32 1.442695, %v4503_v2  ;;  %v4488_v2 = vsub.f32 %v14082_v43, %v12245_v40 }
 0x554   :  { %5031 = vperm.xlu0 %7797, %v8143_v52   ;;  %v8161_v52 = vpop.eup %8160  ;;  %8174 = vpow2.f32 %v4645_v3  ;;  %v14075_v3 = vld [vmem:[#allocation81_spill] sm:$0xff] }
 0x555   :  { %v8163_v53 = vpop.eup %8162  ;;  %v4649_v57 = vmul.f32 1.442695, %v4472_v8  ;;  %8176 = vpow2.f32 %v4695_v36  ;;  %v4505_v29 = vsub.f32 %v14075_v3, %v12282_v63  ;;  %v4681_v3 = vmul.f32 1.442695, %v4488_v2 }
 0x557   :  { %5106 = vperm.xlu1 %7798, %v8145_v61   ;;  %v8165_v61 = vpop.eup %8164  ;;  %8178 = vpow2.f32 %v4649_v57  ;;  %v4715_v33 = vmul.f32 1.442695, %v4505_v29  ;;  %v14077_v57 = vld [vmem:[#allocation54_spill] sm:$0xff]  ;;  %v14084_v29 = vld [vmem:[#allocation83_spill] sm:$0xff] }
 0x558   :  { %5037 = vperm.xlu0 %7797, %v8147_v44   ;;  %v8167_v44 = vpop.eup %8166  ;;  %8180 = vpow2.f32 %v4699_v5  ;;  %v4507_v51 = vsub.f32 %v14077_v57, %v12282_v63  ;;  %v14085_v57 = vld [vmem:[#allocation150_spill] sm:$0xff] }
 0x559   :  { %8182 = vpow2.f32 %v4653_v58 }
 0x55a   :  { %8184 = vpow2.f32 %v4703_v56  ;;  %v4719_v28 = vmul.f32 1.442695, %v4507_v51  ;;  %v4486_v56 = vsub.f32 %v14080_v12, %v12183_v62  ;;  %v4515_v51 = vsub.f32 %v14085_v57, %v12282_v63  ;;  %v14092_v57 = vld [vmem:[#allocation127_spill] sm:$0xff] }
 0x55b   :  { %5112 = vperm.xlu1 %7798, %v8149_v6   ;;  %v8169_v6 = vpop.eup %8168  ;;  %8186 = vpow2.f32 %v4657_v9 }
 0x55c   :  { %5043 = vperm.xlu0 %7797, %v8151_v1   ;;  %v8171_v1 = vpop.eup %8170  ;;  %8188 = vpow2.f32 %v4707_v13  ;;  %v4677_v13 = vmul.f32 1.442695, %v4486_v56  ;;  %v4735_v12 = vmul.f32 1.442695, %v4515_v51  ;;  %v14088_v56 = vld [vmem:[#allocation12_spill] sm:$0xff] }
 0x55d   :  { %v8173_v27 = vpop.eup %8172 }
 0x55e   :  { %v8175_v50 = vpop.eup %8174 }
 0x55f   :  { %5118 = vperm.xlu1 %7798, %v8153_v17   ;;  %v14072_v17 = vld [vmem:[#allocation71_spill] sm:$0xff]  ;;  %v8177_v24 = vpop.eup %8176 }
 0x560   :  { %5049 = vperm.xlu0 %7797, %v8155_v31   ;;  %v4478_v31 = vsub.f32 %v14072_v17, %v12183_v62 }
 0x561   :  { %v8179_v22 = vpop.eup %8178 }
 0x562   :  { %v4661_v38 = vmul.f32 1.442695, %v4478_v31  ;;  %v8181_v36 = vpop.eup %8180 }
 0x563   :  { %5124 = vperm.xlu1 %7798, %v8157_v48   ;;  %v14074_v48 = vld [vmem:[#allocation46_spill] sm:$0xff]  ;;  %v8183_v47 = vpop.eup %8182 }
 0x564   :  { %5055 = vperm.xlu0 %7797, %v8159_v10   ;;  %v4480_v10 = vsub.f32 %v14074_v48, %v12183_v62  ;;  %8190 = vpow2.f32 %v4661_v38  ;;  %v8185_v5 = vpop.eup %8184 }
 0x565   :  { %8192 = vpow2.f32 %v4711_v54  ;;  %v8187_v20 = vpop.eup %8186 }
 0x566   :  { %v4665_v8 = vmul.f32 1.442695, %v4480_v10  ;;  %v8189_v46 = vpop.eup %8188 }
 0x567   :  { %5130 = vperm.xlu1 %7798, %v8161_v52   ;;  %v14076_v52 = vld [vmem:[#allocation48_spill] sm:$0xff] }
 0x568   :  { %5061 = vperm.xlu0 %7797, %v8163_v53   ;;  %v4482_v53 = vsub.f32 %v14076_v52, %v12183_v62  ;;  %8194 = vpow2.f32 %v4665_v8  ;;  %v4490_v8 = vsub.f32 %v14084_v29, %v12245_v40 }
 0x569   :  { %8196 = vpow2.f32 %v4715_v33 }
 0x56a   :  { %v4669_v18 = vmul.f32 1.442695, %v4482_v53 }
 0x56b   :  { %5136 = vperm.xlu1 %7798, %v8165_v61   ;;  %v14078_v61 = vld [vmem:[#allocation50_spill] sm:$0xff] }
 0x56c   :  { %5067 = vperm.xlu0 %7797, %v8167_v44   ;;  %v4484_v44 = vsub.f32 %v14078_v61, %v12183_v62  ;;  %8198 = vpow2.f32 %v4669_v18  ;;  %v4685_v18 = vmul.f32 1.442695, %v4490_v8  ;;  %v14086_v61 = vld [vmem:[#allocation85_spill] sm:$0xff] }
 0x56d   :  { %8200 = vpow2.f32 %v4719_v28 }
 0x56e   :  { %v8191_v9 = vpop.eup %8190 }
 0x56f   :  { %5142 = vperm.xlu1 %7798, %v8169_v6   ;;  %v4509_v6 = vsub.f32 %v14079_v60, %v12282_v63  ;;  %v8193_v38 = vpop.eup %8192 }
 0x570   :  { %5073 = vperm.xlu0 %7797, %v8171_v1   ;;  %v4673_v1 = vmul.f32 1.442695, %v4484_v44  ;;  %v4492_v44 = vsub.f32 %v14086_v61, %v12245_v40  ;;  %v14093_v61 = vld [vmem:[#allocation99_spill] sm:$0xff] }
 0x571   :  { %v4723_v31 = vmul.f32 1.442695, %v4509_v6  ;;  %v14087_v6 = vsub.s32 6, %v13930_v0 }
 0x572   :  { %8202 = vpow2.f32 %v4673_v1  ;;  %v8195_v48 = vpop.eup %8194 }
 0x573   :  { %5148 = vperm.xlu1 %7798, %v8173_v27   ;;  %v14081_v27 = vld [vmem:[#allocation103_spill] sm:$0xff]  ;;  %8204 = vpow2.f32 %v4723_v31  ;;  %v8197_v52 = vpop.eup %8196  ;;  %v12339_v1 = vrot.slane %v12062_v45, %v14087_v6  ;;  %v14089_v31 = vld [vmem:[#allocation58_spill] sm:$0xff] }
 0x574   :  { %5079 = vperm.xlu0 %7797, %v8175_v50   ;;  %v4511_v50 = vsub.f32 %v14081_v27, %v12282_v63  ;;  %8206 = vpow2.f32 %v4677_v13  ;;  %v4494_v27 = vsub.f32 %v14089_v31, %v12245_v40 }
 0x575   :  { %v4521_v51 = vsub.f32 %v14092_v57, %v12339_v1 }
 0x577   :  { %5154 = vperm.xlu1 %7798, %v8177_v24   ;;  %v4727_v24 = vmul.f32 1.442695, %v4511_v50 }
 0x578   :  { %5085 = vperm.xlu0 %7797, %v8179_v22   ;;  %v14083_v22 = vld [vmem:[#allocation10_spill] sm:$0xff] }
 0x579   :  { %v4513_v54 = vsub.f32 %v14083_v22, %v12282_v63  ;;  %8208 = vpow2.f32 %v4727_v24  ;;  %v4693_v22 = vmul.f32 1.442695, %v4494_v27  ;;  %v14095_v27 = vld [vmem:[#allocation130_spill] sm:$0xff] }
 0x57a   :  { %8210 = vpow2.f32 %v4681_v3 }
 0x57b   :  { %5160 = vperm.xlu1 %7798, %v8181_v36   ;;  %v8199_v36 = vpop.eup %8198  ;;  %v4731_v33 = vmul.f32 1.442695, %v4513_v54  ;;  %v14091_v54 = vld [vmem:[#allocation128_spill] sm:$0xff] }
 0x57c   :  { %5091 = vperm.xlu0 %7797, %v8183_v47   ;;  %v4496_v3 = vsub.f32 %v14091_v54, %v12245_v40 }
 0x57d   :  { %8212 = vpow2.f32 %v4731_v33 }
 0x57e   :  { %v12300_v34 = vpop.permute.xlu1 %4962  ;;  %8214 = vpow2.f32 %v4685_v18  ;;  %v4697_v18 = vmul.f32 1.442695, %v4496_v3 }
 0x57f   :  { %v12302_v58 = vpop.permute.xlu0 %4938  ;;  %5166 = vperm.xlu1 %7798, %v8185_v5   ;;  %v8201_v5 = vpop.eup %8200  ;;  %8216 = vpow2.f32 %v4735_v12 }
 0x580   :  { %5097 = vperm.xlu0 %7797, %v8187_v20   ;;  %v8203_v28 = vpop.eup %8202 }
 0x581   :  { %v8205_v50 = vpop.eup %8204 }
 0x582   :  { %v12308_v42 = vpop.permute.xlu1 %4980  ;;  %v8207_v43 = vpop.eup %8206 }
 0x583   :  { %v12310_v17 = vpop.permute.xlu0 %4941  ;;  %5172 = vperm.xlu1 %7798, %v8189_v46   ;;  %v4517_v46 = vsub.f32 %v14088_v56, %v12282_v63  ;;  %v8209_v29 = vpop.eup %8208  ;;  %v4747_v56 = vmul.f32 1.442695, %v4521_v51  ;;  %v14098_v51 = vld [vmem:[#allocation66_spill] sm:$0xff] }
 0x584   :  { %5103 = vperm.xlu0 %7797, %v8191_v9   ;;  %v4689_v9 = vmul.f32 1.442695, %v4492_v44  ;;  %v4498_v44 = vsub.f32 %v14093_v61, %v12245_v40 }
 0x586   :  { %v12316_v62 = vpop.permute.xlu1 %4986  ;;  %8218 = vpow2.f32 %v4689_v9  ;;  %v4701_v31 = vmul.f32 1.442695, %v4498_v44  ;;  %v14099_v44 = vld [vmem:[#allocation190_spill] sm:$0xff] }
 0x587   :  { %v12318_v10 = vpop.permute.xlu0 %4944  ;;  %5178 = vperm.xlu1 %7798, %v8193_v38   ;;  %v4739_v38 = vmul.f32 1.442695, %v4517_v46  ;;  %v14094_v46 = vld [vmem:[#allocation96_spill] sm:$0xff] }
 0x588   :  { %5109 = vperm.xlu0 %7797, %v8195_v48   ;;  %v14090_v48 = vld [vmem:[#allocation56_spill] sm:$0xff]  ;;  %v4523_v9 = vsub.f32 %v14094_v46, %v12339_v1 }
 0x589   :  { %v4519_v24 = vsub.f32 %v14090_v48, %v12339_v1  ;;  %8220 = vpow2.f32 %v4739_v38 }
 0x58a   :  { %v12324_v53 = vpop.permute.xlu1 %4992  ;;  %8222 = vpow2.f32 %v4693_v22  ;;  %v14096_v22 = vld [vmem:[#allocation6_spill] sm:$0xff]  ;;  %v4751_v3 = vmul.f32 1.442695, %v4523_v9 }
 0x58b   :  { %v12326_v47 = vpop.permute.xlu0 %4947  ;;  %5184 = vperm.xlu1 %7798, %v8197_v52   ;;  %v8211_v52 = vpop.eup %8210  ;;  %v4743_v33 = vmul.f32 1.442695, %v4519_v24  ;;  %v5328_v54 = vrot.slane %v12310_v17, %v14096_v22 }
 0x58c   :  { %5115 = vperm.xlu0 %7797, %v8199_v36   ;;  %v5338_v17 = vrot.slane %v12326_v47, %v11565_v16 }
 0x58d   :  { %8224 = vpow2.f32 %v4743_v33  ;;  %v5333_v33 = vrot.slane %v12318_v10, %v11560_v59  ;;  %v14100_v10 = vld [vmem:[#allocation86_spill] sm:$0xff] }
 0x58e   :  { %v12332_v20 = vpop.permute.xlu1 %4998  ;;  %8226 = vpow2.f32 %v4697_v18  ;;  %v4502_v18 = vsub.f32 %v14098_v51, %v12245_v40 }
 0x58f   :  { %v12334_v60 = vpop.permute.xlu0 %4950  ;;  %5190 = vperm.xlu1 %7798, %v8201_v5   ;;  %v8213_v5 = vpop.eup %8212  ;;  %8228 = vpow2.f32 %v4747_v56 }
 0x590   :  { %5121 = vperm.xlu0 %7797, %v8203_v28   ;;  %v8215_v6 = vpop.eup %8214  ;;  %8230 = vpow2.f32 %v4701_v31  ;;  %v5343_v46 = vrot.slane %v12334_v60, %v11569_v11  ;;  %v4527_v31 = vsub.f32 %v14100_v10, %v12339_v1 }
 0x591   :  { %8232 = vpow2.f32 %v4751_v3  ;;  %v14102_v3 = vld [vmem:[#allocation17_spill] sm:$0xff] }
 0x592   :  { %v12345_v13 = vpop.permute.xlu1 %5004 }
 0x593   :  { %v12347_v2 = vpop.permute.xlu0 %4953  ;;  %5196 = vperm.xlu1 %7798, %v8205_v50   ;;  %v4500_v50 = vsub.f32 %v14095_v27, %v12245_v40  ;;  %v14101_v40 = vld [vmem:[#allocation92_spill] sm:$0xff] }
 0x594   :  { %5127 = vperm.xlu0 %7797, %v8207_v43   ;;  %v8217_v43 = vpop.eup %8216  ;;  %v4504_v27 = vsub.f32 %v14101_v40, %v12282_v63 }
 0x595   :  { %v8219_v48 = vpop.eup %8218  ;;  %v4705_v57 = vmul.f32 1.442695, %v4500_v50 }
 0x596   :  { %v12353_v8 = vpop.permute.xlu1 %5010  ;;  %v8221_v61 = vpop.eup %8220 }
 0x597   :  { %v12355_v36 = vpop.permute.xlu0 %4956  ;;  %5202 = vperm.xlu1 %7798, %v8209_v29   ;;  %v14097_v29 = vld [vmem:[#allocation84_spill] sm:$0xff]  ;;  %v8223_v56 = vpop.eup %8222  ;;  %8234 = vpow2.f32 %v4705_v57  ;;  %v14103_v57 = vld [vmem:[#allocation70_spill] sm:$0xff] }
 0x598   :  { %5133 = vperm.xlu0 %7797, %v8211_v52   ;;  %v4525_v52 = vsub.f32 %v14097_v29, %v12339_v1  ;;  %v5353_v60 = vrot.slane %v12355_v36, %v11572_v26  ;;  %v8225_v29 = vpop.eup %8224  ;;  %v4759_v36 = vmul.f32 1.442695, %v4527_v31 }
 0x59a   :  { %v12361_v28 = vpop.permute.xlu1 %5016  ;;  %v4755_v47 = vmul.f32 1.442695, %v4525_v52  ;;  %v4529_v52 = vsub.f32 %v14102_v3, %v12339_v1 }
 0x59b   :  { %v4960_v12 = vpop.permute.xlu0 %4959  ;;  %5208 = vperm.xlu1 %7798, %v8213_v5   ;;  %v5324_v5 = vrot.slane %v12302_v58, %v14099_v44  ;;  %v5348_v58 = vrot.slane %v12347_v2, %v11601_v55 }
 0x59c   :  { %5139 = vperm.xlu0 %7797, %v8215_v6   ;;  %8236 = vpow2.f32 %v4755_v47 }
 0x59d   :  { %v5329_v50 = vsel %vm3700_vm4, %v5328_v54, %v5324_v5  ;;  %v8227_v54 = vpop.eup %8226 }
 0x59e   :  { %v12367_v38 = vpop.permute.xlu1 %5022 }
 0x59f   :  { %v12369_v24 = vpop.permute.xlu0 %4965  ;;  %5214 = vperm.xlu1 %7798, %v8217_v43   ;;  %v5334_v43 = vsel %vm3707_vm5, %v5333_v33, %v5329_v50 }
 0x5a0   :  { %5145 = vperm.xlu0 %7797, %v8219_v48   ;;  %v4709_v48 = vmul.f32 1.442695, %v4502_v18  ;;  %v5339_v51 = vsel %vm3714_vm6, %v5338_v17, %v5334_v43  ;;  %v4506_v18 = vsub.f32 %v14103_v57, %v12282_v63  ;;  %v4713_v17 = vmul.f32 1.442695, %v4504_v27 }
 0x5a1   :  { %v5344_v2 = vsel %vm3721_vm7, %v5343_v46, %v5339_v51  ;;  %v5368_v40 = vrot.slane %v12369_v24, %v11635_v19 }
 0x5a2   :  { %v12383_v6 = vpop.permute.xlu1 %5028  ;;  %v5349_v33 = vsel %vm3728_vm8, %v5348_v58, %v5344_v2  ;;  %8238 = vpow2.f32 %v4709_v48  ;;  %v5363_v58 = vrot.slane %v12300_v34, %v11579_v37  ;;  %v4717_v51 = vmul.f32 1.442695, %v4506_v18  ;;  %v14106_v34 = vld [vmem:[#allocation134_spill] sm:$0xff] }
 0x5a3   :  { %v4969_v9 = vpop.permute.xlu0 %4968  ;;  %5220 = vperm.xlu1 %7798, %v8221_v61   ;;  %v5358_v61 = vrot.slane %v4960_v12, %v11615_v4  ;;  %v5354_v12 = vsel %vm14104_vm9, %v5353_v60, %v5349_v33  ;;  %v14105_v60 = vld [vmem:[#allocation18_spill] sm:$0xff]  ;;  %8240 = vpow2.f32 %v4759_v36  ;;  %vm14108_vm9 = vcmask 720512  }
 0x5a4   :  { %5151 = vperm.xlu0 %7797, %v8223_v56   ;;  %v8229_v56 = vpop.eup %8228  ;;  %v5373_v31 = vrot.slane %v4969_v9, %v11582_v30  ;;  %v4531_v48 = vsub.f32 %v14105_v60, %v12339_v1  ;;  %8242 = vpow2.f32 %v4713_v17 }
 0x5a5   :  { %v5359_v46 = vsel %vm3742_vm10, %v5358_v61, %v5354_v12  ;;  %v8231_v43 = vpop.eup %8230 }
 0x5a6   :  { %v12399_v10 = vpop.permute.xlu1 %5034  ;;  %v5364_v24 = vsel %vm3749_vm11, %v5363_v58, %v5359_v46  ;;  %v8233_v9 = vpop.eup %8232  ;;  %v4767_v18 = vmul.f32 1.442695, %v4531_v48  ;;  %v14112_v58 = vld [vmem:[#allocation68_spill] sm:$0xff] }
 0x5a7   :  { %v4972_v5 = vpop.permute.xlu0 %4971  ;;  %5226 = vperm.xlu1 %7798, %v8225_v29   ;;  %v4763_v29 = vmul.f32 1.442695, %v4529_v52  ;;  %v5369_v2 = vsel %vm3756_vm12, %v5368_v40, %v5364_v24  ;;  %v8235_v33 = vpop.eup %8234 }
 0x5a8   :  { %5157 = vperm.xlu0 %7797, %v8227_v54   ;;  %v5378_v27 = vrot.slane %v4972_v5, %v11666_v35  ;;  %v4508_v54 = vsub.f32 %v14106_v34, %v12282_v63  ;;  %v14107_v5 = vsub.s32 7, %v13930_v0  ;;  %v5374_v52 = vsel %vm14108_vm9, %v5373_v31, %v5369_v2  ;;  %v5982_v0 = vld [vmem:[%s13298_s3 + $0x80] sm:$0xff] }
 0x5a9   :  { %8244 = vpow2.f32 %v4763_v29  ;;  %v4510_v31 = vsub.f32 %v14112_v58, %v12282_v63  ;;  %v5393_v29 = vrot.slane %v12308_v42, %v11590_v25  ;;  %v5985_v42 = vld [vmem:[%s13298_s3 + $0x98] sm:$0xff] }
 0x5aa   :  { %v12411_v50 = vpop.permute.xlu1 %5040  ;;  %v12429_v36 = vrot.slane %v12062_v45, %v14107_v5  ;;  %v5379_v12 = vsel %vm14109_vm13, %v5378_v27, %v5374_v52  ;;  %v5983_v45 = vld [vmem:[%s13298_s3 + $0x88] sm:$0xff]  ;;  %8246 = vpow2.f32 %v4717_v51  ;;  %v14114_v52 = vld [vmem:[#allocation72_spill] sm:$0xff]  ;;  %vm14122_vm13 = vcmask 458112  }
 0x5ab   :  { %v4975_v47 = vpop.permute.xlu0 %4974  ;;  %5232 = vperm.xlu1 %7798, %v8229_v56   ;;  %v14110_v56 = vld [vmem:[#allocation45_spill] sm:$0xff]  ;;  %8248 = vpow2.f32 %v4767_v18  ;;  %v4725_v5 = vmul.f32 1.442695, %v4510_v31 }
 0x5ac   :  { %5163 = vperm.xlu0 %7797, %v8231_v43   ;;  %v5383_v61 = vrot.slane %v4975_v47, %v11585_v7  ;;  %v4533_v46 = vsub.f32 %v14110_v56, %v12339_v1  ;;  %v4721_v43 = vmul.f32 1.442695, %v4508_v54  ;;  %v8237_v47 = vpop.eup %8236  ;;  %v7624_v54 = vpack.c.bf16 %v5983_v45, %v5982_v0  ;;  %v14115_v0 = vld [vmem:[#allocation60_spill] sm:$0xff] }
 0x5ad   :  { %v8239_v27 = vpop.eup %8238  ;;  %v4537_v45 = vsub.f32 %v14115_v0, %v12429_v36 }
 0x5ae   :  { %v12424_v3 = vpop.permute.xlu1 %5046  ;;  %v5384_v40 = vsel %vm14111_vm14, %v5383_v61, %v5379_v12  ;;  %v14113_v61 = vld [vmem:[#allocation74_spill] sm:$0xff]  ;;  %8250 = vpow2.f32 %v4721_v43  ;;  %v8241_v12 = vpop.eup %8240  ;;  %v5403_v43 = vrot.slane %v12316_v62, %v14099_v44  ;;  %v14116_v62 = vld [vmem:[#allocation88_spill] sm:$0xff]  ;;  %vm14127_vm14 = vmmov %vm14108_vm9  ;;  %vm14129_vm9 = vcmask 786112  }
 0x5af   :  { %v4978_v57 = vpop.permute.xlu0 %4977  ;;  %5238 = vperm.xlu1 %7798, %v8233_v9   ;;  %v4535_v34 = vsub.f32 %v14113_v61, %v12429_v36  ;;  %v4771_v9 = vmul.f32 1.442695, %v4533_v46  ;;  %v8243_v56 = vpop.eup %8242 }
 0x5b0   :  { %v5388_v17 = vrot.slane %v4978_v57, %v11676_v41  ;;  %5169 = vperm.xlu0 %7797, %v8235_v33   ;;  %v5984_v33 = vld [vmem:[%s13298_s3 + $0x90] sm:$0xff]  ;;  %v4512_v57 = vsub.f32 %v14114_v52, %v12282_v63 }
 0x5b1   :  { %v7627_v31 = vpack.c.bf16 %v5985_v42, %v5984_v33  ;;  %8252 = vpow2.f32 %v4771_v9 }
 0x5b2   :  { %v12445_v60 = vpop.permute.xlu1 %5052  ;;  %v5389_v48 = vsel %vm3784_vm0, %v5388_v17, %v5384_v40  ;;  %v4775_v40 = vmul.f32 1.442695, %v4535_v34  ;;  %8254 = vpow2.f32 %v4725_v5  ;;  %v14117_v5 = vld [vmem:[#allocation98_spill] sm:$0xff] }
 0x5b3   :  { %v4984_v24 = vpop.permute.xlu0 %4983  ;;  %5244 = vperm.xlu1 %7798, %v8237_v47   ;;  %v5394_v2 = vsel %vm3791_vm1, %v5393_v29, %v5389_v48  ;;  %v5986_v47 = vld [vmem:[%s13298_s3 + $0xa0] sm:$0xff]  ;;  %v5987_v48 = vld [vmem:[%s13298_s3 + $0xa8] sm:$0xff]  ;;  %v4514_v29 = vsub.f32 %v14116_v62, %v12282_v63  ;;  %v4539_v52 = vsub.f32 %v14117_v5, %v12429_v36 }
 0x5b4   :  { %v5398_v51 = vrot.slane %v4984_v24, %v11750_v32  ;;  %5175 = vperm.xlu0 %7797, %v8239_v27   ;;  %v4729_v27 = vmul.f32 1.442695, %v4512_v57  ;;  %v8245_v24 = vpop.eup %8244  ;;  %v7630_v42 = vpack.c.bf16 %v5987_v48, %v5986_v47  ;;  %8256 = vpow2.f32 %v4775_v40  ;;  %v14119_v48 = vld [vmem:[#allocation104_spill] sm:$0xff] }
 0x5b5   :  { %v4541_v62 = vsub.f32 %v14119_v48, %v12429_v36 }
 0x5b6   :  { %v12462_v17 = vpop.permute.xlu1 %5058  ;;  %v12465_v18 = vsel %vm3798_vm2, %v5398_v51, %v5394_v2  ;;  %v8247_v51 = vpop.eup %8246  ;;  %v4779_v2 = vmul.f32 1.442695, %v4537_v45  ;;  %8258 = vpow2.f32 %v4729_v27 }
 0x5b7   :  { %7352 = vmatmul.mubr.f32.vlgmr.msra.gmra.mrb[0].mxu1 %v12465_v18  ;;  %v4990_v46 = vpop.permute.xlu0 %4989  ;;  %5250 = vperm.xlu1 %7798, %v8241_v12   ;;  %v5989_v12 = vld [vmem:[%s13298_s3 + $0xb8] sm:$0xff]  ;;  %v8249_v0 = vpop.eup %8248 }
 0x5b8   :  { %v5407_v58 = vrot.slane %v4990_v46, %v14096_v22  ;;  %5181 = vperm.xlu0 %7797, %v8243_v56   ;;  %7625 = vmatpush3.bf16.msra.mxu1 %v7624_v54  ;;  %v5412_v54 = vrot.slane %v12324_v53, %v11560_v59  ;;  %v5988_v53 = vld [vmem:[%s13298_s3 + $0xb0] sm:$0xff]  ;;  %v4733_v56 = vmul.f32 1.442695, %v4514_v29  ;;  %v14118_v46 = vld [vmem:[#allocation141_spill] sm:$0xff]  ;;  %8260 = vpow2.f32 %v4779_v2 }
 0x5b9   :  { %7626 = vmatprep.subr.bf16.mxu1 %v8327_v39  ;;  %7386 = vmatprep.mubr.msk.f32.mxu1 %vm8328_vm3, %v8326_v14  ;;  %v4516_v40 = vsub.f32 %v14118_v46, %v12282_v63  ;;  %v7633_v29 = vpack.c.bf16 %v5989_v12, %v5988_v53  ;;  %v14121_v12 = vld [vmem:[#allocation153_spill] sm:$0xff] }
 0x5ba   :  { %v5408_v61 = vsel %vm3700_vm4, %v5407_v58, %v5403_v43  ;;  %v12485_v34 = vpop.permute.xlu1 %5064  ;;  %v8251_v58 = vpop.eup %8250  ;;  %8262 = vpow2.f32 %v4733_v56  ;;  %v4543_v46 = vsub.f32 %v14121_v12, %v12429_v36 }
 0x5bb   :  { %v4996_v9 = vpop.permute.xlu0 %4995  ;;  %5256 = vperm.xlu1 %7798, %v8245_v24   ;;  %v5413_v57 = vsel %vm3707_vm5, %v5412_v54, %v5408_v61  ;;  %v4783_v24 = vmul.f32 1.442695, %v4539_v52  ;;  %v4737_v54 = vmul.f32 1.442695, %v4516_v40 }
 0x5bc   :  { %v5417_v33 = vrot.slane %v4996_v9, %v11565_v16  ;;  %5187 = vperm.xlu0 %7797, %v8247_v51   ;;  %7628 = vmatpush3.bf16.msra.mxu1 %v7627_v31  ;;  %v5422_v31 = vrot.slane %v12332_v20, %v11569_v11  ;;  %v5990_v20 = vld [vmem:[%s13298_s3 + $0xc0] sm:$0xff]  ;;  %v5991_v51 = vld [vmem:[%s13298_s3 + $0xc8] sm:$0xff]  ;;  %v14120_v9 = vld [vmem:[#allocation143_spill] sm:$0xff] }
 0x5bd   :  { %7629 = vmatprep.subr.bf16.mxu1 %v8327_v39  ;;  %v7636_v40 = vpack.c.bf16 %v5991_v51, %v5990_v20  ;;  %8264 = vpow2.f32 %v4783_v24  ;;  %v5442_v24 = vrot.slane %v12353_v8, %v11579_v37  ;;  %v4791_v20 = vmul.f32 1.442695, %v4543_v46  ;;  %v5994_v8 = vld [vmem:[%s13298_s3 + $0xe0] sm:$0xff] }
 0x5be   :  { %v5418_v45 = vsel %vm3714_vm6, %v5417_v33, %v5413_v57  ;;  %v12503_v43 = vpop.permute.xlu1 %5070  ;;  %v4518_v33 = vsub.f32 %v14120_v9, %v12282_v63  ;;  %v5432_v57 = vrot.slane %v12345_v13, %v11572_v26  ;;  %v4787_v63 = vmul.f32 1.442695, %v4541_v62  ;;  %v5992_v13 = vld [vmem:[%s13298_s3 + $0xd0] sm:$0xff]  ;;  %v14124_v9 = vld [vmem:[#allocation156_spill] sm:$0xff] }
 0x5bf   :  { %v5002_v47 = vpop.permute.xlu0 %5001  ;;  %5262 = vperm.xlu1 %7798, %v8249_v0   ;;  %v5423_v61 = vsel %vm3721_vm7, %v5422_v31, %v5418_v45  ;;  %v5993_v45 = vld [vmem:[%s13298_s3 + $0xd8] sm:$0xff]  ;;  %8266 = vpow2.f32 %v4737_v54 }
 0x5c0   :  { %v5427_v27 = vrot.slane %v5002_v47, %v11601_v55  ;;  %5193 = vperm.xlu0 %7797, %v8251_v58   ;;  %7631 = vmatpush3.bf16.msra.mxu1 %v7630_v42  ;;  %v8253_v42 = vpop.eup %8252  ;;  %v4741_v58 = vmul.f32 1.442695, %v4518_v33  ;;  %v14123_v31 = vld [vmem:[#allocation135_spill] sm:$0xff]  ;;  %v7639_v54 = vpack.c.bf16 %v5993_v45, %v5992_v13  ;;  %8268 = vpow2.f32 %v4787_v63  ;;  %v14126_v13 = vld [vmem:[#allocation158_spill] sm:$0xff] }
 0x5c1   :  { %7632 = vmatprep.subr.bf16.mxu1 %v8327_v39  ;;  %v8255_v52 = vpop.eup %8254  ;;  %v4520_v47 = vsub.f32 %v14123_v31, %v12339_v1  ;;  %v4545_v33 = vsub.f32 %v14124_v9, %v12429_v36  ;;  %v5452_v63 = vrot.slane %v12361_v28, %v11582_v30  ;;  %v4547_v45 = vsub.f32 %v14126_v13, %v12429_v36  ;;  %v5996_v28 = vld [vmem:[%s13298_s3 + $0xf0] sm:$0xff] }
 0x5c2   :  { %v5428_v2 = vsel %vm3728_vm8, %v5427_v27, %v5423_v61  ;;  %v12521_v5 = vpop.permute.xlu1 %5076  ;;  %v8257_v48 = vpop.eup %8256  ;;  %8270 = vpow2.f32 %v4741_v58 }
 0x5c3   :  { %v5008_v53 = vpop.permute.xlu0 %5007  ;;  %5268 = vperm.xlu1 %7798, %v8253_v42   ;;  %v5433_v0 = vsel %vm14122_vm13, %v5432_v57, %v5428_v2  ;;  %v5995_v2 = vld [vmem:[%s13298_s3 + $0xe8] sm:$0xff]  ;;  %v14125_v57 = vld [vmem:[#allocation76_spill] sm:$0xff]  ;;  %8272 = vpow2.f32 %v4791_v20  ;;  %vm14131_vm13 = vcmask 851712  }
 0x5c4   :  { %v5437_v56 = vrot.slane %v5008_v53, %v11615_v4  ;;  %5199 = vperm.xlu0 %7797, %v8255_v52   ;;  %7634 = vmatpush3.bf16.msra.mxu1 %v7633_v29  ;;  %v8259_v29 = vpop.eup %8258  ;;  %v4745_v52 = vmul.f32 1.442695, %v4520_v47  ;;  %v4522_v53 = vsub.f32 %v14125_v57, %v12339_v1  ;;  %v7642_v31 = vpack.c.bf16 %v5995_v2, %v5994_v8  ;;  %v14130_v8 = vld [vmem:[#allocation152_spill] sm:$0xff] }
 0x5c5   :  { %7635 = vmatprep.subr.bf16.mxu1 %v8327_v39  ;;  %v8261_v12 = vpop.eup %8260  ;;  %v4795_v47 = vmul.f32 1.442695, %v4545_v33  ;;  %v5462_v33 = vrot.slane %v12367_v38, %v11585_v7  ;;  %v4549_v2 = vsub.f32 %v14130_v8, %v12429_v36  ;;  %v5998_v38 = vld [vmem:[%s13298_s3 + $0x100] sm:$0xff] }
 0x5c6   :  { %v5438_v62 = vsel %vm3742_vm10, %v5437_v56, %v5433_v0  ;;  %v12539_v27 = vpop.permute.xlu1 %5082  ;;  %8274 = vpow2.f32 %v4745_v52 }
 0x5c7   :  { %v5014_v61 = vpop.permute.xlu0 %5013  ;;  %5274 = vperm.xlu1 %7798, %v8257_v48   ;;  %v5443_v42 = vsel %vm3749_vm11, %v5442_v24, %v5438_v62  ;;  %v5997_v62 = vld [vmem:[%s13298_s3 + $0xf8] sm:$0xff]  ;;  %8276 = vpow2.f32 %v4795_v47  ;;  %v5472_v47 = vrot.slane %v12383_v6, %v11590_v25 }
 0x5c8   :  { %v5447_v51 = vrot.slane %v5014_v61, %v11635_v19  ;;  %5205 = vperm.xlu0 %7797, %v8259_v29   ;;  %7637 = vmatpush3.bf16.msra.mxu1 %v7636_v40  ;;  %v8263_v40 = vpop.eup %8262  ;;  %v4749_v29 = vmul.f32 1.442695, %v4522_v53  ;;  %v14128_v24 = vld [vmem:[#allocation131_spill] sm:$0xff]  ;;  %v7645_v57 = vpack.c.bf16 %v5997_v62, %v5996_v28  ;;  %v4799_v53 = vmul.f32 1.442695, %v4547_v45 }
 0x5c9   :  { %7638 = vmatprep.subr.bf16.mxu1 %v8327_v39  ;;  %v4524_v61 = vsub.f32 %v14128_v24, %v12339_v1  ;;  %v6001_v6 = vld [vmem:[%s13298_s3 + $0x118] sm:$0xff] }
 0x5ca   :  { %v5448_v46 = vsel %vm3756_vm12, %v5447_v51, %v5443_v42  ;;  %v12557_v56 = vpop.permute.xlu1 %5088  ;;  %v8265_v51 = vpop.eup %8264  ;;  %8278 = vpow2.f32 %v4749_v29  ;;  %v4803_v29 = vmul.f32 1.442695, %v4549_v2 }
 0x5cb   :  { %v5020_v0 = vpop.permute.xlu0 %5019  ;;  %5280 = vperm.xlu1 %7798, %v8261_v12   ;;  %v5453_v48 = vsel %vm14127_vm14, %v5452_v63, %v5448_v46  ;;  %v8267_v9 = vpop.eup %8266  ;;  %v5999_v46 = vld [vmem:[%s13298_s3 + $0x108] sm:$0xff]  ;;  %v14132_v63 = vld [vmem:[#allocation78_spill] sm:$0xff]  ;;  %8280 = vpow2.f32 %v4799_v53  ;;  %vm14134_vm14 = vcmask 1041409   ;;  %v5482_v53 = vrot.slane %v12399_v10, %v14099_v44  ;;  %v14135_v10 = vld [vmem:[#allocation87_spill] sm:$0xff] }
 0x5cc   :  { %v5457_v58 = vrot.slane %v5020_v0, %v11666_v35  ;;  %5211 = vperm.xlu0 %7797, %v8263_v40   ;;  %7640 = vmatpush3.bf16.msra.mxu1 %v7639_v54  ;;  %v4753_v40 = vmul.f32 1.442695, %v4524_v61  ;;  %v4526_v0 = vsub.f32 %v14132_v63, %v12339_v1  ;;  %v8269_v13 = vpop.eup %8268  ;;  %v7648_v62 = vpack.c.bf16 %v5999_v46, %v5998_v38  ;;  %v6000_v61 = vld [vmem:[%s13298_s3 + $0x110] sm:$0xff]  ;;  %v6002_v46 = vld [vmem:[%s13298_s3 + $0x120] sm:$0xff] }
 0x5cd   :  { %7641 = vmatprep.subr.bf16.mxu1 %v8327_v39  ;;  %v7651_v38 = vpack.c.bf16 %v6001_v6, %v6000_v61  ;;  %v4530_v63 = vsub.f32 %v14135_v10, %v12339_v1  ;;  %v6005_v61 = vld [vmem:[%s13298_s3 + $0x138] sm:$0xff]  ;;  %v14136_v6 = vld [vmem:[#allocation89_spill] sm:$0xff] }
 0x5ce   :  { %v5458_v20 = vsel %vm14129_vm9, %v5457_v58, %v5453_v48  ;;  %v12575_v54 = vpop.permute.xlu1 %5094  ;;  %8282 = vpow2.f32 %v4753_v40  ;;  %vm14138_vm9 = vcmask 458112  }
 0x5cf   :  { %v5026_v42 = vpop.permute.xlu0 %5025  ;;  %5286 = vperm.xlu1 %7798, %v8265_v51   ;;  %v5463_v12 = vsel %vm14131_vm13, %v5462_v33, %v5458_v20  ;;  %v4757_v51 = vmul.f32 1.442695, %v4526_v0  ;;  %v14133_v20 = vld [vmem:[#allocation94_spill] sm:$0xff]  ;;  %8284 = vpow2.f32 %v4803_v29  ;;  %vm14141_vm13 = vcmask 720512  }
 0x5d0   :  { %v5467_v52 = vrot.slane %v5026_v42, %v11676_v41  ;;  %5217 = vperm.xlu0 %7797, %v8267_v9   ;;  %7643 = vmatpush3.bf16.msra.mxu1 %v7642_v31  ;;  %v8271_v31 = vpop.eup %8270  ;;  %v4528_v9 = vsub.f32 %v14133_v20, %v12339_v1 }
 0x5d1   :  { %7644 = vmatprep.subr.bf16.mxu1 %v8327_v39  ;;  %v8273_v33 = vpop.eup %8272  ;;  %8286 = vpow2.f32 %v4757_v51  ;;  %v4532_v51 = vsub.f32 %v14136_v6, %v12339_v1 }
 0x5d2   :  { %v5468_v45 = vsel %vm3784_vm0, %v5467_v52, %v5463_v12  ;;  %v12593_v58 = vpop.permute.xlu1 %5100  ;;  %v8275_v2 = vpop.eup %8274  ;;  %v4761_v40 = vmul.f32 1.442695, %v4528_v9 }
 0x5d3   :  { %v5032_v48 = vpop.permute.xlu0 %5031  ;;  %5292 = vperm.xlu1 %7798, %v8269_v13   ;;  %v5473_v24 = vsel %vm3791_vm1, %v5472_v47, %v5468_v45  ;;  %v8277_v0 = vpop.eup %8276  ;;  %v5491_v47 = vrot.slane %v12411_v50, %v11560_v59  ;;  %v4765_v50 = vmul.f32 1.442695, %v4530_v63 }
 0x5d4   :  { %v5477_v28 = vrot.slane %v5032_v48, %v11750_v32  ;;  %5223 = vperm.xlu0 %7797, %v8271_v31   ;;  %7646 = vmatpush3.bf16.msra.mxu1 %v7645_v57  ;;  %v8279_v31 = vpop.eup %8278  ;;  %8288 = vpow2.f32 %v4761_v40  ;;  %v14137_v40 = vld [vmem:[#allocation11_spill] sm:$0xff] }
 0x5d5   :  { %7647 = vmatprep.subr.bf16.mxu1 %v8327_v39  ;;  %v8281_v20 = vpop.eup %8280  ;;  %8290 = vpow2.f32 %v4765_v50  ;;  %v4534_v10 = vsub.f32 %v14137_v40, %v12339_v1  ;;  %v6008_v1 = vld [vmem:[%s13298_s3 + $0x150] sm:$0xff] }
 0x5d6   :  { %v12608_v42 = vpop.permute.xlu1 %5106  ;;  %v5478_v8 = vsel %vm3798_vm2, %v5477_v28, %v5473_v24  ;;  %v6004_v24 = vld [vmem:[%s13298_s3 + $0x130] sm:$0xff] }
 0x5d7   :  { %v12613_v52 = vsel %vm14134_vm14, %v5478_v8, %v12465_v18  ;;  %7387 = vmatmul.mubr.f32.vlgmr.msra.gmra.mrb[2].mxu1 %v5478_v8  ;;  %v5038_v57 = vpop.permute.xlu0 %5037  ;;  %5298 = vperm.xlu1 %7798, %v8273_v33   ;;  %v6003_v18 = vld [vmem:[%s13298_s3 + $0x128] sm:$0xff]  ;;  %vm14143_vm14 = vcmask 786112  }
 0x5d8   :  { %v5486_v12 = vrot.slane %v5038_v57, %v14096_v22  ;;  %5229 = vperm.xlu0 %7797, %v8275_v2   ;;  %7649 = vmatpush3.bf16.msra.mxu1 %v7648_v62  ;;  %v7654_v62 = vpack.c.bf16 %v6003_v18, %v6002_v46  ;;  %v8283_v8 = vpop.eup %8282  ;;  %v5501_v2 = vrot.slane %v12424_v3, %v11569_v11  ;;  %v6006_v46 = vld [vmem:[%s13298_s3 + $0x140] sm:$0xff]  ;;  %v6007_v18 = vld [vmem:[%s13298_s3 + $0x148] sm:$0xff]  ;;  %v4769_v3 = vmul.f32 1.442695, %v4532_v51 }
 0x5d9   :  { %7650 = vmatprep.subr.bf16.mxu1 %v8327_v39  ;;  %7421 = vmatprep.mubr.msk.f32.mxu1 %vm8328_vm3, %v8326_v14  ;;  %v8285_v63 = vpop.eup %8284 }
 0x5da   :  { %v5487_v13 = vsel %vm3700_vm4, %v5486_v12, %v5482_v53  ;;  %v12630_v45 = vpop.permute.xlu1 %5112  ;;  %v7657_v12 = vpack.c.bf16 %v6005_v61, %v6004_v24  ;;  %v6009_v24 = vld [vmem:[%s13298_s3 + $0x158] sm:$0xff]  ;;  %8292 = vpow2.f32 %v4769_v3  ;;  %v14139_v61 = vld [vmem:[#allocation97_spill] sm:$0xff] }
 0x5db   :  { %v5044_v48 = vpop.permute.xlu0 %5043  ;;  %5304 = vperm.xlu1 %7798, %v8277_v0   ;;  %v5492_v29 = vsel %vm3707_vm5, %v5491_v47, %v5487_v13  ;;  %v5511_v47 = vrot.slane %v12445_v60, %v11572_v26  ;;  %v4773_v60 = vmul.f32 1.442695, %v4534_v10  ;;  %v4536_v50 = vsub.f32 %v14139_v61, %v12429_v36 }
 0x5dc   :  { %v5496_v28 = vrot.slane %v5044_v48, %v11565_v16  ;;  %5235 = vperm.xlu0 %7797, %v8279_v31   ;;  %7652 = vmatpush3.bf16.msra.mxu1 %v7651_v38  ;;  %v8287_v31 = vpop.eup %8286 }
 0x5dd   :  { %7653 = vmatprep.subr.bf16.mxu1 %v8327_v39  ;;  %8294 = vpow2.f32 %v4773_v60 }
 0x5de   :  { %v5497_v9 = vsel %vm3714_vm6, %v5496_v28, %v5492_v29  ;;  %v12646_v33 = vpop.permute.xlu1 %5118 }
 0x5df   :  { %v5050_v57 = vpop.permute.xlu0 %5049  ;;  %5310 = vperm.xlu1 %7798, %v8281_v20   ;;  %v5502_v38 = vsel %vm3721_vm7, %v5501_v2, %v5497_v9  ;;  %v8289_v20 = vpop.eup %8288  ;;  %v5521_v9 = vrot.slane %v12462_v17, %v11579_v37  ;;  %v4777_v17 = vmul.f32 1.442695, %v4536_v50  ;;  %v5541_v50 = vrot.slane %v12503_v43, %v11585_v7 }
 0x5e0   :  { %v5506_v53 = vrot.slane %v5050_v57, %v11601_v55  ;;  %5241 = vperm.xlu0 %7797, %v8283_v8   ;;  %7655 = vmatpush3.bf16.msra.mxu1 %v7654_v62  ;;  %v7660_v62 = vpack.c.bf16 %v6007_v18, %v6006_v46  ;;  %v7663_v57 = vpack.c.bf16 %v6009_v24, %v6008_v1  ;;  %v14140_v46 = vld [vmem:[#allocation62_spill] sm:$0xff]  ;;  %v8291_v10 = vpop.eup %8290 }
 0x5e1   :  { %7656 = vmatprep.subr.bf16.mxu1 %v8327_v39  ;;  %v4538_v18 = vsub.f32 %v14140_v46, %v12429_v36  ;;  %8296 = vpow2.f32 %v4777_v17 }
 0x5e2   :  { %v5507_v0 = vsel %vm3728_vm8, %v5506_v53, %v5502_v38  ;;  %v12662_v13 = vpop.permute.xlu1 %5124  ;;  %v6011_v38 = vld [vmem:[%s13298_s3 + $0x168] sm:$0xff] }
 0x5e3   :  { %v5056_v48 = vpop.permute.xlu0 %5055  ;;  %5316 = vperm.xlu1 %7798, %v8285_v63   ;;  %v5512_v29 = vsel %vm14138_vm9, %v5511_v47, %v5507_v0  ;;  %v5531_v63 = vrot.slane %v12485_v34, %v11582_v30  ;;  %v4781_v34 = vmul.f32 1.442695, %v4538_v18  ;;  %vm14144_vm9 = vcmask 851712  }
 0x5e4   :  { %v5516_v28 = vrot.slane %v5056_v48, %v11615_v4  ;;  %5247 = vperm.xlu0 %7797, %v8287_v31   ;;  %7658 = vmatpush3.bf16.msra.mxu1 %v7657_v12  ;;  %v6010_v12 = vld [vmem:[%s13298_s3 + $0x160] sm:$0xff]  ;;  %v8293_v61 = vpop.eup %8292  ;;  %v5551_v18 = vrot.slane %v12521_v5, %v11590_v25 }
 0x5e5   :  { %7659 = vmatprep.subr.bf16.mxu1 %v8327_v39  ;;  %v7666_v47 = vpack.c.bf16 %v6011_v38, %v6010_v12  ;;  %8298 = vpow2.f32 %v4781_v34 }
 0x5e6   :  { %v5517_v6 = vsel %vm3742_vm10, %v5516_v28, %v5512_v29  ;;  %v12678_v51 = vpop.permute.xlu1 %5130  ;;  %v6012_v28 = vld [vmem:[%s13298_s3 + $0x170] sm:$0xff]  ;;  %v14142_v29 = vld [vmem:[#allocation133_spill] sm:$0xff] }
 0x5e7   :  { %v5062_v8 = vpop.permute.xlu0 %5061  ;;  %v5522_v53 = vsel %vm3749_vm11, %v5521_v9, %v5517_v6  ;;  %v4540_v1 = vsub.f32 %v14142_v29, %v12429_v36  ;;  %v8295_v46 = vpop.eup %8294 }
 0x5e8   :  { %v5526_v2 = vrot.slane %v5062_v8, %v11635_v19  ;;  %5253 = vperm.xlu0 %7797, %v8289_v20   ;;  %7661 = vmatpush3.bf16.msra.mxu1 %v7660_v62  ;;  %v6013_v62 = vld [vmem:[%s13298_s3 + $0x178] sm:$0xff] }
 0x5e9   :  { %7662 = vmatprep.subr.bf16.mxu1 %v8327_v39  ;;  %v7669_v9 = vpack.c.bf16 %v6013_v62, %v6012_v28  ;;  %v4785_v43 = vmul.f32 1.442695, %v4540_v1 }
 0x5ea   :  { %v5527_v3 = vsel %vm3756_vm12, %v5526_v2, %v5522_v53  ;;  %v12694_v40 = vpop.permute.xlu1 %5136  ;;  %v6014_v2 = vld [vmem:[%s13298_s3 + $0x180] sm:$0xff]  ;;  %v14145_v53 = vld [vmem:[#allocation53_spill] sm:$0xff] }
 0x5eb   :  { %v5068_v0 = vpop.permute.xlu0 %5067  ;;  %v5532_v48 = vsel %vm14141_vm13, %v5531_v63, %v5527_v3  ;;  %v4542_v12 = vsub.f32 %v14145_v53, %v12429_v36  ;;  %8300 = vpow2.f32 %v4785_v43  ;;  %v8297_v29 = vpop.eup %8296  ;;  %vm14147_vm13 = vcmask 1042434  }
 0x5ec   :  { %v5536_v31 = vrot.slane %v5068_v0, %v11666_v35  ;;  %5259 = vperm.xlu0 %7797, %v8291_v10   ;;  %7664 = vmatpush3.bf16.msra.mxu1 %v7663_v57  ;;  %v6015_v57 = vld [vmem:[%s13298_s3 + $0x188] sm:$0xff]  ;;  %v5570_v53 = vrot.slane %v12557_v56, %v11560_v59 }
 0x5ed   :  { %7665 = vmatprep.subr.bf16.mxu1 %v8327_v39  ;;  %v7672_v63 = vpack.c.bf16 %v6015_v57, %v6014_v2  ;;  %v4789_v5 = vmul.f32 1.442695, %v4542_v12 }
 0x5ee   :  { %v5537_v24 = vsel %vm14143_vm14, %v5536_v31, %v5532_v48  ;;  %v12710_v60 = vpop.permute.xlu1 %5142  ;;  %v6016_v31 = vld [vmem:[%s13298_s3 + $0x190] sm:$0xff]  ;;  %vm14151_vm14 = vcmask 458112  }
 0x5ef   :  { %v5074_v6 = vpop.permute.xlu0 %5073  ;;  %v5542_v8 = vsel %vm14144_vm9, %v5541_v50, %v5537_v24  ;;  %v14146_v48 = vld [vmem:[#allocation82_spill] sm:$0xff]  ;;  %8302 = vpow2.f32 %v4789_v5  ;;  %v8299_v43 = vpop.eup %8298  ;;  %vm14152_vm9 = vcmask 720512  }
 0x5f0   :  { %v5546_v20 = vrot.slane %v5074_v6, %v11676_v41  ;;  %5265 = vperm.xlu0 %7797, %v8293_v61   ;;  %7667 = vmatpush3.bf16.msra.mxu1 %v7666_v47  ;;  %v6017_v47 = vld [vmem:[%s13298_s3 + $0x198] sm:$0xff]  ;;  %v4544_v28 = vsub.f32 %v14146_v48, %v12429_v36  ;;  %v5561_v61 = vrot.slane %v12539_v27, %v14099_v44 }
 0x5f1   :  { %7668 = vmatprep.subr.bf16.mxu1 %v8327_v39  ;;  %v7675_v6 = vpack.c.bf16 %v6017_v47, %v6016_v31  ;;  %v5580_v48 = vrot.slane %v12575_v54, %v11569_v11 }
 0x5f2   :  { %v5547_v38 = vsel %vm3784_vm0, %v5546_v20, %v5542_v8  ;;  %v12726_v17 = vpop.permute.xlu1 %5148  ;;  %v6018_v20 = vld [vmem:[%s13298_s3 + $0x1a0] sm:$0xff]  ;;  %v14148_v8 = vld [vmem:[#allocation15_spill] sm:$0xff] }
 0x5f3   :  { %v5080_v3 = vpop.permute.xlu0 %5079  ;;  %v5552_v0 = vsel %vm3791_vm1, %v5551_v18, %v5547_v38  ;;  %v4546_v27 = vsub.f32 %v14148_v8, %v12429_v36 }
 0x5f4   :  { %v5556_v10 = vrot.slane %v5080_v3, %v11750_v32  ;;  %5271 = vperm.xlu0 %7797, %v8295_v46   ;;  %7670 = vmatpush3.bf16.msra.mxu1 %v7669_v9  ;;  %v4793_v9 = vmul.f32 1.442695, %v4544_v28  ;;  %v6020_v3 = vld [vmem:[%s13298_s3 + $0x1b0] sm:$0xff] }
 0x5f5   :  { %7671 = vmatprep.subr.bf16.mxu1 %v8327_v39  ;;  %v4797_v56 = vmul.f32 1.442695, %v4546_v27  ;;  %v8301_v5 = vpop.eup %8300  ;;  %v5590_v27 = vrot.slane %v12593_v58, %v11572_v26 }
 0x5f6   :  { %v12741_v62 = vpop.permute.xlu1 %5154  ;;  %v5557_v34 = vsel %vm3798_vm2, %v5556_v10, %v5552_v0  ;;  %v6021_v10 = vld [vmem:[%s13298_s3 + $0x1b8] sm:$0xff]  ;;  %8304 = vpow2.f32 %v4793_v9 }
 0x5f7   :  { %v12746_v1 = vsel %vm14147_vm13, %v5557_v34, %v12613_v52  ;;  %7422 = vmatmul.mubr.f32.vlgmr.msra.gmra.mrb[4].mxu1 %v5557_v34  ;;  %v5086_v24 = vpop.permute.xlu0 %5085  ;;  %v6019_v52 = vld [vmem:[%s13298_s3 + $0x1a8] sm:$0xff]  ;;  %8306 = vpow2.f32 %v4797_v56  ;;  %vm14153_vm13 = vcmask 786112  }
 0x5f8   :  { %v5565_v50 = vrot.slane %v5086_v24, %v14096_v22  ;;  %5277 = vperm.xlu0 %7797, %v8297_v29   ;;  %7673 = vmatpush3.bf16.msra.mxu1 %v7672_v63  ;;  %v7678_v46 = vpack.c.bf16 %v6019_v52, %v6018_v20  ;;  %v14149_v63 = vld [vmem:[#allocation106_spill] sm:$0xff]  ;;  %v7681_v29 = vpack.c.bf16 %v6021_v10, %v6020_v3 }
 0x5f9   :  { %7674 = vmatprep.subr.bf16.mxu1 %v8327_v39  ;;  %7456 = vmatprep.mubr.msk.f32.mxu1 %vm8328_vm3, %v8326_v14  ;;  %v4548_v0 = vsub.f32 %v14149_v63, %v12429_v36  ;;  %v8303_v8 = vpop.eup %8302  ;;  %v5600_v10 = vrot.slane %v12608_v42, %v11579_v37 }
 0x5fa   :  { %v5566_v2 = vsel %vm3700_vm4, %v5565_v50, %v5561_v61  ;;  %v12763_v57 = vpop.permute.xlu1 %5160  ;;  %v6022_v61 = vld [vmem:[%s13298_s3 + $0x1c0] sm:$0xff]  ;;  %v6023_v50 = vld [vmem:[%s13298_s3 + $0x1c8] sm:$0xff] }
 0x5fb   :  { %v5092_v12 = vpop.permute.xlu0 %5091  ;;  %v5571_v18 = vsel %vm3707_vm5, %v5570_v53, %v5566_v2  ;;  %v4801_v54 = vmul.f32 1.442695, %v4548_v0  ;;  %v7684_v53 = vpack.c.bf16 %v6023_v50, %v6022_v61 }
 0x5fc   :  { %v5575_v38 = vrot.slane %v5092_v12, %v11565_v16  ;;  %5283 = vperm.xlu0 %7797, %v8299_v43   ;;  %7676 = vmatpush3.bf16.msra.mxu1 %v7675_v6  ;;  %v14150_v6 = vld [vmem:[#allocation43_spill] sm:$0xff] }
 0x5fd   :  { %7677 = vmatprep.subr.bf16.mxu1 %v8327_v39  ;;  %v4550_v20 = vsub.f32 %v14150_v6, %v12429_v36  ;;  %v6024_v36 = vld [vmem:[%s13298_s3 + $0x1d0] sm:$0xff]  ;;  %8308 = vpow2.f32 %v4801_v54  ;;  %v4377_v54 = vmul.f32 1.442695, %v4376_v23 }
 0x5fe   :  { %v5576_v31 = vsel %vm3714_vm6, %v5575_v38, %v5571_v18  ;;  %v12779_v47 = vpop.permute.xlu1 %5166  ;;  %v6025_v38 = vld [vmem:[%s13298_s3 + $0x1d8] sm:$0xff] }
 0x5ff   :  { %v5098_v28 = vpop.permute.xlu0 %5097  ;;  %v5581_v24 = vsel %vm3721_vm7, %v5580_v48, %v5576_v31  ;;  %v4805_v58 = vmul.f32 1.442695, %v4550_v20  ;;  %v7687_v0 = vpack.c.bf16 %v6025_v38, %v6024_v36  ;;  %v6027_v48 = vld [vmem:[%s13298_s3 + $0x1e8] sm:$0xff]  ;;  %v6029_v20 = vld [vmem:[%s13298_s3 + $0x1f8] sm:$0xff]  ;;  %v5630_v38 = vrot.slane %v12662_v13, %v11590_v25 }
 0x600   :  { %v5585_v34 = vrot.slane %v5098_v28, %v11601_v55  ;;  %5289 = vperm.xlu0 %7797, %v8301_v5   ;;  %7679 = vmatpush3.bf16.msra.mxu1 %v7678_v46  ;;  %v8305_v3 = vpop.eup %8304  ;;  %v6026_v5 = vld [vmem:[%s13298_s3 + $0x1e0] sm:$0xff] }
 0x601   :  { %7680 = vmatprep.subr.bf16.mxu1 %v8327_v39  ;;  %8310 = vpow2.f32 %v4805_v58  ;;  %v8307_v28 = vpop.eup %8306  ;;  %v7690_v50 = vpack.c.bf16 %v6027_v48, %v6026_v5  ;;  %v6710_v5 = vld [vmem:[#allocation3] sm:$0xff]  ;;  %v5640_v48 = vrot.slane %v12678_v51, %v14099_v44 }
 0x602   :  { %v5586_v52 = vsel %vm3728_vm8, %v5585_v34, %v5581_v24  ;;  %v12795_v9 = vpop.permute.xlu1 %5172  ;;  %v5610_v34 = vrot.slane %v12630_v45, %v11582_v30  ;;  %v6028_v45 = vld [vmem:[%s13298_s3 + $0x1f0] sm:$0xff]  ;;  %8312 = vpow2.f32 %v4377_v54 }
 0x603   :  { %v5104_v2 = vpop.permute.xlu0 %5103  ;;  %v5591_v12 = vsel %vm14151_vm14, %v5590_v27, %v5586_v52  ;;  %v5620_v27 = vrot.slane %v12646_v33, %v11585_v7  ;;  %v7693_v23 = vpack.c.bf16 %v6029_v20, %v6028_v45  ;;  %vm14154_vm14 = vcmask 851712  }
 0x604   :  { %v5595_v43 = vrot.slane %v5104_v2, %v11615_v4  ;;  %5295 = vperm.xlu0 %7797, %v8303_v8   ;;  %7682 = vmatpush3.bf16.msra.mxu1 %v7681_v29 }
 0x605   :  { %7683 = vmatprep.subr.bf16.mxu1 %v8327_v39 }
 0x606   :  { %v5596_v46 = vsel %vm3742_vm10, %v5595_v43, %v5591_v12  ;;  %v12809_v18 = vpop.permute.xlu1 %5178  ;;  %v6030_v43 = vld [vmem:[%s13298_s3 + $0x200] sm:$0xff] }
 0x607   :  { %v5110_v56 = vpop.permute.xlu0 %5109  ;;  %v5601_v31 = vsel %vm3749_vm11, %v5600_v10, %v5596_v46  ;;  %v8309_v8 = vpop.eup %8308 }
 0x608   :  { %v5605_v63 = vrot.slane %v5110_v56, %v11635_v19  ;;  %5301 = vperm.xlu0 %7797, %v8305_v3   ;;  %7685 = vmatpush3.bf16.msra.mxu1 %v7684_v53  ;;  %v6031_v53 = vld [vmem:[%s13298_s3 + $0x208] sm:$0xff]  ;;  %v6032_v56 = vld [vmem:[%s13298_s3 + $0x210] sm:$0xff] }
 0x609   :  { %7686 = vmatprep.subr.bf16.mxu1 %v8327_v39  ;;  %v7696_v3 = vpack.c.bf16 %v6031_v53, %v6030_v43  ;;  %v6038_v53 = vld [vmem:[%s13298_s3 + $0x240] sm:$0xff] }
 0x60a   :  { %v5606_v42 = vsel %vm3756_vm12, %v5605_v63, %v5601_v31  ;;  %v12825_v24 = vpop.permute.xlu1 %5184  ;;  %v6033_v63 = vld [vmem:[%s13298_s3 + $0x218] sm:$0xff] }
 0x60b   :  { %v5116_v29 = vpop.permute.xlu0 %5115  ;;  %v5611_v6 = vsel %vm14152_vm9, %v5610_v34, %v5606_v42  ;;  %v8311_v36 = vpop.eup %8310  ;;  %vm14155_vm9 = vcmask 1043459   ;;  %v7699_v34 = vpack.c.bf16 %v6033_v63, %v6032_v56  ;;  %v6040_v56 = vld [vmem:[%s13298_s3 + $0x250] sm:$0xff]  ;;  %v6041_v63 = vld [vmem:[%s13298_s3 + $0x258] sm:$0xff] }
 0x60c   :  { %v5615_v61 = vrot.slane %v5116_v29, %v11666_v35  ;;  %5307 = vperm.xlu0 %7797, %v8307_v28   ;;  %7688 = vmatpush3.bf16.msra.mxu1 %v7687_v0  ;;  %v6035_v29 = vld [vmem:[%s13298_s3 + $0x228] sm:$0xff] }
 0x60d   :  { %7689 = vmatprep.subr.bf16.mxu1 %v8327_v39 }
 0x60e   :  { %v5616_v52 = vsel %vm14153_vm13, %v5615_v61, %v5611_v6  ;;  %v12851_v33 = vpop.permute.xlu1 %5190  ;;  %v12885_v61 = vpop.eup %8312  ;;  %vm14156_vm13 = vcmask 458112  }
 0x60f   :  { %v5122_v21 = vpop.permute.xlu0 %5121  ;;  %v5621_v2 = vsel %vm14154_vm14, %v5620_v27, %v5616_v52  ;;  %v6036_v52 = vld [vmem:[%s13298_s3 + $0x230] sm:$0xff]  ;;  %vm14157_vm14 = vcmask 720512  }
 0x610   :  { %v5625_v15 = vrot.slane %v5122_v21, %v11676_v41  ;;  %5313 = vperm.xlu0 %7797, %v8309_v8   ;;  %7691 = vmatpush3.bf16.msra.mxu1 %v7690_v50  ;;  %v5649_v50 = vrot.slane %v12694_v40, %v11560_v59  ;;  %v6037_v8 = vld [vmem:[%s13298_s3 + $0x238] sm:$0xff]  ;;  %v5659_v21 = vrot.slane %v12710_v60, %v11569_v11 }
 0x611   :  { %7692 = vmatprep.subr.bf16.mxu1 %v8327_v39  ;;  %v5669_v60 = vrot.slane %v12726_v17, %v11572_v26 }
 0x612   :  { %v5626_v12 = vsel %vm3784_vm0, %v5625_v15, %v5621_v2  ;;  %v12872_v42 = vpop.permute.xlu1 %5196  ;;  %v7705_v2 = vpack.c.bf16 %v6037_v8, %v6036_v52  ;;  %v6045_v52 = vld [vmem:[%s13298_s3 + $0x278] sm:$0xff] }
 0x613   :  { %v5128_v58 = vpop.permute.xlu0 %5127  ;;  %v5631_v10 = vsel %vm3791_vm1, %v5630_v38, %v5626_v12  ;;  %v6039_v12 = vld [vmem:[%s13298_s3 + $0x248] sm:$0xff] }
 0x614   :  { %v5635_v46 = vrot.slane %v5128_v58, %v11750_v32  ;;  %5319 = vperm.xlu0 %7797, %v8311_v36   ;;  %7694 = vmatpush3.bf16.msra.mxu1 %v7693_v23 }
 0x615   :  { %7695 = vmatprep.subr.bf16.mxu1 %v8327_v39 }
 0x616   :  { %v5636_v13 = vsel %vm3798_vm2, %v5635_v46, %v5631_v10  ;;  %v12899_v40 = vpop.permute.xlu1 %5202 }
 0x617   :  { %v12868_v0 = vsel %vm14155_vm9, %v5636_v13, %v12746_v1  ;;  %7457 = vmatmul.mubr.f32.vlgmr.msra.gmra.mrb[6].mxu1 %v5636_v13  ;;  %v5134_v31 = vpop.permute.xlu0 %5133  ;;  %v6034_v1 = vld [vmem:[%s13298_s3 + $0x220] sm:$0xff]  ;;  %v5679_v13 = vrot.slane %v12741_v62, %v11579_v37  ;;  %vm14158_vm9 = vcmask 786112  }
 0x618   :  { %v5644_v28 = vrot.slane %v5134_v31, %v14096_v22  ;;  %7697 = vmatpush3.bf16.msra.mxu1 %v7696_v3  ;;  %6713 = vperm.xlu0 %7797, %v6710_v5   ;;  %v7702_v45 = vpack.c.bf16 %v6035_v29, %v6034_v1  ;;  %v7708_v3 = vpack.c.bf16 %v6039_v12, %v6038_v53  ;;  %v6043_v1 = vld [vmem:[%s13298_s3 + $0x268] sm:$0xff] }
 0x619   :  { %7698 = vmatprep.subr.bf16.mxu1 %v8327_v39  ;;  %7491 = vmatprep.mubr.msk.f32.mxu1 %vm8328_vm3, %v8326_v14  ;;  %v6047_v53 = vld [vmem:[%s13298_s3 + $0x288] sm:$0xff]  ;;  %v5709_v12 = vrot.slane %v12795_v9, %v11590_v25 }
 0x61a   :  { %v5645_v51 = vsel %vm3700_vm4, %v5644_v28, %v5640_v48  ;;  %v12916_v58 = vpop.permute.xlu1 %5208  ;;  %v7711_v48 = vpack.c.bf16 %v6041_v63, %v6040_v56 }
 0x61b   :  { %v5140_v54 = vpop.permute.xlu0 %5139  ;;  %v5650_v20 = vsel %vm3707_vm5, %v5649_v50, %v5645_v51  ;;  %v5689_v51 = vrot.slane %v12763_v57, %v11582_v30  ;;  %v5699_v57 = vrot.slane %v12779_v47, %v11585_v7 }
 0x61c   :  { %v5654_v6 = vrot.slane %v5140_v54, %v11565_v16  ;;  %7700 = vmatpush3.bf16.msra.mxu1 %v7699_v34  ;;  %6665 = vperm.xlu0 %7797, %v12885_v61   ;;  %v6042_v34 = vld [vmem:[%s13298_s3 + $0x260] sm:$0xff] }
 0x61d   :  { %7701 = vmatprep.subr.bf16.mxu1 %v8327_v39 }
 0x61e   :  { %v5655_v27 = vsel %vm3714_vm6, %v5654_v6, %v5650_v20  ;;  %v12939_v29 = vpop.permute.xlu1 %5214  ;;  %v7714_v6 = vpack.c.bf16 %v6043_v1, %v6042_v34  ;;  %v6044_v20 = vld [vmem:[%s13298_s3 + $0x270] sm:$0xff] }
 0x61f   :  { %v5146_v15 = vpop.permute.xlu0 %5145  ;;  %v5660_v43 = vsel %vm3721_vm7, %v5659_v21, %v5655_v27 }
 0x620   :  { %v5664_v23 = vrot.slane %v5146_v15, %v11601_v55  ;;  %7703 = vmatpush3.bf16.msra.mxu1 %v7702_v45 }
 0x621   :  { %7704 = vmatprep.subr.bf16.mxu1 %v8327_v39 }
 0x622   :  { %v5665_v36 = vsel %vm3728_vm8, %v5664_v23, %v5660_v43  ;;  %v12956_v21 = vpop.permute.xlu1 %5220  ;;  %v7717_v23 = vpack.c.bf16 %v6045_v52, %v6044_v20  ;;  %v6046_v43 = vld [vmem:[%s13298_s3 + $0x280] sm:$0xff] }
 0x623   :  { %v5152_v38 = vpop.permute.xlu0 %5151  ;;  %v5670_v10 = vsel %vm14156_vm13, %v5669_v60, %v5665_v36  ;;  %vm14159_vm13 = vcmask 851712  }
 0x624   :  { %v5674_v46 = vrot.slane %v5152_v38, %v11615_v4  ;;  %7706 = vmatpush3.bf16.msra.mxu1 %v7705_v2  ;;  %v7720_v38 = vpack.c.bf16 %v6047_v53, %v6046_v43 }
 0x625   :  { %7707 = vmatprep.subr.bf16.mxu1 %v8327_v39 }
 0x626   :  { %v5675_v17 = vsel %vm3742_vm10, %v5674_v46, %v5670_v10  ;;  %v6049_v10 = vld [vmem:[%s13298_s3 + $0x298] sm:$0xff]  ;;  %v12979_v56 = vpop.permute.xlu1 %5226 }
 0x627   :  { %v5158_v31 = vpop.permute.xlu0 %5157  ;;  %v5680_v28 = vsel %vm3749_vm11, %v5679_v13, %v5675_v17  ;;  %v5719_v13 = vrot.slane %v12809_v18, %v14099_v44  ;;  %v5728_v18 = vrot.slane %v12825_v24, %v11560_v59 }
 0x628   :  { %v5684_v5 = vrot.slane %v5158_v31, %v11635_v19  ;;  %7709 = vmatpush3.bf16.msra.mxu1 %v7708_v3  ;;  %v6048_v3 = vld [vmem:[%s13298_s3 + $0x290] sm:$0xff] }
 0x629   :  { %7710 = vmatprep.subr.bf16.mxu1 %v8327_v39 }
 0x62a   :  { %v5685_v62 = vsel %vm3756_vm12, %v5684_v5, %v5680_v28  ;;  %v7723_v5 = vpack.c.bf16 %v6049_v10, %v6048_v3  ;;  %v13001_v1 = vpop.permute.xlu1 %5232 }
 0x62b   :  { %v5164_v50 = vpop.permute.xlu0 %5163  ;;  %v5690_v45 = vsel %vm14157_vm14, %v5689_v51, %v5685_v62  ;;  %vm14160_vm14 = vcmask 458112  }
 0x62c   :  { %v5694_v54 = vrot.slane %v5164_v50, %v11666_v35  ;;  %7712 = vmatpush3.bf16.msra.mxu1 %v7711_v48  ;;  %v6050_v48 = vld [vmem:[%s13298_s3 + $0x2a0] sm:$0xff] }
 0x62d   :  { %7713 = vmatprep.subr.bf16.mxu1 %v8327_v39 }
 0x62e   :  { %v5695_v8 = vsel %vm14158_vm9, %v5694_v54, %v5690_v45  ;;  %v6052_v54 = vld [vmem:[%s13298_s3 + $0x2b0] sm:$0xff]  ;;  %v5738_v45 = vrot.slane %v12851_v33, %v11569_v11  ;;  %vm14161_vm9 = vcmask 720512  }
 0x62f   :  { %v5170_v27 = vpop.permute.xlu0 %5169  ;;  %v5700_v2 = vsel %vm14159_vm13, %v5699_v57, %v5695_v8  ;;  %vm14162_vm13 = vcmask 786112  }
 0x630   :  { %v5704_v15 = vrot.slane %v5170_v27, %v11676_v41  ;;  %7715 = vmatpush3.bf16.msra.mxu1 %v7714_v6  ;;  %v6053_v6 = vld [vmem:[%s13298_s3 + $0x2b8] sm:$0xff]  ;;  %v6054_v27 = vld [vmem:[%s13298_s3 + $0x2c0] sm:$0xff] }
 0x631   :  { %7716 = vmatprep.subr.bf16.mxu1 %v8327_v39  ;;  %v7729_v8 = vpack.c.bf16 %v6053_v6, %v6052_v54 }
 0x632   :  { %v5705_v47 = vsel %vm3784_vm0, %v5704_v15, %v5700_v2  ;;  %v6055_v15 = vld [vmem:[%s13298_s3 + $0x2c8] sm:$0xff]  ;;  %v5748_v2 = vrot.slane %v12872_v42, %v11572_v26  ;;  %v5758_v42 = vrot.slane %v12899_v40, %v11579_v37 }
 0x633   :  { %v5176_v36 = vpop.permute.xlu0 %5175  ;;  %v5710_v46 = vsel %vm3791_vm1, %v5709_v12, %v5705_v47  ;;  %v7732_v47 = vpack.c.bf16 %v6055_v15, %v6054_v27 }
 0x634   :  { %v5714_v60 = vrot.slane %v5176_v36, %v11750_v32  ;;  %7718 = vmatpush3.bf16.msra.mxu1 %v7717_v23  ;;  %v13024_v23 = vpop.permute.xlu1 %5238  ;;  %v6056_v36 = vld [vmem:[%s13298_s3 + $0x2d0] sm:$0xff] }
 0x635   :  { %7719 = vmatprep.subr.bf16.mxu1 %v8327_v39 }
 0x636   :  { %v5715_v9 = vsel %vm3798_vm2, %v5714_v60, %v5710_v46  ;;  %v6057_v60 = vld [vmem:[%s13298_s3 + $0x2d8] sm:$0xff] }
 0x637   :  { %v12984_v63 = vsel %vm4359_vm15, %v5715_v9, %v12868_v0  ;;  %7492 = vmatmul.mubr.f32.vlgmr.msra.gmra.mrb[8].mxu1 %v5715_v9  ;;  %v5182_v17 = vpop.permute.xlu0 %5181  ;;  %v6051_v0 = vld [vmem:[%s13298_s3 + $0x2a8] sm:$0xff]  ;;  %v7735_v9 = vpack.c.bf16 %v6057_v60, %v6056_v36 }
 0x638   :  { %v5723_v31 = vrot.slane %v5182_v17, %v14096_v22  ;;  %7721 = vmatpush3.bf16.msra.mxu1 %v7720_v38  ;;  %7526 = vmatprep.mubr.msk.f32.mxu1 %vm8328_vm3, %v8326_v14  ;;  %v7726_v51 = vpack.c.bf16 %v6051_v0, %v6050_v48  ;;  %v13041_v3 = vpop.permute.xlu1 %5244 }
 0x639   :  { %7722 = vmatprep.subr.bf16.mxu1 %v8327_v39 }
 0x63a   :  { %v5724_v28 = vsel %vm3700_vm4, %v5723_v31, %v5719_v13  ;;  %v6058_v13 = vld [vmem:[%s13298_s3 + $0x2e0] sm:$0xff]  ;;  %v6059_v31 = vld [vmem:[%s13298_s3 + $0x2e8] sm:$0xff] }
 0x63b   :  { %v5188_v34 = vpop.permute.xlu0 %5187  ;;  %v5729_v50 = vsel %vm3707_vm5, %v5728_v18, %v5724_v28  ;;  %v7738_v28 = vpack.c.bf16 %v6059_v31, %v6058_v13 }
 0x63c   :  { %v5733_v62 = vrot.slane %v5188_v34, %v11565_v16  ;;  %7724 = vmatpush3.bf16.msra.mxu1 %v7723_v5  ;;  %v5768_v5 = vrot.slane %v12916_v58, %v11582_v30  ;;  %v6060_v34 = vld [vmem:[%s13298_s3 + $0x2f0] sm:$0xff] }
 0x63d   :  { %7725 = vmatprep.subr.bf16.mxu1 %v8327_v39 }
 0x63e   :  { %v5734_v24 = vsel %vm3714_vm6, %v5733_v62, %v5729_v50  ;;  %v6061_v62 = vld [vmem:[%s13298_s3 + $0x2f8] sm:$0xff]  ;;  %v5778_v50 = vrot.slane %v12939_v29, %v11585_v7  ;;  %v5788_v29 = vrot.slane %v12956_v21, %v11590_v25 }
 0x63f   :  { %v5194_v20 = vpop.permute.xlu0 %5193  ;;  %v5739_v57 = vsel %vm3721_vm7, %v5738_v45, %v5734_v24  ;;  %v7741_v24 = vpack.c.bf16 %v6061_v62, %v6060_v34 }
 0x640   :  { %v5743_v52 = vrot.slane %v5194_v20, %v11601_v55  ;;  %7727 = vmatpush3.bf16.msra.mxu1 %v7726_v51  ;;  %v13064_v51 = vpop.permute.xlu1 %5250  ;;  %v6062_v20 = vld [vmem:[%s13298_s3 + $0x300] sm:$0xff] }
 0x641   :  { %7728 = vmatprep.subr.bf16.mxu1 %v8327_v39 }
 0x642   :  { %v5744_v33 = vsel %vm3728_vm8, %v5743_v52, %v5739_v57  ;;  %v6063_v52 = vld [vmem:[%s13298_s3 + $0x308] sm:$0xff] }
 0x643   :  { %v5200_v43 = vpop.permute.xlu0 %5199  ;;  %v5749_v12 = vsel %vm14160_vm14, %v5748_v2, %v5744_v33  ;;  %vm14163_vm14 = vcmask 851712   ;;  %v7744_v33 = vpack.c.bf16 %v6063_v52, %v6062_v20  ;;  %v6072_v52 = vld [vmem:[%s13298_s3 + $0x350] sm:$0xff] }
 0x644   :  { %v5753_v53 = vrot.slane %v5200_v43, %v11615_v4  ;;  %7730 = vmatpush3.bf16.msra.mxu1 %v7729_v8  ;;  %v13081_v27 = vpop.permute.xlu1 %5256  ;;  %v6064_v43 = vld [vmem:[%s13298_s3 + $0x310] sm:$0xff] }
 0x645   :  { %7731 = vmatprep.subr.bf16.mxu1 %v8327_v39 }
 0x646   :  { %v5754_v38 = vsel %vm3742_vm10, %v5753_v53, %v5749_v12  ;;  %v6065_v53 = vld [vmem:[%s13298_s3 + $0x318] sm:$0xff]  ;;  %v5798_v12 = vrot.slane %v12979_v56, %v14099_v44 }
 0x647   :  { %v5206_v46 = vpop.permute.xlu0 %5205  ;;  %v5759_v17 = vsel %vm3749_vm11, %v5758_v42, %v5754_v38  ;;  %v7747_v60 = vpack.c.bf16 %v6065_v53, %v6064_v43  ;;  %v6066_v38 = vld [vmem:[%s13298_s3 + $0x320] sm:$0xff]  ;;  %v6067_v42 = vld [vmem:[%s13298_s3 + $0x328] sm:$0xff] }
 0x648   :  { %v5763_v10 = vrot.slane %v5206_v46, %v11635_v19  ;;  %7733 = vmatpush3.bf16.msra.mxu1 %v7732_v47  ;;  %v5263_v46 = vpop.permute.xlu1 %5262  ;;  %v7750_v13 = vpack.c.bf16 %v6067_v42, %v6066_v38  ;;  %v6074_v53 = vld [vmem:[%s13298_s3 + $0x360] sm:$0xff] }
 0x649   :  { %7734 = vmatprep.subr.bf16.mxu1 %v8327_v39 }
 0x64a   :  { %v5764_v40 = vsel %vm3756_vm12, %v5763_v10, %v5759_v17  ;;  %v5807_v10 = vrot.slane %v13001_v1, %v11560_v59  ;;  %v5817_v1 = vrot.slane %v13024_v23, %v11569_v11 }
 0x64b   :  { %v5212_v48 = vpop.permute.xlu0 %5211  ;;  %v5769_v18 = vsel %vm14161_vm9, %v5768_v5, %v5764_v40  ;;  %v6068_v40 = vld [vmem:[%s13298_s3 + $0x330] sm:$0xff]  ;;  %v6069_v5 = vld [vmem:[%s13298_s3 + $0x338] sm:$0xff]  ;;  %vm14164_vm9 = vcmask 458112  }
 0x64c   :  { %v5773_v0 = vrot.slane %v5212_v48, %v11666_v35  ;;  %7736 = vmatpush3.bf16.msra.mxu1 %v7735_v9  ;;  %v7753_v34 = vpack.c.bf16 %v6069_v5, %v6068_v40 }
 0x64d   :  { %7737 = vmatprep.subr.bf16.mxu1 %v8327_v39 }
 0x64e   :  { %v5774_v58 = vsel %vm14162_vm13, %v5773_v0, %v5769_v18  ;;  %vm14165_vm13 = vcmask 720512  }
 0x64f   :  { %v5218_v54 = vpop.permute.xlu0 %5217  ;;  %v5779_v45 = vsel %vm14163_vm14, %v5778_v50, %v5774_v58  ;;  %v6070_v58 = vld [vmem:[%s13298_s3 + $0x340] sm:$0xff]  ;;  %v6071_v50 = vld [vmem:[%s13298_s3 + $0x348] sm:$0xff]  ;;  %vm14166_vm14 = vcmask 786112  }
 0x650   :  { %v5783_v6 = vrot.slane %v5218_v54, %v11676_v41  ;;  %7739 = vmatpush3.bf16.msra.mxu1 %v7738_v28  ;;  %v5269_v28 = vpop.permute.xlu1 %5268  ;;  %v5827_v54 = vrot.slane %v13041_v3, %v11572_v26 }
 0x651   :  { %7740 = vmatprep.subr.bf16.mxu1 %v8327_v39 }
 0x652   :  { %v5784_v8 = vsel %vm3784_vm0, %v5783_v6, %v5779_v45  ;;  %v7756_v45 = vpack.c.bf16 %v6071_v50, %v6070_v58 }
 0x653   :  { %v5224_v57 = vpop.permute.xlu0 %5223  ;;  %v5789_v2 = vsel %vm3791_vm1, %v5788_v29, %v5784_v8  ;;  %v6073_v8 = vld [vmem:[%s13298_s3 + $0x358] sm:$0xff] }
 0x654   :  { %v5793_v15 = vrot.slane %v5224_v57, %v11750_v32  ;;  %7742 = vmatpush3.bf16.msra.mxu1 %v7741_v24  ;;  %v5275_v29 = vpop.permute.xlu1 %5274  ;;  %v5837_v57 = vrot.slane %v13064_v51, %v11579_v37  ;;  %v5847_v51 = vrot.slane %v13081_v27, %v11582_v30 }
 0x655   :  { %7743 = vmatprep.subr.bf16.mxu1 %v8327_v39 }
 0x656   :  { %v13093_v21 = vsel %vm3798_vm2, %v5793_v15, %v5789_v2  ;;  %v7759_v2 = vpack.c.bf16 %v6073_v8, %v6072_v52  ;;  %v6082_v8 = vld [vmem:[%s13298_s3 + $0x3a0] sm:$0xff] }
 0x657   :  { %7527 = vmatmul.mubr.f32.vlgmr.msra.gmra.mrb[10].mxu1 %v13093_v21  ;;  %v5230_v47 = vpop.permute.xlu0 %5229 }
 0x658   :  { %v5802_v36 = vrot.slane %v5230_v47, %v14096_v22  ;;  %7745 = vmatpush3.bf16.msra.mxu1 %v7744_v33  ;;  %7561 = vmatprep.mubr.msk.f32.mxu1 %vm8328_vm3, %v8326_v14  ;;  %v6075_v47 = vld [vmem:[%s13298_s3 + $0x368] sm:$0xff] }
 0x659   :  { %7746 = vmatprep.subr.bf16.mxu1 %v8327_v39  ;;  %v7762_v42 = vpack.c.bf16 %v6075_v47, %v6074_v53 }
 0x65a   :  { %v5803_v56 = vsel %vm3700_vm4, %v5802_v36, %v5798_v12 }
 0x65b   :  { %v5236_v9 = vpop.permute.xlu0 %5235  ;;  %v5808_v31 = vsel %vm3707_vm5, %v5807_v10, %v5803_v56  ;;  %v6076_v10 = vld [vmem:[%s13298_s3 + $0x370] sm:$0xff] }
 0x65c   :  { %v5812_v17 = vrot.slane %v5236_v9, %v11565_v16  ;;  %7748 = vmatpush3.bf16.msra.mxu1 %v7747_v60  ;;  %v5281_v60 = vpop.permute.xlu1 %5280  ;;  %v6077_v9 = vld [vmem:[%s13298_s3 + $0x378] sm:$0xff] }
 0x65d   :  { %7749 = vmatprep.subr.bf16.mxu1 %v8327_v39  ;;  %v7765_v40 = vpack.c.bf16 %v6077_v9, %v6076_v10 }
 0x65e   :  { %v5813_v48 = vsel %vm3714_vm6, %v5812_v17, %v5808_v31  ;;  %v5857_v17 = vrot.slane %v5263_v46, %v11585_v7 }
 0x65f   :  { %v5242_v0 = vpop.permute.xlu0 %5241  ;;  %v5818_v62 = vsel %vm3721_vm7, %v5817_v1, %v5813_v48  ;;  %v6078_v48 = vld [vmem:[%s13298_s3 + $0x380] sm:$0xff]  ;;  %v6079_v1 = vld [vmem:[%s13298_s3 + $0x388] sm:$0xff] }
 0x660   :  { %v5822_v18 = vrot.slane %v5242_v0, %v11601_v55  ;;  %7751 = vmatpush3.bf16.msra.mxu1 %v7750_v13  ;;  %v5287_v0 = vpop.permute.xlu1 %5286  ;;  %v7768_v58 = vpack.c.bf16 %v6079_v1, %v6078_v48  ;;  %v6090_v48 = vld [vmem:[%s13298_s3 + $0x3e0] sm:$0xff]  ;;  %v6091_v1 = vld [vmem:[%s13298_s3 + $0x3e8] sm:$0xff] }
 0x661   :  { %7752 = vmatprep.subr.bf16.mxu1 %v8327_v39  ;;  %v5896_v53 = vrot.slane %v5287_v0, %v11569_v11 }
 0x662   :  { %v5823_v23 = vsel %vm3728_vm8, %v5822_v18, %v5818_v62  ;;  %v5867_v18 = vrot.slane %v5269_v28, %v11590_v25 }
 0x663   :  { %v5248_v6 = vpop.permute.xlu0 %5247  ;;  %v5828_v20 = vsel %vm14164_vm9, %v5827_v54, %v5823_v23  ;;  %vm14167_vm9 = vcmask 851712   ;;  %v6080_v23 = vld [vmem:[%s13298_s3 + $0x390] sm:$0xff]  ;;  %v6081_v54 = vld [vmem:[%s13298_s3 + $0x398] sm:$0xff] }
 0x664   :  { %v5832_v24 = vrot.slane %v5248_v6, %v11615_v4  ;;  %7754 = vmatpush3.bf16.msra.mxu1 %v7753_v34  ;;  %v7771_v52 = vpack.c.bf16 %v6081_v54, %v6080_v23  ;;  %v6092_v23 = vld [vmem:[%s13298_s3 + $0x3f0] sm:$0xff]  ;;  %v6093_v54 = vld [vmem:[%s13298_s3 + $0x3f8] sm:$0xff] }
 0x665   :  { %7755 = vmatprep.subr.bf16.mxu1 %v8327_v39 }
 0x666   :  { %v5833_v3 = vsel %vm3742_vm10, %v5832_v24, %v5828_v20  ;;  %v5877_v24 = vrot.slane %v5275_v29, %v14099_v44  ;;  %v5886_v29 = vrot.slane %v5281_v60, %v11560_v59  ;;  %v6087_v60 = vld [vmem:[%s13298_s3 + $0x3c8] sm:$0xff] }
 0x667   :  { %v5254_v15 = vpop.permute.xlu0 %5253  ;;  %v5838_v43 = vsel %vm3749_vm11, %v5837_v57, %v5833_v3  ;;  %v6083_v3 = vld [vmem:[%s13298_s3 + $0x3a8] sm:$0xff] }
 0x668   :  { %v5842_v33 = vrot.slane %v5254_v15, %v11635_v19  ;;  %7757 = vmatpush3.bf16.msra.mxu1 %v7756_v45  ;;  %v5293_v45 = vpop.permute.xlu1 %5292  ;;  %v7774_v15 = vpack.c.bf16 %v6083_v3, %v6082_v8 }
 0x669   :  { %7758 = vmatprep.subr.bf16.mxu1 %v8327_v39  ;;  %v5906_v11 = vrot.slane %v5293_v45, %v11572_v26 }
 0x66a   :  { %v5843_v12 = vsel %vm3756_vm12, %v5842_v33, %v5838_v43  ;;  %v6084_v33 = vld [vmem:[%s13298_s3 + $0x3b0] sm:$0xff] }
 0x66b   :  { %v5260_v36 = vpop.permute.xlu0 %5259  ;;  %v5848_v56 = vsel %vm14165_vm13, %v5847_v51, %v5843_v12 }
 0x66c   :  { %v5852_v38 = vrot.slane %v5260_v36, %v11666_v35  ;;  %7760 = vmatpush3.bf16.msra.mxu1 %v7759_v2  ;;  %v6085_v2 = vld [vmem:[%s13298_s3 + $0x3b8] sm:$0xff]  ;;  %v5299_v43 = vpop.permute.xlu1 %5298  ;;  %v6086_v36 = vld [vmem:[%s13298_s3 + $0x3c0] sm:$0xff] }
 0x66d   :  { %7761 = vmatprep.subr.bf16.mxu1 %v8327_v39  ;;  %v7777_v12 = vpack.c.bf16 %v6085_v2, %v6084_v33  ;;  %v7780_v10 = vpack.c.bf16 %v6087_v60, %v6086_v36  ;;  %v4807_v36 = vld [vmem:[#allocation4] sm:$0xff] }
 0x66e   :  { %v5853_v27 = vsel %vm14166_vm14, %v5852_v38, %v5848_v56  ;;  %v4808_v60 = vmul.f32 %v12885_v61, %v4807_v36 }
 0x66f   :  { %v5266_v13 = vpop.permute.xlu0 %5265  ;;  %v5858_v5 = vsel %vm14167_vm9, %v5857_v17, %v5853_v27  ;;  %v6088_v27 = vld [vmem:[%s13298_s3 + $0x3d0] sm:$0xff]  ;;  %v6089_v17 = vld [vmem:[%s13298_s3 + $0x3d8] sm:$0xff] }
 0x670   :  { %v5862_v31 = vrot.slane %v5266_v13, %v11676_v41  ;;  %7763 = vmatpush3.bf16.msra.mxu1 %v7762_v42  ;;  %v5916_v13 = vrot.slane %v5299_v43, %v11579_v37 }
 0x671   :  { %7764 = vmatprep.subr.bf16.mxu1 %v8327_v39 }
 0x672   :  { %v5863_v46 = vsel %vm3784_vm0, %v5862_v31, %v5858_v5 }
 0x673   :  { %v5272_v34 = vpop.permute.xlu0 %5271  ;;  %v5868_v50 = vsel %vm3791_vm1, %v5867_v18, %v5863_v46 }
 0x674   :  { %v5872_v62 = vrot.slane %v5272_v34, %v11750_v32  ;;  %7766 = vmatpush3.bf16.msra.mxu1 %v7765_v40  ;;  %v7783_v40 = vpack.c.bf16 %v6089_v17, %v6088_v27 }
 0x675   :  { %7767 = vmatprep.subr.bf16.mxu1 %v8327_v39 }
 0x676   :  { %v13191_v6 = vsel %vm3798_vm2, %v5872_v62, %v5868_v50 }
 0x677   :  { %7562 = vmatmul.mubr.f32.vlgmr.msra.gmra.mrb[12].mxu1 %v13191_v6  ;;  %v5278_v28 = vpop.permute.xlu0 %5277 }
 0x678   :  { %v5881_v20 = vrot.slane %v5278_v28, %v14096_v22  ;;  %7769 = vmatpush3.bf16.msra.mxu1 %v7768_v58  ;;  %7596 = vmatprep.mubr.msk.f32.mxu1 %vm8328_vm3, %v8326_v14  ;;  %v7786_v58 = vpack.c.bf16 %v6091_v1, %v6090_v48 }
 0x679   :  { %7770 = vmatprep.subr.bf16.mxu1 %v8327_v39 }
 0x67a   :  { %v5882_v44 = vsel %vm3700_vm4, %v5881_v20, %v5877_v24  ;;  %vm14168_vm4 = vcmask 458112   ;;  %v7789_v20 = vpack.c.bf16 %v6093_v54, %v6092_v23 }
 0x67b   :  { %v5284_v22 = vpop.permute.xlu0 %5283  ;;  %v5887_v14 = vsel %vm3707_vm5, %v5886_v29, %v5882_v44  ;;  %vm14169_vm5 = vmmov %vm14165_vm13 }
 0x67c   :  { %v5891_v57 = vrot.slane %v5284_v22, %v11565_v16  ;;  %7772 = vmatpush3.bf16.msra.mxu1 %v7771_v52 }
 0x67d   :  { %7773 = vmatprep.subr.bf16.mxu1 %v8327_v39 }
 0x67e   :  { %v5892_v59 = vsel %vm3714_vm6, %v5891_v57, %v5887_v14  ;;  %vm14170_vm6 = vmmov %vm14166_vm14 }
 0x67f   :  { %v5290_v16 = vpop.permute.xlu0 %5289  ;;  %v5897_v51 = vsel %vm3721_vm7, %v5896_v53, %v5892_v59  ;;  %vm14171_vm7 = vmmov %vm14167_vm9 }
 0x680   :  { %v5901_v47 = vrot.slane %v5290_v16, %v11601_v55  ;;  %7775 = vmatpush3.bf16.msra.mxu1 %v7774_v15  ;;  %v5305_v55 = vpop.permute.xlu1 %5304 }
 0x681   :  { %7776 = vmatprep.subr.bf16.mxu1 %v8327_v39 }
 0x682   :  { %v5902_v38 = vsel %vm3728_vm8, %v5901_v47, %v5897_v51  ;;  %vm14172_vm8 = vcmask 1045509  }
 0x683   :  { %v5296_v42 = vpop.permute.xlu0 %5295  ;;  %v5907_v9 = vsel %vm14168_vm4, %v5906_v11, %v5902_v38  ;;  %vm14179_vm3 = vmmov %vm14172_vm8 }
 0x684   :  { %v5911_v56 = vrot.slane %v5296_v42, %v11615_v4  ;;  %7778 = vmatpush3.bf16.msra.mxu1 %v7777_v12  ;;  %v5311_v0 = vpop.permute.xlu1 %5310 }
 0x685   :  { %7779 = vmatprep.subr.bf16.mxu1 %v8327_v39  ;;  %v5936_v28 = vrot.slane %v5311_v0, %v11585_v7  ;;  %v5957_v7 = vsel %vm14172_vm8, %v13093_v21, %v12984_v63 }
 0x686   :  { %v5912_v26 = vsel %vm3742_vm10, %v5911_v56, %v5907_v9  ;;  %vm14173_vm10 = vcmask 1046534  }
 0x687   :  { %v5302_v31 = vpop.permute.xlu0 %5301  ;;  %v5917_v5 = vsel %vm3749_vm11, %v5916_v13, %v5912_v26  ;;  %v5958_v57 = vsel %vm14173_vm10, %v13191_v6, %v5957_v7  ;;  %vm14174_vm11 = vcmask 1047559  }
 0x688   :  { %v5921_v4 = vrot.slane %v5302_v31, %v11635_v19  ;;  %7781 = vmatpush3.bf16.msra.mxu1 %v7780_v10  ;;  %v5926_v19 = vrot.slane %v5305_v55, %v11582_v30  ;;  %vm14181_vm13 = vmmov %vm14174_vm11 }
 0x689   :  { %7782 = vmatprep.subr.bf16.mxu1 %v8327_v39 }
 0x68a   :  { %v5922_v37 = vsel %vm3756_vm12, %v5921_v4, %v5917_v5  ;;  %v6161_v46 = vpop.f32.mrb[0].mxu1  ;;  %vm14175_vm12 = vcmask 1041409  }
 0x68b   :  { %v7353_v18 = vpop.f32.mrb[1].mxu1  ;;  %v5308_v34 = vpop.permute.xlu0 %5307  ;;  %v5927_v50 = vsel %vm14169_vm5, %v5926_v19, %v5922_v37 }
 0x68c   :  { %v5931_v62 = vrot.slane %v5308_v34, %v11666_v35  ;;  %7784 = vmatpush3.bf16.msra.mxu1 %v7783_v40  ;;  %v5317_v35 = vpop.permute.xlu1 %5316 }
 0x68d   :  { %7785 = vmatprep.subr.bf16.mxu1 %v8327_v39  ;;  %v5946_v3 = vrot.slane %v5317_v35, %v11590_v25 }
 0x68e   :  { %v5932_v30 = vsel %vm14170_vm6, %v5931_v62, %v5927_v50 }
 0x68f   :  { %v5314_v24 = vpop.permute.xlu0 %5313  ;;  %v5937_v52 = vsel %vm14171_vm7, %v5936_v28, %v5932_v30 }
 0x690   :  { %v5941_v45 = vrot.slane %v5314_v24, %v11676_v41  ;;  %7787 = vmatpush3.bf16.msra.mxu1 %v7786_v58 }
 0x691   :  { %7788 = vmatprep.subr.bf16.mxu1 %v8327_v39 }
 0x692   :  { %v5942_v8 = vsel %vm3784_vm0, %v5941_v45, %v5937_v52  ;;  %vm14176_vm0 = vcmask 1042434  }
 0x693   :  { %v5320_v44 = vpop.permute.xlu0 %5319  ;;  %v5947_v41 = vsel %vm3791_vm1, %v5946_v3, %v5942_v8  ;;  %vm14177_vm1 = vcmask 1043459  }
 0x694   :  { %v5951_v29 = vrot.slane %v5320_v44, %v11750_v32  ;;  %7790 = vmatpush3.bf16.msra.mxu1 %v7789_v20 }
 0x696   :  { %v5952_v22 = vsel %vm3798_vm2, %v5951_v29, %v5947_v41  ;;  %vm14178_vm2 = vcmask 7168  }
 0x697   :  { %7597 = vmatmul.mubr.f32.vlgmr.msra.gmra.mrb[14].mxu1 %v5952_v22  ;;  %v5959_v39 = vsel %vm14174_vm11, %v5952_v22, %v5958_v57  ;;  %v6714_v48 = vpop.permute.xlu0 %6713 }
 0x698   :  { %5961 = vadd.xlane.f32.xlu1 %v5959_v39  ;;  %v6716_v1 = vsub.f32 %v12047_v49, %v6714_v48 }
 0x69a   :  { %v6717_v0 = vmul.f32 1.442695, %v6716_v1 }
 0x69b   :  { %v6666_v37 = vpop.permute.xlu0 %6665 }
 0x6aa   :  { %v6232_v25 = vpop.f32.mrb[2].mxu1 }
 0x6ab   :  { %v6677_v15 = vrot.slane %v6232_v25, 7  ;;  %v7388_v14 = vpop.f32.mrb[3].mxu1 }
 0x6ad   :  { %v6678_v32 = vsel %vm14175_vm12, %v6677_v15, %v6161_v46  ;;  %v6668_v46 = vmul.f32 0.0, %v6666_v37 }
 0x6ca   :  { %v6303_v33 = vpop.f32.mrb[4].mxu1 }
 0x6cb   :  { %v6679_v2 = vrot.slane %v6303_v33, 6  ;;  %v7423_v43 = vpop.f32.mrb[5].mxu1 }
 0x6cd   :  { %v6680_v63 = vsel %vm14176_vm0, %v6679_v2, %v6678_v32 }
 0x6ea   :  { %v6374_v21 = vpop.f32.mrb[6].mxu1 }
 0x6eb   :  { %v6681_v59 = vrot.slane %v6374_v21, 5  ;;  %v7458_v53 = vpop.f32.mrb[7].mxu1 }
 0x6ed   :  { %v6682_v16 = vsel %vm14177_vm1, %v6681_v59, %v6680_v63 }
 0x70a   :  { %v6445_v6 = vpop.f32.mrb[8].mxu1 }
 0x70b   :  { %v6683_v47 = vrot.slane %v6445_v6, 4  ;;  %v7493_v12 = vpop.f32.mrb[9].mxu1 }
 0x70d   :  { %v6684_v51 = vsel %vm4359_vm15, %v6683_v47, %v6682_v16  ;;  %vm14180_vm15 = vmmov %vm14173_vm10 }
 0x725   :  { %v5962_v38 = vpop.xlane.xlu1 %5961 }
 0x726   :  { %v5963_v11 = vadd.f32 %v5962_v38, %v4808_v60 }
 0x728   :  { %5965 = vst.msk [vmem:[#allocation4] sm:$0xff] %vm14178_vm2, %v5963_v11 }
 0x72a   :  { %v6516_v42 = vpop.f32.mrb[10].mxu1 }
 0x72b   :  { %v6685_v55 = vrot.slane %v6516_v42, 3  ;;  %v7528_v56 = vpop.f32.mrb[11].mxu1 }
 0x72d   :  { %v6686_v10 = vsel %vm14179_vm3, %v6685_v55, %v6684_v51 }
 0x72f   :  { %v6698_v9 = vld [vmem:[#allocation4] sm:$0xff] }
 0x730   :  { %8314 = vrcp.f32 %v6698_v9 }
 0x731   :  { %8316 = vpow2.f32 %v6717_v0 }
 0x73a   :  { %v8315_v27 = vpop.eup %8314 }
 0x73b   :  { %6704 = vperm.xlu0 %7797, %v8315_v27   ;;  %v8317_v18 = vpop.eup %8316 }
 0x74a   :  { %v6587_v17 = vpop.f32.mrb[12].mxu1 }
 0x74b   :  { %v6687_v26 = vrot.slane %v6587_v17, 2  ;;  %v7563_v13 = vpop.f32.mrb[13].mxu1 }
 0x74d   :  { %v6688_v31 = vsel %vm14180_vm15, %v6687_v26, %v6686_v10 }
 0x76a   :  { %v6658_v4 = vpop.f32.mrb[14].mxu1 }
 0x76b   :  { %v6689_v61 = vrot.slane %v6658_v4, 1  ;;  %v7598_v40 = vpop.f32.mrb[15].mxu1 }
 0x76d   :  { %v6690_v5 = vsel %vm14181_vm13, %v6689_v61, %v6688_v31 }
 0x76e   :  { %v6692_v19 = vadd.f32 %v6690_v5, %v6668_v46 }
 0x7ba   :  { %v6705_v34 = vpop.permute.xlu0 %6704 }
 0x7bb   :  { %v6707_v62 = vmul.f32 %v6705_v34, %v6692_v19  ;;  %v6719_v58 = vmul.f32 %v8317_v18, %v6705_v34 }
 0x7bd   :  { %6708 = vst [vmem:[%s13299_s7] sm:$0xff] %v6707_v62  ;;  %6720 = vst [vmem:[%s13300_s8] sm:$0xff] %v6719_v58 }

</bundles_post_ra>
